<compile_context>
chip_gen: v5e
topology: v5e:2x2
jax: 0.10.0
libtpu: 0.0.40
codegen_flags: <defaults>
</compile_context>

<pallas_src>
import jax
import jax.numpy as jnp
from jax.experimental import pallas as pl
from jax.experimental.pallas import tpu as pltpu

BN_EPS = 1e-5


# ----------------------------------------------------------------------------
# Fused "stage" kernel: a chain of convs, each executed as one big-K matmul,
# with folded bias/BN scale-shift, optional residual add, and ReLU.
#   layer 0   : "valid" kh x kw conv directly on the kernel input
#               (stride-2 4x4 convs arrive here as 2x2 convs on s2d input).
#   layers 1+ : 3x3 same-padded convs on the previous layer's output
#               (padding via a zero-initialized VMEM scratch).
# ----------------------------------------------------------------------------
def _make_stage_kernel(layers, n, ho, wo):
    nl = len(layers)
    hw = ho * wo

    def kernel(*refs):
        x_ref = refs[0]
        out_ref = refs[1 + 3 * nl]
        pad_ref = refs[2 + 3 * nl]          # (n, ho+2, wo+2, c_mid) bf16
        col_ref = refs[3 + 3 * nl]          # (n*hw, k_max)          bf16

        # Zero the padded-activation scratch once; only its interior is
        # rewritten per layer, so the 1-pixel border stays zero.
        pad_ref[...] = jnp.zeros_like(pad_ref)

        h = None           # current activation, (n*hw, cout) f32
        identity = None    # layer-0 output (f32), used by the residual add

        for li, spec in enumerate(layers):
            kh, kw, cin, cout = spec["kh"], spec["kw"], spec["cin"], spec["cout"]
            k = kh * kw * cin
            w_ref = refs[1 + 3 * li]
            scale_ref = refs[2 + 3 * li]
            shift_ref = refs[3 + 3 * li]

            # --- im2col into the VMEM column scratch (static tap unroll) ---
            if li == 0:
                for b in range(n):
                    src = x_ref[b]                      # (ho+kh-1, wo+kw-1, cin)
                    for i in range(kh):
                        for j in range(kw):
                            t = i * kw + j
                            col_ref[b * hw:(b + 1) * hw,
                                    t * cin:(t + 1) * cin] = (
                                src[i:i + ho, j:j + wo, :].reshape(hw, cin))
            else:
                # write previous activation (downcast to bf16) into the padded
                # scratch, then build the 3x3 im2col from it.
                for b in range(n):
                    pad_ref[b, 1:ho + 1, 1:wo + 1, :] = (
                        h[b * hw:(b + 1) * hw, :]
                        .reshape(ho, wo, cin).astype(pad_ref.dtype))
                for b in range(n):
                    src = pad_ref[b]                    # (ho+2, wo+2, cin)
                    for i in range(kh):
                        for j in range(kw):
                            t = i * kw + j
                            col_ref[b * hw:(b + 1) * hw,
                                    t * cin:(t + 1) * cin] = (
                                src[i:i + ho, j:j + wo, :].reshape(hw, cin))

            # --- single big-K MXU matmul (bf16 x bf16 -> f32 accumulate) ---
            acc = jnp.dot(col_ref[:, :k], w_ref[...],
                          preferred_element_type=jnp.float32)

            # --- f32 epilogue: folded bias/BN, residual add, ReLU ---
            acc = acc * scale_ref[...] + shift_ref[...]
            if spec["add_identity"]:
                acc = acc + identity
            acc = jnp.maximum(acc, 0.0)
            if li == 0:
                identity = acc
            h = acc

        out_ref[...] = h.astype(out_ref.dtype)

    return kernel


def run_stage(x_nhwc, layers, weights, scales, shifts, out_dtype):
    """Run one fused conv stage.

    x_nhwc : (N, Hp, Wp, Cin0), sized for a 'valid' layer-0 conv.
    weights[i] : (kh*kw*cin, cout) packed matmul weights.
    Returns a (N*Ho*Wo, Cout_last) activation matrix (row = b*Ho*Wo + oh*Wo + ow).
    """
    n, hp, wp, cin0 = x_nhwc.shape
    kh0, kw0 = layers[0]["kh"], layers[0]["kw"]
    ho, wo = hp - kh0 + 1, wp - kw0 + 1
    m = n * ho * wo
    c_mid = layers[0]["cout"]
    cout_last = layers[-1]["cout"]
    k_max = max(l["kh"] * l["kw"] * l["cin"] for l in layers)

    kernel = _make_stage_kernel(layers, n, ho, wo)

    args = [x_nhwc.astype(jnp.bfloat16)]
    in_specs = [pl.BlockSpec((n, hp, wp, cin0), lambda i: (0, 0, 0, 0))]
    for spec, w, s, sh in zip(layers, weights, scales, shifts):
        k = spec["kh"] * spec["kw"] * spec["cin"]
        cout = spec["cout"]
        args += [w.astype(jnp.bfloat16),
                 s.reshape(1, cout).astype(jnp.float32),
                 sh.reshape(1, cout).astype(jnp.float32)]
        in_specs += [pl.BlockSpec((k, cout), lambda i: (0, 0)),
                     pl.BlockSpec((1, cout), lambda i: (0, 0)),
                     pl.BlockSpec((1, cout), lambda i: (0, 0))]

    return pl.pallas_call(
        kernel,
        out_shape=jax.ShapeDtypeStruct((m, cout_last), out_dtype),
        grid=(1,),
        in_specs=in_specs,
        out_specs=pl.BlockSpec((m, cout_last), lambda i: (0, 0)),
        scratch_shapes=[
            pltpu.VMEM((n, ho + 2, wo + 2, c_mid), jnp.bfloat16),  # padded act
            pltpu.VMEM((m, k_max), jnp.bfloat16),                  # im2col cols
        ],
        compiler_params=pltpu.CompilerParams(
            dimension_semantics=("arbitrary",),
            vmem_limit_bytes=32 * 1024 * 1024,
        ),
    )(*args)


# ----------------------------------------------------------------------------
# Glue: padding, space-to-depth (stride-2 -> stride-1), weight packing,
# BatchNorm folding.
# ----------------------------------------------------------------------------
def pad_hw(x, p):
    return jnp.pad(x, ((0, 0), (p, p), (p, p), (0, 0)))


def stride2_space_to_depth(x_padded):
    # phase index m = p*2 + q, channels stacked in that order
    phases = [x_padded[:, p::2, q::2, :] for p in (0, 1) for q in (0, 1)]
    return jnp.concatenate(phases, axis=-1)


def stride2_weight_taps(w_torch):
    # (Cout, Cin, 4, 4) -> (4, 4*Cin, Cout): 2x2 taps over phase-stacked input
    taps = []
    for a in (0, 1):
        for b in (0, 1):
            per_phase = [w_torch[:, :, 2 * a + p, 2 * b + q].T
                         for p in (0, 1) for q in (0, 1)]    # each (Cin, Cout)
            taps.append(jnp.concatenate(per_phase, axis=0))  # (4*Cin, Cout)
    return jnp.stack(taps, axis=0)


def stride1_weight_taps(w_torch):
    # (Cout, Cin, KH, KW) -> (KH*KW, Cin, Cout)
    _, _, khs, kws = w_torch.shape
    taps = [w_torch[:, :, i, j].T for i in range(khs) for j in range(kws)]
    return jnp.stack(taps, axis=0)


def fold_bn(conv_bias, bn):
    s = bn["gamma"] * jax.lax.rsqrt(bn["var"] + BN_EPS)
    shift = (conv_bias - bn["mean"]) * s + bn["beta"]
    return s, shift


# ----------------------------------------------------------------------------
# Model forward (NCHW in / NCHW out, like the PyTorch module)
# ----------------------------------------------------------------------------
def vqvae_encoder_forward(x_nchw, p):
    x = jnp.transpose(x_nchw, (0, 2, 3, 1)).astype(jnp.bfloat16)  # -> NHWC bf16
    n = x.shape[0]
    hid = p["conv_a_b"].shape[0]
    hid2 = p["conv_b_b"].shape[0]
    lat = p["conv_out_b"].shape[0]

    # ---- stage A: conv(4x4,s2)+ReLU + ResidualBlock(hid) -------------------
    xa = stride2_space_to_depth(pad_hw(x, 1))          # (N, H/2+1, W/2+1, 4*in)
    r1 = p["res1"]
    s1, sh1 = fold_bn(r1["conv1_b"], r1["bn1"])
    s2, sh2 = fold_bn(r1["conv2_b"], r1["bn2"])
    layers_a = [
        dict(kh=2, kw=2, cin=xa.shape[-1], cout=hid, add_identity=False),
        dict(kh=3, kw=3, cin=hid, cout=hid, add_identity=False),
        dict(kh=3, kw=3, cin=hid, cout=hid, add_identity=True),
    ]
    wts_a = [stride2_weight_taps(p["conv_a_w"]).reshape(-1, hid),
             stride1_weight_taps(r1["conv1_w"]).reshape(-1, hid),
             stride1_weight_taps(r1["conv2_w"]).reshape(-1, hid)]
    scl_a = [jnp.ones((hid,), jnp.float32), s1, s2]
    shf_a = [p["conv_a_b"], sh1, sh2]
    ha, wa = x.shape[1] // 2, x.shape[2] // 2
    h1 = run_stage(xa, layers_a, wts_a, scl_a, shf_a, jnp.bfloat16)
    h1 = h1.reshape(n, ha, wa, hid)

    # ---- stage B: conv(4x4,s2)+ReLU + ResidualBlock(2*hid) + conv(3x3)+ReLU -
    xb = stride2_space_to_depth(pad_hw(h1, 1))         # (N, H/4+1, W/4+1, 4*hid)
    r2 = p["res2"]
    s3, sh3 = fold_bn(r2["conv1_b"], r2["bn1"])
    s4, sh4 = fold_bn(r2["conv2_b"], r2["bn2"])
    cpad = 128                                         # lane-dense final store
    w_out = stride1_weight_taps(p["conv_out_w"]).reshape(-1, lat)
    w_out = jnp.pad(w_out, ((0, 0), (0, cpad - lat)))
    b_out = jnp.pad(p["conv_out_b"], (0, cpad - lat))
    layers_b = [
        dict(kh=2, kw=2, cin=xb.shape[-1], cout=hid2, add_identity=False),
        dict(kh=3, kw=3, cin=hid2, cout=hid2, add_identity=False),
        dict(kh=3, kw=3, cin=hid2, cout=hid2, add_identity=True),
        dict(kh=3, kw=3, cin=hid2, cout=cpad, add_identity=False),
    ]
    wts_b = [stride2_weight_taps(p["conv_b_w"]).reshape(-1, hid2),
             stride1_weight_taps(r2["conv1_w"]).reshape(-1, hid2),
             stride1_weight_taps(r2["conv2_w"]).reshape(-1, hid2),
             w_out]
    scl_b = [jnp.ones((hid2,), jnp.float32), s3, s4,
             jnp.ones((cpad,), jnp.float32)]
    shf_b = [p["conv_b_b"], sh3, sh4, b_out]
    hb, wb = ha // 2, wa // 2
    out = run_stage(xb, layers_b, wts_b, scl_b, shf_b, jnp.float32)
    out = out.reshape(n, hb, wb, cpad)[..., :lat]      # drop padded lanes
    return jnp.transpose(out, (0, 3, 1, 2))            # -> NCHW


# ----------------------------------------------------------------------------
# Deterministic parameter construction (synthetic, no checkpoint)
# ----------------------------------------------------------------------------
def make_params(key, in_ch, hid, lat):
    keys = iter(jax.random.split(key, 64))

    def w(shape, scale=0.1):
        return scale * jax.random.normal(next(keys), shape, jnp.float32)

    def bn(c):
        return dict(
            gamma=1.0 + 0.1 * jax.random.normal(next(keys), (c,), jnp.float32),
            beta=0.1 * jax.random.normal(next(keys), (c,), jnp.float32),
            mean=0.1 * jax.random.normal(next(keys), (c,), jnp.float32),
            var=1.0 + 0.1 * jax.random.uniform(next(keys), (c,), jnp.float32),
        )

    return dict(
        conv_a_w=w((hid, in_ch, 4, 4)), conv_a_b=w((hid,)),
        res1=dict(conv1_w=w((hid, hid, 3, 3)), conv1_b=w((hid,)), bn1=bn(hid),
                  conv2_w=w((hid, hid, 3, 3)), conv2_b=w((hid,)), bn2=bn(hid)),
        conv_b_w=w((2 * hid, hid, 4, 4)), conv_b_b=w((2 * hid,)),
        res2=dict(conv1_w=w((2 * hid, 2 * hid, 3, 3)), conv1_b=w((2 * hid,)),
                  bn1=bn(2 * hid),
                  conv2_w=w((2 * hid, 2 * hid, 3, 3)), conv2_b=w((2 * hid,)),
                  bn2=bn(2 * hid)),
        conv_out_w=w((lat, 2 * hid, 3, 3)), conv_out_b=w((lat,)),
    )


# ----------------------------------------------------------------------------
# Pure-JAX reference (for correctness check).  It emulates the kernel's
# precision policy: bf16 conv inputs/weights, f32 accumulation, f32 epilogue.
# ----------------------------------------------------------------------------
def reference_forward(x_nchw, p):
    x = jnp.transpose(x_nchw, (0, 2, 3, 1))

    def conv(x, w, b, stride, pad):
        wh = jnp.transpose(w, (2, 3, 1, 0)).astype(jnp.bfloat16)  # HWIO
        y = jax.lax.conv_general_dilated(
            x.astype(jnp.bfloat16), wh, (stride, stride),
            ((pad, pad), (pad, pad)),
            dimension_numbers=("NHWC", "HWIO", "NHWC"),
            preferred_element_type=jnp.float32)
        return y + b

    def bn(y, d):
        return (y - d["mean"]) * jax.lax.rsqrt(d["var"] + BN_EPS) * d["gamma"] + d["beta"]

    def resblock(x, rp):
        idn = x
        h = jax.nn.relu(bn(conv(x, rp["conv1_w"], rp["conv1_b"], 1, 1), rp["bn1"]))
        h = bn(conv(h, rp["conv2_w"], rp["conv2_b"], 1, 1), rp["bn2"])
        return jax.nn.relu(h + idn)

    h = jax.nn.relu(conv(x, p["conv_a_w"], p["conv_a_b"], 2, 1))
    h = resblock(h, p["res1"])
    h = jax.nn.relu(conv(h, p["conv_b_w"], p["conv_b_b"], 2, 1))
    h = resblock(h, p["res2"])
    h = jax.nn.relu(conv(h, p["conv_out_w"], p["conv_out_b"], 1, 1))
    return jnp.transpose(h, (0, 3, 1, 2))


if __name__ == "__main__":
    in_ch, hid, lat = 4, 32, 8
    x = jax.random.normal(jax.random.PRNGKey(0), (2, in_ch, 16, 16), jnp.float32)
    params = make_params(jax.random.PRNGKey(42), in_ch, hid, lat)

    fwd = jax.jit(vqvae_encoder_forward)
    out = jax.block_until_ready(fwd(x, params))

    assert out.shape == (2, lat, 4, 4), out.shape
    ref = reference_forward(x, params)
    max_err = float(jnp.max(jnp.abs(out - ref)))
    assert bool(jnp.allclose(out, ref, rtol=1e-2, atol=1e-2)), max_err

    print("KERNEL_OK")
</pallas_src>

<mosaic_0001>
module attributes {stable_mosaic.version = 11 : i64} {
  func.func @kernel(%arg0: i32, %arg1: memref<2x9x9x16xbf16, #tpu.memory_space<vmem>>, %arg2: memref<64x32xbf16, #tpu.memory_space<vmem>>, %arg3: memref<1x32xf32, #tpu.memory_space<vmem>>, %arg4: memref<1x32xf32, #tpu.memory_space<vmem>>, %arg5: memref<288x32xbf16, #tpu.memory_space<vmem>>, %arg6: memref<1x32xf32, #tpu.memory_space<vmem>>, %arg7: memref<1x32xf32, #tpu.memory_space<vmem>>, %arg8: memref<288x32xbf16, #tpu.memory_space<vmem>>, %arg9: memref<1x32xf32, #tpu.memory_space<vmem>>, %arg10: memref<1x32xf32, #tpu.memory_space<vmem>>, %arg11: memref<128x32xbf16, #tpu.memory_space<vmem>>, %arg12: memref<2x10x10x32xbf16, #tpu.memory_space<vmem>>, %arg13: memref<128x288xbf16, #tpu.memory_space<vmem>>) attributes {dimension_semantics = [#tpu.dimension_semantics<arbitrary>], iteration_bounds = array<i64: 1>, scalar_prefetch = 0 : i64, scratch_operands = 2 : i64, tpu.core_type = #tpu.core_type<tc>, window_params = [{pipeline_mode = #tpu.pipeline_mode<synchronous>, transform_indices = @transform_0, window_bounds = array<i64: 2, 9, 9, 16>}, {pipeline_mode = #tpu.pipeline_mode<synchronous>, transform_indices = @transform_1, window_bounds = array<i64: 64, 32>}, {pipeline_mode = #tpu.pipeline_mode<synchronous>, transform_indices = @transform_2, window_bounds = array<i64: 1, 32>}, {pipeline_mode = #tpu.pipeline_mode<synchronous>, transform_indices = @transform_3, window_bounds = array<i64: 1, 32>}, {pipeline_mode = #tpu.pipeline_mode<synchronous>, transform_indices = @transform_4, window_bounds = array<i64: 288, 32>}, {pipeline_mode = #tpu.pipeline_mode<synchronous>, transform_indices = @transform_5, window_bounds = array<i64: 1, 32>}, {pipeline_mode = #tpu.pipeline_mode<synchronous>, transform_indices = @transform_6, window_bounds = array<i64: 1, 32>}, {pipeline_mode = #tpu.pipeline_mode<synchronous>, transform_indices = @transform_7, window_bounds = array<i64: 288, 32>}, {pipeline_mode = #tpu.pipeline_mode<synchronous>, transform_indices = @transform_8, window_bounds = array<i64: 1, 32>}, {pipeline_mode = #tpu.pipeline_mode<synchronous>, transform_indices = @transform_9, window_bounds = array<i64: 1, 32>}, {pipeline_mode = #tpu.pipeline_mode<synchronous>, transform_indices = @transform_10, window_bounds = array<i64: 128, 32>}]} {
    %cst = arith.constant 0.000000e+00 : bf16
    %0 = vector.broadcast %cst : bf16 to vector<2x10x10x32xbf16>
    %c0 = arith.constant 0 : index
    %c0_0 = arith.constant 0 : index
    %c0_1 = arith.constant 0 : index
    %c0_2 = arith.constant 0 : index
    %1 = vector.load %arg12[%c0, %c0_0, %c0_1, %c0_2] : memref<2x10x10x32xbf16, #tpu.memory_space<vmem>>, vector<2x10x10x32xbf16>
    tpu.vector_store %arg12[%c0, %c0_0, %c0_1, %c0_2], %0 {strides = array<i32>} : memref<2x10x10x32xbf16, #tpu.memory_space<vmem>>, vector<2x10x10x32xbf16>,
    %c0_3 = arith.constant 0 : index
    %c0_4 = arith.constant 0 : index
    %c0_5 = arith.constant 0 : index
    %c0_6 = arith.constant 0 : index
    %2 = vector.load %arg1[%c0_3, %c0_4, %c0_5, %c0_6] : memref<2x9x9x16xbf16, #tpu.memory_space<vmem>>, vector<1x9x9x16xbf16>
    %3 = vector.shape_cast %2 : vector<1x9x9x16xbf16> to vector<9x9x16xbf16>
    %4 = vector.extract_strided_slice %3 {offsets = [0, 0, 0], sizes = [8, 8, 16], strides = [1, 1, 1]} : vector<9x9x16xbf16> to vector<8x8x16xbf16>
    %5 = vector.shape_cast %4 : vector<8x8x16xbf16> to vector<64x16xbf16>
    %c0_7 = arith.constant 0 : index
    %c0_8 = arith.constant 0 : index
    %6 = vector.load %arg13[%c0_7, %c0_8] : memref<128x288xbf16, #tpu.memory_space<vmem>>, vector<64x16xbf16>
    tpu.vector_store %arg13[%c0_7, %c0_8], %5 {strides = array<i32>} : memref<128x288xbf16, #tpu.memory_space<vmem>>, vector<64x16xbf16>,
    %7 = vector.extract_strided_slice %3 {offsets = [0, 1, 0], sizes = [8, 8, 16], strides = [1, 1, 1]} : vector<9x9x16xbf16> to vector<8x8x16xbf16>
    %8 = vector.shape_cast %7 : vector<8x8x16xbf16> to vector<64x16xbf16>
    %c0_9 = arith.constant 0 : index
    %c16 = arith.constant 16 : index
    %9 = vector.load %arg13[%c0_9, %c16] : memref<128x288xbf16, #tpu.memory_space<vmem>>, vector<64x16xbf16>
    tpu.vector_store %arg13[%c0_9, %c16], %8 {strides = array<i32>} : memref<128x288xbf16, #tpu.memory_space<vmem>>, vector<64x16xbf16>,
    %10 = vector.extract_strided_slice %3 {offsets = [1, 0, 0], sizes = [8, 8, 16], strides = [1, 1, 1]} : vector<9x9x16xbf16> to vector<8x8x16xbf16>
    %11 = vector.shape_cast %10 : vector<8x8x16xbf16> to vector<64x16xbf16>
    %c0_10 = arith.constant 0 : index
    %c32 = arith.constant 32 : index
    %12 = vector.load %arg13[%c0_10, %c32] : memref<128x288xbf16, #tpu.memory_space<vmem>>, vector<64x16xbf16>
    tpu.vector_store %arg13[%c0_10, %c32], %11 {strides = array<i32>} : memref<128x288xbf16, #tpu.memory_space<vmem>>, vector<64x16xbf16>,
    %13 = vector.extract_strided_slice %3 {offsets = [1, 1, 0], sizes = [8, 8, 16], strides = [1, 1, 1]} : vector<9x9x16xbf16> to vector<8x8x16xbf16>
    %14 = vector.shape_cast %13 : vector<8x8x16xbf16> to vector<64x16xbf16>
    %c0_11 = arith.constant 0 : index
    %c48 = arith.constant 48 : index
    %15 = vector.load %arg13[%c0_11, %c48] : memref<128x288xbf16, #tpu.memory_space<vmem>>, vector<64x16xbf16>
    tpu.vector_store %arg13[%c0_11, %c48], %14 {strides = array<i32>} : memref<128x288xbf16, #tpu.memory_space<vmem>>, vector<64x16xbf16>,
    %c1 = arith.constant 1 : index
    %c0_12 = arith.constant 0 : index
    %c0_13 = arith.constant 0 : index
    %c0_14 = arith.constant 0 : index
    %16 = vector.load %arg1[%c1, %c0_12, %c0_13, %c0_14] : memref<2x9x9x16xbf16, #tpu.memory_space<vmem>>, vector<1x9x9x16xbf16>
    %17 = vector.shape_cast %16 : vector<1x9x9x16xbf16> to vector<9x9x16xbf16>
    %18 = vector.extract_strided_slice %17 {offsets = [0, 0, 0], sizes = [8, 8, 16], strides = [1, 1, 1]} : vector<9x9x16xbf16> to vector<8x8x16xbf16>
    %19 = vector.shape_cast %18 : vector<8x8x16xbf16> to vector<64x16xbf16>
    %c64 = arith.constant 64 : index
    %c0_15 = arith.constant 0 : index
    %20 = vector.load %arg13[%c64, %c0_15] : memref<128x288xbf16, #tpu.memory_space<vmem>>, vector<64x16xbf16>
    tpu.vector_store %arg13[%c64, %c0_15], %19 {strides = array<i32>} : memref<128x288xbf16, #tpu.memory_space<vmem>>, vector<64x16xbf16>,
    %21 = vector.extract_strided_slice %17 {offsets = [0, 1, 0], sizes = [8, 8, 16], strides = [1, 1, 1]} : vector<9x9x16xbf16> to vector<8x8x16xbf16>
    %22 = vector.shape_cast %21 : vector<8x8x16xbf16> to vector<64x16xbf16>
    %c64_16 = arith.constant 64 : index
    %c16_17 = arith.constant 16 : index
    %23 = vector.load %arg13[%c64_16, %c16_17] : memref<128x288xbf16, #tpu.memory_space<vmem>>, vector<64x16xbf16>
    tpu.vector_store %arg13[%c64_16, %c16_17], %22 {strides = array<i32>} : memref<128x288xbf16, #tpu.memory_space<vmem>>, vector<64x16xbf16>,
    %24 = vector.extract_strided_slice %17 {offsets = [1, 0, 0], sizes = [8, 8, 16], strides = [1, 1, 1]} : vector<9x9x16xbf16> to vector<8x8x16xbf16>
    %25 = vector.shape_cast %24 : vector<8x8x16xbf16> to vector<64x16xbf16>
    %c64_18 = arith.constant 64 : index
    %c32_19 = arith.constant 32 : index
    %26 = vector.load %arg13[%c64_18, %c32_19] : memref<128x288xbf16, #tpu.memory_space<vmem>>, vector<64x16xbf16>
    tpu.vector_store %arg13[%c64_18, %c32_19], %25 {strides = array<i32>} : memref<128x288xbf16, #tpu.memory_space<vmem>>, vector<64x16xbf16>,
    %27 = vector.extract_strided_slice %17 {offsets = [1, 1, 0], sizes = [8, 8, 16], strides = [1, 1, 1]} : vector<9x9x16xbf16> to vector<8x8x16xbf16>
    %28 = vector.shape_cast %27 : vector<8x8x16xbf16> to vector<64x16xbf16>
    %c64_20 = arith.constant 64 : index
    %c48_21 = arith.constant 48 : index
    %29 = vector.load %arg13[%c64_20, %c48_21] : memref<128x288xbf16, #tpu.memory_space<vmem>>, vector<64x16xbf16>
    tpu.vector_store %arg13[%c64_20, %c48_21], %28 {strides = array<i32>} : memref<128x288xbf16, #tpu.memory_space<vmem>>, vector<64x16xbf16>,
    %c0_22 = arith.constant 0 : index
    %c0_23 = arith.constant 0 : index
    %30 = vector.load %arg13[%c0_22, %c0_23] : memref<128x288xbf16, #tpu.memory_space<vmem>>, vector<128x64xbf16>
    %c0_24 = arith.constant 0 : index
    %c0_25 = arith.constant 0 : index
    %31 = vector.load %arg2[%c0_24, %c0_25] : memref<64x32xbf16, #tpu.memory_space<vmem>>, vector<64x32xbf16>
    %cst_26 = arith.constant dense<0.000000e+00> : vector<128x32xf32>
    %32 = tpu.matmul %30, %31, %cst_26 {dimension_numbers = #tpu.dot_dimension_numbers<[1], [0], [0], [1], [0, 0, 1, 1], [], []>} : vector<128x64xbf16>, vector<64x32xbf16>, vector<128x32xf32> -> vector<128x32xf32>
    %c0_27 = arith.constant 0 : index
    %c0_28 = arith.constant 0 : index
    %33 = vector.load %arg3[%c0_27, %c0_28] : memref<1x32xf32, #tpu.memory_space<vmem>>, vector<1x32xf32>
    %34 = vector.broadcast %33 : vector<1x32xf32> to vector<128x32xf32>
    %35 = arith.mulf %32, %34 : vector<128x32xf32>
    %c0_29 = arith.constant 0 : index
    %c0_30 = arith.constant 0 : index
    %36 = vector.load %arg4[%c0_29, %c0_30] : memref<1x32xf32, #tpu.memory_space<vmem>>, vector<1x32xf32>
    %37 = vector.broadcast %36 : vector<1x32xf32> to vector<128x32xf32>
    %38 = arith.addf %35, %37 : vector<128x32xf32>
    %cst_31 = arith.constant 0.000000e+00 : f32
    %39 = vector.broadcast %cst_31 : f32 to vector<128x32xf32>
    %40 = arith.maximumf %38, %39 : vector<128x32xf32>
    %41 = vector.extract_strided_slice %40 {offsets = [0, 0], sizes = [64, 32], strides = [1, 1]} : vector<128x32xf32> to vector<64x32xf32>
    %42 = vector.shape_cast %41 : vector<64x32xf32> to vector<8x8x32xf32>
    %43 = arith.truncf %42 : vector<8x8x32xf32> to vector<8x8x32xbf16>
    %c0_32 = arith.constant 0 : index
    %c1_33 = arith.constant 1 : index
    %c1_34 = arith.constant 1 : index
    %c0_35 = arith.constant 0 : index
    %44 = vector.load %arg12[%c0_32, %c1_33, %c1_34, %c0_35] : memref<2x10x10x32xbf16, #tpu.memory_space<vmem>>, vector<1x8x8x32xbf16>
    %45 = vector.shape_cast %44 : vector<1x8x8x32xbf16> to vector<8x8x32xbf16>
    %46 = vector.shape_cast %43 : vector<8x8x32xbf16> to vector<1x8x8x32xbf16>
    tpu.vector_store %arg12[%c0_32, %c1_33, %c1_34, %c0_35], %46 {strides = array<i32>} : memref<2x10x10x32xbf16, #tpu.memory_space<vmem>>, vector<1x8x8x32xbf16>,
    %47 = vector.extract_strided_slice %40 {offsets = [64, 0], sizes = [64, 32], strides = [1, 1]} : vector<128x32xf32> to vector<64x32xf32>
    %48 = vector.shape_cast %47 : vector<64x32xf32> to vector<8x8x32xf32>
    %49 = arith.truncf %48 : vector<8x8x32xf32> to vector<8x8x32xbf16>
    %c1_36 = arith.constant 1 : index
    %c1_37 = arith.constant 1 : index
    %c1_38 = arith.constant 1 : index
    %c0_39 = arith.constant 0 : index
    %50 = vector.load %arg12[%c1_36, %c1_37, %c1_38, %c0_39] : memref<2x10x10x32xbf16, #tpu.memory_space<vmem>>, vector<1x8x8x32xbf16>
    %51 = vector.shape_cast %50 : vector<1x8x8x32xbf16> to vector<8x8x32xbf16>
    %52 = vector.shape_cast %49 : vector<8x8x32xbf16> to vector<1x8x8x32xbf16>
    tpu.vector_store %arg12[%c1_36, %c1_37, %c1_38, %c0_39], %52 {strides = array<i32>} : memref<2x10x10x32xbf16, #tpu.memory_space<vmem>>, vector<1x8x8x32xbf16>,
    %c0_40 = arith.constant 0 : index
    %c0_41 = arith.constant 0 : index
    %c0_42 = arith.constant 0 : index
    %c0_43 = arith.constant 0 : index
    %53 = vector.load %arg12[%c0_40, %c0_41, %c0_42, %c0_43] : memref<2x10x10x32xbf16, #tpu.memory_space<vmem>>, vector<1x10x10x32xbf16>
    %54 = vector.shape_cast %53 : vector<1x10x10x32xbf16> to vector<10x10x32xbf16>
    %55 = vector.extract_strided_slice %54 {offsets = [0, 0, 0], sizes = [8, 8, 32], strides = [1, 1, 1]} : vector<10x10x32xbf16> to vector<8x8x32xbf16>
    %56 = vector.shape_cast %55 : vector<8x8x32xbf16> to vector<64x32xbf16>
    %c0_44 = arith.constant 0 : index
    %c0_45 = arith.constant 0 : index
    %57 = vector.load %arg13[%c0_44, %c0_45] : memref<128x288xbf16, #tpu.memory_space<vmem>>, vector<64x32xbf16>
    tpu.vector_store %arg13[%c0_44, %c0_45], %56 {strides = array<i32>} : memref<128x288xbf16, #tpu.memory_space<vmem>>, vector<64x32xbf16>,
    %58 = vector.extract_strided_slice %54 {offsets = [0, 1, 0], sizes = [8, 8, 32], strides = [1, 1, 1]} : vector<10x10x32xbf16> to vector<8x8x32xbf16>
    %59 = vector.shape_cast %58 : vector<8x8x32xbf16> to vector<64x32xbf16>
    %c0_46 = arith.constant 0 : index
    %c32_47 = arith.constant 32 : index
    %60 = vector.load %arg13[%c0_46, %c32_47] : memref<128x288xbf16, #tpu.memory_space<vmem>>, vector<64x32xbf16>
    tpu.vector_store %arg13[%c0_46, %c32_47], %59 {strides = array<i32>} : memref<128x288xbf16, #tpu.memory_space<vmem>>, vector<64x32xbf16>,
    %61 = vector.extract_strided_slice %54 {offsets = [0, 2, 0], sizes = [8, 8, 32], strides = [1, 1, 1]} : vector<10x10x32xbf16> to vector<8x8x32xbf16>
    %62 = vector.shape_cast %61 : vector<8x8x32xbf16> to vector<64x32xbf16>
    %c0_48 = arith.constant 0 : index
    %c64_49 = arith.constant 64 : index
    %63 = vector.load %arg13[%c0_48, %c64_49] : memref<128x288xbf16, #tpu.memory_space<vmem>>, vector<64x32xbf16>
    tpu.vector_store %arg13[%c0_48, %c64_49], %62 {strides = array<i32>} : memref<128x288xbf16, #tpu.memory_space<vmem>>, vector<64x32xbf16>,
    %64 = vector.extract_strided_slice %54 {offsets = [1, 0, 0], sizes = [8, 8, 32], strides = [1, 1, 1]} : vector<10x10x32xbf16> to vector<8x8x32xbf16>
    %65 = vector.shape_cast %64 : vector<8x8x32xbf16> to vector<64x32xbf16>
    %c0_50 = arith.constant 0 : index
    %c96 = arith.constant 96 : index
    %66 = vector.load %arg13[%c0_50, %c96] : memref<128x288xbf16, #tpu.memory_space<vmem>>, vector<64x32xbf16>
    tpu.vector_store %arg13[%c0_50, %c96], %65 {strides = array<i32>} : memref<128x288xbf16, #tpu.memory_space<vmem>>, vector<64x32xbf16>,
    %67 = vector.extract_strided_slice %54 {offsets = [1, 1, 0], sizes = [8, 8, 32], strides = [1, 1, 1]} : vector<10x10x32xbf16> to vector<8x8x32xbf16>
    %68 = vector.shape_cast %67 : vector<8x8x32xbf16> to vector<64x32xbf16>
    %c0_51 = arith.constant 0 : index
    %c128 = arith.constant 128 : index
    %69 = vector.load %arg13[%c0_51, %c128] : memref<128x288xbf16, #tpu.memory_space<vmem>>, vector<64x32xbf16>
    tpu.vector_store %arg13[%c0_51, %c128], %68 {strides = array<i32>} : memref<128x288xbf16, #tpu.memory_space<vmem>>, vector<64x32xbf16>,
    %70 = vector.extract_strided_slice %54 {offsets = [1, 2, 0], sizes = [8, 8, 32], strides = [1, 1, 1]} : vector<10x10x32xbf16> to vector<8x8x32xbf16>
    %71 = vector.shape_cast %70 : vector<8x8x32xbf16> to vector<64x32xbf16>
    %c0_52 = arith.constant 0 : index
    %c160 = arith.constant 160 : index
    %72 = vector.load %arg13[%c0_52, %c160] : memref<128x288xbf16, #tpu.memory_space<vmem>>, vector<64x32xbf16>
    tpu.vector_store %arg13[%c0_52, %c160], %71 {strides = array<i32>} : memref<128x288xbf16, #tpu.memory_space<vmem>>, vector<64x32xbf16>,
    %73 = vector.extract_strided_slice %54 {offsets = [2, 0, 0], sizes = [8, 8, 32], strides = [1, 1, 1]} : vector<10x10x32xbf16> to vector<8x8x32xbf16>
    %74 = vector.shape_cast %73 : vector<8x8x32xbf16> to vector<64x32xbf16>
    %c0_53 = arith.constant 0 : index
    %c192 = arith.constant 192 : index
    %75 = vector.load %arg13[%c0_53, %c192] : memref<128x288xbf16, #tpu.memory_space<vmem>>, vector<64x32xbf16>
    tpu.vector_store %arg13[%c0_53, %c192], %74 {strides = array<i32>} : memref<128x288xbf16, #tpu.memory_space<vmem>>, vector<64x32xbf16>,
    %76 = vector.extract_strided_slice %54 {offsets = [2, 1, 0], sizes = [8, 8, 32], strides = [1, 1, 1]} : vector<10x10x32xbf16> to vector<8x8x32xbf16>
    %77 = vector.shape_cast %76 : vector<8x8x32xbf16> to vector<64x32xbf16>
    %c0_54 = arith.constant 0 : index
    %c224 = arith.constant 224 : index
    %78 = vector.load %arg13[%c0_54, %c224] : memref<128x288xbf16, #tpu.memory_space<vmem>>, vector<64x32xbf16>
    tpu.vector_store %arg13[%c0_54, %c224], %77 {strides = array<i32>} : memref<128x288xbf16, #tpu.memory_space<vmem>>, vector<64x32xbf16>,
    %79 = vector.extract_strided_slice %54 {offsets = [2, 2, 0], sizes = [8, 8, 32], strides = [1, 1, 1]} : vector<10x10x32xbf16> to vector<8x8x32xbf16>
    %80 = vector.shape_cast %79 : vector<8x8x32xbf16> to vector<64x32xbf16>
    %c0_55 = arith.constant 0 : index
    %c256 = arith.constant 256 : index
    %81 = vector.load %arg13[%c0_55, %c256] : memref<128x288xbf16, #tpu.memory_space<vmem>>, vector<64x32xbf16>
    tpu.vector_store %arg13[%c0_55, %c256], %80 {strides = array<i32>} : memref<128x288xbf16, #tpu.memory_space<vmem>>, vector<64x32xbf16>,
    %c1_56 = arith.constant 1 : index
    %c0_57 = arith.constant 0 : index
    %c0_58 = arith.constant 0 : index
    %c0_59 = arith.constant 0 : index
    %82 = vector.load %arg12[%c1_56, %c0_57, %c0_58, %c0_59] : memref<2x10x10x32xbf16, #tpu.memory_space<vmem>>, vector<1x10x10x32xbf16>
    %83 = vector.shape_cast %82 : vector<1x10x10x32xbf16> to vector<10x10x32xbf16>
    %84 = vector.extract_strided_slice %83 {offsets = [0, 0, 0], sizes = [8, 8, 32], strides = [1, 1, 1]} : vector<10x10x32xbf16> to vector<8x8x32xbf16>
    %85 = vector.shape_cast %84 : vector<8x8x32xbf16> to vector<64x32xbf16>
    %c64_60 = arith.constant 64 : index
    %c0_61 = arith.constant 0 : index
    %86 = vector.load %arg13[%c64_60, %c0_61] : memref<128x288xbf16, #tpu.memory_space<vmem>>, vector<64x32xbf16>
    tpu.vector_store %arg13[%c64_60, %c0_61], %85 {strides = array<i32>} : memref<128x288xbf16, #tpu.memory_space<vmem>>, vector<64x32xbf16>,
    %87 = vector.extract_strided_slice %83 {offsets = [0, 1, 0], sizes = [8, 8, 32], strides = [1, 1, 1]} : vector<10x10x32xbf16> to vector<8x8x32xbf16>
    %88 = vector.shape_cast %87 : vector<8x8x32xbf16> to vector<64x32xbf16>
    %c64_62 = arith.constant 64 : index
    %c32_63 = arith.constant 32 : index
    %89 = vector.load %arg13[%c64_62, %c32_63] : memref<128x288xbf16, #tpu.memory_space<vmem>>, vector<64x32xbf16>
    tpu.vector_store %arg13[%c64_62, %c32_63], %88 {strides = array<i32>} : memref<128x288xbf16, #tpu.memory_space<vmem>>, vector<64x32xbf16>,
    %90 = vector.extract_strided_slice %83 {offsets = [0, 2, 0], sizes = [8, 8, 32], strides = [1, 1, 1]} : vector<10x10x32xbf16> to vector<8x8x32xbf16>
    %91 = vector.shape_cast %90 : vector<8x8x32xbf16> to vector<64x32xbf16>
    %c64_64 = arith.constant 64 : index
    %c64_65 = arith.constant 64 : index
    %92 = vector.load %arg13[%c64_64, %c64_65] : memref<128x288xbf16, #tpu.memory_space<vmem>>, vector<64x32xbf16>
    tpu.vector_store %arg13[%c64_64, %c64_65], %91 {strides = array<i32>} : memref<128x288xbf16, #tpu.memory_space<vmem>>, vector<64x32xbf16>,
    %93 = vector.extract_strided_slice %83 {offsets = [1, 0, 0], sizes = [8, 8, 32], strides = [1, 1, 1]} : vector<10x10x32xbf16> to vector<8x8x32xbf16>
    %94 = vector.shape_cast %93 : vector<8x8x32xbf16> to vector<64x32xbf16>
    %c64_66 = arith.constant 64 : index
    %c96_67 = arith.constant 96 : index
    %95 = vector.load %arg13[%c64_66, %c96_67] : memref<128x288xbf16, #tpu.memory_space<vmem>>, vector<64x32xbf16>
    tpu.vector_store %arg13[%c64_66, %c96_67], %94 {strides = array<i32>} : memref<128x288xbf16, #tpu.memory_space<vmem>>, vector<64x32xbf16>,
    %96 = vector.extract_strided_slice %83 {offsets = [1, 1, 0], sizes = [8, 8, 32], strides = [1, 1, 1]} : vector<10x10x32xbf16> to vector<8x8x32xbf16>
    %97 = vector.shape_cast %96 : vector<8x8x32xbf16> to vector<64x32xbf16>
    %c64_68 = arith.constant 64 : index
    %c128_69 = arith.constant 128 : index
    %98 = vector.load %arg13[%c64_68, %c128_69] : memref<128x288xbf16, #tpu.memory_space<vmem>>, vector<64x32xbf16>
    tpu.vector_store %arg13[%c64_68, %c128_69], %97 {strides = array<i32>} : memref<128x288xbf16, #tpu.memory_space<vmem>>, vector<64x32xbf16>,
    %99 = vector.extract_strided_slice %83 {offsets = [1, 2, 0], sizes = [8, 8, 32], strides = [1, 1, 1]} : vector<10x10x32xbf16> to vector<8x8x32xbf16>
    %100 = vector.shape_cast %99 : vector<8x8x32xbf16> to vector<64x32xbf16>
    %c64_70 = arith.constant 64 : index
    %c160_71 = arith.constant 160 : index
    %101 = vector.load %arg13[%c64_70, %c160_71] : memref<128x288xbf16, #tpu.memory_space<vmem>>, vector<64x32xbf16>
    tpu.vector_store %arg13[%c64_70, %c160_71], %100 {strides = array<i32>} : memref<128x288xbf16, #tpu.memory_space<vmem>>, vector<64x32xbf16>,
    %102 = vector.extract_strided_slice %83 {offsets = [2, 0, 0], sizes = [8, 8, 32], strides = [1, 1, 1]} : vector<10x10x32xbf16> to vector<8x8x32xbf16>
    %103 = vector.shape_cast %102 : vector<8x8x32xbf16> to vector<64x32xbf16>
    %c64_72 = arith.constant 64 : index
    %c192_73 = arith.constant 192 : index
    %104 = vector.load %arg13[%c64_72, %c192_73] : memref<128x288xbf16, #tpu.memory_space<vmem>>, vector<64x32xbf16>
    tpu.vector_store %arg13[%c64_72, %c192_73], %103 {strides = array<i32>} : memref<128x288xbf16, #tpu.memory_space<vmem>>, vector<64x32xbf16>,
    %105 = vector.extract_strided_slice %83 {offsets = [2, 1, 0], sizes = [8, 8, 32], strides = [1, 1, 1]} : vector<10x10x32xbf16> to vector<8x8x32xbf16>
    %106 = vector.shape_cast %105 : vector<8x8x32xbf16> to vector<64x32xbf16>
    %c64_74 = arith.constant 64 : index
    %c224_75 = arith.constant 224 : index
    %107 = vector.load %arg13[%c64_74, %c224_75] : memref<128x288xbf16, #tpu.memory_space<vmem>>, vector<64x32xbf16>
    tpu.vector_store %arg13[%c64_74, %c224_75], %106 {strides = array<i32>} : memref<128x288xbf16, #tpu.memory_space<vmem>>, vector<64x32xbf16>,
    %108 = vector.extract_strided_slice %83 {offsets = [2, 2, 0], sizes = [8, 8, 32], strides = [1, 1, 1]} : vector<10x10x32xbf16> to vector<8x8x32xbf16>
    %109 = vector.shape_cast %108 : vector<8x8x32xbf16> to vector<64x32xbf16>
    %c64_76 = arith.constant 64 : index
    %c256_77 = arith.constant 256 : index
    %110 = vector.load %arg13[%c64_76, %c256_77] : memref<128x288xbf16, #tpu.memory_space<vmem>>, vector<64x32xbf16>
    tpu.vector_store %arg13[%c64_76, %c256_77], %109 {strides = array<i32>} : memref<128x288xbf16, #tpu.memory_space<vmem>>, vector<64x32xbf16>,
    %c0_78 = arith.constant 0 : index
    %c0_79 = arith.constant 0 : index
    %111 = vector.load %arg13[%c0_78, %c0_79] : memref<128x288xbf16, #tpu.memory_space<vmem>>, vector<128x288xbf16>
    %c0_80 = arith.constant 0 : index
    %c0_81 = arith.constant 0 : index
    %112 = vector.load %arg5[%c0_80, %c0_81] : memref<288x32xbf16, #tpu.memory_space<vmem>>, vector<288x32xbf16>
    %cst_82 = arith.constant dense<0.000000e+00> : vector<128x32xf32>
    %113 = tpu.matmul %111, %112, %cst_82 {dimension_numbers = #tpu.dot_dimension_numbers<[1], [0], [0], [1], [0, 0, 1, 1], [], []>} : vector<128x288xbf16>, vector<288x32xbf16>, vector<128x32xf32> -> vector<128x32xf32>
    %c0_83 = arith.constant 0 : index
    %c0_84 = arith.constant 0 : index
    %114 = vector.load %arg6[%c0_83, %c0_84] : memref<1x32xf32, #tpu.memory_space<vmem>>, vector<1x32xf32>
    %115 = vector.broadcast %114 : vector<1x32xf32> to vector<128x32xf32>
    %116 = arith.mulf %113, %115 : vector<128x32xf32>
    %c0_85 = arith.constant 0 : index
    %c0_86 = arith.constant 0 : index
    %117 = vector.load %arg7[%c0_85, %c0_86] : memref<1x32xf32, #tpu.memory_space<vmem>>, vector<1x32xf32>
    %118 = vector.broadcast %117 : vector<1x32xf32> to vector<128x32xf32>
    %119 = arith.addf %116, %118 : vector<128x32xf32>
    %cst_87 = arith.constant 0.000000e+00 : f32
    %120 = vector.broadcast %cst_87 : f32 to vector<128x32xf32>
    %121 = arith.maximumf %119, %120 : vector<128x32xf32>
    %122 = vector.extract_strided_slice %121 {offsets = [0, 0], sizes = [64, 32], strides = [1, 1]} : vector<128x32xf32> to vector<64x32xf32>
    %123 = vector.shape_cast %122 : vector<64x32xf32> to vector<8x8x32xf32>
    %124 = arith.truncf %123 : vector<8x8x32xf32> to vector<8x8x32xbf16>
    %c0_88 = arith.constant 0 : index
    %c1_89 = arith.constant 1 : index
    %c1_90 = arith.constant 1 : index
    %c0_91 = arith.constant 0 : index
    %125 = vector.load %arg12[%c0_88, %c1_89, %c1_90, %c0_91] : memref<2x10x10x32xbf16, #tpu.memory_space<vmem>>, vector<1x8x8x32xbf16>
    %126 = vector.shape_cast %125 : vector<1x8x8x32xbf16> to vector<8x8x32xbf16>
    %127 = vector.shape_cast %124 : vector<8x8x32xbf16> to vector<1x8x8x32xbf16>
    tpu.vector_store %arg12[%c0_88, %c1_89, %c1_90, %c0_91], %127 {strides = array<i32>} : memref<2x10x10x32xbf16, #tpu.memory_space<vmem>>, vector<1x8x8x32xbf16>,
    %128 = vector.extract_strided_slice %121 {offsets = [64, 0], sizes = [64, 32], strides = [1, 1]} : vector<128x32xf32> to vector<64x32xf32>
    %129 = vector.shape_cast %128 : vector<64x32xf32> to vector<8x8x32xf32>
    %130 = arith.truncf %129 : vector<8x8x32xf32> to vector<8x8x32xbf16>
    %c1_92 = arith.constant 1 : index
    %c1_93 = arith.constant 1 : index
    %c1_94 = arith.constant 1 : index
    %c0_95 = arith.constant 0 : index
    %131 = vector.load %arg12[%c1_92, %c1_93, %c1_94, %c0_95] : memref<2x10x10x32xbf16, #tpu.memory_space<vmem>>, vector<1x8x8x32xbf16>
    %132 = vector.shape_cast %131 : vector<1x8x8x32xbf16> to vector<8x8x32xbf16>
    %133 = vector.shape_cast %130 : vector<8x8x32xbf16> to vector<1x8x8x32xbf16>
    tpu.vector_store %arg12[%c1_92, %c1_93, %c1_94, %c0_95], %133 {strides = array<i32>} : memref<2x10x10x32xbf16, #tpu.memory_space<vmem>>, vector<1x8x8x32xbf16>,
    %c0_96 = arith.constant 0 : index
    %c0_97 = arith.constant 0 : index
    %c0_98 = arith.constant 0 : index
    %c0_99 = arith.constant 0 : index
    %134 = vector.load %arg12[%c0_96, %c0_97, %c0_98, %c0_99] : memref<2x10x10x32xbf16, #tpu.memory_space<vmem>>, vector<1x10x10x32xbf16>
    %135 = vector.shape_cast %134 : vector<1x10x10x32xbf16> to vector<10x10x32xbf16>
    %136 = vector.extract_strided_slice %135 {offsets = [0, 0, 0], sizes = [8, 8, 32], strides = [1, 1, 1]} : vector<10x10x32xbf16> to vector<8x8x32xbf16>
    %137 = vector.shape_cast %136 : vector<8x8x32xbf16> to vector<64x32xbf16>
    %c0_100 = arith.constant 0 : index
    %c0_101 = arith.constant 0 : index
    %138 = vector.load %arg13[%c0_100, %c0_101] : memref<128x288xbf16, #tpu.memory_space<vmem>>, vector<64x32xbf16>
    tpu.vector_store %arg13[%c0_100, %c0_101], %137 {strides = array<i32>} : memref<128x288xbf16, #tpu.memory_space<vmem>>, vector<64x32xbf16>,
    %139 = vector.extract_strided_slice %135 {offsets = [0, 1, 0], sizes = [8, 8, 32], strides = [1, 1, 1]} : vector<10x10x32xbf16> to vector<8x8x32xbf16>
    %140 = vector.shape_cast %139 : vector<8x8x32xbf16> to vector<64x32xbf16>
    %c0_102 = arith.constant 0 : index
    %c32_103 = arith.constant 32 : index
    %141 = vector.load %arg13[%c0_102, %c32_103] : memref<128x288xbf16, #tpu.memory_space<vmem>>, vector<64x32xbf16>
    tpu.vector_store %arg13[%c0_102, %c32_103], %140 {strides = array<i32>} : memref<128x288xbf16, #tpu.memory_space<vmem>>, vector<64x32xbf16>,
    %142 = vector.extract_strided_slice %135 {offsets = [0, 2, 0], sizes = [8, 8, 32], strides = [1, 1, 1]} : vector<10x10x32xbf16> to vector<8x8x32xbf16>
    %143 = vector.shape_cast %142 : vector<8x8x32xbf16> to vector<64x32xbf16>
    %c0_104 = arith.constant 0 : index
    %c64_105 = arith.constant 64 : index
    %144 = vector.load %arg13[%c0_104, %c64_105] : memref<128x288xbf16, #tpu.memory_space<vmem>>, vector<64x32xbf16>
    tpu.vector_store %arg13[%c0_104, %c64_105], %143 {strides = array<i32>} : memref<128x288xbf16, #tpu.memory_space<vmem>>, vector<64x32xbf16>,
    %145 = vector.extract_strided_slice %135 {offsets = [1, 0, 0], sizes = [8, 8, 32], strides = [1, 1, 1]} : vector<10x10x32xbf16> to vector<8x8x32xbf16>
    %146 = vector.shape_cast %145 : vector<8x8x32xbf16> to vector<64x32xbf16>
    %c0_106 = arith.constant 0 : index
    %c96_107 = arith.constant 96 : index
    %147 = vector.load %arg13[%c0_106, %c96_107] : memref<128x288xbf16, #tpu.memory_space<vmem>>, vector<64x32xbf16>
    tpu.vector_store %arg13[%c0_106, %c96_107], %146 {strides = array<i32>} : memref<128x288xbf16, #tpu.memory_space<vmem>>, vector<64x32xbf16>,
    %148 = vector.extract_strided_slice %135 {offsets = [1, 1, 0], sizes = [8, 8, 32], strides = [1, 1, 1]} : vector<10x10x32xbf16> to vector<8x8x32xbf16>
    %149 = vector.shape_cast %148 : vector<8x8x32xbf16> to vector<64x32xbf16>
    %c0_108 = arith.constant 0 : index
    %c128_109 = arith.constant 128 : index
    %150 = vector.load %arg13[%c0_108, %c128_109] : memref<128x288xbf16, #tpu.memory_space<vmem>>, vector<64x32xbf16>
    tpu.vector_store %arg13[%c0_108, %c128_109], %149 {strides = array<i32>} : memref<128x288xbf16, #tpu.memory_space<vmem>>, vector<64x32xbf16>,
    %151 = vector.extract_strided_slice %135 {offsets = [1, 2, 0], sizes = [8, 8, 32], strides = [1, 1, 1]} : vector<10x10x32xbf16> to vector<8x8x32xbf16>
    %152 = vector.shape_cast %151 : vector<8x8x32xbf16> to vector<64x32xbf16>
    %c0_110 = arith.constant 0 : index
    %c160_111 = arith.constant 160 : index
    %153 = vector.load %arg13[%c0_110, %c160_111] : memref<128x288xbf16, #tpu.memory_space<vmem>>, vector<64x32xbf16>
    tpu.vector_store %arg13[%c0_110, %c160_111], %152 {strides = array<i32>} : memref<128x288xbf16, #tpu.memory_space<vmem>>, vector<64x32xbf16>,
    %154 = vector.extract_strided_slice %135 {offsets = [2, 0, 0], sizes = [8, 8, 32], strides = [1, 1, 1]} : vector<10x10x32xbf16> to vector<8x8x32xbf16>
    %155 = vector.shape_cast %154 : vector<8x8x32xbf16> to vector<64x32xbf16>
    %c0_112 = arith.constant 0 : index
    %c192_113 = arith.constant 192 : index
    %156 = vector.load %arg13[%c0_112, %c192_113] : memref<128x288xbf16, #tpu.memory_space<vmem>>, vector<64x32xbf16>
    tpu.vector_store %arg13[%c0_112, %c192_113], %155 {strides = array<i32>} : memref<128x288xbf16, #tpu.memory_space<vmem>>, vector<64x32xbf16>,
    %157 = vector.extract_strided_slice %135 {offsets = [2, 1, 0], sizes = [8, 8, 32], strides = [1, 1, 1]} : vector<10x10x32xbf16> to vector<8x8x32xbf16>
    %158 = vector.shape_cast %157 : vector<8x8x32xbf16> to vector<64x32xbf16>
    %c0_114 = arith.constant 0 : index
    %c224_115 = arith.constant 224 : index
    %159 = vector.load %arg13[%c0_114, %c224_115] : memref<128x288xbf16, #tpu.memory_space<vmem>>, vector<64x32xbf16>
    tpu.vector_store %arg13[%c0_114, %c224_115], %158 {strides = array<i32>} : memref<128x288xbf16, #tpu.memory_space<vmem>>, vector<64x32xbf16>,
    %160 = vector.extract_strided_slice %135 {offsets = [2, 2, 0], sizes = [8, 8, 32], strides = [1, 1, 1]} : vector<10x10x32xbf16> to vector<8x8x32xbf16>
    %161 = vector.shape_cast %160 : vector<8x8x32xbf16> to vector<64x32xbf16>
    %c0_116 = arith.constant 0 : index
    %c256_117 = arith.constant 256 : index
    %162 = vector.load %arg13[%c0_116, %c256_117] : memref<128x288xbf16, #tpu.memory_space<vmem>>, vector<64x32xbf16>
    tpu.vector_store %arg13[%c0_116, %c256_117], %161 {strides = array<i32>} : memref<128x288xbf16, #tpu.memory_space<vmem>>, vector<64x32xbf16>,
    %c1_118 = arith.constant 1 : index
    %c0_119 = arith.constant 0 : index
    %c0_120 = arith.constant 0 : index
    %c0_121 = arith.constant 0 : index
    %163 = vector.load %arg12[%c1_118, %c0_119, %c0_120, %c0_121] : memref<2x10x10x32xbf16, #tpu.memory_space<vmem>>, vector<1x10x10x32xbf16>
    %164 = vector.shape_cast %163 : vector<1x10x10x32xbf16> to vector<10x10x32xbf16>
    %165 = vector.extract_strided_slice %164 {offsets = [0, 0, 0], sizes = [8, 8, 32], strides = [1, 1, 1]} : vector<10x10x32xbf16> to vector<8x8x32xbf16>
    %166 = vector.shape_cast %165 : vector<8x8x32xbf16> to vector<64x32xbf16>
    %c64_122 = arith.constant 64 : index
    %c0_123 = arith.constant 0 : index
    %167 = vector.load %arg13[%c64_122, %c0_123] : memref<128x288xbf16, #tpu.memory_space<vmem>>, vector<64x32xbf16>
    tpu.vector_store %arg13[%c64_122, %c0_123], %166 {strides = array<i32>} : memref<128x288xbf16, #tpu.memory_space<vmem>>, vector<64x32xbf16>,
    %168 = vector.extract_strided_slice %164 {offsets = [0, 1, 0], sizes = [8, 8, 32], strides = [1, 1, 1]} : vector<10x10x32xbf16> to vector<8x8x32xbf16>
    %169 = vector.shape_cast %168 : vector<8x8x32xbf16> to vector<64x32xbf16>
    %c64_124 = arith.constant 64 : index
    %c32_125 = arith.constant 32 : index
    %170 = vector.load %arg13[%c64_124, %c32_125] : memref<128x288xbf16, #tpu.memory_space<vmem>>, vector<64x32xbf16>
    tpu.vector_store %arg13[%c64_124, %c32_125], %169 {strides = array<i32>} : memref<128x288xbf16, #tpu.memory_space<vmem>>, vector<64x32xbf16>,
    %171 = vector.extract_strided_slice %164 {offsets = [0, 2, 0], sizes = [8, 8, 32], strides = [1, 1, 1]} : vector<10x10x32xbf16> to vector<8x8x32xbf16>
    %172 = vector.shape_cast %171 : vector<8x8x32xbf16> to vector<64x32xbf16>
    %c64_126 = arith.constant 64 : index
    %c64_127 = arith.constant 64 : index
    %173 = vector.load %arg13[%c64_126, %c64_127] : memref<128x288xbf16, #tpu.memory_space<vmem>>, vector<64x32xbf16>
    tpu.vector_store %arg13[%c64_126, %c64_127], %172 {strides = array<i32>} : memref<128x288xbf16, #tpu.memory_space<vmem>>, vector<64x32xbf16>,
    %174 = vector.extract_strided_slice %164 {offsets = [1, 0, 0], sizes = [8, 8, 32], strides = [1, 1, 1]} : vector<10x10x32xbf16> to vector<8x8x32xbf16>
    %175 = vector.shape_cast %174 : vector<8x8x32xbf16> to vector<64x32xbf16>
    %c64_128 = arith.constant 64 : index
    %c96_129 = arith.constant 96 : index
    %176 = vector.load %arg13[%c64_128, %c96_129] : memref<128x288xbf16, #tpu.memory_space<vmem>>, vector<64x32xbf16>
    tpu.vector_store %arg13[%c64_128, %c96_129], %175 {strides = array<i32>} : memref<128x288xbf16, #tpu.memory_space<vmem>>, vector<64x32xbf16>,
    %177 = vector.extract_strided_slice %164 {offsets = [1, 1, 0], sizes = [8, 8, 32], strides = [1, 1, 1]} : vector<10x10x32xbf16> to vector<8x8x32xbf16>
    %178 = vector.shape_cast %177 : vector<8x8x32xbf16> to vector<64x32xbf16>
    %c64_130 = arith.constant 64 : index
    %c128_131 = arith.constant 128 : index
    %179 = vector.load %arg13[%c64_130, %c128_131] : memref<128x288xbf16, #tpu.memory_space<vmem>>, vector<64x32xbf16>
    tpu.vector_store %arg13[%c64_130, %c128_131], %178 {strides = array<i32>} : memref<128x288xbf16, #tpu.memory_space<vmem>>, vector<64x32xbf16>,
    %180 = vector.extract_strided_slice %164 {offsets = [1, 2, 0], sizes = [8, 8, 32], strides = [1, 1, 1]} : vector<10x10x32xbf16> to vector<8x8x32xbf16>
    %181 = vector.shape_cast %180 : vector<8x8x32xbf16> to vector<64x32xbf16>
    %c64_132 = arith.constant 64 : index
    %c160_133 = arith.constant 160 : index
    %182 = vector.load %arg13[%c64_132, %c160_133] : memref<128x288xbf16, #tpu.memory_space<vmem>>, vector<64x32xbf16>
    tpu.vector_store %arg13[%c64_132, %c160_133], %181 {strides = array<i32>} : memref<128x288xbf16, #tpu.memory_space<vmem>>, vector<64x32xbf16>,
    %183 = vector.extract_strided_slice %164 {offsets = [2, 0, 0], sizes = [8, 8, 32], strides = [1, 1, 1]} : vector<10x10x32xbf16> to vector<8x8x32xbf16>
    %184 = vector.shape_cast %183 : vector<8x8x32xbf16> to vector<64x32xbf16>
    %c64_134 = arith.constant 64 : index
    %c192_135 = arith.constant 192 : index
    %185 = vector.load %arg13[%c64_134, %c192_135] : memref<128x288xbf16, #tpu.memory_space<vmem>>, vector<64x32xbf16>
    tpu.vector_store %arg13[%c64_134, %c192_135], %184 {strides = array<i32>} : memref<128x288xbf16, #tpu.memory_space<vmem>>, vector<64x32xbf16>,
    %186 = vector.extract_strided_slice %164 {offsets = [2, 1, 0], sizes = [8, 8, 32], strides = [1, 1, 1]} : vector<10x10x32xbf16> to vector<8x8x32xbf16>
    %187 = vector.shape_cast %186 : vector<8x8x32xbf16> to vector<64x32xbf16>
    %c64_136 = arith.constant 64 : index
    %c224_137 = arith.constant 224 : index
    %188 = vector.load %arg13[%c64_136, %c224_137] : memref<128x288xbf16, #tpu.memory_space<vmem>>, vector<64x32xbf16>
    tpu.vector_store %arg13[%c64_136, %c224_137], %187 {strides = array<i32>} : memref<128x288xbf16, #tpu.memory_space<vmem>>, vector<64x32xbf16>,
    %189 = vector.extract_strided_slice %164 {offsets = [2, 2, 0], sizes = [8, 8, 32], strides = [1, 1, 1]} : vector<10x10x32xbf16> to vector<8x8x32xbf16>
    %190 = vector.shape_cast %189 : vector<8x8x32xbf16> to vector<64x32xbf16>
    %c64_138 = arith.constant 64 : index
    %c256_139 = arith.constant 256 : index
    %191 = vector.load %arg13[%c64_138, %c256_139] : memref<128x288xbf16, #tpu.memory_space<vmem>>, vector<64x32xbf16>
    tpu.vector_store %arg13[%c64_138, %c256_139], %190 {strides = array<i32>} : memref<128x288xbf16, #tpu.memory_space<vmem>>, vector<64x32xbf16>,
    %c0_140 = arith.constant 0 : index
    %c0_141 = arith.constant 0 : index
    %192 = vector.load %arg13[%c0_140, %c0_141] : memref<128x288xbf16, #tpu.memory_space<vmem>>, vector<128x288xbf16>
    %c0_142 = arith.constant 0 : index
    %c0_143 = arith.constant 0 : index
    %193 = vector.load %arg8[%c0_142, %c0_143] : memref<288x32xbf16, #tpu.memory_space<vmem>>, vector<288x32xbf16>
    %cst_144 = arith.constant dense<0.000000e+00> : vector<128x32xf32>
    %194 = tpu.matmul %192, %193, %cst_144 {dimension_numbers = #tpu.dot_dimension_numbers<[1], [0], [0], [1], [0, 0, 1, 1], [], []>} : vector<128x288xbf16>, vector<288x32xbf16>, vector<128x32xf32> -> vector<128x32xf32>
    %c0_145 = arith.constant 0 : index
    %c0_146 = arith.constant 0 : index
    %195 = vector.load %arg9[%c0_145, %c0_146] : memref<1x32xf32, #tpu.memory_space<vmem>>, vector<1x32xf32>
    %196 = vector.broadcast %195 : vector<1x32xf32> to vector<128x32xf32>
    %197 = arith.mulf %194, %196 : vector<128x32xf32>
    %c0_147 = arith.constant 0 : index
    %c0_148 = arith.constant 0 : index
    %198 = vector.load %arg10[%c0_147, %c0_148] : memref<1x32xf32, #tpu.memory_space<vmem>>, vector<1x32xf32>
    %199 = vector.broadcast %198 : vector<1x32xf32> to vector<128x32xf32>
    %200 = arith.addf %197, %199 : vector<128x32xf32>
    %201 = arith.addf %200, %40 : vector<128x32xf32>
    %cst_149 = arith.constant 0.000000e+00 : f32
    %202 = vector.broadcast %cst_149 : f32 to vector<128x32xf32>
    %203 = arith.maximumf %201, %202 : vector<128x32xf32>
    %204 = arith.truncf %203 : vector<128x32xf32> to vector<128x32xbf16>
    %c0_150 = arith.constant 0 : index
    %c0_151 = arith.constant 0 : index
    %205 = vector.load %arg11[%c0_150, %c0_151] : memref<128x32xbf16, #tpu.memory_space<vmem>>, vector<128x32xbf16>
    tpu.vector_store %arg11[%c0_150, %c0_151], %204 {strides = array<i32>} : memref<128x32xbf16, #tpu.memory_space<vmem>>, vector<128x32xbf16>,
    return
  }
  func.func @transform_0(%arg0: i32) -> (i32, i32, i32, i32) {
    %c0_i32 = arith.constant 0 : i32
    %c0_i32_0 = arith.constant 0 : i32
    %c0_i32_1 = arith.constant 0 : i32
    %c0_i32_2 = arith.constant 0 : i32
    %c0_i32_3 = arith.constant 0 : i32
    return %c0_i32, %c0_i32_0, %c0_i32_1, %c0_i32_2 : i32, i32, i32, i32
  }
  func.func @transform_1(%arg0: i32) -> (i32, i32) {
    %c0_i32 = arith.constant 0 : i32
    %c0_i32_0 = arith.constant 0 : i32
    %c0_i32_1 = arith.constant 0 : i32
    return %c0_i32, %c0_i32_0 : i32, i32
  }
  func.func @transform_2(%arg0: i32) -> (i32, i32) {
    %c0_i32 = arith.constant 0 : i32
    %c0_i32_0 = arith.constant 0 : i32
    %c0_i32_1 = arith.constant 0 : i32
    return %c0_i32, %c0_i32_0 : i32, i32
  }
  func.func @transform_3(%arg0: i32) -> (i32, i32) {
    %c0_i32 = arith.constant 0 : i32
    %c0_i32_0 = arith.constant 0 : i32
    %c0_i32_1 = arith.constant 0 : i32
    return %c0_i32, %c0_i32_0 : i32, i32
  }
  func.func @transform_4(%arg0: i32) -> (i32, i32) {
    %c0_i32 = arith.constant 0 : i32
    %c0_i32_0 = arith.constant 0 : i32
    %c0_i32_1 = arith.constant 0 : i32
    return %c0_i32, %c0_i32_0 : i32, i32
  }
  func.func @transform_5(%arg0: i32) -> (i32, i32) {
    %c0_i32 = arith.constant 0 : i32
    %c0_i32_0 = arith.constant 0 : i32
    %c0_i32_1 = arith.constant 0 : i32
    return %c0_i32, %c0_i32_0 : i32, i32
  }
  func.func @transform_6(%arg0: i32) -> (i32, i32) {
    %c0_i32 = arith.constant 0 : i32
    %c0_i32_0 = arith.constant 0 : i32
    %c0_i32_1 = arith.constant 0 : i32
    return %c0_i32, %c0_i32_0 : i32, i32
  }
  func.func @transform_7(%arg0: i32) -> (i32, i32) {
    %c0_i32 = arith.constant 0 : i32
    %c0_i32_0 = arith.constant 0 : i32
    %c0_i32_1 = arith.constant 0 : i32
    return %c0_i32, %c0_i32_0 : i32, i32
  }
  func.func @transform_8(%arg0: i32) -> (i32, i32) {
    %c0_i32 = arith.constant 0 : i32
    %c0_i32_0 = arith.constant 0 : i32
    %c0_i32_1 = arith.constant 0 : i32
    return %c0_i32, %c0_i32_0 : i32, i32
  }
  func.func @transform_9(%arg0: i32) -> (i32, i32) {
    %c0_i32 = arith.constant 0 : i32
    %c0_i32_0 = arith.constant 0 : i32
    %c0_i32_1 = arith.constant 0 : i32
    return %c0_i32, %c0_i32_0 : i32, i32
  }
  func.func @transform_10(%arg0: i32) -> (i32, i32) {
    %c0_i32 = arith.constant 0 : i32
    %c0_i32_0 = arith.constant 0 : i32
    %c0_i32_1 = arith.constant 0 : i32
    return %c0_i32, %c0_i32_0 : i32, i32
  }
}

module attributes {stable_mosaic.version = 11 : i64} {
  func.func @kernel(%arg0: i32, %arg1: memref<2x5x5x128xbf16, #tpu.memory_space<vmem>>, %arg2: memref<512x64xbf16, #tpu.memory_space<vmem>>, %arg3: memref<1x64xf32, #tpu.memory_space<vmem>>, %arg4: memref<1x64xf32, #tpu.memory_space<vmem>>, %arg5: memref<576x64xbf16, #tpu.memory_space<vmem>>, %arg6: memref<1x64xf32, #tpu.memory_space<vmem>>, %arg7: memref<1x64xf32, #tpu.memory_space<vmem>>, %arg8: memref<576x64xbf16, #tpu.memory_space<vmem>>, %arg9: memref<1x64xf32, #tpu.memory_space<vmem>>, %arg10: memref<1x64xf32, #tpu.memory_space<vmem>>, %arg11: memref<576x128xbf16, #tpu.memory_space<vmem>>, %arg12: memref<1x128xf32, #tpu.memory_space<vmem>>, %arg13: memref<1x128xf32, #tpu.memory_space<vmem>>, %arg14: memref<32x128xf32, #tpu.memory_space<vmem>>, %arg15: memref<2x6x6x64xbf16, #tpu.memory_space<vmem>>, %arg16: memref<32x576xbf16, #tpu.memory_space<vmem>>) attributes {dimension_semantics = [#tpu.dimension_semantics<arbitrary>], iteration_bounds = array<i64: 1>, scalar_prefetch = 0 : i64, scratch_operands = 2 : i64, tpu.core_type = #tpu.core_type<tc>, window_params = [{pipeline_mode = #tpu.pipeline_mode<synchronous>, transform_indices = @transform_0, window_bounds = array<i64: 2, 5, 5, 128>}, {pipeline_mode = #tpu.pipeline_mode<synchronous>, transform_indices = @transform_1, window_bounds = array<i64: 512, 64>}, {pipeline_mode = #tpu.pipeline_mode<synchronous>, transform_indices = @transform_2, window_bounds = array<i64: 1, 64>}, {pipeline_mode = #tpu.pipeline_mode<synchronous>, transform_indices = @transform_3, window_bounds = array<i64: 1, 64>}, {pipeline_mode = #tpu.pipeline_mode<synchronous>, transform_indices = @transform_4, window_bounds = array<i64: 576, 64>}, {pipeline_mode = #tpu.pipeline_mode<synchronous>, transform_indices = @transform_5, window_bounds = array<i64: 1, 64>}, {pipeline_mode = #tpu.pipeline_mode<synchronous>, transform_indices = @transform_6, window_bounds = array<i64: 1, 64>}, {pipeline_mode = #tpu.pipeline_mode<synchronous>, transform_indices = @transform_7, window_bounds = array<i64: 576, 64>}, {pipeline_mode = #tpu.pipeline_mode<synchronous>, transform_indices = @transform_8, window_bounds = array<i64: 1, 64>}, {pipeline_mode = #tpu.pipeline_mode<synchronous>, transform_indices = @transform_9, window_bounds = array<i64: 1, 64>}, {pipeline_mode = #tpu.pipeline_mode<synchronous>, transform_indices = @transform_10, window_bounds = array<i64: 576, 128>}, {pipeline_mode = #tpu.pipeline_mode<synchronous>, transform_indices = @transform_11, window_bounds = array<i64: 1, 128>}, {pipeline_mode = #tpu.pipeline_mode<synchronous>, transform_indices = @transform_12, window_bounds = array<i64: 1, 128>}, {pipeline_mode = #tpu.pipeline_mode<synchronous>, transform_indices = @transform_13, window_bounds = array<i64: 32, 128>}]} {
    %cst = arith.constant 0.000000e+00 : bf16
    %0 = vector.broadcast %cst : bf16 to vector<2x6x6x64xbf16>
    %c0 = arith.constant 0 : index
    %c0_0 = arith.constant 0 : index
    %c0_1 = arith.constant 0 : index
    %c0_2 = arith.constant 0 : index
    %1 = vector.load %arg15[%c0, %c0_0, %c0_1, %c0_2] : memref<2x6x6x64xbf16, #tpu.memory_space<vmem>>, vector<2x6x6x64xbf16>
    tpu.vector_store %arg15[%c0, %c0_0, %c0_1, %c0_2], %0 {strides = array<i32>} : memref<2x6x6x64xbf16, #tpu.memory_space<vmem>>, vector<2x6x6x64xbf16>,
    %c0_3 = arith.constant 0 : index
    %c0_4 = arith.constant 0 : index
    %c0_5 = arith.constant 0 : index
    %c0_6 = arith.constant 0 : index
    %2 = vector.load %arg1[%c0_3, %c0_4, %c0_5, %c0_6] : memref<2x5x5x128xbf16, #tpu.memory_space<vmem>>, vector<1x5x5x128xbf16>
    %3 = vector.shape_cast %2 : vector<1x5x5x128xbf16> to vector<5x5x128xbf16>
    %4 = vector.extract_strided_slice %3 {offsets = [0, 0, 0], sizes = [4, 4, 128], strides = [1, 1, 1]} : vector<5x5x128xbf16> to vector<4x4x128xbf16>
    %5 = vector.shape_cast %4 : vector<4x4x128xbf16> to vector<16x128xbf16>
    %c0_7 = arith.constant 0 : index
    %c0_8 = arith.constant 0 : index
    %6 = vector.load %arg16[%c0_7, %c0_8] : memref<32x576xbf16, #tpu.memory_space<vmem>>, vector<16x128xbf16>
    tpu.vector_store %arg16[%c0_7, %c0_8], %5 {strides = array<i32>} : memref<32x576xbf16, #tpu.memory_space<vmem>>, vector<16x128xbf16>,
    %7 = vector.extract_strided_slice %3 {offsets = [0, 1, 0], sizes = [4, 4, 128], strides = [1, 1, 1]} : vector<5x5x128xbf16> to vector<4x4x128xbf16>
    %8 = vector.shape_cast %7 : vector<4x4x128xbf16> to vector<16x128xbf16>
    %c0_9 = arith.constant 0 : index
    %c128 = arith.constant 128 : index
    %9 = vector.load %arg16[%c0_9, %c128] : memref<32x576xbf16, #tpu.memory_space<vmem>>, vector<16x128xbf16>
    tpu.vector_store %arg16[%c0_9, %c128], %8 {strides = array<i32>} : memref<32x576xbf16, #tpu.memory_space<vmem>>, vector<16x128xbf16>,
    %10 = vector.extract_strided_slice %3 {offsets = [1, 0, 0], sizes = [4, 4, 128], strides = [1, 1, 1]} : vector<5x5x128xbf16> to vector<4x4x128xbf16>
    %11 = vector.shape_cast %10 : vector<4x4x128xbf16> to vector<16x128xbf16>
    %c0_10 = arith.constant 0 : index
    %c256 = arith.constant 256 : index
    %12 = vector.load %arg16[%c0_10, %c256] : memref<32x576xbf16, #tpu.memory_space<vmem>>, vector<16x128xbf16>
    tpu.vector_store %arg16[%c0_10, %c256], %11 {strides = array<i32>} : memref<32x576xbf16, #tpu.memory_space<vmem>>, vector<16x128xbf16>,
    %13 = vector.extract_strided_slice %3 {offsets = [1, 1, 0], sizes = [4, 4, 128], strides = [1, 1, 1]} : vector<5x5x128xbf16> to vector<4x4x128xbf16>
    %14 = vector.shape_cast %13 : vector<4x4x128xbf16> to vector<16x128xbf16>
    %c0_11 = arith.constant 0 : index
    %c384 = arith.constant 384 : index
    %15 = vector.load %arg16[%c0_11, %c384] : memref<32x576xbf16, #tpu.memory_space<vmem>>, vector<16x128xbf16>
    tpu.vector_store %arg16[%c0_11, %c384], %14 {strides = array<i32>} : memref<32x576xbf16, #tpu.memory_space<vmem>>, vector<16x128xbf16>,
    %c1 = arith.constant 1 : index
    %c0_12 = arith.constant 0 : index
    %c0_13 = arith.constant 0 : index
    %c0_14 = arith.constant 0 : index
    %16 = vector.load %arg1[%c1, %c0_12, %c0_13, %c0_14] : memref<2x5x5x128xbf16, #tpu.memory_space<vmem>>, vector<1x5x5x128xbf16>
    %17 = vector.shape_cast %16 : vector<1x5x5x128xbf16> to vector<5x5x128xbf16>
    %18 = vector.extract_strided_slice %17 {offsets = [0, 0, 0], sizes = [4, 4, 128], strides = [1, 1, 1]} : vector<5x5x128xbf16> to vector<4x4x128xbf16>
    %19 = vector.shape_cast %18 : vector<4x4x128xbf16> to vector<16x128xbf16>
    %c16 = arith.constant 16 : index
    %c0_15 = arith.constant 0 : index
    %20 = vector.load %arg16[%c16, %c0_15] : memref<32x576xbf16, #tpu.memory_space<vmem>>, vector<16x128xbf16>
    tpu.vector_store %arg16[%c16, %c0_15], %19 {strides = array<i32>} : memref<32x576xbf16, #tpu.memory_space<vmem>>, vector<16x128xbf16>,
    %21 = vector.extract_strided_slice %17 {offsets = [0, 1, 0], sizes = [4, 4, 128], strides = [1, 1, 1]} : vector<5x5x128xbf16> to vector<4x4x128xbf16>
    %22 = vector.shape_cast %21 : vector<4x4x128xbf16> to vector<16x128xbf16>
    %c16_16 = arith.constant 16 : index
    %c128_17 = arith.constant 128 : index
    %23 = vector.load %arg16[%c16_16, %c128_17] : memref<32x576xbf16, #tpu.memory_space<vmem>>, vector<16x128xbf16>
    tpu.vector_store %arg16[%c16_16, %c128_17], %22 {strides = array<i32>} : memref<32x576xbf16, #tpu.memory_space<vmem>>, vector<16x128xbf16>,
    %24 = vector.extract_strided_slice %17 {offsets = [1, 0, 0], sizes = [4, 4, 128], strides = [1, 1, 1]} : vector<5x5x128xbf16> to vector<4x4x128xbf16>
    %25 = vector.shape_cast %24 : vector<4x4x128xbf16> to vector<16x128xbf16>
    %c16_18 = arith.constant 16 : index
    %c256_19 = arith.constant 256 : index
    %26 = vector.load %arg16[%c16_18, %c256_19] : memref<32x576xbf16, #tpu.memory_space<vmem>>, vector<16x128xbf16>
    tpu.vector_store %arg16[%c16_18, %c256_19], %25 {strides = array<i32>} : memref<32x576xbf16, #tpu.memory_space<vmem>>, vector<16x128xbf16>,
    %27 = vector.extract_strided_slice %17 {offsets = [1, 1, 0], sizes = [4, 4, 128], strides = [1, 1, 1]} : vector<5x5x128xbf16> to vector<4x4x128xbf16>
    %28 = vector.shape_cast %27 : vector<4x4x128xbf16> to vector<16x128xbf16>
    %c16_20 = arith.constant 16 : index
    %c384_21 = arith.constant 384 : index
    %29 = vector.load %arg16[%c16_20, %c384_21] : memref<32x576xbf16, #tpu.memory_space<vmem>>, vector<16x128xbf16>
    tpu.vector_store %arg16[%c16_20, %c384_21], %28 {strides = array<i32>} : memref<32x576xbf16, #tpu.memory_space<vmem>>, vector<16x128xbf16>,
    %c0_22 = arith.constant 0 : index
    %c0_23 = arith.constant 0 : index
    %30 = vector.load %arg16[%c0_22, %c0_23] : memref<32x576xbf16, #tpu.memory_space<vmem>>, vector<32x512xbf16>
    %c0_24 = arith.constant 0 : index
    %c0_25 = arith.constant 0 : index
    %31 = vector.load %arg2[%c0_24, %c0_25] : memref<512x64xbf16, #tpu.memory_space<vmem>>, vector<512x64xbf16>
    %cst_26 = arith.constant dense<0.000000e+00> : vector<32x64xf32>
    %32 = tpu.matmul %30, %31, %cst_26 {dimension_numbers = #tpu.dot_dimension_numbers<[1], [0], [0], [1], [0, 0, 1, 1], [], []>} : vector<32x512xbf16>, vector<512x64xbf16>, vector<32x64xf32> -> vector<32x64xf32>
    %c0_27 = arith.constant 0 : index
    %c0_28 = arith.constant 0 : index
    %33 = vector.load %arg3[%c0_27, %c0_28] : memref<1x64xf32, #tpu.memory_space<vmem>>, vector<1x64xf32>
    %34 = vector.broadcast %33 : vector<1x64xf32> to vector<32x64xf32>
    %35 = arith.mulf %32, %34 : vector<32x64xf32>
    %c0_29 = arith.constant 0 : index
    %c0_30 = arith.constant 0 : index
    %36 = vector.load %arg4[%c0_29, %c0_30] : memref<1x64xf32, #tpu.memory_space<vmem>>, vector<1x64xf32>
    %37 = vector.broadcast %36 : vector<1x64xf32> to vector<32x64xf32>
    %38 = arith.addf %35, %37 : vector<32x64xf32>
    %cst_31 = arith.constant 0.000000e+00 : f32
    %39 = vector.broadcast %cst_31 : f32 to vector<32x64xf32>
    %40 = arith.maximumf %38, %39 : vector<32x64xf32>
    %41 = vector.extract_strided_slice %40 {offsets = [0, 0], sizes = [16, 64], strides = [1, 1]} : vector<32x64xf32> to vector<16x64xf32>
    %42 = vector.shape_cast %41 : vector<16x64xf32> to vector<4x4x64xf32>
    %43 = arith.truncf %42 : vector<4x4x64xf32> to vector<4x4x64xbf16>
    %c0_32 = arith.constant 0 : index
    %c1_33 = arith.constant 1 : index
    %c1_34 = arith.constant 1 : index
    %c0_35 = arith.constant 0 : index
    %44 = vector.load %arg15[%c0_32, %c1_33, %c1_34, %c0_35] : memref<2x6x6x64xbf16, #tpu.memory_space<vmem>>, vector<1x4x4x64xbf16>
    %45 = vector.shape_cast %44 : vector<1x4x4x64xbf16> to vector<4x4x64xbf16>
    %46 = vector.shape_cast %43 : vector<4x4x64xbf16> to vector<1x4x4x64xbf16>
    tpu.vector_store %arg15[%c0_32, %c1_33, %c1_34, %c0_35], %46 {strides = array<i32>} : memref<2x6x6x64xbf16, #tpu.memory_space<vmem>>, vector<1x4x4x64xbf16>,
    %47 = vector.extract_strided_slice %40 {offsets = [16, 0], sizes = [16, 64], strides = [1, 1]} : vector<32x64xf32> to vector<16x64xf32>
    %48 = vector.shape_cast %47 : vector<16x64xf32> to vector<4x4x64xf32>
    %49 = arith.truncf %48 : vector<4x4x64xf32> to vector<4x4x64xbf16>
    %c1_36 = arith.constant 1 : index
    %c1_37 = arith.constant 1 : index
    %c1_38 = arith.constant 1 : index
    %c0_39 = arith.constant 0 : index
    %50 = vector.load %arg15[%c1_36, %c1_37, %c1_38, %c0_39] : memref<2x6x6x64xbf16, #tpu.memory_space<vmem>>, vector<1x4x4x64xbf16>
    %51 = vector.shape_cast %50 : vector<1x4x4x64xbf16> to vector<4x4x64xbf16>
    %52 = vector.shape_cast %49 : vector<4x4x64xbf16> to vector<1x4x4x64xbf16>
    tpu.vector_store %arg15[%c1_36, %c1_37, %c1_38, %c0_39], %52 {strides = array<i32>} : memref<2x6x6x64xbf16, #tpu.memory_space<vmem>>, vector<1x4x4x64xbf16>,
    %c0_40 = arith.constant 0 : index
    %c0_41 = arith.constant 0 : index
    %c0_42 = arith.constant 0 : index
    %c0_43 = arith.constant 0 : index
    %53 = vector.load %arg15[%c0_40, %c0_41, %c0_42, %c0_43] : memref<2x6x6x64xbf16, #tpu.memory_space<vmem>>, vector<1x6x6x64xbf16>
    %54 = vector.shape_cast %53 : vector<1x6x6x64xbf16> to vector<6x6x64xbf16>
    %55 = vector.extract_strided_slice %54 {offsets = [0, 0, 0], sizes = [4, 4, 64], strides = [1, 1, 1]} : vector<6x6x64xbf16> to vector<4x4x64xbf16>
    %56 = vector.shape_cast %55 : vector<4x4x64xbf16> to vector<16x64xbf16>
    %c0_44 = arith.constant 0 : index
    %c0_45 = arith.constant 0 : index
    %57 = vector.load %arg16[%c0_44, %c0_45] : memref<32x576xbf16, #tpu.memory_space<vmem>>, vector<16x64xbf16>
    tpu.vector_store %arg16[%c0_44, %c0_45], %56 {strides = array<i32>} : memref<32x576xbf16, #tpu.memory_space<vmem>>, vector<16x64xbf16>,
    %58 = vector.extract_strided_slice %54 {offsets = [0, 1, 0], sizes = [4, 4, 64], strides = [1, 1, 1]} : vector<6x6x64xbf16> to vector<4x4x64xbf16>
    %59 = vector.shape_cast %58 : vector<4x4x64xbf16> to vector<16x64xbf16>
    %c0_46 = arith.constant 0 : index
    %c64 = arith.constant 64 : index
    %60 = vector.load %arg16[%c0_46, %c64] : memref<32x576xbf16, #tpu.memory_space<vmem>>, vector<16x64xbf16>
    tpu.vector_store %arg16[%c0_46, %c64], %59 {strides = array<i32>} : memref<32x576xbf16, #tpu.memory_space<vmem>>, vector<16x64xbf16>,
    %61 = vector.extract_strided_slice %54 {offsets = [0, 2, 0], sizes = [4, 4, 64], strides = [1, 1, 1]} : vector<6x6x64xbf16> to vector<4x4x64xbf16>
    %62 = vector.shape_cast %61 : vector<4x4x64xbf16> to vector<16x64xbf16>
    %c0_47 = arith.constant 0 : index
    %c128_48 = arith.constant 128 : index
    %63 = vector.load %arg16[%c0_47, %c128_48] : memref<32x576xbf16, #tpu.memory_space<vmem>>, vector<16x64xbf16>
    tpu.vector_store %arg16[%c0_47, %c128_48], %62 {strides = array<i32>} : memref<32x576xbf16, #tpu.memory_space<vmem>>, vector<16x64xbf16>,
    %64 = vector.extract_strided_slice %54 {offsets = [1, 0, 0], sizes = [4, 4, 64], strides = [1, 1, 1]} : vector<6x6x64xbf16> to vector<4x4x64xbf16>
    %65 = vector.shape_cast %64 : vector<4x4x64xbf16> to vector<16x64xbf16>
    %c0_49 = arith.constant 0 : index
    %c192 = arith.constant 192 : index
    %66 = vector.load %arg16[%c0_49, %c192] : memref<32x576xbf16, #tpu.memory_space<vmem>>, vector<16x64xbf16>
    tpu.vector_store %arg16[%c0_49, %c192], %65 {strides = array<i32>} : memref<32x576xbf16, #tpu.memory_space<vmem>>, vector<16x64xbf16>,
    %67 = vector.extract_strided_slice %54 {offsets = [1, 1, 0], sizes = [4, 4, 64], strides = [1, 1, 1]} : vector<6x6x64xbf16> to vector<4x4x64xbf16>
    %68 = vector.shape_cast %67 : vector<4x4x64xbf16> to vector<16x64xbf16>
    %c0_50 = arith.constant 0 : index
    %c256_51 = arith.constant 256 : index
    %69 = vector.load %arg16[%c0_50, %c256_51] : memref<32x576xbf16, #tpu.memory_space<vmem>>, vector<16x64xbf16>
    tpu.vector_store %arg16[%c0_50, %c256_51], %68 {strides = array<i32>} : memref<32x576xbf16, #tpu.memory_space<vmem>>, vector<16x64xbf16>,
    %70 = vector.extract_strided_slice %54 {offsets = [1, 2, 0], sizes = [4, 4, 64], strides = [1, 1, 1]} : vector<6x6x64xbf16> to vector<4x4x64xbf16>
    %71 = vector.shape_cast %70 : vector<4x4x64xbf16> to vector<16x64xbf16>
    %c0_52 = arith.constant 0 : index
    %c320 = arith.constant 320 : index
    %72 = vector.load %arg16[%c0_52, %c320] : memref<32x576xbf16, #tpu.memory_space<vmem>>, vector<16x64xbf16>
    tpu.vector_store %arg16[%c0_52, %c320], %71 {strides = array<i32>} : memref<32x576xbf16, #tpu.memory_space<vmem>>, vector<16x64xbf16>,
    %73 = vector.extract_strided_slice %54 {offsets = [2, 0, 0], sizes = [4, 4, 64], strides = [1, 1, 1]} : vector<6x6x64xbf16> to vector<4x4x64xbf16>
    %74 = vector.shape_cast %73 : vector<4x4x64xbf16> to vector<16x64xbf16>
    %c0_53 = arith.constant 0 : index
    %c384_54 = arith.constant 384 : index
    %75 = vector.load %arg16[%c0_53, %c384_54] : memref<32x576xbf16, #tpu.memory_space<vmem>>, vector<16x64xbf16>
    tpu.vector_store %arg16[%c0_53, %c384_54], %74 {strides = array<i32>} : memref<32x576xbf16, #tpu.memory_space<vmem>>, vector<16x64xbf16>,
    %76 = vector.extract_strided_slice %54 {offsets = [2, 1, 0], sizes = [4, 4, 64], strides = [1, 1, 1]} : vector<6x6x64xbf16> to vector<4x4x64xbf16>
    %77 = vector.shape_cast %76 : vector<4x4x64xbf16> to vector<16x64xbf16>
    %c0_55 = arith.constant 0 : index
    %c448 = arith.constant 448 : index
    %78 = vector.load %arg16[%c0_55, %c448] : memref<32x576xbf16, #tpu.memory_space<vmem>>, vector<16x64xbf16>
    tpu.vector_store %arg16[%c0_55, %c448], %77 {strides = array<i32>} : memref<32x576xbf16, #tpu.memory_space<vmem>>, vector<16x64xbf16>,
    %79 = vector.extract_strided_slice %54 {offsets = [2, 2, 0], sizes = [4, 4, 64], strides = [1, 1, 1]} : vector<6x6x64xbf16> to vector<4x4x64xbf16>
    %80 = vector.shape_cast %79 : vector<4x4x64xbf16> to vector<16x64xbf16>
    %c0_56 = arith.constant 0 : index
    %c512 = arith.constant 512 : index
    %81 = vector.load %arg16[%c0_56, %c512] : memref<32x576xbf16, #tpu.memory_space<vmem>>, vector<16x64xbf16>
    tpu.vector_store %arg16[%c0_56, %c512], %80 {strides = array<i32>} : memref<32x576xbf16, #tpu.memory_space<vmem>>, vector<16x64xbf16>,
    %c1_57 = arith.constant 1 : index
    %c0_58 = arith.constant 0 : index
    %c0_59 = arith.constant 0 : index
    %c0_60 = arith.constant 0 : index
    %82 = vector.load %arg15[%c1_57, %c0_58, %c0_59, %c0_60] : memref<2x6x6x64xbf16, #tpu.memory_space<vmem>>, vector<1x6x6x64xbf16>
    %83 = vector.shape_cast %82 : vector<1x6x6x64xbf16> to vector<6x6x64xbf16>
    %84 = vector.extract_strided_slice %83 {offsets = [0, 0, 0], sizes = [4, 4, 64], strides = [1, 1, 1]} : vector<6x6x64xbf16> to vector<4x4x64xbf16>
    %85 = vector.shape_cast %84 : vector<4x4x64xbf16> to vector<16x64xbf16>
    %c16_61 = arith.constant 16 : index
    %c0_62 = arith.constant 0 : index
    %86 = vector.load %arg16[%c16_61, %c0_62] : memref<32x576xbf16, #tpu.memory_space<vmem>>, vector<16x64xbf16>
    tpu.vector_store %arg16[%c16_61, %c0_62], %85 {strides = array<i32>} : memref<32x576xbf16, #tpu.memory_space<vmem>>, vector<16x64xbf16>,
    %87 = vector.extract_strided_slice %83 {offsets = [0, 1, 0], sizes = [4, 4, 64], strides = [1, 1, 1]} : vector<6x6x64xbf16> to vector<4x4x64xbf16>
    %88 = vector.shape_cast %87 : vector<4x4x64xbf16> to vector<16x64xbf16>
    %c16_63 = arith.constant 16 : index
    %c64_64 = arith.constant 64 : index
    %89 = vector.load %arg16[%c16_63, %c64_64] : memref<32x576xbf16, #tpu.memory_space<vmem>>, vector<16x64xbf16>
    tpu.vector_store %arg16[%c16_63, %c64_64], %88 {strides = array<i32>} : memref<32x576xbf16, #tpu.memory_space<vmem>>, vector<16x64xbf16>,
    %90 = vector.extract_strided_slice %83 {offsets = [0, 2, 0], sizes = [4, 4, 64], strides = [1, 1, 1]} : vector<6x6x64xbf16> to vector<4x4x64xbf16>
    %91 = vector.shape_cast %90 : vector<4x4x64xbf16> to vector<16x64xbf16>
    %c16_65 = arith.constant 16 : index
    %c128_66 = arith.constant 128 : index
    %92 = vector.load %arg16[%c16_65, %c128_66] : memref<32x576xbf16, #tpu.memory_space<vmem>>, vector<16x64xbf16>
    tpu.vector_store %arg16[%c16_65, %c128_66], %91 {strides = array<i32>} : memref<32x576xbf16, #tpu.memory_space<vmem>>, vector<16x64xbf16>,
    %93 = vector.extract_strided_slice %83 {offsets = [1, 0, 0], sizes = [4, 4, 64], strides = [1, 1, 1]} : vector<6x6x64xbf16> to vector<4x4x64xbf16>
    %94 = vector.shape_cast %93 : vector<4x4x64xbf16> to vector<16x64xbf16>
    %c16_67 = arith.constant 16 : index
    %c192_68 = arith.constant 192 : index
    %95 = vector.load %arg16[%c16_67, %c192_68] : memref<32x576xbf16, #tpu.memory_space<vmem>>, vector<16x64xbf16>
    tpu.vector_store %arg16[%c16_67, %c192_68], %94 {strides = array<i32>} : memref<32x576xbf16, #tpu.memory_space<vmem>>, vector<16x64xbf16>,
    %96 = vector.extract_strided_slice %83 {offsets = [1, 1, 0], sizes = [4, 4, 64], strides = [1, 1, 1]} : vector<6x6x64xbf16> to vector<4x4x64xbf16>
    %97 = vector.shape_cast %96 : vector<4x4x64xbf16> to vector<16x64xbf16>
    %c16_69 = arith.constant 16 : index
    %c256_70 = arith.constant 256 : index
    %98 = vector.load %arg16[%c16_69, %c256_70] : memref<32x576xbf16, #tpu.memory_space<vmem>>, vector<16x64xbf16>
    tpu.vector_store %arg16[%c16_69, %c256_70], %97 {strides = array<i32>} : memref<32x576xbf16, #tpu.memory_space<vmem>>, vector<16x64xbf16>,
    %99 = vector.extract_strided_slice %83 {offsets = [1, 2, 0], sizes = [4, 4, 64], strides = [1, 1, 1]} : vector<6x6x64xbf16> to vector<4x4x64xbf16>
    %100 = vector.shape_cast %99 : vector<4x4x64xbf16> to vector<16x64xbf16>
    %c16_71 = arith.constant 16 : index
    %c320_72 = arith.constant 320 : index
    %101 = vector.load %arg16[%c16_71, %c320_72] : memref<32x576xbf16, #tpu.memory_space<vmem>>, vector<16x64xbf16>
    tpu.vector_store %arg16[%c16_71, %c320_72], %100 {strides = array<i32>} : memref<32x576xbf16, #tpu.memory_space<vmem>>, vector<16x64xbf16>,
    %102 = vector.extract_strided_slice %83 {offsets = [2, 0, 0], sizes = [4, 4, 64], strides = [1, 1, 1]} : vector<6x6x64xbf16> to vector<4x4x64xbf16>
    %103 = vector.shape_cast %102 : vector<4x4x64xbf16> to vector<16x64xbf16>
    %c16_73 = arith.constant 16 : index
    %c384_74 = arith.constant 384 : index
    %104 = vector.load %arg16[%c16_73, %c384_74] : memref<32x576xbf16, #tpu.memory_space<vmem>>, vector<16x64xbf16>
    tpu.vector_store %arg16[%c16_73, %c384_74], %103 {strides = array<i32>} : memref<32x576xbf16, #tpu.memory_space<vmem>>, vector<16x64xbf16>,
    %105 = vector.extract_strided_slice %83 {offsets = [2, 1, 0], sizes = [4, 4, 64], strides = [1, 1, 1]} : vector<6x6x64xbf16> to vector<4x4x64xbf16>
    %106 = vector.shape_cast %105 : vector<4x4x64xbf16> to vector<16x64xbf16>
    %c16_75 = arith.constant 16 : index
    %c448_76 = arith.constant 448 : index
    %107 = vector.load %arg16[%c16_75, %c448_76] : memref<32x576xbf16, #tpu.memory_space<vmem>>, vector<16x64xbf16>
    tpu.vector_store %arg16[%c16_75, %c448_76], %106 {strides = array<i32>} : memref<32x576xbf16, #tpu.memory_space<vmem>>, vector<16x64xbf16>,
    %108 = vector.extract_strided_slice %83 {offsets = [2, 2, 0], sizes = [4, 4, 64], strides = [1, 1, 1]} : vector<6x6x64xbf16> to vector<4x4x64xbf16>
    %109 = vector.shape_cast %108 : vector<4x4x64xbf16> to vector<16x64xbf16>
    %c16_77 = arith.constant 16 : index
    %c512_78 = arith.constant 512 : index
    %110 = vector.load %arg16[%c16_77, %c512_78] : memref<32x576xbf16, #tpu.memory_space<vmem>>, vector<16x64xbf16>
    tpu.vector_store %arg16[%c16_77, %c512_78], %109 {strides = array<i32>} : memref<32x576xbf16, #tpu.memory_space<vmem>>, vector<16x64xbf16>,
    %c0_79 = arith.constant 0 : index
    %c0_80 = arith.constant 0 : index
    %111 = vector.load %arg16[%c0_79, %c0_80] : memref<32x576xbf16, #tpu.memory_space<vmem>>, vector<32x576xbf16>
    %c0_81 = arith.constant 0 : index
    %c0_82 = arith.constant 0 : index
    %112 = vector.load %arg5[%c0_81, %c0_82] : memref<576x64xbf16, #tpu.memory_space<vmem>>, vector<576x64xbf16>
    %cst_83 = arith.constant dense<0.000000e+00> : vector<32x64xf32>
    %113 = tpu.matmul %111, %112, %cst_83 {dimension_numbers = #tpu.dot_dimension_numbers<[1], [0], [0], [1], [0, 0, 1, 1], [], []>} : vector<32x576xbf16>, vector<576x64xbf16>, vector<32x64xf32> -> vector<32x64xf32>
    %c0_84 = arith.constant 0 : index
    %c0_85 = arith.constant 0 : index
    %114 = vector.load %arg6[%c0_84, %c0_85] : memref<1x64xf32, #tpu.memory_space<vmem>>, vector<1x64xf32>
    %115 = vector.broadcast %114 : vector<1x64xf32> to vector<32x64xf32>
    %116 = arith.mulf %113, %115 : vector<32x64xf32>
    %c0_86 = arith.constant 0 : index
    %c0_87 = arith.constant 0 : index
    %117 = vector.load %arg7[%c0_86, %c0_87] : memref<1x64xf32, #tpu.memory_space<vmem>>, vector<1x64xf32>
    %118 = vector.broadcast %117 : vector<1x64xf32> to vector<32x64xf32>
    %119 = arith.addf %116, %118 : vector<32x64xf32>
    %cst_88 = arith.constant 0.000000e+00 : f32
    %120 = vector.broadcast %cst_88 : f32 to vector<32x64xf32>
    %121 = arith.maximumf %119, %120 : vector<32x64xf32>
    %122 = vector.extract_strided_slice %121 {offsets = [0, 0], sizes = [16, 64], strides = [1, 1]} : vector<32x64xf32> to vector<16x64xf32>
    %123 = vector.shape_cast %122 : vector<16x64xf32> to vector<4x4x64xf32>
    %124 = arith.truncf %123 : vector<4x4x64xf32> to vector<4x4x64xbf16>
    %c0_89 = arith.constant 0 : index
    %c1_90 = arith.constant 1 : index
    %c1_91 = arith.constant 1 : index
    %c0_92 = arith.constant 0 : index
    %125 = vector.load %arg15[%c0_89, %c1_90, %c1_91, %c0_92] : memref<2x6x6x64xbf16, #tpu.memory_space<vmem>>, vector<1x4x4x64xbf16>
    %126 = vector.shape_cast %125 : vector<1x4x4x64xbf16> to vector<4x4x64xbf16>
    %127 = vector.shape_cast %124 : vector<4x4x64xbf16> to vector<1x4x4x64xbf16>
    tpu.vector_store %arg15[%c0_89, %c1_90, %c1_91, %c0_92], %127 {strides = array<i32>} : memref<2x6x6x64xbf16, #tpu.memory_space<vmem>>, vector<1x4x4x64xbf16>,
    %128 = vector.extract_strided_slice %121 {offsets = [16, 0], sizes = [16, 64], strides = [1, 1]} : vector<32x64xf32> to vector<16x64xf32>
    %129 = vector.shape_cast %128 : vector<16x64xf32> to vector<4x4x64xf32>
    %130 = arith.truncf %129 : vector<4x4x64xf32> to vector<4x4x64xbf16>
    %c1_93 = arith.constant 1 : index
    %c1_94 = arith.constant 1 : index
    %c1_95 = arith.constant 1 : index
    %c0_96 = arith.constant 0 : index
    %131 = vector.load %arg15[%c1_93, %c1_94, %c1_95, %c0_96] : memref<2x6x6x64xbf16, #tpu.memory_space<vmem>>, vector<1x4x4x64xbf16>
    %132 = vector.shape_cast %131 : vector<1x4x4x64xbf16> to vector<4x4x64xbf16>
    %133 = vector.shape_cast %130 : vector<4x4x64xbf16> to vector<1x4x4x64xbf16>
    tpu.vector_store %arg15[%c1_93, %c1_94, %c1_95, %c0_96], %133 {strides = array<i32>} : memref<2x6x6x64xbf16, #tpu.memory_space<vmem>>, vector<1x4x4x64xbf16>,
    %c0_97 = arith.constant 0 : index
    %c0_98 = arith.constant 0 : index
    %c0_99 = arith.constant 0 : index
    %c0_100 = arith.constant 0 : index
    %134 = vector.load %arg15[%c0_97, %c0_98, %c0_99, %c0_100] : memref<2x6x6x64xbf16, #tpu.memory_space<vmem>>, vector<1x6x6x64xbf16>
    %135 = vector.shape_cast %134 : vector<1x6x6x64xbf16> to vector<6x6x64xbf16>
    %136 = vector.extract_strided_slice %135 {offsets = [0, 0, 0], sizes = [4, 4, 64], strides = [1, 1, 1]} : vector<6x6x64xbf16> to vector<4x4x64xbf16>
    %137 = vector.shape_cast %136 : vector<4x4x64xbf16> to vector<16x64xbf16>
    %c0_101 = arith.constant 0 : index
    %c0_102 = arith.constant 0 : index
    %138 = vector.load %arg16[%c0_101, %c0_102] : memref<32x576xbf16, #tpu.memory_space<vmem>>, vector<16x64xbf16>
    tpu.vector_store %arg16[%c0_101, %c0_102], %137 {strides = array<i32>} : memref<32x576xbf16, #tpu.memory_space<vmem>>, vector<16x64xbf16>,
    %139 = vector.extract_strided_slice %135 {offsets = [0, 1, 0], sizes = [4, 4, 64], strides = [1, 1, 1]} : vector<6x6x64xbf16> to vector<4x4x64xbf16>
    %140 = vector.shape_cast %139 : vector<4x4x64xbf16> to vector<16x64xbf16>
    %c0_103 = arith.constant 0 : index
    %c64_104 = arith.constant 64 : index
    %141 = vector.load %arg16[%c0_103, %c64_104] : memref<32x576xbf16, #tpu.memory_space<vmem>>, vector<16x64xbf16>
    tpu.vector_store %arg16[%c0_103, %c64_104], %140 {strides = array<i32>} : memref<32x576xbf16, #tpu.memory_space<vmem>>, vector<16x64xbf16>,
    %142 = vector.extract_strided_slice %135 {offsets = [0, 2, 0], sizes = [4, 4, 64], strides = [1, 1, 1]} : vector<6x6x64xbf16> to vector<4x4x64xbf16>
    %143 = vector.shape_cast %142 : vector<4x4x64xbf16> to vector<16x64xbf16>
    %c0_105 = arith.constant 0 : index
    %c128_106 = arith.constant 128 : index
    %144 = vector.load %arg16[%c0_105, %c128_106] : memref<32x576xbf16, #tpu.memory_space<vmem>>, vector<16x64xbf16>
    tpu.vector_store %arg16[%c0_105, %c128_106], %143 {strides = array<i32>} : memref<32x576xbf16, #tpu.memory_space<vmem>>, vector<16x64xbf16>,
    %145 = vector.extract_strided_slice %135 {offsets = [1, 0, 0], sizes = [4, 4, 64], strides = [1, 1, 1]} : vector<6x6x64xbf16> to vector<4x4x64xbf16>
    %146 = vector.shape_cast %145 : vector<4x4x64xbf16> to vector<16x64xbf16>
    %c0_107 = arith.constant 0 : index
    %c192_108 = arith.constant 192 : index
    %147 = vector.load %arg16[%c0_107, %c192_108] : memref<32x576xbf16, #tpu.memory_space<vmem>>, vector<16x64xbf16>
    tpu.vector_store %arg16[%c0_107, %c192_108], %146 {strides = array<i32>} : memref<32x576xbf16, #tpu.memory_space<vmem>>, vector<16x64xbf16>,
    %148 = vector.extract_strided_slice %135 {offsets = [1, 1, 0], sizes = [4, 4, 64], strides = [1, 1, 1]} : vector<6x6x64xbf16> to vector<4x4x64xbf16>
    %149 = vector.shape_cast %148 : vector<4x4x64xbf16> to vector<16x64xbf16>
    %c0_109 = arith.constant 0 : index
    %c256_110 = arith.constant 256 : index
    %150 = vector.load %arg16[%c0_109, %c256_110] : memref<32x576xbf16, #tpu.memory_space<vmem>>, vector<16x64xbf16>
    tpu.vector_store %arg16[%c0_109, %c256_110], %149 {strides = array<i32>} : memref<32x576xbf16, #tpu.memory_space<vmem>>, vector<16x64xbf16>,
    %151 = vector.extract_strided_slice %135 {offsets = [1, 2, 0], sizes = [4, 4, 64], strides = [1, 1, 1]} : vector<6x6x64xbf16> to vector<4x4x64xbf16>
    %152 = vector.shape_cast %151 : vector<4x4x64xbf16> to vector<16x64xbf16>
    %c0_111 = arith.constant 0 : index
    %c320_112 = arith.constant 320 : index
    %153 = vector.load %arg16[%c0_111, %c320_112] : memref<32x576xbf16, #tpu.memory_space<vmem>>, vector<16x64xbf16>
    tpu.vector_store %arg16[%c0_111, %c320_112], %152 {strides = array<i32>} : memref<32x576xbf16, #tpu.memory_space<vmem>>, vector<16x64xbf16>,
    %154 = vector.extract_strided_slice %135 {offsets = [2, 0, 0], sizes = [4, 4, 64], strides = [1, 1, 1]} : vector<6x6x64xbf16> to vector<4x4x64xbf16>
    %155 = vector.shape_cast %154 : vector<4x4x64xbf16> to vector<16x64xbf16>
    %c0_113 = arith.constant 0 : index
    %c384_114 = arith.constant 384 : index
    %156 = vector.load %arg16[%c0_113, %c384_114] : memref<32x576xbf16, #tpu.memory_space<vmem>>, vector<16x64xbf16>
    tpu.vector_store %arg16[%c0_113, %c384_114], %155 {strides = array<i32>} : memref<32x576xbf16, #tpu.memory_space<vmem>>, vector<16x64xbf16>,
    %157 = vector.extract_strided_slice %135 {offsets = [2, 1, 0], sizes = [4, 4, 64], strides = [1, 1, 1]} : vector<6x6x64xbf16> to vector<4x4x64xbf16>
    %158 = vector.shape_cast %157 : vector<4x4x64xbf16> to vector<16x64xbf16>
    %c0_115 = arith.constant 0 : index
    %c448_116 = arith.constant 448 : index
    %159 = vector.load %arg16[%c0_115, %c448_116] : memref<32x576xbf16, #tpu.memory_space<vmem>>, vector<16x64xbf16>
    tpu.vector_store %arg16[%c0_115, %c448_116], %158 {strides = array<i32>} : memref<32x576xbf16, #tpu.memory_space<vmem>>, vector<16x64xbf16>,
    %160 = vector.extract_strided_slice %135 {offsets = [2, 2, 0], sizes = [4, 4, 64], strides = [1, 1, 1]} : vector<6x6x64xbf16> to vector<4x4x64xbf16>
    %161 = vector.shape_cast %160 : vector<4x4x64xbf16> to vector<16x64xbf16>
    %c0_117 = arith.constant 0 : index
    %c512_118 = arith.constant 512 : index
    %162 = vector.load %arg16[%c0_117, %c512_118] : memref<32x576xbf16, #tpu.memory_space<vmem>>, vector<16x64xbf16>
    tpu.vector_store %arg16[%c0_117, %c512_118], %161 {strides = array<i32>} : memref<32x576xbf16, #tpu.memory_space<vmem>>, vector<16x64xbf16>,
    %c1_119 = arith.constant 1 : index
    %c0_120 = arith.constant 0 : index
    %c0_121 = arith.constant 0 : index
    %c0_122 = arith.constant 0 : index
    %163 = vector.load %arg15[%c1_119, %c0_120, %c0_121, %c0_122] : memref<2x6x6x64xbf16, #tpu.memory_space<vmem>>, vector<1x6x6x64xbf16>
    %164 = vector.shape_cast %163 : vector<1x6x6x64xbf16> to vector<6x6x64xbf16>
    %165 = vector.extract_strided_slice %164 {offsets = [0, 0, 0], sizes = [4, 4, 64], strides = [1, 1, 1]} : vector<6x6x64xbf16> to vector<4x4x64xbf16>
    %166 = vector.shape_cast %165 : vector<4x4x64xbf16> to vector<16x64xbf16>
    %c16_123 = arith.constant 16 : index
    %c0_124 = arith.constant 0 : index
    %167 = vector.load %arg16[%c16_123, %c0_124] : memref<32x576xbf16, #tpu.memory_space<vmem>>, vector<16x64xbf16>
    tpu.vector_store %arg16[%c16_123, %c0_124], %166 {strides = array<i32>} : memref<32x576xbf16, #tpu.memory_space<vmem>>, vector<16x64xbf16>,
    %168 = vector.extract_strided_slice %164 {offsets = [0, 1, 0], sizes = [4, 4, 64], strides = [1, 1, 1]} : vector<6x6x64xbf16> to vector<4x4x64xbf16>
    %169 = vector.shape_cast %168 : vector<4x4x64xbf16> to vector<16x64xbf16>
    %c16_125 = arith.constant 16 : index
    %c64_126 = arith.constant 64 : index
    %170 = vector.load %arg16[%c16_125, %c64_126] : memref<32x576xbf16, #tpu.memory_space<vmem>>, vector<16x64xbf16>
    tpu.vector_store %arg16[%c16_125, %c64_126], %169 {strides = array<i32>} : memref<32x576xbf16, #tpu.memory_space<vmem>>, vector<16x64xbf16>,
    %171 = vector.extract_strided_slice %164 {offsets = [0, 2, 0], sizes = [4, 4, 64], strides = [1, 1, 1]} : vector<6x6x64xbf16> to vector<4x4x64xbf16>
    %172 = vector.shape_cast %171 : vector<4x4x64xbf16> to vector<16x64xbf16>
    %c16_127 = arith.constant 16 : index
    %c128_128 = arith.constant 128 : index
    %173 = vector.load %arg16[%c16_127, %c128_128] : memref<32x576xbf16, #tpu.memory_space<vmem>>, vector<16x64xbf16>
    tpu.vector_store %arg16[%c16_127, %c128_128], %172 {strides = array<i32>} : memref<32x576xbf16, #tpu.memory_space<vmem>>, vector<16x64xbf16>,
    %174 = vector.extract_strided_slice %164 {offsets = [1, 0, 0], sizes = [4, 4, 64], strides = [1, 1, 1]} : vector<6x6x64xbf16> to vector<4x4x64xbf16>
    %175 = vector.shape_cast %174 : vector<4x4x64xbf16> to vector<16x64xbf16>
    %c16_129 = arith.constant 16 : index
    %c192_130 = arith.constant 192 : index
    %176 = vector.load %arg16[%c16_129, %c192_130] : memref<32x576xbf16, #tpu.memory_space<vmem>>, vector<16x64xbf16>
    tpu.vector_store %arg16[%c16_129, %c192_130], %175 {strides = array<i32>} : memref<32x576xbf16, #tpu.memory_space<vmem>>, vector<16x64xbf16>,
    %177 = vector.extract_strided_slice %164 {offsets = [1, 1, 0], sizes = [4, 4, 64], strides = [1, 1, 1]} : vector<6x6x64xbf16> to vector<4x4x64xbf16>
    %178 = vector.shape_cast %177 : vector<4x4x64xbf16> to vector<16x64xbf16>
    %c16_131 = arith.constant 16 : index
    %c256_132 = arith.constant 256 : index
    %179 = vector.load %arg16[%c16_131, %c256_132] : memref<32x576xbf16, #tpu.memory_space<vmem>>, vector<16x64xbf16>
    tpu.vector_store %arg16[%c16_131, %c256_132], %178 {strides = array<i32>} : memref<32x576xbf16, #tpu.memory_space<vmem>>, vector<16x64xbf16>,
    %180 = vector.extract_strided_slice %164 {offsets = [1, 2, 0], sizes = [4, 4, 64], strides = [1, 1, 1]} : vector<6x6x64xbf16> to vector<4x4x64xbf16>
    %181 = vector.shape_cast %180 : vector<4x4x64xbf16> to vector<16x64xbf16>
    %c16_133 = arith.constant 16 : index
    %c320_134 = arith.constant 320 : index
    %182 = vector.load %arg16[%c16_133, %c320_134] : memref<32x576xbf16, #tpu.memory_space<vmem>>, vector<16x64xbf16>
    tpu.vector_store %arg16[%c16_133, %c320_134], %181 {strides = array<i32>} : memref<32x576xbf16, #tpu.memory_space<vmem>>, vector<16x64xbf16>,
    %183 = vector.extract_strided_slice %164 {offsets = [2, 0, 0], sizes = [4, 4, 64], strides = [1, 1, 1]} : vector<6x6x64xbf16> to vector<4x4x64xbf16>
    %184 = vector.shape_cast %183 : vector<4x4x64xbf16> to vector<16x64xbf16>
    %c16_135 = arith.constant 16 : index
    %c384_136 = arith.constant 384 : index
    %185 = vector.load %arg16[%c16_135, %c384_136] : memref<32x576xbf16, #tpu.memory_space<vmem>>, vector<16x64xbf16>
    tpu.vector_store %arg16[%c16_135, %c384_136], %184 {strides = array<i32>} : memref<32x576xbf16, #tpu.memory_space<vmem>>, vector<16x64xbf16>,
    %186 = vector.extract_strided_slice %164 {offsets = [2, 1, 0], sizes = [4, 4, 64], strides = [1, 1, 1]} : vector<6x6x64xbf16> to vector<4x4x64xbf16>
    %187 = vector.shape_cast %186 : vector<4x4x64xbf16> to vector<16x64xbf16>
    %c16_137 = arith.constant 16 : index
    %c448_138 = arith.constant 448 : index
    %188 = vector.load %arg16[%c16_137, %c448_138] : memref<32x576xbf16, #tpu.memory_space<vmem>>, vector<16x64xbf16>
    tpu.vector_store %arg16[%c16_137, %c448_138], %187 {strides = array<i32>} : memref<32x576xbf16, #tpu.memory_space<vmem>>, vector<16x64xbf16>,
    %189 = vector.extract_strided_slice %164 {offsets = [2, 2, 0], sizes = [4, 4, 64], strides = [1, 1, 1]} : vector<6x6x64xbf16> to vector<4x4x64xbf16>
    %190 = vector.shape_cast %189 : vector<4x4x64xbf16> to vector<16x64xbf16>
    %c16_139 = arith.constant 16 : index
    %c512_140 = arith.constant 512 : index
    %191 = vector.load %arg16[%c16_139, %c512_140] : memref<32x576xbf16, #tpu.memory_space<vmem>>, vector<16x64xbf16>
    tpu.vector_store %arg16[%c16_139, %c512_140], %190 {strides = array<i32>} : memref<32x576xbf16, #tpu.memory_space<vmem>>, vector<16x64xbf16>,
    %c0_141 = arith.constant 0 : index
    %c0_142 = arith.constant 0 : index
    %192 = vector.load %arg16[%c0_141, %c0_142] : memref<32x576xbf16, #tpu.memory_space<vmem>>, vector<32x576xbf16>
    %c0_143 = arith.constant 0 : index
    %c0_144 = arith.constant 0 : index
    %193 = vector.load %arg8[%c0_143, %c0_144] : memref<576x64xbf16, #tpu.memory_space<vmem>>, vector<576x64xbf16>
    %cst_145 = arith.constant dense<0.000000e+00> : vector<32x64xf32>
    %194 = tpu.matmul %192, %193, %cst_145 {dimension_numbers = #tpu.dot_dimension_numbers<[1], [0], [0], [1], [0, 0, 1, 1], [], []>} : vector<32x576xbf16>, vector<576x64xbf16>, vector<32x64xf32> -> vector<32x64xf32>
    %c0_146 = arith.constant 0 : index
    %c0_147 = arith.constant 0 : index
    %195 = vector.load %arg9[%c0_146, %c0_147] : memref<1x64xf32, #tpu.memory_space<vmem>>, vector<1x64xf32>
    %196 = vector.broadcast %195 : vector<1x64xf32> to vector<32x64xf32>
    %197 = arith.mulf %194, %196 : vector<32x64xf32>
    %c0_148 = arith.constant 0 : index
    %c0_149 = arith.constant 0 : index
    %198 = vector.load %arg10[%c0_148, %c0_149] : memref<1x64xf32, #tpu.memory_space<vmem>>, vector<1x64xf32>
    %199 = vector.broadcast %198 : vector<1x64xf32> to vector<32x64xf32>
    %200 = arith.addf %197, %199 : vector<32x64xf32>
    %201 = arith.addf %200, %40 : vector<32x64xf32>
    %cst_150 = arith.constant 0.000000e+00 : f32
    %202 = vector.broadcast %cst_150 : f32 to vector<32x64xf32>
    %203 = arith.maximumf %201, %202 : vector<32x64xf32>
    %204 = vector.extract_strided_slice %203 {offsets = [0, 0], sizes = [16, 64], strides = [1, 1]} : vector<32x64xf32> to vector<16x64xf32>
    %205 = vector.shape_cast %204 : vector<16x64xf32> to vector<4x4x64xf32>
    %206 = arith.truncf %205 : vector<4x4x64xf32> to vector<4x4x64xbf16>
    %c0_151 = arith.constant 0 : index
    %c1_152 = arith.constant 1 : index
    %c1_153 = arith.constant 1 : index
    %c0_154 = arith.constant 0 : index
    %207 = vector.load %arg15[%c0_151, %c1_152, %c1_153, %c0_154] : memref<2x6x6x64xbf16, #tpu.memory_space<vmem>>, vector<1x4x4x64xbf16>
    %208 = vector.shape_cast %207 : vector<1x4x4x64xbf16> to vector<4x4x64xbf16>
    %209 = vector.shape_cast %206 : vector<4x4x64xbf16> to vector<1x4x4x64xbf16>
    tpu.vector_store %arg15[%c0_151, %c1_152, %c1_153, %c0_154], %209 {strides = array<i32>} : memref<2x6x6x64xbf16, #tpu.memory_space<vmem>>, vector<1x4x4x64xbf16>,
    %210 = vector.extract_strided_slice %203 {offsets = [16, 0], sizes = [16, 64], strides = [1, 1]} : vector<32x64xf32> to vector<16x64xf32>
    %211 = vector.shape_cast %210 : vector<16x64xf32> to vector<4x4x64xf32>
    %212 = arith.truncf %211 : vector<4x4x64xf32> to vector<4x4x64xbf16>
    %c1_155 = arith.constant 1 : index
    %c1_156 = arith.constant 1 : index
    %c1_157 = arith.constant 1 : index
    %c0_158 = arith.constant 0 : index
    %213 = vector.load %arg15[%c1_155, %c1_156, %c1_157, %c0_158] : memref<2x6x6x64xbf16, #tpu.memory_space<vmem>>, vector<1x4x4x64xbf16>
    %214 = vector.shape_cast %213 : vector<1x4x4x64xbf16> to vector<4x4x64xbf16>
    %215 = vector.shape_cast %212 : vector<4x4x64xbf16> to vector<1x4x4x64xbf16>
    tpu.vector_store %arg15[%c1_155, %c1_156, %c1_157, %c0_158], %215 {strides = array<i32>} : memref<2x6x6x64xbf16, #tpu.memory_space<vmem>>, vector<1x4x4x64xbf16>,
    %c0_159 = arith.constant 0 : index
    %c0_160 = arith.constant 0 : index
    %c0_161 = arith.constant 0 : index
    %c0_162 = arith.constant 0 : index
    %216 = vector.load %arg15[%c0_159, %c0_160, %c0_161, %c0_162] : memref<2x6x6x64xbf16, #tpu.memory_space<vmem>>, vector<1x6x6x64xbf16>
    %217 = vector.shape_cast %216 : vector<1x6x6x64xbf16> to vector<6x6x64xbf16>
    %218 = vector.extract_strided_slice %217 {offsets = [0, 0, 0], sizes = [4, 4, 64], strides = [1, 1, 1]} : vector<6x6x64xbf16> to vector<4x4x64xbf16>
    %219 = vector.shape_cast %218 : vector<4x4x64xbf16> to vector<16x64xbf16>
    %c0_163 = arith.constant 0 : index
    %c0_164 = arith.constant 0 : index
    %220 = vector.load %arg16[%c0_163, %c0_164] : memref<32x576xbf16, #tpu.memory_space<vmem>>, vector<16x64xbf16>
    tpu.vector_store %arg16[%c0_163, %c0_164], %219 {strides = array<i32>} : memref<32x576xbf16, #tpu.memory_space<vmem>>, vector<16x64xbf16>,
    %221 = vector.extract_strided_slice %217 {offsets = [0, 1, 0], sizes = [4, 4, 64], strides = [1, 1, 1]} : vector<6x6x64xbf16> to vector<4x4x64xbf16>
    %222 = vector.shape_cast %221 : vector<4x4x64xbf16> to vector<16x64xbf16>
    %c0_165 = arith.constant 0 : index
    %c64_166 = arith.constant 64 : index
    %223 = vector.load %arg16[%c0_165, %c64_166] : memref<32x576xbf16, #tpu.memory_space<vmem>>, vector<16x64xbf16>
    tpu.vector_store %arg16[%c0_165, %c64_166], %222 {strides = array<i32>} : memref<32x576xbf16, #tpu.memory_space<vmem>>, vector<16x64xbf16>,
    %224 = vector.extract_strided_slice %217 {offsets = [0, 2, 0], sizes = [4, 4, 64], strides = [1, 1, 1]} : vector<6x6x64xbf16> to vector<4x4x64xbf16>
    %225 = vector.shape_cast %224 : vector<4x4x64xbf16> to vector<16x64xbf16>
    %c0_167 = arith.constant 0 : index
    %c128_168 = arith.constant 128 : index
    %226 = vector.load %arg16[%c0_167, %c128_168] : memref<32x576xbf16, #tpu.memory_space<vmem>>, vector<16x64xbf16>
    tpu.vector_store %arg16[%c0_167, %c128_168], %225 {strides = array<i32>} : memref<32x576xbf16, #tpu.memory_space<vmem>>, vector<16x64xbf16>,
    %227 = vector.extract_strided_slice %217 {offsets = [1, 0, 0], sizes = [4, 4, 64], strides = [1, 1, 1]} : vector<6x6x64xbf16> to vector<4x4x64xbf16>
    %228 = vector.shape_cast %227 : vector<4x4x64xbf16> to vector<16x64xbf16>
    %c0_169 = arith.constant 0 : index
    %c192_170 = arith.constant 192 : index
    %229 = vector.load %arg16[%c0_169, %c192_170] : memref<32x576xbf16, #tpu.memory_space<vmem>>, vector<16x64xbf16>
    tpu.vector_store %arg16[%c0_169, %c192_170], %228 {strides = array<i32>} : memref<32x576xbf16, #tpu.memory_space<vmem>>, vector<16x64xbf16>,
    %230 = vector.extract_strided_slice %217 {offsets = [1, 1, 0], sizes = [4, 4, 64], strides = [1, 1, 1]} : vector<6x6x64xbf16> to vector<4x4x64xbf16>
    %231 = vector.shape_cast %230 : vector<4x4x64xbf16> to vector<16x64xbf16>
    %c0_171 = arith.constant 0 : index
    %c256_172 = arith.constant 256 : index
    %232 = vector.load %arg16[%c0_171, %c256_172] : memref<32x576xbf16, #tpu.memory_space<vmem>>, vector<16x64xbf16>
    tpu.vector_store %arg16[%c0_171, %c256_172], %231 {strides = array<i32>} : memref<32x576xbf16, #tpu.memory_space<vmem>>, vector<16x64xbf16>,
    %233 = vector.extract_strided_slice %217 {offsets = [1, 2, 0], sizes = [4, 4, 64], strides = [1, 1, 1]} : vector<6x6x64xbf16> to vector<4x4x64xbf16>
    %234 = vector.shape_cast %233 : vector<4x4x64xbf16> to vector<16x64xbf16>
    %c0_173 = arith.constant 0 : index
    %c320_174 = arith.constant 320 : index
    %235 = vector.load %arg16[%c0_173, %c320_174] : memref<32x576xbf16, #tpu.memory_space<vmem>>, vector<16x64xbf16>
    tpu.vector_store %arg16[%c0_173, %c320_174], %234 {strides = array<i32>} : memref<32x576xbf16, #tpu.memory_space<vmem>>, vector<16x64xbf16>,
    %236 = vector.extract_strided_slice %217 {offsets = [2, 0, 0], sizes = [4, 4, 64], strides = [1, 1, 1]} : vector<6x6x64xbf16> to vector<4x4x64xbf16>
    %237 = vector.shape_cast %236 : vector<4x4x64xbf16> to vector<16x64xbf16>
    %c0_175 = arith.constant 0 : index
    %c384_176 = arith.constant 384 : index
    %238 = vector.load %arg16[%c0_175, %c384_176] : memref<32x576xbf16, #tpu.memory_space<vmem>>, vector<16x64xbf16>
    tpu.vector_store %arg16[%c0_175, %c384_176], %237 {strides = array<i32>} : memref<32x576xbf16, #tpu.memory_space<vmem>>, vector<16x64xbf16>,
    %239 = vector.extract_strided_slice %217 {offsets = [2, 1, 0], sizes = [4, 4, 64], strides = [1, 1, 1]} : vector<6x6x64xbf16> to vector<4x4x64xbf16>
    %240 = vector.shape_cast %239 : vector<4x4x64xbf16> to vector<16x64xbf16>
    %c0_177 = arith.constant 0 : index
    %c448_178 = arith.constant 448 : index
    %241 = vector.load %arg16[%c0_177, %c448_178] : memref<32x576xbf16, #tpu.memory_space<vmem>>, vector<16x64xbf16>
    tpu.vector_store %arg16[%c0_177, %c448_178], %240 {strides = array<i32>} : memref<32x576xbf16, #tpu.memory_space<vmem>>, vector<16x64xbf16>,
    %242 = vector.extract_strided_slice %217 {offsets = [2, 2, 0], sizes = [4, 4, 64], strides = [1, 1, 1]} : vector<6x6x64xbf16> to vector<4x4x64xbf16>
    %243 = vector.shape_cast %242 : vector<4x4x64xbf16> to vector<16x64xbf16>
    %c0_179 = arith.constant 0 : index
    %c512_180 = arith.constant 512 : index
    %244 = vector.load %arg16[%c0_179, %c512_180] : memref<32x576xbf16, #tpu.memory_space<vmem>>, vector<16x64xbf16>
    tpu.vector_store %arg16[%c0_179, %c512_180], %243 {strides = array<i32>} : memref<32x576xbf16, #tpu.memory_space<vmem>>, vector<16x64xbf16>,
    %c1_181 = arith.constant 1 : index
    %c0_182 = arith.constant 0 : index
    %c0_183 = arith.constant 0 : index
    %c0_184 = arith.constant 0 : index
    %245 = vector.load %arg15[%c1_181, %c0_182, %c0_183, %c0_184] : memref<2x6x6x64xbf16, #tpu.memory_space<vmem>>, vector<1x6x6x64xbf16>
    %246 = vector.shape_cast %245 : vector<1x6x6x64xbf16> to vector<6x6x64xbf16>
    %247 = vector.extract_strided_slice %246 {offsets = [0, 0, 0], sizes = [4, 4, 64], strides = [1, 1, 1]} : vector<6x6x64xbf16> to vector<4x4x64xbf16>
    %248 = vector.shape_cast %247 : vector<4x4x64xbf16> to vector<16x64xbf16>
    %c16_185 = arith.constant 16 : index
    %c0_186 = arith.constant 0 : index
    %249 = vector.load %arg16[%c16_185, %c0_186] : memref<32x576xbf16, #tpu.memory_space<vmem>>, vector<16x64xbf16>
    tpu.vector_store %arg16[%c16_185, %c0_186], %248 {strides = array<i32>} : memref<32x576xbf16, #tpu.memory_space<vmem>>, vector<16x64xbf16>,
    %250 = vector.extract_strided_slice %246 {offsets = [0, 1, 0], sizes = [4, 4, 64], strides = [1, 1, 1]} : vector<6x6x64xbf16> to vector<4x4x64xbf16>
    %251 = vector.shape_cast %250 : vector<4x4x64xbf16> to vector<16x64xbf16>
    %c16_187 = arith.constant 16 : index
    %c64_188 = arith.constant 64 : index
    %252 = vector.load %arg16[%c16_187, %c64_188] : memref<32x576xbf16, #tpu.memory_space<vmem>>, vector<16x64xbf16>
    tpu.vector_store %arg16[%c16_187, %c64_188], %251 {strides = array<i32>} : memref<32x576xbf16, #tpu.memory_space<vmem>>, vector<16x64xbf16>,
    %253 = vector.extract_strided_slice %246 {offsets = [0, 2, 0], sizes = [4, 4, 64], strides = [1, 1, 1]} : vector<6x6x64xbf16> to vector<4x4x64xbf16>
    %254 = vector.shape_cast %253 : vector<4x4x64xbf16> to vector<16x64xbf16>
    %c16_189 = arith.constant 16 : index
    %c128_190 = arith.constant 128 : index
    %255 = vector.load %arg16[%c16_189, %c128_190] : memref<32x576xbf16, #tpu.memory_space<vmem>>, vector<16x64xbf16>
    tpu.vector_store %arg16[%c16_189, %c128_190], %254 {strides = array<i32>} : memref<32x576xbf16, #tpu.memory_space<vmem>>, vector<16x64xbf16>,
    %256 = vector.extract_strided_slice %246 {offsets = [1, 0, 0], sizes = [4, 4, 64], strides = [1, 1, 1]} : vector<6x6x64xbf16> to vector<4x4x64xbf16>
    %257 = vector.shape_cast %256 : vector<4x4x64xbf16> to vector<16x64xbf16>
    %c16_191 = arith.constant 16 : index
    %c192_192 = arith.constant 192 : index
    %258 = vector.load %arg16[%c16_191, %c192_192] : memref<32x576xbf16, #tpu.memory_space<vmem>>, vector<16x64xbf16>
    tpu.vector_store %arg16[%c16_191, %c192_192], %257 {strides = array<i32>} : memref<32x576xbf16, #tpu.memory_space<vmem>>, vector<16x64xbf16>,
    %259 = vector.extract_strided_slice %246 {offsets = [1, 1, 0], sizes = [4, 4, 64], strides = [1, 1, 1]} : vector<6x6x64xbf16> to vector<4x4x64xbf16>
    %260 = vector.shape_cast %259 : vector<4x4x64xbf16> to vector<16x64xbf16>
    %c16_193 = arith.constant 16 : index
    %c256_194 = arith.constant 256 : index
    %261 = vector.load %arg16[%c16_193, %c256_194] : memref<32x576xbf16, #tpu.memory_space<vmem>>, vector<16x64xbf16>
    tpu.vector_store %arg16[%c16_193, %c256_194], %260 {strides = array<i32>} : memref<32x576xbf16, #tpu.memory_space<vmem>>, vector<16x64xbf16>,
    %262 = vector.extract_strided_slice %246 {offsets = [1, 2, 0], sizes = [4, 4, 64], strides = [1, 1, 1]} : vector<6x6x64xbf16> to vector<4x4x64xbf16>
    %263 = vector.shape_cast %262 : vector<4x4x64xbf16> to vector<16x64xbf16>
    %c16_195 = arith.constant 16 : index
    %c320_196 = arith.constant 320 : index
    %264 = vector.load %arg16[%c16_195, %c320_196] : memref<32x576xbf16, #tpu.memory_space<vmem>>, vector<16x64xbf16>
    tpu.vector_store %arg16[%c16_195, %c320_196], %263 {strides = array<i32>} : memref<32x576xbf16, #tpu.memory_space<vmem>>, vector<16x64xbf16>,
    %265 = vector.extract_strided_slice %246 {offsets = [2, 0, 0], sizes = [4, 4, 64], strides = [1, 1, 1]} : vector<6x6x64xbf16> to vector<4x4x64xbf16>
    %266 = vector.shape_cast %265 : vector<4x4x64xbf16> to vector<16x64xbf16>
    %c16_197 = arith.constant 16 : index
    %c384_198 = arith.constant 384 : index
    %267 = vector.load %arg16[%c16_197, %c384_198] : memref<32x576xbf16, #tpu.memory_space<vmem>>, vector<16x64xbf16>
    tpu.vector_store %arg16[%c16_197, %c384_198], %266 {strides = array<i32>} : memref<32x576xbf16, #tpu.memory_space<vmem>>, vector<16x64xbf16>,
    %268 = vector.extract_strided_slice %246 {offsets = [2, 1, 0], sizes = [4, 4, 64], strides = [1, 1, 1]} : vector<6x6x64xbf16> to vector<4x4x64xbf16>
    %269 = vector.shape_cast %268 : vector<4x4x64xbf16> to vector<16x64xbf16>
    %c16_199 = arith.constant 16 : index
    %c448_200 = arith.constant 448 : index
    %270 = vector.load %arg16[%c16_199, %c448_200] : memref<32x576xbf16, #tpu.memory_space<vmem>>, vector<16x64xbf16>
    tpu.vector_store %arg16[%c16_199, %c448_200], %269 {strides = array<i32>} : memref<32x576xbf16, #tpu.memory_space<vmem>>, vector<16x64xbf16>,
    %271 = vector.extract_strided_slice %246 {offsets = [2, 2, 0], sizes = [4, 4, 64], strides = [1, 1, 1]} : vector<6x6x64xbf16> to vector<4x4x64xbf16>
    %272 = vector.shape_cast %271 : vector<4x4x64xbf16> to vector<16x64xbf16>
    %c16_201 = arith.constant 16 : index
    %c512_202 = arith.constant 512 : index
    %273 = vector.load %arg16[%c16_201, %c512_202] : memref<32x576xbf16, #tpu.memory_space<vmem>>, vector<16x64xbf16>
    tpu.vector_store %arg16[%c16_201, %c512_202], %272 {strides = array<i32>} : memref<32x576xbf16, #tpu.memory_space<vmem>>, vector<16x64xbf16>,
    %c0_203 = arith.constant 0 : index
    %c0_204 = arith.constant 0 : index
    %274 = vector.load %arg16[%c0_203, %c0_204] : memref<32x576xbf16, #tpu.memory_space<vmem>>, vector<32x576xbf16>
    %c0_205 = arith.constant 0 : index
    %c0_206 = arith.constant 0 : index
    %275 = vector.load %arg11[%c0_205, %c0_206] : memref<576x128xbf16, #tpu.memory_space<vmem>>, vector<576x128xbf16>
    %cst_207 = arith.constant dense<0.000000e+00> : vector<32x128xf32>
    %276 = tpu.matmul %274, %275, %cst_207 {dimension_numbers = #tpu.dot_dimension_numbers<[1], [0], [0], [1], [0, 0, 1, 1], [], []>} : vector<32x576xbf16>, vector<576x128xbf16>, vector<32x128xf32> -> vector<32x128xf32>
    %c0_208 = arith.constant 0 : index
    %c0_209 = arith.constant 0 : index
    %277 = vector.load %arg12[%c0_208, %c0_209] : memref<1x128xf32, #tpu.memory_space<vmem>>, vector<1x128xf32>
    %278 = vector.broadcast %277 : vector<1x128xf32> to vector<32x128xf32>
    %279 = arith.mulf %276, %278 : vector<32x128xf32>
    %c0_210 = arith.constant 0 : index
    %c0_211 = arith.constant 0 : index
    %280 = vector.load %arg13[%c0_210, %c0_211] : memref<1x128xf32, #tpu.memory_space<vmem>>, vector<1x128xf32>
    %281 = vector.broadcast %280 : vector<1x128xf32> to vector<32x128xf32>
    %282 = arith.addf %279, %281 : vector<32x128xf32>
    %cst_212 = arith.constant 0.000000e+00 : f32
    %283 = vector.broadcast %cst_212 : f32 to vector<32x128xf32>
    %284 = arith.maximumf %282, %283 : vector<32x128xf32>
    %c0_213 = arith.constant 0 : index
    %c0_214 = arith.constant 0 : index
    %285 = vector.load %arg14[%c0_213, %c0_214] : memref<32x128xf32, #tpu.memory_space<vmem>>, vector<32x128xf32>
    tpu.vector_store %arg14[%c0_213, %c0_214], %284 {strides = array<i32>} : memref<32x128xf32, #tpu.memory_space<vmem>>, vector<32x128xf32>,
    return
  }
  func.func @transform_0(%arg0: i32) -> (i32, i32, i32, i32) {
    %c0_i32 = arith.constant 0 : i32
    %c0_i32_0 = arith.constant 0 : i32
    %c0_i32_1 = arith.constant 0 : i32
    %c0_i32_2 = arith.constant 0 : i32
    %c0_i32_3 = arith.constant 0 : i32
    return %c0_i32, %c0_i32_0, %c0_i32_1, %c0_i32_2 : i32, i32, i32, i32
  }
  func.func @transform_1(%arg0: i32) -> (i32, i32) {
    %c0_i32 = arith.constant 0 : i32
    %c0_i32_0 = arith.constant 0 : i32
    %c0_i32_1 = arith.constant 0 : i32
    return %c0_i32, %c0_i32_0 : i32, i32
  }
  func.func @transform_2(%arg0: i32) -> (i32, i32) {
    %c0_i32 = arith.constant 0 : i32
    %c0_i32_0 = arith.constant 0 : i32
    %c0_i32_1 = arith.constant 0 : i32
    return %c0_i32, %c0_i32_0 : i32, i32
  }
  func.func @transform_3(%arg0: i32) -> (i32, i32) {
    %c0_i32 = arith.constant 0 : i32
    %c0_i32_0 = arith.constant 0 : i32
    %c0_i32_1 = arith.constant 0 : i32
    return %c0_i32, %c0_i32_0 : i32, i32
  }
  func.func @transform_4(%arg0: i32) -> (i32, i32) {
    %c0_i32 = arith.constant 0 : i32
    %c0_i32_0 = arith.constant 0 : i32
    %c0_i32_1 = arith.constant 0 : i32
    return %c0_i32, %c0_i32_0 : i32, i32
  }
  func.func @transform_5(%arg0: i32) -> (i32, i32) {
    %c0_i32 = arith.constant 0 : i32
    %c0_i32_0 = arith.constant 0 : i32
    %c0_i32_1 = arith.constant 0 : i32
    return %c0_i32, %c0_i32_0 : i32, i32
  }
  func.func @transform_6(%arg0: i32) -> (i32, i32) {
    %c0_i32 = arith.constant 0 : i32
    %c0_i32_0 = arith.constant 0 : i32
    %c0_i32_1 = arith.constant 0 : i32
    return %c0_i32, %c0_i32_0 : i32, i32
  }
  func.func @transform_7(%arg0: i32) -> (i32, i32) {
    %c0_i32 = arith.constant 0 : i32
    %c0_i32_0 = arith.constant 0 : i32
    %c0_i32_1 = arith.constant 0 : i32
    return %c0_i32, %c0_i32_0 : i32, i32
  }
  func.func @transform_8(%arg0: i32) -> (i32, i32) {
    %c0_i32 = arith.constant 0 : i32
    %c0_i32_0 = arith.constant 0 : i32
    %c0_i32_1 = arith.constant 0 : i32
    return %c0_i32, %c0_i32_0 : i32, i32
  }
  func.func @transform_9(%arg0: i32) -> (i32, i32) {
    %c0_i32 = arith.constant 0 : i32
    %c0_i32_0 = arith.constant 0 : i32
    %c0_i32_1 = arith.constant 0 : i32
    return %c0_i32, %c0_i32_0 : i32, i32
  }
  func.func @transform_10(%arg0: i32) -> (i32, i32) {
    %c0_i32 = arith.constant 0 : i32
    %c0_i32_0 = arith.constant 0 : i32
    %c0_i32_1 = arith.constant 0 : i32
    return %c0_i32, %c0_i32_0 : i32, i32
  }
  func.func @transform_11(%arg0: i32) -> (i32, i32) {
    %c0_i32 = arith.constant 0 : i32
    %c0_i32_0 = arith.constant 0 : i32
    %c0_i32_1 = arith.constant 0 : i32
    return %c0_i32, %c0_i32_0 : i32, i32
  }
  func.func @transform_12(%arg0: i32) -> (i32, i32) {
    %c0_i32 = arith.constant 0 : i32
    %c0_i32_0 = arith.constant 0 : i32
    %c0_i32_1 = arith.constant 0 : i32
    return %c0_i32, %c0_i32_0 : i32, i32
  }
  func.func @transform_13(%arg0: i32) -> (i32, i32) {
    %c0_i32 = arith.constant 0 : i32
    %c0_i32_0 = arith.constant 0 : i32
    %c0_i32_1 = arith.constant 0 : i32
    return %c0_i32, %c0_i32_0 : i32, i32
  }
}

</mosaic_0001>

<bundles_post_ra>
// kernel: vqvae_encoder_forward.2
= control target key start
LH: loop header
LB: loop body
LE: loop exit
PB: predicated region body
PF: predicated region fallthrough
CT: control target
= control target key end

     0   :  { %vm105_vm0 = vsmask.f32 3328  ;;  %s4878_s19 = smov 32   ;;  %vm106_vm1 = vsmask.f32 7440  ;;  %s4879_s30 = smov 16   ;;  %s7186_s0 = inlined_call_operand.vmem [shape: bf16[2,9,9,16], index: 0, kind: input, shape index: {}]   ;;  %s7187_s1 = inlined_call_operand.vmem [shape: bf16[64,32], index: 1, kind: input, shape index: {}]   ;;  %s7188_s2 = inlined_call_operand.vmem [shape: f32[1,32], index: 2, kind: input, shape index: {}]   ;;  %s7189_s3 = inlined_call_operand.vmem [shape: f32[1,32], index: 3, kind: input, shape index: {}]   ;;  %s7190_s4 = inlined_call_operand.vmem [shape: bf16[288,32], index: 4, kind: input, shape index: {}]   ;;  %s7191_s5 = inlined_call_operand.vmem [shape: f32[1,32], index: 5, kind: input, shape index: {}]   ;;  %s7192_s6 = inlined_call_operand.vmem [shape: f32[1,32], index: 6, kind: input, shape index: {}]   ;;  %s7193_s7 = inlined_call_operand.vmem [shape: bf16[288,32], index: 7, kind: input, shape index: {}]   ;;  %s7194_s8 = inlined_call_operand.vmem [shape: f32[1,32], index: 8, kind: input, shape index: {}]   ;;  %s7195_s9 = inlined_call_operand.vmem [shape: f32[1,32], index: 9, kind: input, shape index: {}]   ;;  %s7196_s10 = inlined_call_operand.vmem [shape: bf16[128,32], index: 10, kind: output, shape index: {}]  }
   0x1   :  { %v4942_v0 = vld [vmem:[%s7186_s0] sm:$0xf]  ;;  %v79_v1 = vld [vmem:[%s7186_s0 + $0x4] sm:$0x1]  ;;  %v4952_v5 = vld [vmem:[%s7186_s0 + $0x8] sm:$0xf] }
   0x2   :  { %v109_v2 = vshrl.u32 %v4942_v0, 16  ;;  %v112_v3 = vshll.u32 %v4942_v0, 16  ;;  %v118_v4 = vshll.u32 %v79_v1, 16  ;;  %261 = vrot.lane.b32.xlu1 %v4952_v5, %s4878_s19  ;;  %v123_v6 = vshrl.u32 %v4952_v5, 16  ;;  %v81_v8 = vld [vmem:[%s7186_s0 + $0xc] sm:$0x1]  ;;  %vm4978_vm2 = vmor %vm105_vm0, %vm106_vm1 }
   0x3   :  { %v126_v7 = vshll.u32 %v4952_v5, 16  ;;  %v4964_v9 = vld [vmem:[%s7186_s0 + $0x10] sm:$0xf]  ;;  %v132_v12 = vshll.u32 %v81_v8, 16  ;;  %v4971_v17 = vld [vmem:[%s7186_s0 + $0x18] sm:$0xf] }
   0x4   :  { %v111_v10 = vrot.slane %v109_v2, 4  ;;  %v114_v11 = vrot.slane %v112_v3, 5  ;;  %v125_v13 = vrot.slane %v123_v6, 4  ;;  %v137_v15 = vshrl.u32 %v4964_v9, 16  ;;  %v85_v21 = vld [vmem:[%s7186_s0 + $0x1c] sm:$0x1] }
   0x5   :  { %v128_v14 = vrot.slane %v126_v7, 5  ;;  %v140_v16 = vshll.u32 %v4964_v9, 16  ;;  %v120_v19 = vrot.slane %v118_v4, 5  ;;  %v134_v20 = vrot.slane %v132_v12, 5  ;;  %v83_v29 = vld [vmem:[%s7186_s0 + $0x14] sm:$0x1] }
   0x6   :  { %v115_v18 = vor.u32 %v114_v11, %v111_v10  ;;  %v151_v22 = vshrl.u32 %v4971_v17, 16  ;;  %v139_v25 = vrot.slane %v137_v15, 4  ;;  %v154_v27 = vshll.u32 %v4971_v17, 16  ;;  %s4880_s11 = smov 48   ;;  %v4997_v41 = vld [vmem:[%s7186_s0 + $0x28] sm:$0xf] }
   0x7   :  { %v129_v24 = vor.u32 %v128_v14, %v125_v13  ;;  %v142_v26 = vrot.slane %v140_v16, 5  ;;  %v160_v31 = vshll.u32 %v85_v21, 16  ;;  %v146_v37 = vshll.u32 %v83_v29, 16  ;;  %v5004_v45 = vld [vmem:[%s7186_s0 + $0x20] sm:$0xf] }
   0x8   :  { %v116_v28 = vrot.slane %v115_v18, 4  ;;  %v153_v30 = vrot.slane %v151_v22, 4  ;;  %v156_v33 = vrot.slane %v154_v27, 5  ;;  %v179_v46 = vshrl.u32 %v4997_v41, 16  ;;  %v89_v53 = vld [vmem:[%s7186_s0 + $0x2c] sm:$0x1] }
   0x9   :  { %v130_v32 = vrot.slane %v129_v24, 4  ;;  %v143_v36 = vor.u32 %v142_v26, %v139_v25  ;;  %v162_v39 = vrot.slane %v160_v31, 5  ;;  %v148_v43 = vrot.slane %v146_v37, 5  ;;  %v87_v56 = vld [vmem:[%s7186_s0 + $0x24] sm:$0x1] }
   0xa   :  { %v121_v34 = vsel %vm4978_vm2, %v116_v28, %v120_v19  ;;  %263 = vrot.lane.b32.xlu1 %v4964_v9, %s4878_s19  ;;  %v157_v38 = vor.u32 %v156_v33, %v153_v30  ;;  %v182_v47 = vshll.u32 %v4997_v41, 16  ;;  %v165_v49 = vshrl.u32 %v5004_v45, 16  ;;  %v5028_v63 = vld [vmem:[%s7186_s0 + $0x38] sm:$0xf]  ;;  %v5035_v4 = vld [vmem:[%s7186_s0 + $0x30] sm:$0xf] }
   0xb   :  { %220 = vrot.lane.b32.xlu0 %v121_v34, %s4879_s30  ;;  %v135_v35 = vsel %vm4978_vm2, %v130_v32, %v134_v20  ;;  %v144_v42 = vrot.slane %v143_v36, 4  ;;  %v168_v50 = vshll.u32 %v5004_v45, 16  ;;  %v181_v51 = vrot.slane %v179_v46, 4  ;;  %v93_v14 = vld [vmem:[%s7186_s0 + $0x3c] sm:$0x1] }
   0xc   :  { %308 = vrot.lane.b32.xlu2 %v135_v35, %s4880_s11  ;;  %v158_v40 = vrot.slane %v157_v38, 4  ;;  %v184_v52 = vrot.slane %v182_v47, 5  ;;  %v167_v54 = vrot.slane %v165_v49, 4  ;;  %v188_v58 = vshll.u32 %v89_v53, 16  ;;  %v91_v18 = vld [vmem:[%s7186_s0 + $0x34] sm:$0x1] }
   0xd   :  { %v149_v48 = vsel %vm4978_vm2, %v144_v42, %v148_v43  ;;  %v170_v55 = vrot.slane %v168_v50, 5  ;;  %v174_v60 = vshll.u32 %v87_v56, 16  ;;  %v207_v6 = vshrl.u32 %v5028_v63, 16  ;;  %v5060_v26 = vld [vmem:[%s7186_s0 + $0x50] sm:$0xf] }
   0xe   :  { %v163_v44 = vsel %vm4978_vm2, %v158_v40, %v162_v39  ;;  %v185_v57 = vor.u32 %v184_v52, %v181_v51  ;;  %v190_v62 = vrot.slane %v188_v58, 5  ;;  %v210_v7 = vshll.u32 %v5028_v63, 16  ;;  %v94_v30 = vld [vmem:[%s7186_s0 + $0x40] sm:$0xf]  ;;  %v5078_v40 = vld [vmem:[%s7186_s0 + $0x48] sm:$0xf] }
   0xf   :  { %v171_v59 = vor.u32 %v170_v55, %v167_v54  ;;  %v176_v2 = vrot.slane %v174_v60, 5  ;;  %v193_v10 = vshrl.u32 %v5035_v4, 16  ;;  %v196_v11 = vshll.u32 %v5035_v4, 16  ;;  %v4285_v42 = vld [vmem:[%s7186_s0 + $0x54] sm:$0x1] }
  0x10   :  { %v186_v61 = vrot.slane %v185_v57, 4  ;;  %v209_v12 = vrot.slane %v207_v6, 4  ;;  %v212_v13 = vrot.slane %v210_v7, 5  ;;  %v216_v20 = vshll.u32 %v93_v14, 16  ;;  %v95_v43 = vld [vmem:[%s7186_s0 + $0x44] sm:$0x1] }
  0x11   :  { %v172_v1 = vrot.slane %v171_v59, 4  ;;  %v195_v15 = vrot.slane %v193_v10, 4  ;;  %v198_v16 = vrot.slane %v196_v11, 5  ;;  %v202_v22 = vshll.u32 %v91_v18, 16  ;;  %v4283_v51 = vld [vmem:[%s7186_s0 + $0x4c] sm:$0x1] }
  0x12   :  { %226 = vrot.lane.b32.xlu1 %v163_v44, %s4879_s30  ;;  %v191_v3 = vsel %vm4978_vm2, %v186_v61, %v190_v62  ;;  %v213_v19 = vor.u32 %v212_v13, %v209_v12  ;;  %v218_v25 = vrot.slane %v216_v20, 5  ;;  %v383_v31 = vshrl.u32 %v5060_v26, 16  ;;  %v5098_v56 = vld [vmem:[%s7186_s0 + $0x60] sm:$0xf]  ;;  %v5105_v62 = vld [vmem:[%s7186_s0 + $0x58] sm:$0xf] }
  0x13   :  { %222 = vrot.lane.b32.xlu0 %v135_v35, %s4879_s30  ;;  %v177_v8 = vsel %vm4978_vm2, %v172_v1, %v176_v2  ;;  %v199_v21 = vor.u32 %v198_v16, %v195_v15  ;;  %v204_v28 = vrot.slane %v202_v22, 5  ;;  %v386_v32 = vshll.u32 %v5060_v26, 16  ;;  %v4289_v13 = vld [vmem:[%s7186_s0 + $0x64] sm:$0x1]  ;;  %v4287_v18 = vld [vmem:[%s7186_s0 + $0x5c] sm:$0x1] }
  0x14   :  { %310 = vrot.lane.b32.xlu2 %v149_v48, %s4880_s11  ;;  %v214_v24 = vrot.slane %v213_v19, 4  ;;  %v295_v33 = vshrl.u32 %v94_v30, 16  ;;  %v298_v34 = vshll.u32 %v94_v30, 16  ;;  %v385_v36 = vrot.slane %v383_v31, 4  ;;  %v5138_v31 = vld [vmem:[%s7186_s0 + $0x68] sm:$0xf] }
  0x15   :  { %v200_v27 = vrot.slane %v199_v21, 4  ;;  %v388_v37 = vrot.slane %v386_v32, 5  ;;  %v372_v46 = vshll.u32 %v5078_v40, 16  ;;  %v304_v50 = vshll.u32 %v95_v43, 16 }
  0x16   :  { %v219_v29 = vsel %vm4978_vm2, %v214_v24, %v218_v25  ;;  %v297_v38 = vrot.slane %v295_v33, 4  ;;  %v300_v39 = vrot.slane %v298_v34, 5  ;;  %v378_v59 = vshll.u32 %v4283_v51, 16 }
  0x17   :  { %v205_v35 = vsel %vm4978_vm2, %v200_v27, %v204_v28  ;;  %v389_v47 = vor.u32 %v388_v37, %v385_v36  ;;  %v374_v53 = vrot.slane %v372_v46, 5  ;;  %v306_v58 = vrot.slane %v304_v50, 5  ;;  %v5131_v27 = vld [vmem:[%s7186_s0 + $0x70] sm:$0xf] }
  0x18   :  { %v301_v49 = vor.u32 %v300_v39, %v297_v38  ;;  %v411_v1 = vshrl.u32 %v5098_v56, 16  ;;  %v414_v2 = vshll.u32 %v5098_v56, 16  ;;  %v397_v6 = vshrl.u32 %v5105_v62, 16  ;;  %v4293_v39 = vld [vmem:[%s7186_s0 + $0x74] sm:$0x1] }
  0x19   :  { %v390_v54 = vrot.slane %v389_v47, 4  ;;  %v400_v7 = vshll.u32 %v5105_v62, 16  ;;  %v380_v10 = vrot.slane %v378_v59, 5  ;;  %v420_v20 = vshll.u32 %v4289_v13, 16 }
  0x1a   :  { %312 = vrot.lane.b32.xlu1 %v163_v44, %s4880_s11  ;;  %v369_v44 = vshrl.u32 %v5078_v40, 16  ;;  %v302_v57 = vrot.slane %v301_v49, 4  ;;  %v413_v11 = vrot.slane %v411_v1, 4  ;;  %v416_v12 = vrot.slane %v414_v2, 5 }
  0x1b   :  { %224 = vrot.lane.b32.xlu0 %v149_v48, %s4879_s30  ;;  %v392_v48 = vshll.u32 %v4285_v42, 16  ;;  %v399_v14 = vrot.slane %v397_v6, 4  ;;  %v402_v15 = vrot.slane %v400_v7, 5  ;;  %v406_v22 = vshll.u32 %v4287_v18, 16 }
  0x1c   :  { %265 = vrot.lane.b32.xlu2 %v4971_v17, %s4878_s19  ;;  %v371_v52 = vrot.slane %v369_v44, 4  ;;  %v417_v19 = vor.u32 %v416_v12, %v413_v11  ;;  %v422_v25 = vrot.slane %v420_v20, 5  ;;  %v439_v32 = vshrl.u32 %v5131_v27, 16  ;;  %v4291_v44 = vld [vmem:[%s7186_s0 + $0x6c] sm:$0x1]  ;;  %v4756_v11 = vld [vmem:[%s7187_s1] sm:$0xff] }
  0x1d   :  { %v394_v55 = vrot.slane %v392_v48, 5  ;;  %v403_v21 = vor.u32 %v402_v15, %v399_v14  ;;  %v442_v33 = vshll.u32 %v5131_v27, 16  ;;  %v428_v36 = vshll.u32 %v5138_v31, 16  ;;  %v4298_v15 = vld [vmem:[%s7186_s0 + $0x88] sm:$0xf] }
  0x1e   :  { %v375_v60 = vor.u32 %v374_v53, %v371_v52  ;;  %v418_v24 = vrot.slane %v417_v19, 4  ;;  %v441_v37 = vrot.slane %v439_v32, 4  ;;  %v448_v47 = vshll.u32 %v4293_v39, 16  ;;  %v5165_v52 = vld [vmem:[%s7186_s0 + $0x80] sm:$0xf] }
  0x1f   :  { %v395_v61 = vsel %vm4978_vm2, %v390_v54, %v394_v55  ;;  %v404_v28 = vrot.slane %v403_v21, 4  ;;  %v444_v38 = vrot.slane %v442_v33, 5  ;;  %v430_v43 = vrot.slane %v428_v36, 5 }
  0x20   :  { %v434_v49 = vshll.u32 %v4291_v44, 16  ;;  %vm96_vm3 = vcmask 125952   ;;  %v450_v51 = vrot.slane %v448_v47, 5  ;;  %vm36_vm4 = vcmask 257024  }
  0x21   :  { %v445_v46 = vor.u32 %v444_v38, %v441_v37  ;;  %97 = vst.msk [vmem:[#allocation3] sm:$0xf] %vm96_vm3, %v4942_v0  ;;  %v4294_v0 = vld [vmem:[%s7186_s0 + $0x78] sm:$0xf]  ;;  %v556_v18 = vshll.u32 %v4298_v15, 16  ;;  %vm244_vm5 = vcmask 257152  }
  0x22   :  { %230 = vrot.lane.b32.xlu1 %v191_v3, %s4879_s30  ;;  %98 = vst.msk [vmem:[#allocation3 + $0xc] sm:$0xf] %vm96_vm3, %v4952_v5  ;;  %v436_v54 = vrot.slane %v434_v49, 5  ;;  %v4759_v5 = vld [vmem:[%s7187_s1 + $0x18] sm:$0xff]  ;;  %vm285_vm6 = vcmask 388352   ;;  %vm332_vm7 = vcmask 519552  }
  0x23   :  { %267 = vrot.lane.b32.xlu0 %v5004_v45, %s4878_s19  ;;  %v446_v50 = vrot.slane %v445_v46, 4  ;;  %99 = vst.msk [vmem:[#allocation3 + $0x18] sm:$0xf] %vm96_vm3, %v4964_v9  ;;  %715 = vmatpush.bf16.msra.mxu0 %v4759_v5  ;;  %vm686_vm8 = vcmask 523264   ;;  %vm38_vm9 = vcmask 253952   ;;  %vm1285_vm10 = vcmask 1042432  }
  0x24   :  { %314 = vrot.lane.b32.xlu2 %v177_v8, %s4880_s11  ;;  %100 = vst.msk [vmem:[#allocation3 + $0x24] sm:$0xf] %vm96_vm3, %v4971_v17  ;;  %v453_v17 = vshrl.u32 %v4294_v0, 16  ;;  %vm1286_vm11 = vcmask 1046532   ;;  %vm906_vm13 = vsmask.f32 7938 }
  0x25   :  { %v451_v55 = vsel %vm4978_vm2, %v446_v50, %v450_v51  ;;  %101 = vst.msk [vmem:[#allocation3 + $0x30] sm:$0xf] %vm96_vm3, %v5004_v45  ;;  %v456_v45 = vshll.u32 %v4294_v0, 16  ;;  %vm5407_vm12 = vmor %vm1285_vm10, %vm1286_vm11  ;;  %vm912_vm14 = vsmask.f32 256  ;;  %vm2303_vm1 = vcmask 261120  }
  0x26   :  { %102 = vst.msk [vmem:[#allocation3 + $0x3c] sm:$0xf] %vm96_vm3, %v4997_v41  ;;  %vm5440_vm15 = vmand %vm36_vm4, %vm906_vm13 }
  0x27   :  { %103 = vst.msk [vmem:[#allocation3 + $0x48] sm:$0xf] %vm96_vm3, %v5035_v4  ;;  %v458_v1 = vrot.slane %v456_v45, 5  ;;  %vm5446_vm0 = vmand %vm38_vm9, %vm912_vm14 }
  0x28   :  { %104 = vst.msk [vmem:[#allocation3 + $0x54] sm:$0xf] %vm96_vm3, %v5028_v63 }
  0x29   :  { %360 = vst.msk [vmem:[#allocation3 + $0x60] sm:$0xf] %vm96_vm3, %v5078_v40  ;;  %v4295_v40 = vld [vmem:[%s7186_s0 + $0x7c] sm:$0x1] }
  0x2a   :  { %316 = vrot.lane.b32.xlu1 %v191_v3, %s4880_s11  ;;  %v307_v3 = vsel %vm4978_vm2, %v302_v57, %v306_v58  ;;  %v467_v57 = vshrl.u32 %v5165_v52, 16  ;;  %v470_v58 = vshll.u32 %v5165_v52, 16  ;;  %361 = vst.msk [vmem:[#allocation3 + $0x6c] sm:$0xf] %vm96_vm3, %v5060_v26 }
  0x2b   :  { %228 = vrot.lane.b32.xlu0 %v177_v8, %s4879_s30  ;;  %v376_v8 = vrot.slane %v375_v60, 4  ;;  %v4758_v60 = vld [vmem:[%s7187_s1 + $0x10] sm:$0xff]  ;;  %362 = vst.msk [vmem:[#allocation3 + $0x78] sm:$0xf] %vm96_vm3, %v5105_v62 }
  0x2c   :  { %269 = vrot.lane.b32.xlu2 %v4997_v41, %s4878_s19  ;;  %v469_v41 = vrot.slane %v467_v57, 4  ;;  %v472_v59 = vrot.slane %v470_v58, 5  ;;  %363 = vst.msk [vmem:[#allocation3 + $0x84] sm:$0xf] %vm96_vm3, %v5098_v56  ;;  %716 = vmatpush.bf16.msra.mxu0 %v4758_v60 }
  0x2d   :  { %v381_v16 = vsel %vm4978_vm2, %v376_v8, %v380_v10  ;;  %364 = vst.msk [vmem:[#allocation3 + $0x90] sm:$0xf] %vm96_vm3, %v5138_v31  ;;  %v4881_v8 = vmov 0  }
  0x2e   :  { %v473_v2 = vor.u32 %v472_v59, %v469_v41  ;;  %365 = vst.msk [vmem:[#allocation3 + $0x9c] sm:$0xf] %vm96_vm3, %v5131_v27 }
  0x2f   :  { %366 = vst.msk [vmem:[#allocation3 + $0xa8] sm:$0xf] %vm96_vm3, %v4294_v0 }
  0x30   :  { %367 = vst.msk [vmem:[#allocation3 + $0xb4] sm:$0xf] %vm96_vm3, %v5165_v52  ;;  %v474_v6 = vrot.slane %v473_v2, 4  ;;  %vm1260_vm3 = vcmask 519424  }
  0x31   :  { %37 = vst.msk [vmem:[#allocation2] sm:$0xf] %vm36_vm4, %v4881_v8 }
  0x32   :  { %234 = vrot.lane.b32.xlu1 %v219_v29, %s4879_s30  ;;  %40 = vst.msk [vmem:[#allocation2 + $0x8] sm:$0xf] %vm36_vm4, %v4881_v8 }
  0x33   :  { %271 = vrot.lane.b32.xlu0 %v5035_v4, %s4878_s19  ;;  %v4297_v4 = vld [vmem:[%s7186_s0 + $0x84] sm:$0x1]  ;;  %42 = vst.msk [vmem:[#allocation2 + $0x10] sm:$0xf] %vm36_vm4, %v4881_v8 }
  0x34   :  { %318 = vrot.lane.b32.xlu2 %v205_v35, %s4880_s11  ;;  %44 = vst.msk [vmem:[#allocation2 + $0x18] sm:$0xf] %vm36_vm4, %v4881_v8 }
  0x35   :  { %46 = vst.msk [vmem:[#allocation2 + $0x20] sm:$0xf] %vm36_vm4, %v4881_v8 }
  0x36   :  { %48 = vst.msk [vmem:[#allocation2 + $0x28] sm:$0xf] %vm36_vm4, %v4881_v8 }
  0x37   :  { %50 = vst.msk [vmem:[#allocation2 + $0x30] sm:$0xf] %vm36_vm4, %v4881_v8 }
  0x38   :  { %52 = vst.msk [vmem:[#allocation2 + $0x38] sm:$0xf] %vm36_vm4, %v4881_v8  ;;  %v5301_v38 = vld [vmem:[#allocation2] sm:$0xf] }
  0x39   :  { %54 = vst.msk [vmem:[#allocation2 + $0x40] sm:$0xf] %vm36_vm4, %v4881_v8 }
  0x3a   :  { %320 = vrot.lane.b32.xlu1 %v219_v29, %s4880_s11  ;;  %v408_v29 = vrot.slane %v406_v22, 5  ;;  %56 = vst.msk [vmem:[#allocation2 + $0x48] sm:$0xf] %vm36_vm4, %v4881_v8  ;;  %v558_v22 = vrot.slane %v556_v18, 5 }
  0x3b   :  { %232 = vrot.lane.b32.xlu0 %v205_v35, %s4879_s30  ;;  %v425_v35 = vshrl.u32 %v5138_v31, 16  ;;  %58 = vst.msk [vmem:[#allocation2 + $0x50] sm:$0xf] %vm36_vm4, %v4881_v8 }
  0x3c   :  { %273 = vrot.lane.b32.xlu2 %v5028_v63, %s4878_s19  ;;  %v409_v34 = vsel %vm4978_vm2, %v404_v28, %v408_v29  ;;  %60 = vst.msk [vmem:[#allocation2 + $0x58] sm:$0xf] %vm36_vm4, %v4881_v8 }
  0x3d   :  { %v427_v42 = vrot.slane %v425_v35, 4  ;;  %62 = vst.msk [vmem:[#allocation2 + $0x60] sm:$0xf] %vm36_vm4, %v4881_v8 }
  0x3e   :  { %64 = vst.msk [vmem:[#allocation2 + $0x68] sm:$0xf] %vm36_vm4, %v4881_v8 }
  0x3f   :  { %v431_v48 = vor.u32 %v430_v43, %v427_v42  ;;  %66 = vst.msk [vmem:[#allocation2 + $0x70] sm:$0xf] %vm36_vm4, %v4881_v8 }
  0x40   :  { %68 = vst.msk [vmem:[#allocation2 + $0x78] sm:$0xf] %vm36_vm4, %v4881_v8 }
  0x41   :  { %v432_v53 = vrot.slane %v431_v48, 4  ;;  %70 = vst.msk [vmem:[#allocation2 + $0x80] sm:$0xf] %vm36_vm4, %v4881_v8 }
  0x42   :  { %482 = vrot.lane.b32.xlu1 %v395_v61, %s4879_s30  ;;  %72 = vst.msk [vmem:[#allocation2 + $0x88] sm:$0xf] %vm36_vm4, %v4881_v8 }
  0x43   :  { %275 = vrot.lane.b32.xlu0 %v94_v30, %s4878_s19  ;;  %v423_v30 = vsel %vm4978_vm2, %v418_v24, %v422_v25  ;;  %v437_v9 = vsel %vm4978_vm2, %v432_v53, %v436_v54  ;;  %v4299_v25 = vld [vmem:[%s7186_s0 + $0x8c] sm:$0x1]  ;;  %74 = vst.msk [vmem:[#allocation2 + $0x90] sm:$0xf] %vm36_vm4, %v4881_v8  ;;  %s4882_s0 = smov 64  }
  0x44   :  { %322 = vrot.lane.b32.xlu2 %v307_v3, %s4880_s11  ;;  %v462_v3 = vshll.u32 %v4295_v40, 16  ;;  %v562_v28 = vshll.u32 %v4299_v25, 16  ;;  %76 = vst.msk [vmem:[#allocation2 + $0x98] sm:$0xf] %vm36_vm4, %v4881_v8 }
  0x45   :  { %41 = vst.msk [vmem:[#allocation2 + $0xc] sm:$0x1] %vm38_vm9, %v4881_v8 }
  0x46   :  { %v464_v13 = vrot.slane %v462_v3, 5  ;;  %v564_v32 = vrot.slane %v562_v28, 5  ;;  %39 = vst.msk [vmem:[#allocation2 + $0x4] sm:$0x1] %vm38_vm9, %v4881_v8 }
  0x47   :  { %43 = vst.msk [vmem:[#allocation2 + $0x14] sm:$0x1] %vm38_vm9, %v4881_v8 }
  0x48   :  { %45 = vst.msk [vmem:[#allocation2 + $0x1c] sm:$0x1] %vm38_vm9, %v4881_v8 }
  0x49   :  { %47 = vst.msk [vmem:[#allocation2 + $0x24] sm:$0x1] %vm38_vm9, %v4881_v8 }
  0x4a   :  { %566 = vrot.lane.b32.xlu1 %v395_v61, %s4880_s11  ;;  %v455_v61 = vrot.slane %v453_v17, 4  ;;  %49 = vst.msk [vmem:[#allocation2 + $0x2c] sm:$0x1] %vm38_vm9, %v4881_v8 }
  0x4b   :  { %480 = vrot.lane.b32.xlu0 %v381_v16, %s4879_s30  ;;  %v553_v16 = vshrl.u32 %v4298_v15, 16  ;;  %51 = vst.msk [vmem:[#allocation2 + $0x34] sm:$0x1] %vm38_vm9, %v4881_v8 }
  0x4c   :  { %520 = vrot.lane.b32.xlu2 %v5060_v26, %s4878_s19  ;;  %v476_v26 = vshll.u32 %v4297_v4, 16  ;;  %53 = vst.msk [vmem:[#allocation2 + $0x3c] sm:$0x1] %vm38_vm9, %v4881_v8 }
  0x4d   :  { %v555_v21 = vrot.slane %v553_v16, 4  ;;  %55 = vst.msk [vmem:[#allocation2 + $0x44] sm:$0x1] %vm38_vm9, %v4881_v8 }
  0x4e   :  { %v478_v7 = vrot.slane %v476_v26, 5  ;;  %57 = vst.msk [vmem:[#allocation2 + $0x4c] sm:$0x1] %vm38_vm9, %v4881_v8 }
  0x4f   :  { %59 = vst.msk [vmem:[#allocation2 + $0x54] sm:$0x1] %vm38_vm9, %v4881_v8 }
  0x50   :  { %v479_v14 = vsel %vm4978_vm2, %v474_v6, %v478_v7  ;;  %v5335_v6 = vld [vmem:[#allocation2 + $0x50] sm:$0xf]  ;;  %61 = vst.msk [vmem:[#allocation2 + $0x5c] sm:$0x1] %vm38_vm9, %v4881_v8 }
  0x51   :  { %63 = vst.msk [vmem:[#allocation2 + $0x64] sm:$0x1] %vm38_vm9, %v4881_v8 }
  0x52   :  { %486 = vrot.lane.b32.xlu1 %v423_v30, %s4879_s30  ;;  %65 = vst.msk [vmem:[#allocation2 + $0x6c] sm:$0x1] %vm38_vm9, %v4881_v8 }
  0x53   :  { %522 = vrot.lane.b32.xlu0 %v5105_v62, %s4878_s19  ;;  %v4757_v62 = vld [vmem:[%s7187_s1 + $0x8] sm:$0xff]  ;;  %67 = vst.msk [vmem:[#allocation2 + $0x74] sm:$0x1] %vm38_vm9, %v4881_v8 }
  0x54   :  { %568 = vrot.lane.b32.xlu2 %v409_v34, %s4880_s11  ;;  %717 = vmatpush.bf16.msra.mxu0 %v4757_v62  ;;  %69 = vst.msk [vmem:[#allocation2 + $0x7c] sm:$0x1] %vm38_vm9, %v4881_v8 }
  0x55   :  { %71 = vst.msk [vmem:[#allocation2 + $0x84] sm:$0x1] %vm38_vm9, %v4881_v8 }
  0x56   :  { %73 = vst.msk [vmem:[#allocation2 + $0x8c] sm:$0x1] %vm38_vm9, %v4881_v8 }
  0x57   :  { %75 = vst.msk [vmem:[#allocation2 + $0x94] sm:$0x1] %vm38_vm9, %v4881_v8 }
  0x58   :  { %718 = vmatpush.bf16.msra.mxu0 %v4756_v11  ;;  %77 = vst.msk [vmem:[#allocation2 + $0x9c] sm:$0x1] %vm38_vm9, %v4881_v8 }
  0x5a   :  { %570 = vrot.lane.b32.xlu1 %v423_v30, %s4880_s11 }
  0x5b   :  { %484 = vrot.lane.b32.xlu0 %v409_v34, %s4879_s30 }
  0x5c   :  { %524 = vrot.lane.b32.xlu2 %v5098_v56, %s4878_s19  ;;  %v459_v56 = vor.u32 %v458_v1, %v455_v61 }
  0x5e   :  { %v460_v12 = vrot.slane %v459_v56, 4 }
  0x60   :  { %v465_v19 = vsel %vm4978_vm2, %v460_v12, %v464_v13 }
  0x62   :  { %490 = vrot.lane.b32.xlu1 %v451_v55, %s4879_s30 }
  0x63   :  { %526 = vrot.lane.b32.xlu0 %v5138_v31, %s4878_s19 }
  0x64   :  { %572 = vrot.lane.b32.xlu2 %v437_v9, %s4880_s11 }
  0x66   :  { %v5209_v63 = vpop.permute.xlu2 %308 }
  0x6a   :  { %574 = vrot.lane.b32.xlu1 %v451_v55, %s4880_s11 }
  0x6b   :  { %488 = vrot.lane.b32.xlu0 %v437_v9, %s4879_s30 }
  0x6c   :  { %528 = vrot.lane.b32.xlu2 %v5131_v27, %s4878_s19  ;;  %v559_v27 = vor.u32 %v558_v22, %v555_v21 }
  0x6e   :  { %v5236_v10 = vpop.permute.xlu2 %310  ;;  %v560_v31 = vrot.slane %v559_v27, 4 }
  0x70   :  { %v565_v34 = vsel %vm4978_vm2, %v560_v31, %v564_v32 }
  0x72   :  { %494 = vrot.lane.b32.xlu1 %v479_v14, %s4879_s30 }
  0x73   :  { %530 = vrot.lane.b32.xlu0 %v4294_v0, %s4878_s19 }
  0x74   :  { %576 = vrot.lane.b32.xlu2 %v465_v19, %s4880_s11  ;;  %v262_v20 = vpop.permute.xlu1 %261 }
  0x76   :  { %v266_v24 = vpop.permute.xlu2 %265 }
  0x7a   :  { %578 = vrot.lane.b32.xlu1 %v479_v14, %s4880_s11 }
  0x7b   :  { %492 = vrot.lane.b32.xlu0 %v465_v19, %s4879_s30  ;;  %s4883_s30 = smov 96  }
  0x7c   :  { %532 = vrot.lane.b32.xlu2 %v5165_v52, %s4878_s19  ;;  %v264_v30 = vpop.permute.xlu1 %263 }
  0x7d   :  { %v221_v29 = vpop.permute.xlu0 %220 }
  0x7e   :  { %245 = vst.msk [vmem:[#allocation3] sm:$0xf] %vm244_vm5, %v221_v29  ;;  %v315_v33 = vpop.permute.xlu2 %314 }
  0x7f   :  { %286 = vst.msk [vmem:[#allocation3] sm:$0xf] %vm285_vm6, %v262_v20 }
  0x80   :  { %333 = vst.msk [vmem:[#allocation3] sm:$0xf] %vm332_vm7, %v5209_v63 }
  0x83   :  { %534 = vrot.lane.b32.xlu0 %v4298_v15, %s4878_s19 }
  0x84   :  { %580 = vrot.lane.b32.xlu2 %v565_v34, %s4880_s11  ;;  %v227_v36 = vpop.permute.xlu1 %226 }
  0x85   :  { %v223_v35 = vpop.permute.xlu0 %222  ;;  %248 = vst.msk [vmem:[#allocation3 + $0x24] sm:$0xf] %vm244_vm5, %v227_v36  ;;  %v1128_v36 = vshll.u32 %v5301_v38, 16 }
  0x86   :  { %246 = vst.msk [vmem:[#allocation3 + $0xc] sm:$0xf] %vm244_vm5, %v223_v35  ;;  %v270_v37 = vpop.permute.xlu2 %269  ;;  %v1125_v35 = vshrl.u32 %v5301_v38, 16 }
  0x87   :  { %v4302_v39 = vld [vmem:[#allocation3] sm:$0xf]  ;;  %287 = vst.msk [vmem:[#allocation3 + $0xc] sm:$0xf] %vm285_vm6, %v264_v30 }
  0x88   :  { %1116 = vst.msk [vmem:[#allocation3] sm:$0xf] %vm36_vm4, %v5301_v38 }
  0x89   :  { %334 = vst.msk [vmem:[#allocation3 + $0xc] sm:$0xf] %vm332_vm7, %v5236_v10 }
  0x8c   :  { %v313_v43 = vpop.permute.xlu1 %312 }
  0x8d   :  { %v225_v42 = vpop.permute.xlu0 %224 }
  0x8e   :  { %247 = vst.msk [vmem:[#allocation3 + $0x18] sm:$0xf] %vm244_vm5, %v225_v42  ;;  %v319_v46 = vpop.permute.xlu2 %318  ;;  %v1127_v42 = vrot.slane %v1125_v35, 4 }
  0x8f   :  { %288 = vst.msk [vmem:[#allocation3 + $0x18] sm:$0xf] %vm285_vm6, %v266_v24 }
  0x90   :  { %v4748_v44 = vld [vmem:[#allocation3 + $0x8] sm:$0xf0]  ;;  %335 = vst.msk [vmem:[#allocation3 + $0x18] sm:$0xf] %vm332_vm7, %v313_v43  ;;  %v1130_v43 = vrot.slane %v1128_v36, 5 }
  0x91   :  { %v4303_v47 = vor.u32 %v4748_v44, %v4302_v39  ;;  %v1097_v44 = vld [vmem:[#allocation2 + $0x4] sm:$0x1] }
  0x93   :  { %4348 = vmatmul.msk.bf16.vlgmr.msra.gmra.mxu0 %vm686_vm8, %v4303_v47  ;;  %v1134_v47 = vshll.u32 %v1097_v44, 16 }
  0x94   :  { %v231_v49 = vpop.permute.xlu1 %230 }
  0x95   :  { %v268_v48 = vpop.permute.xlu0 %267  ;;  %250 = vst.msk [vmem:[#allocation3 + $0x3c] sm:$0xf] %vm244_vm5, %v231_v49  ;;  %v1136_v49 = vrot.slane %v1134_v47, 5 }
  0x96   :  { %289 = vst.msk [vmem:[#allocation3 + $0x24] sm:$0xf] %vm285_vm6, %v268_v48  ;;  %v274_v50 = vpop.permute.xlu2 %273 }
  0x97   :  { %336 = vst.msk [vmem:[#allocation3 + $0x24] sm:$0xf] %vm332_vm7, %v315_v33  ;;  %v4306_v51 = vld [vmem:[#allocation3 + $0x18] sm:$0xf] }
  0x9c   :  { %v317_v53 = vpop.permute.xlu1 %316 }
  0x9d   :  { %v229_v52 = vpop.permute.xlu0 %228 }
  0x9e   :  { %249 = vst.msk [vmem:[#allocation3 + $0x30] sm:$0xf] %vm244_vm5, %v229_v52  ;;  %v4749_v54 = vld [vmem:[#allocation3 + $0x20] sm:$0xf0]  ;;  %v323_v0 = vpop.permute.xlu2 %322 }
  0x9f   :  { %290 = vst.msk [vmem:[#allocation3 + $0x30] sm:$0xf] %vm285_vm6, %v270_v37  ;;  %v4307_v55 = vor.u32 %v4749_v54, %v4306_v51  ;;  %v4356_v54 = vrot.slane %v5301_v38, 9 }
  0xa0   :  { %337 = vst.msk [vmem:[#allocation3 + $0x30] sm:$0xf] %vm332_vm7, %v317_v53 }
  0xa3   :  { %4349 = vmatmul.msk.bf16.gmra.mxu0 %vm686_vm8, %v4307_v55 }
  0xa4   :  { %v235_v58 = vpop.permute.xlu1 %234 }
  0xa5   :  { %v272_v57 = vpop.permute.xlu0 %271  ;;  %252 = vst.msk [vmem:[#allocation3 + $0x54] sm:$0xf] %vm244_vm5, %v235_v58 }
  0xa6   :  { %291 = vst.msk [vmem:[#allocation3 + $0x3c] sm:$0xf] %vm285_vm6, %v272_v57  ;;  %v521_v41 = vpop.permute.xlu2 %520  ;;  %v1114_v57 = vld [vmem:[#allocation2 + $0x48] sm:$0xf] }
  0xa7   :  { %338 = vst.msk [vmem:[#allocation3 + $0x3c] sm:$0xf] %vm332_vm7, %v319_v46  ;;  %v4310_v5 = vld [vmem:[#allocation3 + $0x30] sm:$0xf]  ;;  %v1131_v46 = vor.u32 %v1130_v43, %v1127_v42  ;;  %v1488_v58 = vshrl.u32 %v1114_v57, 16 }
  0xa9   :  { %v1132_v48 = vrot.slane %v1131_v46, 4  ;;  %v1490_v38 = vrot.slane %v1488_v58, 4 }
  0xac   :  { %v321_v17 = vpop.permute.xlu1 %320 }
  0xad   :  { %v233_v9 = vpop.permute.xlu0 %232 }
  0xae   :  { %251 = vst.msk [vmem:[#allocation3 + $0x48] sm:$0xf] %vm244_vm5, %v233_v9  ;;  %v4750_v45 = vld [vmem:[#allocation3 + $0x38] sm:$0xf0]  ;;  %v569_v63 = vpop.permute.xlu2 %568 }
  0xaf   :  { %292 = vst.msk [vmem:[#allocation3 + $0x48] sm:$0xf] %vm285_vm6, %v274_v50  ;;  %v4311_v59 = vor.u32 %v4750_v45, %v4310_v5  ;;  %v1137_v50 = vsel %vm4978_vm2, %v1132_v48, %v1136_v49  ;;  %v1491_v5 = vshll.u32 %v1114_v57, 16  ;;  %v1115_v45 = vld [vmem:[#allocation2 + $0x4c] sm:$0x1] }
  0xb0   :  { %339 = vst.msk [vmem:[#allocation3 + $0x48] sm:$0xf] %vm332_vm7, %v321_v17  ;;  %1236 = vrot.lane.b32.xlu0 %v1137_v50, %s4878_s19  ;;  %v1497_v8 = vshll.u32 %v1115_v45, 16 }
  0xb1   :  { %v1493_v17 = vrot.slane %v1491_v5, 5 }
  0xb3   :  { %4350 = vmatmul.msk.bf16.gmra.mxu0 %vm686_vm8, %v4311_v59  ;;  %v1499_v59 = vrot.slane %v1497_v8, 5 }
  0xb4   :  { %v483_v60 = vpop.permute.xlu1 %482 }
  0xb5   :  { %v276_v4 = vpop.permute.xlu0 %275  ;;  %505 = vst.msk [vmem:[#allocation3 + $0x6c] sm:$0xf] %vm244_vm5, %v483_v60 }
  0xb6   :  { %293 = vst.msk [vmem:[#allocation3 + $0x54] sm:$0xf] %vm285_vm6, %v276_v4  ;;  %v525_v62 = vpop.permute.xlu2 %524 }
  0xb7   :  { %340 = vst.msk [vmem:[#allocation3 + $0x54] sm:$0xf] %vm332_vm7, %v323_v0  ;;  %v4314_v61 = vld [vmem:[#allocation3 + $0x48] sm:$0xf]  ;;  %v1290_v0 = vrot.slane %v1097_v44, 5 }
  0xb8   :  { %1469 = vrot.lane.b32.xlu0 %v1114_v57, %s4882_s0 }
  0xb9   :  { %v1291_v9 = vsel %vm5407_vm12, %v4356_v54, %v1290_v0 }
  0xba   :  { %1320 = vrot.lane.b32.xlu2 %v1291_v9, %s4882_s0 }
  0xbc   :  { %v567_v40 = vpop.permute.xlu1 %566 }
  0xbd   :  { %v481_v1 = vpop.permute.xlu0 %480 }
  0xbe   :  { %504 = vst.msk [vmem:[#allocation3 + $0x60] sm:$0xf] %vm244_vm5, %v481_v1  ;;  %v4751_v2 = vld [vmem:[#allocation3 + $0x50] sm:$0xf0]  ;;  %v573_v10 = vpop.permute.xlu2 %572 }
  0xbf   :  { %544 = vst.msk [vmem:[#allocation3 + $0x60] sm:$0xf] %vm285_vm6, %v521_v41  ;;  %v4315_v26 = vor.u32 %v4751_v2, %v4314_v61  ;;  %v1494_v41 = vor.u32 %v1493_v17, %v1490_v38  ;;  %v5427_v61 = vld [vmem:[%s7189_s3] ss:$0 sm:$0xff]  ;;  %v4365_v2 = vrot.slane %v1114_v57, 9 }
  0xc0   :  { %590 = vst.msk [vmem:[#allocation3 + $0x60] sm:$0xf] %vm332_vm7, %v567_v40 }
  0xc1   :  { %v1495_v4 = vrot.slane %v1494_v41, 4  ;;  %v923_v41 = vld [vmem:[#allocation2 + $0x18] sm:$0xf] }
  0xc3   :  { %4351 = vmatmul.msk.bf16.gmra.mxu0 %vm686_vm8, %v4315_v26  ;;  %v1500_v60 = vsel %vm4978_vm2, %v1495_v4, %v1499_v59  ;;  %v1536_v26 = vrot.slane %v1115_v45, 5  ;;  %v926_v59 = vld [vmem:[#allocation2 + $0x1c] sm:$0x1] }
  0xc4   :  { %v487_v3 = vpop.permute.xlu1 %486  ;;  %1515 = vrot.lane.b32.xlu2 %v1500_v60, %s4883_s30 }
  0xc5   :  { %v523_v56 = vpop.permute.xlu0 %522  ;;  %507 = vst.msk [vmem:[#allocation3 + $0x84] sm:$0xf] %vm244_vm5, %v487_v3 }
  0xc6   :  { %545 = vst.msk [vmem:[#allocation3 + $0x6c] sm:$0xf] %vm285_vm6, %v523_v56  ;;  %v529_v18 = vpop.permute.xlu2 %528  ;;  %v1537_v56 = vsel %vm5407_vm12, %v4365_v2, %v1536_v26 }
  0xc7   :  { %v4318_v7 = vld [vmem:[#allocation3 + $0x60] sm:$0xf]  ;;  %591 = vst.msk [vmem:[#allocation3 + $0x6c] sm:$0xf] %vm332_vm7, %v569_v63 }
  0xc8   :  { %1575 = vst.msk [vmem:[#allocation3 + $0x60] sm:$0xf] %vm36_vm4, %v5335_v6  ;;  %v5422_v63 = vld [vmem:[%s7188_s2] ss:$0 sm:$0xff] }
  0xc9   :  { %1553 = vst.msk [vmem:[#allocation3 + $0x5c] sm:$0xf] %vm36_vm4, %v1537_v56 }
  0xcc   :  { %v571_v12 = vpop.permute.xlu1 %570 }
  0xcd   :  { %v485_v11 = vpop.permute.xlu0 %484 }
  0xce   :  { %506 = vst.msk [vmem:[#allocation3 + $0x78] sm:$0xf] %vm244_vm5, %v485_v11  ;;  %v4752_v13 = vld [vmem:[#allocation3 + $0x68] sm:$0xf0]  ;;  %v577_v25 = vpop.permute.xlu2 %576 }
  0xcf   :  { %546 = vst.msk [vmem:[#allocation3 + $0x78] sm:$0xf] %vm285_vm6, %v525_v62  ;;  %v4319_v14 = vor.u32 %v4752_v13, %v4318_v7 }
  0xd0   :  { %592 = vst.msk [vmem:[#allocation3 + $0x78] sm:$0xf] %vm332_vm7, %v571_v12 }
  0xd3   :  { %4352 = vmatmul.msk.bf16.gmra.mxu0 %vm686_vm8, %v4319_v14 }
  0xd4   :  { %v491_v16 = vpop.permute.xlu1 %490 }
  0xd5   :  { %v527_v15 = vpop.permute.xlu0 %526  ;;  %509 = vst.msk [vmem:[#allocation3 + $0x9c] sm:$0xf] %vm244_vm5, %v491_v16 }
  0xd6   :  { %547 = vst.msk [vmem:[#allocation3 + $0x84] sm:$0xf] %vm285_vm6, %v527_v15  ;;  %v533_v29 = vpop.permute.xlu2 %532 }
  0xd7   :  { %593 = vst.msk [vmem:[#allocation3 + $0x84] sm:$0xf] %vm332_vm7, %v573_v10  ;;  %v4322_v19 = vld [vmem:[#allocation3 + $0x78] sm:$0xf] }
  0xdc   :  { %v575_v21 = vpop.permute.xlu1 %574 }
  0xdd   :  { %v489_v20 = vpop.permute.xlu0 %488 }
  0xde   :  { %508 = vst.msk [vmem:[#allocation3 + $0x90] sm:$0xf] %vm244_vm5, %v489_v20  ;;  %v4753_v22 = vld [vmem:[#allocation3 + $0x80] sm:$0xf0]  ;;  %v581_v37 = vpop.permute.xlu2 %580  ;;  %v914_v20 = vld [vmem:[#allocation2 + $0xc] sm:$0x1] }
  0xdf   :  { %548 = vst.msk [vmem:[#allocation3 + $0x90] sm:$0xf] %vm285_vm6, %v529_v18  ;;  %v4323_v24 = vor.u32 %v4753_v22, %v4322_v19  ;;  %v908_v18 = vld [vmem:[#allocation2 + $0x8] sm:$0xf] }
  0xe0   :  { %594 = vst.msk [vmem:[#allocation3 + $0x90] sm:$0xf] %vm332_vm7, %v575_v21 }
  0xe3   :  { %4353 = vmatmul.msk.bf16.gmra.mxu0 %vm686_vm8, %v4323_v24 }
  0xe4   :  { %v495_v28 = vpop.permute.xlu1 %494 }
  0xe5   :  { %v531_v27 = vpop.permute.xlu0 %530  ;;  %511 = vst.msk [vmem:[#allocation3 + $0xb4] sm:$0xf] %vm244_vm5, %v495_v28 }
  0xe6   :  { %549 = vst.msk [vmem:[#allocation3 + $0x9c] sm:$0xf] %vm285_vm6, %v531_v27 }
  0xe7   :  { %595 = vst.msk [vmem:[#allocation3 + $0x9c] sm:$0xf] %vm332_vm7, %v577_v25  ;;  %v4326_v30 = vld [vmem:[#allocation3 + $0x90] sm:$0xf]  ;;  %v4801_v25 = vld [vmem:[%s7190_s4 + $0x88] sm:$0xff] }
  0xe8   :  { %2432 = vmatpush.bf16.msra.mxu3 %v4801_v25 }
  0xec   :  { %v579_v32 = vpop.permute.xlu1 %578 }
  0xed   :  { %v493_v31 = vpop.permute.xlu0 %492 }
  0xee   :  { %510 = vst.msk [vmem:[#allocation3 + $0xa8] sm:$0xf] %vm244_vm5, %v493_v31  ;;  %v4754_v33 = vld [vmem:[#allocation3 + $0x98] sm:$0xf0]  ;;  %vm1344_vm5 = vcmask 781824  }
  0xef   :  { %550 = vst.msk [vmem:[#allocation3 + $0xa8] sm:$0xf] %vm285_vm6, %v533_v29  ;;  %v4327_v34 = vor.u32 %v4754_v33, %v4326_v30  ;;  %v4800_v33 = vld [vmem:[%s7190_s4 + $0x80] sm:$0xff] }
  0xf0   :  { %596 = vst.msk [vmem:[#allocation3 + $0xa8] sm:$0xf] %vm332_vm7, %v579_v32  ;;  %2433 = vmatpush.bf16.msra.mxu3 %v4800_v33  ;;  %v932_v33 = vld [vmem:[#allocation2 + $0x24] sm:$0x1] }
  0xf3   :  { %4354 = vmatmul.msk.bf16.gmra.mxu0 %vm686_vm8, %v4327_v34 }
  0xf5   :  { %v535_v39 = vpop.permute.xlu0 %534 }
  0xf6   :  { %551 = vst.msk [vmem:[#allocation3 + $0xb4] sm:$0xf] %vm285_vm6, %v535_v39  ;;  %v920_v39 = vld [vmem:[#allocation2 + $0x14] sm:$0x1]  ;;  %vm1378_vm6 = vcmask 1044224  }
  0xf7   :  { %597 = vst.msk [vmem:[#allocation3 + $0xb4] sm:$0xf] %vm332_vm7, %v581_v37  ;;  %v4330_v51 = vld [vmem:[#allocation3 + $0xa8] sm:$0xf]  ;;  %v917_v37 = vld [vmem:[#allocation2 + $0x10] sm:$0xf] }
  0xfe   :  { %v4755_v52 = vld [vmem:[#allocation3 + $0xb0] sm:$0xf0] }
  0xff   :  { %v4331_v53 = vor.u32 %v4755_v52, %v4330_v51 }
 0x103   :  { %4355 = vmatmul.msk.bf16.gmra.mxu0 %vm686_vm8, %v4331_v53 }
 0x110   :  { %v720_v1 = vpop.f32.mrf.mxu0 }
 0x111   :  { %v764_v40 = vmul.f32 %v5422_v63, %v720_v1 }
 0x113   :  { %v784_v62 = vadd.f32 %v5427_v61, %v764_v40 }
 0x115   :  { %v5434_v3 = vmax.f32 %v784_v62, 0.0 }
 0x117   :  { %v816_v7 = vpack.c.bf16 %v5434_v3, %v5434_v3 }
 0x118   :  { %v722_v10 = vpop.f32.mrf.mxu0 }
 0x119   :  { %v825_v11 = vshrl.u32 %v816_v7, 16  ;;  %v765_v12 = vmul.f32 %v5422_v63, %v722_v10  ;;  %v828_v14 = vshll.u32 %v816_v7, 16 }
 0x11b   :  { %v827_v13 = vrot.slane %v825_v11, 7  ;;  %v785_v16 = vadd.f32 %v5427_v61, %v765_v12 }
 0x11d   :  { %v830_v21 = vor.u32 %v828_v14, %v827_v13  ;;  %v831_v22 = vrot.slane %v827_v13, 4  ;;  %v5450_v24 = vmax.f32 %v785_v16, 0.0 }
 0x11f   :  { %v909_v27 = vsel %vm5440_vm15, %v830_v21, %v908_v18  ;;  %v915_v28 = vsel %vm5446_vm0, %v831_v22, %v914_v20  ;;  %v817_v29 = vpack.c.bf16 %v5450_v24, %v5450_v24 }
 0x120   :  { %910 = vst [vmem:[#allocation2 + $0x8] sm:$0xf] %v909_v27  ;;  %v725_v30 = vpop.f32.mrf.mxu0 }
 0x121   :  { %916 = vst [vmem:[#allocation2 + $0xc] sm:$0x1] %v915_v28  ;;  %v833_v31 = vshrl.u32 %v817_v29, 16  ;;  %v766_v32 = vmul.f32 %v5422_v63, %v725_v30  ;;  %v836_v35 = vshll.u32 %v817_v29, 16  ;;  %v929_v29 = vld [vmem:[#allocation2 + $0x20] sm:$0xf] }
 0x123   :  { %v835_v34 = vrot.slane %v833_v31, 7  ;;  %v786_v36 = vadd.f32 %v5427_v61, %v766_v32 }
 0x125   :  { %v838_v42 = vor.u32 %v836_v35, %v835_v34  ;;  %v839_v43 = vrot.slane %v835_v34, 4  ;;  %v5466_v44 = vmax.f32 %v786_v36, 0.0 }
 0x127   :  { %v918_v46 = vsel %vm5440_vm15, %v838_v42, %v917_v37  ;;  %v921_v47 = vsel %vm5446_vm0, %v839_v43, %v920_v39  ;;  %v818_v48 = vpack.c.bf16 %v5466_v44, %v5466_v44  ;;  %v1098_v49 = vld [vmem:[#allocation2 + $0x8] sm:$0xf] }
 0x128   :  { %919 = vst [vmem:[#allocation2 + $0x10] sm:$0xf] %v918_v46  ;;  %1354 = vrot.lane.b32.xlu1 %v1098_v49, %s4883_s30  ;;  %v727_v50 = vpop.f32.mrf.mxu0  ;;  %v1099_v51 = vld [vmem:[#allocation2 + $0xc] sm:$0x1]  ;;  %v4357_v52 = vrot.slane %v1098_v49, 9  ;;  %v1139_v53 = vshrl.u32 %v1098_v49, 16 }
 0x129   :  { %922 = vst [vmem:[#allocation2 + $0x14] sm:$0x1] %v921_v47  ;;  %v841_v54 = vshrl.u32 %v818_v48, 16  ;;  %v844_v0 = vshll.u32 %v818_v48, 16  ;;  %v767_v57 = vmul.f32 %v5422_v63, %v727_v50  ;;  %v1294_v58 = vrot.slane %v1099_v51, 5 }
 0x12a   :  { %1117 = vst.msk [vmem:[#allocation3 + $0xc] sm:$0xf] %vm36_vm4, %v1098_v49  ;;  %v1141_v5 = vrot.slane %v1139_v53, 4  ;;  %v1142_v9 = vshll.u32 %v1098_v49, 16  ;;  %v1148_v8 = vshll.u32 %v1099_v51, 16 }
 0x12b   :  { %v843_v38 = vrot.slane %v841_v54, 7  ;;  %v787_v17 = vadd.f32 %v5427_v61, %v767_v57  ;;  %v1295_v45 = vsel %vm5407_vm12, %v4357_v52, %v1294_v58 }
 0x12c   :  { %1322 = vrot.lane.b32.xlu0 %v1295_v45, %s4882_s0  ;;  %v1144_v4 = vrot.slane %v1142_v9, 5  ;;  %v1150_v10 = vrot.slane %v1148_v8, 5 }
 0x12d   :  { %v846_v60 = vor.u32 %v844_v0, %v843_v38  ;;  %v847_v1 = vrot.slane %v843_v38, 4  ;;  %v5481_v40 = vmax.f32 %v787_v17, 0.0  ;;  %v935_v38 = vld [vmem:[#allocation2 + $0x28] sm:$0xf] }
 0x12e   :  { %v1145_v2 = vor.u32 %v1144_v4, %v1141_v5 }
 0x12f   :  { %v924_v26 = vsel %vm5440_vm15, %v846_v60, %v923_v41  ;;  %v927_v62 = vsel %vm5446_vm0, %v847_v1, %v926_v59  ;;  %v819_v56 = vpack.c.bf16 %v5481_v40, %v5481_v40  ;;  %v1100_v7 = vld [vmem:[#allocation2 + $0x10] sm:$0xf]  ;;  %v938_v41 = vld [vmem:[#allocation2 + $0x2c] sm:$0x1] }
 0x130   :  { %925 = vst [vmem:[#allocation2 + $0x18] sm:$0xf] %v924_v26  ;;  %1422 = vrot.lane.b32.xlu1 %v1295_v45, %s4878_s19  ;;  %1356 = vrot.lane.b32.xlu2 %v1100_v7, %s4883_s30  ;;  %v730_v11 = vpop.f32.mrf.mxu0  ;;  %v1146_v12 = vrot.slane %v1145_v2, 4  ;;  %v1101_v13 = vld [vmem:[#allocation2 + $0x14] sm:$0x1]  ;;  %v4358_v14 = vrot.slane %v1100_v7, 9 }
 0x131   :  { %928 = vst [vmem:[#allocation2 + $0x1c] sm:$0x1] %v927_v62  ;;  %v849_v16 = vshrl.u32 %v819_v56, 16  ;;  %v768_v18 = vmul.f32 %v5422_v63, %v730_v11  ;;  %v1298_v20 = vrot.slane %v1101_v13, 5  ;;  %v852_v21 = vshll.u32 %v819_v56, 16 }
 0x132   :  { %1118 = vst.msk [vmem:[#allocation3 + $0x18] sm:$0xf] %vm36_vm4, %v1100_v7  ;;  %v1151_v22 = vsel %vm4978_vm2, %v1146_v12, %v1150_v10  ;;  %v1153_v25 = vshrl.u32 %v1100_v7, 16  ;;  %v1156_v27 = vshll.u32 %v1100_v7, 16  ;;  %v1162_v32 = vshll.u32 %v1101_v13, 16 }
 0x133   :  { %v851_v28 = vrot.slane %v849_v16, 7  ;;  %v788_v30 = vadd.f32 %v5427_v61, %v768_v18  ;;  %1409 = vst.msk [vmem:[#allocation3 + $0x4] sm:$0xf] %vm36_vm4, %v1151_v22  ;;  %v1299_v31 = vsel %vm5407_vm12, %v4358_v14, %v1298_v20 }
 0x134   :  { %1455 = vrot.lane.b32.xlu0 %v1100_v7, %s4882_s0  ;;  %1546 = vst.msk [vmem:[#allocation3 + $0x8] sm:$0xf] %vm36_vm4, %v1299_v31  ;;  %v1155_v34 = vrot.slane %v1153_v25, 4  ;;  %v1158_v35 = vrot.slane %v1156_v27, 5  ;;  %v1164_v48 = vrot.slane %v1162_v32, 5 }
 0x135   :  { %v854_v36 = vor.u32 %v852_v21, %v851_v28  ;;  %v855_v37 = vrot.slane %v851_v28, 4  ;;  %v5501_v39 = vmax.f32 %v788_v30, 0.0  ;;  %v941_v28 = vld [vmem:[#allocation2 + $0x30] sm:$0xf] }
 0x136   :  { %v1159_v42 = vor.u32 %v1158_v35, %v1155_v34 }
 0x137   :  { %v930_v43 = vsel %vm5440_vm15, %v854_v36, %v929_v29  ;;  %v933_v46 = vsel %vm5446_vm0, %v855_v37, %v932_v33  ;;  %v820_v47 = vpack.c.bf16 %v5501_v39, %v5501_v39  ;;  %v5509_v49 = vld [vmem:[#allocation2 + $0x18] sm:$0xf]  ;;  %v944_v36 = vld [vmem:[#allocation2 + $0x34] sm:$0x1] }
 0x138   :  { %931 = vst [vmem:[#allocation2 + $0x20] sm:$0xf] %v930_v43  ;;  %1238 = vrot.lane.b32.xlu1 %v1151_v22, %s4878_s19  ;;  %1424 = vrot.lane.b32.xlu2 %v1299_v31, %s4878_s19  ;;  %v732_v50 = vpop.f32.mrf.mxu0  ;;  %v1160_v51 = vrot.slane %v1159_v42, 4  ;;  %v1103_v52 = vld [vmem:[#allocation2 + $0x1c] sm:$0x1]  ;;  %v4359_v53 = vrot.slane %v5509_v49, 9 }
 0x139   :  { %934 = vst [vmem:[#allocation2 + $0x24] sm:$0x1] %v933_v46  ;;  %v857_v54 = vshrl.u32 %v820_v47, 16  ;;  %v860_v0 = vshll.u32 %v820_v47, 16  ;;  %v769_v57 = vmul.f32 %v5422_v63, %v732_v50  ;;  %v1302_v58 = vrot.slane %v1103_v52, 5 }
 0x13a   :  { %v5517_v5 = vsel %vm4978_vm2, %v1160_v51, %v1164_v48  ;;  %1119 = vst.msk [vmem:[#allocation3 + $0x24] sm:$0xf] %vm36_vm4, %v5509_v49  ;;  %v1167_v8 = vshrl.u32 %v5509_v49, 16  ;;  %v1170_v59 = vshll.u32 %v5509_v49, 16  ;;  %v1176_v4 = vshll.u32 %v1103_v52, 16 }
 0x13b   :  { %v859_v9 = vrot.slane %v857_v54, 7  ;;  %v789_v17 = vadd.f32 %v5427_v61, %v769_v57  ;;  %1410 = vst.msk [vmem:[#allocation3 + $0x10] sm:$0xf] %vm36_vm4, %v5517_v5  ;;  %v5526_v45 = vsel %vm5407_vm12, %v4359_v53, %v1302_v58  ;;  %v4386_v32 = vld [vmem:[#allocation3 + $0x8] sm:$0xf] }
 0x13c   :  { %1240 = vrot.lane.b32.xlu0 %v5517_v5, %s4878_s19  ;;  %1547 = vst.msk [vmem:[#allocation3 + $0x14] sm:$0xf] %vm36_vm4, %v5526_v45  ;;  %v1169_v26 = vrot.slane %v1167_v8, 4  ;;  %v1172_v62 = vrot.slane %v1170_v59, 5  ;;  %v1178_v11 = vrot.slane %v1176_v4, 5 }
 0x13d   :  { %v862_v60 = vor.u32 %v860_v0, %v859_v9  ;;  %v863_v1 = vrot.slane %v859_v9, 4  ;;  %v5534_v2 = vmax.f32 %v789_v17, 0.0 }
 0x13e   :  { %v1173_v14 = vor.u32 %v1172_v62, %v1169_v26  ;;  %v947_v62 = vld [vmem:[#allocation2 + $0x38] sm:$0xf] }
 0x13f   :  { %v936_v56 = vsel %vm5440_vm15, %v862_v60, %v935_v38  ;;  %v939_v7 = vsel %vm5446_vm0, %v863_v1, %v938_v41  ;;  %v821_v10 = vpack.c.bf16 %v5534_v2, %v5534_v2  ;;  %v5542_v12 = vld [vmem:[#allocation2 + $0x20] sm:$0xf] }
 0x140   :  { %937 = vst [vmem:[#allocation2 + $0x28] sm:$0xf] %v936_v56  ;;  %1324 = vrot.lane.b32.xlu2 %v1299_v31, %s4882_s0  ;;  %1457 = vrot.lane.b32.xlu1 %v5509_v49, %s4882_s0  ;;  %v735_v13 = vpop.f32.mrf.mxu0  ;;  %v1105_v16 = vld [vmem:[#allocation2 + $0x24] sm:$0x1]  ;;  %v4360_v18 = vrot.slane %v5542_v12, 9  ;;  %v1181_v20 = vshrl.u32 %v5542_v12, 16 }
 0x141   :  { %940 = vst [vmem:[#allocation2 + $0x2c] sm:$0x1] %v939_v7  ;;  %v865_v21 = vshrl.u32 %v821_v10, 16  ;;  %v868_v22 = vshll.u32 %v821_v10, 16  ;;  %v770_v25 = vmul.f32 %v5422_v63, %v735_v13  ;;  %v1306_v27 = vrot.slane %v1105_v16, 5 }
 0x142   :  { %v1174_v29 = vrot.slane %v1173_v14, 4  ;;  %1120 = vst.msk [vmem:[#allocation3 + $0x30] sm:$0xf] %vm36_vm4, %v5542_v12  ;;  %v1184_v35 = vshll.u32 %v5542_v12, 16  ;;  %v1183_v43 = vrot.slane %v1181_v20, 4  ;;  %v1190_v51 = vshll.u32 %v1105_v16, 16 }
 0x143   :  { %v867_v30 = vrot.slane %v865_v21, 7  ;;  %v790_v31 = vadd.f32 %v5427_v61, %v770_v25  ;;  %v4762_v33 = vld [vmem:[#allocation3 + $0x10] sm:$0xf0]  ;;  %v5555_v34 = vsel %vm5407_vm12, %v4360_v18, %v1306_v27  ;;  %v950_v10 = vld [vmem:[#allocation2 + $0x3c] sm:$0x1] }
 0x144   :  { %1426 = vrot.lane.b32.xlu0 %v5526_v45, %s4878_s19  ;;  %v4387_v37 = vor.u32 %v4762_v33, %v4386_v32  ;;  %v5562_v42 = vsel %vm4978_vm2, %v1174_v29, %v1178_v11  ;;  %1548 = vst.msk [vmem:[#allocation3 + $0x20] sm:$0xf] %vm36_vm4, %v5555_v34  ;;  %v1186_v50 = vrot.slane %v1184_v35, 5  ;;  %v1192_v1 = vrot.slane %v1190_v51, 5 }
 0x145   :  { %v870_v46 = vor.u32 %v868_v22, %v867_v30  ;;  %v871_v47 = vrot.slane %v867_v30, 4  ;;  %v5566_v48 = vmax.f32 %v790_v31, 0.0  ;;  %1411 = vst.msk [vmem:[#allocation3 + $0x1c] sm:$0xf] %vm36_vm4, %v5562_v42 }
 0x146   :  { %4544 = vmatmul.msk.bf16.vlgmr.msra.gmra.mxu3 %vm2303_vm1, %v4387_v37  ;;  %v1187_v38 = vor.u32 %v1186_v50, %v1183_v43 }
 0x147   :  { %v5571_v52 = vld [vmem:[#allocation2 + $0x28] sm:$0xf]  ;;  %v942_v53 = vsel %vm5440_vm15, %v870_v46, %v941_v28  ;;  %v945_v54 = vsel %vm5446_vm0, %v871_v47, %v944_v36  ;;  %v822_v0 = vpack.c.bf16 %v5566_v48, %v5566_v48 }
 0x148   :  { %1121 = vst.msk [vmem:[#allocation3 + $0x3c] sm:$0xf] %vm36_vm4, %v5571_v52  ;;  %1501 = vrot.lane.b32.xlu2 %v5517_v5, %s4883_s30  ;;  %1358 = vrot.lane.b32.xlu1 %v5509_v49, %s4883_s30  ;;  %v737_v57 = vpop.f32.mrf.mxu0  ;;  %v1107_v58 = vld [vmem:[#allocation2 + $0x2c] sm:$0x1]  ;;  %v4361_v9 = vrot.slane %v5571_v52, 9  ;;  %v1195_v17 = vshrl.u32 %v5571_v52, 16 }
 0x149   :  { %943 = vst [vmem:[#allocation2 + $0x30] sm:$0xf] %v942_v53  ;;  %v873_v8 = vshrl.u32 %v822_v0, 16  ;;  %v876_v41 = vshll.u32 %v822_v0, 16  ;;  %v771_v59 = vmul.f32 %v5422_v63, %v737_v57  ;;  %v1310_v4 = vrot.slane %v1107_v58, 5 }
 0x14a   :  { %946 = vst [vmem:[#allocation2 + $0x34] sm:$0x1] %v945_v54  ;;  %v1188_v60 = vrot.slane %v1187_v38, 4  ;;  %v1197_v5 = vrot.slane %v1195_v17, 4  ;;  %v1198_v7 = vshll.u32 %v5571_v52, 16  ;;  %v1204_v13 = vshll.u32 %v1107_v58, 16 }
 0x14b   :  { %v875_v26 = vrot.slane %v873_v8, 7  ;;  %v791_v49 = vadd.f32 %v5427_v61, %v771_v59  ;;  %v5591_v56 = vsel %vm5407_vm12, %v4361_v9, %v1310_v4  ;;  %v4398_v33 = vld [vmem:[#allocation3 + $0x20] sm:$0xf]  ;;  %v956_v54 = vld [vmem:[#allocation2 + $0x44] sm:$0x1] }
 0x14c   :  { %1326 = vrot.lane.b32.xlu0 %v5526_v45, %s4882_s0  ;;  %1549 = vst.msk [vmem:[#allocation3 + $0x2c] sm:$0xf] %vm36_vm4, %v5591_v56  ;;  %v5600_v11 = vsel %vm4978_vm2, %v1188_v60, %v1192_v1  ;;  %v1200_v20 = vrot.slane %v1198_v7, 5  ;;  %v1206_v29 = vrot.slane %v1204_v13, 5  ;;  %v953_v53 = vld [vmem:[#allocation2 + $0x40] sm:$0xf] }
 0x14d   :  { %v878_v14 = vor.u32 %v876_v41, %v875_v26  ;;  %v879_v16 = vrot.slane %v875_v26, 4  ;;  %v5602_v18 = vmax.f32 %v791_v49, 0.0  ;;  %1412 = vst.msk [vmem:[#allocation3 + $0x28] sm:$0xf] %vm36_vm4, %v5600_v11 }
 0x14e   :  { %v1201_v25 = vor.u32 %v1200_v20, %v1197_v5 }
 0x14f   :  { %v948_v21 = vsel %vm5440_vm15, %v878_v14, %v947_v62  ;;  %v951_v45 = vsel %vm5446_vm0, %v879_v16, %v950_v10  ;;  %v823_v22 = vpack.c.bf16 %v5602_v18, %v5602_v18 }
 0x150   :  { %v5612_v27 = vld [vmem:[#allocation2 + $0x30] sm:$0xf]  ;;  %949 = vst [vmem:[#allocation2 + $0x38] sm:$0xf] %v948_v21  ;;  %1242 = vrot.lane.b32.xlu1 %v5562_v42, %s4878_s19  ;;  %1459 = vrot.lane.b32.xlu2 %v5542_v12, %s4882_s0  ;;  %v740_v28 = vpop.f32.mrf.mxu0  ;;  %v1202_v37 = vrot.slane %v1201_v25, 4 }
 0x151   :  { %1122 = vst.msk [vmem:[#allocation3 + $0x48] sm:$0xf] %vm36_vm4, %v5612_v27  ;;  %v881_v30 = vshrl.u32 %v823_v22, 16  ;;  %v884_v31 = vshll.u32 %v823_v22, 16  ;;  %v772_v32 = vmul.f32 %v5422_v63, %v740_v28  ;;  %v1109_v35 = vld [vmem:[#allocation2 + $0x34] sm:$0x1] }
 0x152   :  { %952 = vst [vmem:[#allocation2 + $0x3c] sm:$0x1] %v951_v45  ;;  %v4362_v36 = vrot.slane %v5612_v27, 9  ;;  %v1314_v50 = vrot.slane %v1109_v35, 5  ;;  %v1209_v51 = vshrl.u32 %v5612_v27, 16  ;;  %v5628_v57 = vsel %vm4978_vm2, %v1202_v37, %v1206_v29 }
 0x153   :  { %v883_v43 = vrot.slane %v881_v30, 7  ;;  %v792_v46 = vadd.f32 %v5427_v61, %v772_v32  ;;  %v4765_v47 = vld [vmem:[#allocation3 + $0x28] sm:$0xf0]  ;;  %v1212_v58 = vshll.u32 %v5612_v27, 16  ;;  %v1218_v9 = vshll.u32 %v1109_v35, 16 }
 0x154   :  { %1503 = vrot.lane.b32.xlu0 %v5562_v42, %s4883_s30  ;;  %v4399_v0 = vor.u32 %v4765_v47, %v4398_v33  ;;  %v5635_v41 = vsel %vm5407_vm12, %v4362_v36, %v1314_v50  ;;  %1413 = vst.msk [vmem:[#allocation3 + $0x34] sm:$0xf] %vm36_vm4, %v5628_v57  ;;  %v1211_v42 = vrot.slane %v1209_v51, 4  ;;  %v1048_v30 = vld [vmem:[#allocation2 + $0x58] sm:$0xf] }
 0x155   :  { %v886_v38 = vor.u32 %v884_v31, %v883_v43  ;;  %v887_v17 = vrot.slane %v883_v43, 4  ;;  %v5631_v8 = vmax.f32 %v792_v46, 0.0  ;;  %1550 = vst.msk [vmem:[#allocation3 + $0x38] sm:$0xf] %vm36_vm4, %v5635_v41  ;;  %v1214_v59 = vrot.slane %v1212_v58, 5 }
 0x156   :  { %4545 = vmatmul.msk.bf16.gmra.mxu3 %vm2303_vm1, %v4399_v0  ;;  %v1220_v26 = vrot.slane %v1218_v9, 5  ;;  %v1051_v31 = vld [vmem:[#allocation2 + $0x5c] sm:$0x1] }
 0x157   :  { %v5642_v4 = vld [vmem:[#allocation2 + $0x38] sm:$0xf]  ;;  %v954_v60 = vsel %vm5440_vm15, %v886_v38, %v953_v53  ;;  %v957_v1 = vsel %vm5446_vm0, %v887_v17, %v956_v54  ;;  %v959_v5 = vpack.c.bf16 %v5631_v8, %v5631_v8  ;;  %v1215_v7 = vor.u32 %v1214_v59, %v1211_v42 }
 0x158   :  { %1123 = vst.msk [vmem:[#allocation3 + $0x54] sm:$0xf] %vm36_vm4, %v5642_v4  ;;  %1360 = vrot.lane.b32.xlu2 %v5542_v12, %s4883_s30  ;;  %1428 = vrot.lane.b32.xlu1 %v5555_v34, %s4878_s19  ;;  %v742_v62 = vpop.f32.mrf.mxu0  ;;  %v4363_v49 = vrot.slane %v5642_v4, 9  ;;  %v1223_v10 = vshrl.u32 %v5642_v4, 16  ;;  %v1226_v13 = vshll.u32 %v5642_v4, 16 }
 0x159   :  { %955 = vst [vmem:[#allocation2 + $0x40] sm:$0xf] %v954_v60  ;;  %v968_v14 = vshrl.u32 %v959_v5, 16  ;;  %v971_v16 = vshll.u32 %v959_v5, 16  ;;  %v773_v20 = vmul.f32 %v5422_v63, %v742_v62  ;;  %v1111_v21 = vld [vmem:[#allocation2 + $0x3c] sm:$0x1] }
 0x15a   :  { %958 = vst [vmem:[#allocation2 + $0x44] sm:$0x1] %v957_v1  ;;  %v1318_v45 = vrot.slane %v1111_v21, 5  ;;  %v1216_v12 = vrot.slane %v1215_v7, 4  ;;  %v1225_v28 = vrot.slane %v1223_v10, 4  ;;  %v1228_v29 = vrot.slane %v1226_v13, 5 }
 0x15b   :  { %v970_v22 = vrot.slane %v968_v14, 7  ;;  %v793_v25 = vadd.f32 %v5427_v61, %v773_v20  ;;  %v1232_v35 = vshll.u32 %v1111_v21, 16  ;;  %v1054_v1 = vld [vmem:[#allocation2 + $0x60] sm:$0xf]  ;;  %v1057_v5 = vld [vmem:[#allocation2 + $0x64] sm:$0x1] }
 0x15c   :  { %1461 = vrot.lane.b32.xlu0 %v5571_v52, %s4882_s0  ;;  %v5665_v32 = vsel %vm5407_vm12, %v4363_v49, %v1318_v45  ;;  %v5669_v33 = vsel %vm4978_vm2, %v1216_v12, %v1220_v26  ;;  %v1229_v46 = vor.u32 %v1228_v29, %v1225_v28  ;;  %v4410_v9 = vld [vmem:[#allocation3 + $0x38] sm:$0xf]  ;;  %v2821_v62 = vld [vmem:[#allocation2 + $0x48] sm:$0xf]  ;;  %v2822_v49 = vld [vmem:[#allocation2 + $0x4c] sm:$0x1] }
 0x15d   :  { %v973_v36 = vor.u32 %v971_v16, %v970_v22  ;;  %v974_v37 = vrot.slane %v970_v22, 4  ;;  %v5671_v43 = vmax.f32 %v793_v25, 0.0  ;;  %1551 = vst.msk [vmem:[#allocation3 + $0x44] sm:$0xf] %vm36_vm4, %v5665_v32  ;;  %v1234_v47 = vrot.slane %v1232_v35, 5 }
 0x15e   :  { %1414 = vst.msk [vmem:[#allocation3 + $0x40] sm:$0xf] %vm36_vm4, %v5669_v33  ;;  %v1230_v54 = vrot.slane %v1229_v46, 4  ;;  %v4561_v10 = vrot.slane %v2821_v62, 9  ;;  %v3237_v13 = vrot.slane %v2822_v49, 5 }
 0x15f   :  { %7212 = vst [vmem:[#allocation4_spill] sm:$0xff] %v5671_v43  ;;  %v1049_v50 = vsel %vm5440_vm15, %v973_v36, %v1048_v30  ;;  %v1052_v51 = vsel %vm5446_vm0, %v974_v37, %v1051_v31  ;;  %v960_v53 = vpack.c.bf16 %v5671_v43, %v5671_v43  ;;  %v5710_v29 = vld [vmem:[#allocation3 + $0x58] sm:$0xf0] }
 0x160   :  { %v5683_v0 = vld [vmem:[#allocation2 + $0x40] sm:$0xf]  ;;  %1050 = vst [vmem:[#allocation2 + $0x58] sm:$0xf] %v1049_v50  ;;  %1328 = vrot.lane.b32.xlu2 %v5555_v34, %s4882_s0  ;;  %1362 = vrot.lane.b32.xlu1 %v5571_v52, %s4883_s30  ;;  %v745_v58 = vpop.f32.mrf.mxu0  ;;  %v5692_v60 = vsel %vm4978_vm2, %v1230_v54, %v1234_v47  ;;  %v3238_v30 = vsel %vm5407_vm12, %v4561_v10, %v3237_v13 }
 0x161   :  { %1053 = vst [vmem:[#allocation2 + $0x5c] sm:$0x1] %v1052_v51  ;;  %v976_v38 = vshrl.u32 %v960_v53, 16  ;;  %v979_v17 = vshll.u32 %v960_v53, 16  ;;  %v774_v42 = vmul.f32 %v5422_v63, %v745_v58  ;;  %v1113_v59 = vld [vmem:[#allocation2 + $0x44] sm:$0x1] }
 0x162   :  { %v4364_v26 = vrot.slane %v5683_v0, 9  ;;  %v1420_v34 = vrot.slane %v1113_v59, 5  ;;  %1415 = vst.msk [vmem:[#allocation3 + $0x4c] sm:$0xf] %vm36_vm4, %v5692_v60  ;;  %v1388_v20 = vshrl.u32 %v5683_v0, 16  ;;  %v1391_v21 = vshll.u32 %v5683_v0, 16 }
 0x163   :  { %v978_v52 = vrot.slane %v976_v38, 7  ;;  %v794_v7 = vadd.f32 %v5427_v61, %v774_v42  ;;  %v1397_v45 = vshll.u32 %v1113_v59, 16  ;;  %3254 = vst.msk [vmem:[#allocation3 + $0x5c] sm:$0xf] %vm36_vm4, %v3238_v30  ;;  %v1060_v59 = vld [vmem:[#allocation2 + $0x68] sm:$0xf] }
 0x164   :  { %1244 = vrot.lane.b32.xlu0 %v5600_v11, %s4878_s19  ;;  %v4768_v14 = vld [vmem:[#allocation3 + $0x40] sm:$0xf0]  ;;  %v5702_v16 = vsel %vm5407_vm12, %v4364_v26, %v1420_v34  ;;  %v1390_v31 = vrot.slane %v1388_v20, 4  ;;  %v1393_v35 = vrot.slane %v1391_v21, 5  ;;  %v1063_v26 = vld [vmem:[#allocation2 + $0x6c] sm:$0x1] }
 0x165   :  { %v981_v12 = vor.u32 %v979_v17, %v978_v52  ;;  %v982_v22 = vrot.slane %v978_v52, 4  ;;  %v5706_v25 = vmax.f32 %v794_v7, 0.0  ;;  %v4411_v28 = vor.u32 %v4768_v14, %v4410_v9  ;;  %1552 = vst.msk [vmem:[#allocation3 + $0x50] sm:$0xf] %vm36_vm4, %v5702_v16 }
 0x166   :  { %v1394_v51 = vor.u32 %v1393_v35, %v1390_v31  ;;  %v1399_v53 = vrot.slane %v1397_v45, 5 }
 0x167   :  { %7213 = vst [vmem:[#allocation5_spill] sm:$0xff] %v5706_v25  ;;  %v1055_v36 = vsel %vm5440_vm15, %v981_v12, %v1054_v1  ;;  %v1058_v37 = vsel %vm5446_vm0, %v982_v22, %v1057_v5  ;;  %v961_v46 = vpack.c.bf16 %v5706_v25, %v5706_v25  ;;  %4546 = vmatmul.msk.bf16.gmra.mxu3 %vm2303_vm1, %v4411_v28  ;;  %v5722_v47 = vld [vmem:[#allocation2 + $0x58] sm:$0xf] }
 0x168   :  { %1056 = vst [vmem:[#allocation2 + $0x60] sm:$0xf] %v1055_v36  ;;  %1505 = vrot.lane.b32.xlu1 %v5600_v11, %s4883_s30  ;;  %1463 = vrot.lane.b32.xlu2 %v5612_v27, %s4882_s0  ;;  %v747_v50 = vpop.f32.mrf.mxu0  ;;  %v1395_v38 = vrot.slane %v1394_v51, 4  ;;  %v1598_v17 = vshrl.u32 %v5722_v47, 16  ;;  %v1601_v42 = vshll.u32 %v5722_v47, 16  ;;  %v1237_v51 = vpop.permute.xlu0 %1236 }
 0x169   :  { %1059 = vst [vmem:[#allocation2 + $0x64] sm:$0x1] %v1058_v37  ;;  %v984_v54 = vshrl.u32 %v961_v46, 16  ;;  %v987_v58 = vshll.u32 %v961_v46, 16  ;;  %v775_v9 = vmul.f32 %v5422_v63, %v747_v50  ;;  %v5734_v5 = vld [vmem:[#allocation2 + $0x5c] sm:$0x1] }
 0x16a   :  { %1576 = vst.msk [vmem:[#allocation3 + $0x6c] sm:$0xf] %vm36_vm4, %v5722_v47  ;;  %v5740_v34 = vsel %vm4978_vm2, %v1395_v38, %v1399_v53  ;;  %v1600_v62 = vrot.slane %v1598_v17, 4  ;;  %v1603_v49 = vrot.slane %v1601_v42, 5  ;;  %v1607_v52 = vshll.u32 %v5734_v5, 16 }
 0x16b   :  { %v986_v11 = vrot.slane %v984_v54, 7  ;;  %v795_v1 = vadd.f32 %v5427_v61, %v775_v9  ;;  %1416 = vst.msk [vmem:[#allocation3 + $0x58] sm:$0xf] %vm36_vm4, %v5740_v34  ;;  %v1069_v42 = vld [vmem:[#allocation2 + $0x74] sm:$0x1] }
 0x16c   :  { %1430 = vrot.lane.b32.xlu0 %v5591_v56, %s4878_s19  ;;  %v4422_v12 = vld [vmem:[#allocation3 + $0x50] sm:$0xf]  ;;  %v1604_v22 = vor.u32 %v1603_v49, %v1600_v62  ;;  %v1609_v31 = vrot.slane %v1607_v52, 5  ;;  %1261 = vst.msk [vmem:[#allocation3] sm:$0xf] %vm1260_vm3, %v1237_v51 }
 0x16d   :  { %v989_v7 = vor.u32 %v987_v58, %v986_v11  ;;  %v990_v10 = vrot.slane %v986_v11, 4  ;;  %v5743_v13 = vmax.f32 %v795_v1, 0.0  ;;  %v4423_v38 = vor.u32 %v5710_v29, %v4422_v12 }
 0x16e   :  { %v1605_v17 = vrot.slane %v1604_v22, 4 }
 0x16f   :  { %7214 = vst [vmem:[#allocation6_spill] sm:$0xff] %v5743_v13  ;;  %v5747_v14 = vld [vmem:[#allocation2 + $0x60] sm:$0xf]  ;;  %v1061_v20 = vsel %vm5440_vm15, %v989_v7, %v1060_v59  ;;  %v1064_v21 = vsel %vm5446_vm0, %v990_v10, %v1063_v26  ;;  %v962_v45 = vpack.c.bf16 %v5743_v13, %v5743_v13  ;;  %v1321_v7 = vpop.permute.xlu2 %1320 }
 0x170   :  { %1577 = vst.msk [vmem:[#allocation3 + $0x78] sm:$0xf] %vm36_vm4, %v5747_v14  ;;  %1246 = vrot.lane.b32.xlu1 %v5628_v57, %s4878_s19  ;;  %1364 = vrot.lane.b32.xlu2 %v5612_v27, %s4883_s30  ;;  %v750_v28 = vpop.f32.mrf.mxu0  ;;  %v1560_v30 = vld [vmem:[#allocation2 + $0x64] sm:$0x1]  ;;  %v4368_v46 = vrot.slane %v5747_v14, 9  ;;  %v1612_v53 = vshrl.u32 %v5747_v14, 16  ;;  %v5780_v29 = vsel %vm4978_vm2, %v1605_v17, %v1609_v31 }
 0x171   :  { %1062 = vst [vmem:[#allocation2 + $0x68] sm:$0xf] %v1061_v20  ;;  %v992_v35 = vshrl.u32 %v962_v45, 16  ;;  %v995_v36 = vshll.u32 %v962_v45, 16  ;;  %v776_v37 = vmul.f32 %v5422_v63, %v750_v28  ;;  %v1753_v50 = vrot.slane %v1560_v30, 5 }
 0x172   :  { %1065 = vst [vmem:[#allocation2 + $0x6c] sm:$0x1] %v1064_v21  ;;  %v1615_v54 = vshll.u32 %v5747_v14, 16  ;;  %v1066_v27 = vld [vmem:[#allocation2 + $0x70] sm:$0xf]  ;;  %v1614_v59 = vrot.slane %v1612_v53, 4 }
 0x173   :  { %v994_v58 = vrot.slane %v992_v35, 7  ;;  %v796_v9 = vadd.f32 %v5427_v61, %v776_v37  ;;  %v5772_v11 = vsel %vm5407_vm12, %v4368_v46, %v1753_v50  ;;  %v1621_v26 = vshll.u32 %v1560_v30, 16  ;;  %1862 = vst.msk [vmem:[#allocation3 + $0x64] sm:$0xf] %vm36_vm4, %v5780_v29  ;;  %v1072_v50 = vld [vmem:[#allocation2 + $0x78] sm:$0xf] }
 0x174   :  { %1330 = vrot.lane.b32.xlu0 %v5591_v56, %s4882_s0  ;;  %v1617_v1 = vrot.slane %v1615_v54, 5  ;;  %1999 = vst.msk [vmem:[#allocation3 + $0x68] sm:$0xf] %vm36_vm4, %v5772_v11  ;;  %v1075_v54 = vld [vmem:[#allocation2 + $0x7c] sm:$0x1] }
 0x175   :  { %v997_v62 = vor.u32 %v995_v36, %v994_v58  ;;  %v998_v49 = vrot.slane %v994_v58, 4  ;;  %v5774_v52 = vmax.f32 %v796_v9, 0.0  ;;  %v1623_v22 = vrot.slane %v1621_v26, 5  ;;  %1345 = vst.msk [vmem:[#allocation3] sm:$0xf] %vm1344_vm5, %v1321_v7 }
 0x176   :  { %v1618_v12 = vor.u32 %v1617_v1, %v1614_v59  ;;  %v4790_v1 = vld [vmem:[%s7190_s4 + $0x30] sm:$0xff] }
 0x177   :  { %7215 = vst [vmem:[#allocation7_spill] sm:$0xff] %v5774_v52  ;;  %v1067_v56 = vsel %vm5440_vm15, %v997_v62, %v1066_v27  ;;  %v1070_v10 = vsel %vm5446_vm0, %v998_v49, %v1069_v42  ;;  %v963_v20 = vpack.c.bf16 %v5774_v52, %v5774_v52  ;;  %4547 = vmatmul.msk.bf16.gmra.mxu3 %vm2303_vm1, %v4423_v38  ;;  %v1093_v52 = vld [vmem:[#allocation2 + $0x94] sm:$0x1] }
 0x178   :  { %v5791_v21 = vld [vmem:[#allocation2 + $0x68] sm:$0xf]  ;;  %1068 = vst [vmem:[#allocation2 + $0x70] sm:$0xf] %v1067_v56  ;;  %1507 = vrot.lane.b32.xlu2 %v5628_v57, %s4883_s30  ;;  %1432 = vrot.lane.b32.xlu1 %v5635_v41, %s4878_s19  ;;  %v752_v45 = vpop.f32.mrf.mxu0  ;;  %v4791_v57 = vld [vmem:[%s7190_s4 + $0x38] sm:$0xff]  ;;  %v1619_v38 = vrot.slane %v1618_v12, 4 }
 0x179   :  { %1578 = vst.msk [vmem:[#allocation3 + $0x84] sm:$0xf] %vm36_vm4, %v5791_v21  ;;  %v1000_v28 = vshrl.u32 %v963_v20, 16  ;;  %v1003_v30 = vshll.u32 %v963_v20, 16  ;;  %v777_v31 = vmul.f32 %v5422_v63, %v752_v45  ;;  %v1562_v35 = vld [vmem:[#allocation2 + $0x6c] sm:$0x1]  ;;  %2328 = vmatpush.bf16.msra.mxu1 %v4791_v57  ;;  %4844 = vmatpush.bf16.msra.mxu2 %v4791_v57 }
 0x17a   :  { %1071 = vst [vmem:[#allocation2 + $0x74] sm:$0x1] %v1070_v10  ;;  %v4369_v36 = vrot.slane %v5791_v21, 9  ;;  %v1757_v37 = vrot.slane %v1562_v35, 5  ;;  %v1626_v53 = vshrl.u32 %v5791_v21, 16  ;;  %v1629_v27 = vshll.u32 %v5791_v21, 16 }
 0x17b   :  { %v1002_v46 = vrot.slane %v1000_v28, 7  ;;  %v797_v51 = vadd.f32 %v5427_v61, %v777_v31  ;;  %v1635_v9 = vshll.u32 %v1562_v35, 16  ;;  %v5823_v49 = vsel %vm4978_vm2, %v1619_v38, %v1623_v22  ;;  %v5839_v22 = vpop.permute.xlu2 %1515  ;;  %v4434_v28 = vld [vmem:[#allocation3 + $0x68] sm:$0xf] }
 0x17c   :  { %1465 = vrot.lane.b32.xlu0 %v5642_v4, %s4882_s0  ;;  %v5811_v58 = vsel %vm5407_vm12, %v4369_v36, %v1757_v37  ;;  %v1628_v26 = vrot.slane %v1626_v53, 4  ;;  %v1631_v62 = vrot.slane %v1629_v27, 5  ;;  %1863 = vst.msk [vmem:[#allocation3 + $0x70] sm:$0xf] %vm36_vm4, %v5823_v49  ;;  %v4789_v31 = vld [vmem:[%s7190_s4 + $0x28] sm:$0xff] }
 0x17d   :  { %v1005_v17 = vor.u32 %v1003_v30, %v1002_v46  ;;  %v1006_v42 = vrot.slane %v1002_v46, 4  ;;  %v5814_v59 = vmax.f32 %v797_v51, 0.0  ;;  %2000 = vst.msk [vmem:[#allocation3 + $0x74] sm:$0xf] %vm36_vm4, %v5811_v58  ;;  %v1637_v45 = vrot.slane %v1635_v9, 5  ;;  %2329 = vmatpush.bf16.msra.mxu1 %v4790_v1  ;;  %4845 = vmatpush.bf16.msra.mxu2 %v4790_v1 }
 0x17e   :  { %v1632_v37 = vor.u32 %v1631_v62, %v1628_v26  ;;  %v1081_v62 = vld [vmem:[#allocation2 + $0x84] sm:$0x1] }
 0x17f   :  { %7216 = vst [vmem:[#allocation8_spill] sm:$0xff] %v5814_v59  ;;  %v1073_v7 = vsel %vm5440_vm15, %v1005_v17, %v1072_v50  ;;  %v1076_v56 = vsel %vm5446_vm0, %v1006_v42, %v1075_v54  ;;  %v964_v10 = vpack.c.bf16 %v5814_v59, %v5814_v59  ;;  %v5831_v20 = vld [vmem:[#allocation2 + $0x70] sm:$0xf]  ;;  %v1078_v17 = vld [vmem:[#allocation2 + $0x80] sm:$0xf] }
 0x180   :  { %1074 = vst [vmem:[#allocation2 + $0x78] sm:$0xf] %v1073_v7  ;;  %1509 = vrot.lane.b32.xlu1 %v5669_v33, %s4883_s30  ;;  %1467 = vrot.lane.b32.xlu2 %v5683_v0, %s4882_s0  ;;  %v755_v12 = vpop.f32.mrf.mxu0  ;;  %v4370_v30 = vrot.slane %v5831_v20, 9  ;;  %v1640_v35 = vshrl.u32 %v5831_v20, 16  ;;  %v1643_v36 = vshll.u32 %v5831_v20, 16  ;;  %v1633_v26 = vrot.slane %v1632_v37, 4 }
 0x181   :  { %1077 = vst [vmem:[#allocation2 + $0x7c] sm:$0x1] %v1076_v56  ;;  %v1008_v57 = vshrl.u32 %v964_v10, 16  ;;  %v1011_v46 = vshll.u32 %v964_v10, 16  ;;  %v778_v50 = vmul.f32 %v5422_v63, %v755_v12  ;;  %v1564_v51 = vld [vmem:[#allocation2 + $0x74] sm:$0x1]  ;;  %2330 = vmatpush.bf16.msra.mxu1 %v4789_v31  ;;  %4846 = vmatpush.bf16.msra.mxu2 %v4789_v31 }
 0x182   :  { %v1761_v53 = vrot.slane %v1564_v51, 5  ;;  %1579 = vst.msk [vmem:[#allocation3 + $0x90] sm:$0xf] %vm36_vm4, %v5831_v20  ;;  %v1642_v54 = vrot.slane %v1640_v35, 4  ;;  %v1645_v27 = vrot.slane %v1643_v36, 5  ;;  %v1649_v9 = vshll.u32 %v1564_v51, 16 }
 0x183   :  { %v1010_v38 = vrot.slane %v1008_v57, 7  ;;  %v798_v42 = vadd.f32 %v5427_v61, %v778_v50  ;;  %v4788_v61 = vld [vmem:[%s7190_s4 + $0x20] sm:$0xff] }
 0x184   :  { %1248 = vrot.lane.b32.xlu0 %v5669_v33, %s4878_s19  ;;  %v4774_v63 = vld [vmem:[#allocation3 + $0x70] sm:$0xf0]  ;;  %v5855_v1 = vsel %vm5407_vm12, %v4370_v30, %v1761_v53  ;;  %v1646_v7 = vor.u32 %v1645_v27, %v1642_v54  ;;  %v1651_v56 = vrot.slane %v1649_v9, 5  ;;  %v5866_v30 = vsel %vm4978_vm2, %v1633_v26, %v1637_v45 }
 0x185   :  { %v1013_v10 = vor.u32 %v1011_v46, %v1010_v38  ;;  %v1014_v12 = vrot.slane %v1010_v38, 4  ;;  %v5857_v35 = vmax.f32 %v798_v42, 0.0  ;;  %v4435_v36 = vor.u32 %v4774_v63, %v4434_v28  ;;  %2001 = vst.msk [vmem:[#allocation3 + $0x80] sm:$0xf] %vm36_vm4, %v5855_v1  ;;  %v4872_v38 = vld [vmem:[%s7188_s2] ss:$0 sm:$0xff]  ;;  %2331 = vmatpush.bf16.msra.mxu1 %v4788_v61  ;;  %4847 = vmatpush.bf16.msra.mxu2 %v4788_v61 }
 0x186   :  { %v1647_v33 = vrot.slane %v1646_v7, 4  ;;  %1864 = vst.msk [vmem:[#allocation3 + $0x7c] sm:$0xf] %vm36_vm4, %v5866_v30  ;;  %v1084_v42 = vld [vmem:[#allocation2 + $0x88] sm:$0xf] }
 0x187   :  { %7217 = vst [vmem:[#allocation9_spill] sm:$0xff] %v5857_v35  ;;  %v1079_v37 = vsel %vm5440_vm15, %v1013_v10, %v1078_v17  ;;  %v1082_v28 = vsel %vm5446_vm0, %v1014_v12, %v1081_v62  ;;  %v965_v57 = vpack.c.bf16 %v5857_v35, %v5857_v35  ;;  %4548 = vmatmul.msk.bf16.gmra.mxu3 %vm2303_vm1, %v4435_v36  ;;  %v5875_v46 = vld [vmem:[#allocation2 + $0x78] sm:$0xf]  ;;  %v4873_v10 = vld [vmem:[%s7189_s3] ss:$0 sm:$0xff]  ;;  %v5957_v35 = vpop.permute.xlu0 %1469 }
 0x188   :  { %1080 = vst [vmem:[#allocation2 + $0x80] sm:$0xf] %v1079_v37  ;;  %1250 = vrot.lane.b32.xlu1 %v5692_v60, %s4878_s19  ;;  %1511 = vrot.lane.b32.xlu2 %v5692_v60, %s4883_s30  ;;  %v1566_v45 = vld [vmem:[#allocation2 + $0x7c] sm:$0x1]  ;;  %v4371_v31 = vrot.slane %v5875_v46, 9  ;;  %v757_v50 = vpop.f32.mrf.mxu0  ;;  %v1654_v51 = vshrl.u32 %v5875_v46, 16  ;;  %v5887_v53 = vsel %vm4978_vm2, %v1647_v33, %v1651_v56 }
 0x189   :  { %1083 = vst [vmem:[#allocation2 + $0x84] sm:$0x1] %v1082_v28  ;;  %v1016_v54 = vshrl.u32 %v965_v57, 16  ;;  %v1019_v27 = vshll.u32 %v965_v57, 16  ;;  %v1765_v9 = vrot.slane %v1566_v45, 5  ;;  %v779_v17 = vmul.f32 %v4872_v38, %v757_v50  ;;  %v4787_v60 = vld [vmem:[%s7190_s4 + $0x18] sm:$0xff] }
 0x18a   :  { %v5895_v26 = vpop.permute.xlu2 %1356  ;;  %1580 = vst.msk [vmem:[#allocation3 + $0x9c] sm:$0xf] %vm36_vm4, %v5875_v46  ;;  %v1656_v62 = vrot.slane %v1654_v51, 4  ;;  %v1657_v63 = vshll.u32 %v5875_v46, 16  ;;  %v1663_v36 = vshll.u32 %v1566_v45, 16  ;;  %2332 = vmatpush.bf16.msra.mxu1 %v4787_v60  ;;  %v4786_v45 = vld [vmem:[%s7190_s4 + $0x10] sm:$0xff]  ;;  %4848 = vmatpush.bf16.msra.mxu2 %v4787_v60 }
 0x18b   :  { %v1018_v7 = vrot.slane %v1016_v54, 7  ;;  %v5902_v56 = vsel %vm5407_vm12, %v4371_v31, %v1765_v9  ;;  %v799_v12 = vadd.f32 %v4873_v10, %v779_v17  ;;  %1865 = vst.msk [vmem:[#allocation3 + $0x88] sm:$0xf] %vm36_vm4, %v5887_v53  ;;  %v5909_v61 = vld [vmem:[#allocation2 + $0x98] sm:$0xf] }
 0x18c   :  { %v1087_v33 = vld [vmem:[#allocation2 + $0x8c] sm:$0x1]  ;;  %1434 = vrot.lane.b32.xlu0 %v5665_v32, %s4878_s19  ;;  %2002 = vst.msk [vmem:[#allocation3 + $0x8c] sm:$0xf] %vm36_vm4, %v5902_v56  ;;  %v1659_v37 = vrot.slane %v1657_v63, 5  ;;  %v4375_v54 = vrot.slane %v5909_v61, 9 }
 0x18d   :  { %v1021_v28 = vor.u32 %v1019_v27, %v1018_v7  ;;  %v1022_v57 = vrot.slane %v1018_v7, 4  ;;  %v5915_v31 = vmax.f32 %v799_v12, 0.0  ;;  %v5920_v50 = vld [vmem:[#allocation2 + $0x9c] sm:$0x1]  ;;  %v4446_v63 = vld [vmem:[#allocation3 + $0x80] sm:$0xf] }
 0x18e   :  { %v1660_v51 = vor.u32 %v1659_v37, %v1656_v62  ;;  %v1989_v9 = vrot.slane %v5920_v50, 5  ;;  %v1665_v7 = vrot.slane %v1663_v36, 5  ;;  %2333 = vmatpush.bf16.msra.mxu1 %v4786_v45  ;;  %v4785_v36 = vld [vmem:[%s7190_s4 + $0x8] sm:$0xff]  ;;  %4849 = vmatpush.bf16.msra.mxu2 %v4786_v45 }
 0x18f   :  { %7218 = vst [vmem:[#allocation10_spill] sm:$0xff] %v5915_v31  ;;  %v1085_v38 = vsel %vm5440_vm15, %v1021_v28, %v1084_v42  ;;  %v1088_v27 = vsel %vm5446_vm0, %v1022_v57, %v1087_v33  ;;  %v966_v17 = vpack.c.bf16 %v5915_v31, %v5915_v31  ;;  %v5930_v10 = vld [vmem:[#allocation2 + $0x80] sm:$0xf]  ;;  %v1090_v28 = vld [vmem:[#allocation2 + $0x90] sm:$0xf] }
 0x190   :  { %1086 = vst [vmem:[#allocation2 + $0x88] sm:$0xf] %v1085_v38  ;;  %1436 = vrot.lane.b32.xlu1 %v5702_v16, %s4878_s19  ;;  %1816 = vrot.lane.b32.xlu2 %v5875_v46, %s4883_s30  ;;  %v1661_v60 = vrot.slane %v1660_v51, 4  ;;  %v1568_v62 = vld [vmem:[#allocation2 + $0x84] sm:$0x1]  ;;  %v4372_v42 = vrot.slane %v5930_v10, 9  ;;  %v1990_v38 = vsel %vm5407_vm12, %v4375_v54, %v1989_v9 }
 0x191   :  { %1089 = vst [vmem:[#allocation2 + $0x8c] sm:$0x1] %v1088_v27  ;;  %v1024_v12 = vshrl.u32 %v966_v17, 16  ;;  %v1027_v33 = vshll.u32 %v966_v17, 16  ;;  %v1769_v37 = vrot.slane %v1568_v62, 5  ;;  %v1668_v16 = vshrl.u32 %v5930_v10, 16 }
 0x192   :  { %v1425_v57 = vpop.permute.xlu2 %1424  ;;  %1581 = vst.msk [vmem:[#allocation3 + $0xa8] sm:$0xf] %vm36_vm4, %v5930_v10  ;;  %v1671_v51 = vshll.u32 %v5930_v10, 16  ;;  %v5949_v59 = vsel %vm4978_vm2, %v1661_v60, %v1665_v7  ;;  %v1677_v31 = vshll.u32 %v1568_v62, 16  ;;  %2334 = vmatpush.bf16.msra.mxu1 %v4785_v36  ;;  %v4784_v60 = vld [vmem:[%s7190_s4] sm:$0xff]  ;;  %4850 = vmatpush.bf16.msra.mxu2 %v4785_v36 }
 0x193   :  { %v1026_v27 = vrot.slane %v1024_v12, 7  ;;  %1447 = vst.msk [vmem:[#allocation3 + $0x10] sm:$0xf] %vm1260_vm3, %v1425_v57  ;;  %v4777_v17 = vld [vmem:[#allocation3 + $0x88] sm:$0xf0]  ;;  %v5953_v45 = vsel %vm5407_vm12, %v4372_v42, %v1769_v37  ;;  %v1670_v9 = vrot.slane %v1668_v16, 4 }
 0x194   :  { %1783 = vrot.lane.b32.xlu0 %v5855_v1, %s4882_s0  ;;  %v4447_v54 = vor.u32 %v4777_v17, %v4446_v63  ;;  %1866 = vst.msk [vmem:[#allocation3 + $0x94] sm:$0xf] %vm36_vm4, %v5949_v59  ;;  %v1673_v12 = vrot.slane %v1671_v51, 5  ;;  %v1679_v37 = vrot.slane %v1677_v31, 5 }
 0x195   :  { %v1029_v57 = vor.u32 %v1027_v33, %v1026_v27  ;;  %v1030_v7 = vrot.slane %v1026_v27, 4  ;;  %2003 = vst.msk [vmem:[#allocation3 + $0x98] sm:$0xf] %vm36_vm4, %v5953_v45 }
 0x196   :  { %v1674_v62 = vor.u32 %v1673_v12, %v1670_v9  ;;  %2006 = vst.msk [vmem:[#allocation3 + $0xbc] sm:$0xf] %vm36_vm4, %v1990_v38  ;;  %2335 = vmatpush.bf16.msra.mxu1 %v4784_v60  ;;  %4851 = vmatpush.bf16.msra.mxu2 %v4784_v60 }
 0x197   :  { %v1091_v63 = vsel %vm5440_vm15, %v1029_v57, %v1090_v28  ;;  %v1094_v42 = vsel %vm5446_vm0, %v1030_v7, %v1093_v52  ;;  %4549 = vmatmul.msk.bf16.gmra.mxu3 %vm2303_vm1, %v4447_v54  ;;  %v5972_v33 = vld [vmem:[#allocation2 + $0x88] sm:$0xf] }
 0x198   :  { %1092 = vst [vmem:[#allocation2 + $0x90] sm:$0xf] %v1091_v63  ;;  %1513 = vrot.lane.b32.xlu1 %v5740_v34, %s4883_s30  ;;  %1705 = vrot.lane.b32.xlu2 %v5949_v59, %s4878_s19  ;;  %v1570_v36 = vld [vmem:[#allocation2 + $0x8c] sm:$0x1]  ;;  %v4373_v16 = vrot.slane %v5972_v33, 9  ;;  %v1682_v28 = vshrl.u32 %v5972_v33, 16 }
 0x199   :  { %1095 = vst [vmem:[#allocation2 + $0x94] sm:$0x1] %v1094_v42  ;;  %v1773_v52 = vrot.slane %v1570_v36, 5  ;;  %v1685_v51 = vshll.u32 %v5972_v33, 16  ;;  %v1691_v38 = vshll.u32 %v1570_v36, 16  ;;  %v1675_v27 = vrot.slane %v1674_v62, 4 }
 0x19a   :  { %v1355_v31 = vpop.permute.xlu1 %1354  ;;  %v1325_v17 = vpop.permute.xlu2 %1324  ;;  %1582 = vst.msk [vmem:[#allocation3 + $0xb4] sm:$0xf] %vm36_vm4, %v5972_v33  ;;  %v1684_v34 = vrot.slane %v1682_v28, 4 }
 0x19b   :  { %1379 = vst.msk [vmem:[#allocation3] sm:$0xf] %vm1378_vm6, %v1355_v31  ;;  %v5986_v54 = vsel %vm5407_vm12, %v4373_v16, %v1773_v52  ;;  %v1687_v9 = vrot.slane %v1685_v51, 5  ;;  %v5990_v12 = vsel %vm4978_vm2, %v1675_v27, %v1679_v37  ;;  %v1693_v7 = vrot.slane %v1691_v38, 5 }
 0x19c   :  { %1818 = vrot.lane.b32.xlu0 %v5930_v10, %s4883_s30  ;;  %2004 = vst.msk [vmem:[#allocation3 + $0xa4] sm:$0xf] %vm36_vm4, %v5986_v54  ;;  %v4458_v28 = vld [vmem:[#allocation3 + $0x98] sm:$0xf] }
 0x19d   :  { %v1688_v57 = vor.u32 %v1687_v9, %v1684_v34  ;;  %1867 = vst.msk [vmem:[#allocation3 + $0xa0] sm:$0xf] %vm36_vm4, %v5990_v12 }
 0x19e   :  { %v1323_v60 = vpop.permute.xlu0 %1322 }
 0x19f   :  { %v1689_v62 = vrot.slane %v1688_v57, 4  ;;  %v5998_v63 = vld [vmem:[#allocation2 + $0x90] sm:$0xf] }
 0x1a0   :  { %1703 = vrot.lane.b32.xlu1 %v5887_v53, %s4878_s19  ;;  %1820 = vrot.lane.b32.xlu2 %v5972_v33, %s4883_s30  ;;  %v1572_v42 = vld [vmem:[#allocation2 + $0x94] sm:$0x1]  ;;  %v4374_v37 = vrot.slane %v5998_v63, 9  ;;  %v1841_v36 = vshrl.u32 %v5998_v63, 16  ;;  %v1844_v16 = vshll.u32 %v5998_v63, 16 }
 0x1a1   :  { %v6009_v52 = vsel %vm4978_vm2, %v1689_v62, %v1693_v7  ;;  %v1873_v51 = vrot.slane %v1572_v42, 5  ;;  %v1850_v38 = vshll.u32 %v1572_v42, 16 }
 0x1a2   :  { %v1423_v27 = vpop.permute.xlu1 %1422  ;;  %v1502_v31 = vpop.permute.xlu2 %1501  ;;  %1868 = vst.msk [vmem:[#allocation3 + $0xac] sm:$0xf] %vm36_vm4, %v6009_v52  ;;  %v1843_v34 = vrot.slane %v1841_v36, 4  ;;  %v1846_v9 = vrot.slane %v1844_v16, 5 }
 0x1a3   :  { %1446 = vst.msk [vmem:[#allocation3 + $0x4] sm:$0xf] %vm1260_vm3, %v1423_v27  ;;  %v4780_v57 = vld [vmem:[#allocation3 + $0xa0] sm:$0xf0]  ;;  %v6016_v13 = vsel %vm5407_vm12, %v4374_v37, %v1873_v51  ;;  %v1852_v42 = vrot.slane %v1850_v38, 5 }
 0x1a4   :  { %1787 = vrot.lane.b32.xlu0 %v5953_v45, %s4882_s0  ;;  %v4459_v7 = vor.u32 %v4780_v57, %v4458_v28  ;;  %2005 = vst.msk [vmem:[#allocation3 + $0xb0] sm:$0xf] %vm36_vm4, %v6016_v13  ;;  %v1847_v62 = vor.u32 %v1846_v9, %v1843_v34  ;;  %v4783_v28 = vld [vmem:[#allocation3 + $0xb8] sm:$0xf0]  ;;  %v1749_v34 = vrot.slane %v5734_v5, 5  ;;  %v1587_v9 = vshll.u32 %v5335_v6, 16 }
 0x1a6   :  { %v1456_v25 = vpop.permute.xlu0 %1455  ;;  %v1848_v43 = vrot.slane %v1847_v62, 4 }
 0x1a7   :  { %1479 = vst.msk [vmem:[#allocation3 + $0x4] sm:$0xf] %vm1344_vm5, %v1456_v25  ;;  %4550 = vmatmul.msk.bf16.gmra.mxu3 %vm2303_vm1, %v4459_v7 }
 0x1a8   :  { %1525 = vst.msk [vmem:[#allocation3 + $0x4] sm:$0xf] %vm1378_vm6, %v1502_v31  ;;  %1785 = vrot.lane.b32.xlu1 %v5902_v56, %s4882_s0  ;;  %1709 = vrot.lane.b32.xlu2 %v6009_v52, %s4878_s19  ;;  %v6031_v37 = vsel %vm4978_vm2, %v1848_v43, %v1852_v42  ;;  %v1589_v42 = vrot.slane %v1587_v9, 5 }
 0x1a9   :  { %1869 = vst.msk [vmem:[#allocation3 + $0xb8] sm:$0xf] %vm36_vm4, %v6031_v37 }
 0x1aa   :  { %v1239_v36 = vpop.permute.xlu1 %1238  ;;  %v1460_v16 = vpop.permute.xlu2 %1459 }
 0x1ab   :  { %1262 = vst.msk [vmem:[#allocation3 + $0xc] sm:$0xf] %vm1260_vm3, %v1239_v36  ;;  %v4470_v43 = vld [vmem:[#allocation3 + $0xb0] sm:$0xf] }
 0x1ac   :  { %1346 = vst.msk [vmem:[#allocation3 + $0xc] sm:$0xf] %vm1344_vm5, %v1323_v60  ;;  %1822 = vrot.lane.b32.xlu0 %v5998_v63, %s4883_s30  ;;  %v4471_v38 = vor.u32 %v4783_v28, %v4470_v43 }
 0x1ad   :  { %1380 = vst.msk [vmem:[#allocation3 + $0xc] sm:$0xf] %vm1378_vm6, %v5895_v26  ;;  %v4378_v26 = vld [vmem:[#allocation3] sm:$0xf] }
 0x1ae   :  { %v1241_v25 = vpop.permute.xlu0 %1240 }
 0x1af   :  { %1263 = vst.msk [vmem:[#allocation3 + $0x18] sm:$0xf] %vm1260_vm3, %v1241_v25 }
 0x1b0   :  { %1347 = vst.msk [vmem:[#allocation3 + $0x18] sm:$0xf] %vm1344_vm5, %v1325_v17  ;;  %1707 = vrot.lane.b32.xlu1 %v5990_v12, %s4878_s19  ;;  %1332 = vrot.lane.b32.xlu2 %v5635_v41, %s4882_s0  ;;  %v4367_v41 = vrot.slane %v5722_v47, 9 }
 0x1b2   :  { %v1458_v60 = vpop.permute.xlu1 %1457  ;;  %v1361_v51 = vpop.permute.xlu2 %1360  ;;  %v1750_v62 = vsel %vm5407_vm12, %v4367_v41, %v1749_v34 }
 0x1b3   :  { %1480 = vst.msk [vmem:[#allocation3 + $0x10] sm:$0xf] %vm1344_vm5, %v1458_v60 }
 0x1b4   :  { %1334 = vrot.lane.b32.xlu0 %v5665_v32, %s4882_s0  ;;  %v4761_v27 = vld [vmem:[#allocation3 + $0x8] sm:$0xf0]  ;;  %v1584_v32 = vshrl.u32 %v5335_v6, 16 }
 0x1b5   :  { %v4379_v31 = vor.u32 %v4761_v27, %v4378_v26  ;;  %v4366_v27 = vrot.slane %v5335_v6, 9 }
 0x1b6   :  { %v1427_v17 = vpop.permute.xlu0 %1426  ;;  %v1586_v5 = vrot.slane %v1584_v32, 4 }
 0x1b7   :  { %1448 = vst.msk [vmem:[#allocation3 + $0x1c] sm:$0xf] %vm1260_vm3, %v1427_v17  ;;  %4551 = vmatmul.msk.bf16.gmra.mxu3 %vm2303_vm1, %v4471_v38  ;;  %2336 = vmatmul.bf16.vlgmr.msra.gmra.mxu1 %v4379_v31 }
 0x1b8   :  { %1481 = vst.msk [vmem:[#allocation3 + $0x1c] sm:$0xf] %vm1344_vm5, %v1460_v16  ;;  %1789 = vrot.lane.b32.xlu1 %v5986_v54, %s4882_s0  ;;  %1368 = vrot.lane.b32.xlu2 %v5683_v0, %s4883_s30  ;;  %v1556_v16 = vld [vmem:[#allocation2 + $0x54] sm:$0x1]  ;;  %v1590_v0 = vor.u32 %v1589_v42, %v1586_v5 }
 0x1b9   :  { %v1593_v25 = vshll.u32 %v1556_v16, 16  ;;  %v1745_v31 = vrot.slane %v1556_v16, 5 }
 0x1ba   :  { %v1359_v57 = vpop.permute.xlu1 %1358  ;;  %v1329_v7 = vpop.permute.xlu2 %1328  ;;  %v1591_v60 = vrot.slane %v1590_v0, 4 }
 0x1bb   :  { %1381 = vst.msk [vmem:[#allocation3 + $0x18] sm:$0xf] %vm1378_vm6, %v1359_v57  ;;  %v1595_v38 = vrot.slane %v1593_v25, 5  ;;  %v1746_v9 = vsel %vm5407_vm12, %v4366_v27, %v1745_v31 }
 0x1bc   :  { %1875 = vrot.lane.b32.xlu0 %v1750_v62, %s4878_s19 }
 0x1be   :  { %v1327_v36 = vpop.permute.xlu0 %1326 }
 0x1c0   :  { %1366 = vrot.lane.b32.xlu1 %v5642_v4, %s4883_s30  ;;  %1908 = vrot.lane.b32.xlu2 %v5747_v14, %s4882_s0  ;;  %v1596_v4 = vsel %vm4978_vm2, %v1591_v60, %v1595_v38 }
 0x1c2   :  { %v1243_v43 = vpop.permute.xlu1 %1242  ;;  %v1464_v28 = vpop.permute.xlu2 %1463 }
 0x1c3   :  { %1264 = vst.msk [vmem:[#allocation3 + $0x24] sm:$0xf] %vm1260_vm3, %v1243_v43 }
 0x1c4   :  { %1348 = vst.msk [vmem:[#allocation3 + $0x24] sm:$0xf] %vm1344_vm5, %v1327_v36  ;;  %1910 = vrot.lane.b32.xlu0 %v5791_v21, %s4882_s0 }
 0x1c5   :  { %1382 = vst.msk [vmem:[#allocation3 + $0x24] sm:$0xf] %vm1378_vm6, %v1361_v51  ;;  %v4390_v51 = vld [vmem:[#allocation3 + $0x18] sm:$0xf] }
 0x1c6   :  { %v1504_v26 = vpop.permute.xlu0 %1503 }
 0x1c7   :  { %1526 = vst.msk [vmem:[#allocation3 + $0x10] sm:$0xf] %vm1378_vm6, %v1504_v26 }
 0x1c8   :  { %1877 = vrot.lane.b32.xlu1 %v5772_v11, %s4878_s19  ;;  %1956 = vrot.lane.b32.xlu2 %v5866_v30, %s4883_s30 }
 0x1ca   :  { %v1429_v17 = vpop.permute.xlu1 %1428  ;;  %v1365_v41 = vpop.permute.xlu2 %1364 }
 0x1cb   :  { %1449 = vst.msk [vmem:[#allocation3 + $0x28] sm:$0xf] %vm1260_vm3, %v1429_v17 }
 0x1cc   :  { %1695 = vrot.lane.b32.xlu0 %v1596_v4, %s4878_s19  ;;  %v4764_v34 = vld [vmem:[#allocation3 + $0x20] sm:$0xf0] }
 0x1cd   :  { %v4391_v32 = vor.u32 %v4764_v34, %v4390_v51  ;;  %v4797_v51 = vld [vmem:[%s7190_s4 + $0x68] sm:$0xff] }
 0x1ce   :  { %v1462_v57 = vpop.permute.xlu0 %1461 }
 0x1cf   :  { %1482 = vst.msk [vmem:[#allocation3 + $0x28] sm:$0xf] %vm1344_vm5, %v1462_v57  ;;  %2341 = vmatmul.bf16.gmra.mxu1 %v4391_v32 }
 0x1d0   :  { %1954 = vrot.lane.b32.xlu1 %v5823_v49, %s4883_s30  ;;  %1775 = vrot.lane.b32.xlu2 %v1746_v9, %s4882_s0  ;;  %v4796_v9 = vld [vmem:[%s7190_s4 + $0x60] sm:$0xff] }
 0x1d2   :  { %v1363_v6 = vpop.permute.xlu1 %1362  ;;  %v1508_v5 = vpop.permute.xlu2 %1507 }
 0x1d3   :  { %1528 = vst.msk [vmem:[#allocation3 + $0x28] sm:$0xf] %vm1378_vm6, %v1508_v5 }
 0x1d4   :  { %1777 = vrot.lane.b32.xlu0 %v1750_v62, %s4882_s0 }
 0x1d6   :  { %v1245_v42 = vpop.permute.xlu0 %1244 }
 0x1d7   :  { %1265 = vst.msk [vmem:[#allocation3 + $0x30] sm:$0xf] %vm1260_vm3, %v1245_v42  ;;  %v4795_v42 = vld [vmem:[%s7190_s4 + $0x58] sm:$0xff] }
 0x1d8   :  { %1349 = vst.msk [vmem:[#allocation3 + $0x30] sm:$0xf] %vm1344_vm5, %v1329_v7  ;;  %1697 = vrot.lane.b32.xlu1 %v5780_v29, %s4878_s19  ;;  %1810 = vrot.lane.b32.xlu2 %v5747_v14, %s4883_s30 }
 0x1d9   :  { %1383 = vst.msk [vmem:[#allocation3 + $0x30] sm:$0xf] %vm1378_vm6, %v1363_v6 }
 0x1da   :  { %v1506_v36 = vpop.permute.xlu1 %1505  ;;  %v1468_v16 = vpop.permute.xlu2 %1467 }
 0x1db   :  { %1527 = vst.msk [vmem:[#allocation3 + $0x1c] sm:$0xf] %vm1378_vm6, %v1506_v36  ;;  %v4794_v36 = vld [vmem:[%s7190_s4 + $0x50] sm:$0xff] }
 0x1dc   :  { %1879 = vrot.lane.b32.xlu0 %v5811_v58, %s4878_s19 }
 0x1de   :  { %v1431_v62 = vpop.permute.xlu0 %1430 }
 0x1df   :  { %1450 = vst.msk [vmem:[#allocation3 + $0x34] sm:$0xf] %vm1260_vm3, %v1431_v62 }
 0x1e0   :  { %1483 = vst.msk [vmem:[#allocation3 + $0x34] sm:$0xf] %vm1344_vm5, %v1464_v28  ;;  %1808 = vrot.lane.b32.xlu1 %v5722_v47, %s4883_s30  ;;  %1912 = vrot.lane.b32.xlu2 %v5831_v20, %s4882_s0  ;;  %v4402_v25 = vld [vmem:[#allocation3 + $0x30] sm:$0xf] }
 0x1e2   :  { %v1247_v14 = vpop.permute.xlu1 %1246  ;;  %v1512_v29 = vpop.permute.xlu2 %1511 }
 0x1e3   :  { %1266 = vst.msk [vmem:[#allocation3 + $0x3c] sm:$0xf] %vm1260_vm3, %v1247_v14  ;;  %v4793_v14 = vld [vmem:[%s7190_s4 + $0x48] sm:$0xff] }
 0x1e4   :  { %1914 = vrot.lane.b32.xlu0 %v5875_v46, %s4882_s0 }
 0x1e6   :  { %v1331_v7 = vpop.permute.xlu0 %1330 }
 0x1e7   :  { %1350 = vst.msk [vmem:[#allocation3 + $0x3c] sm:$0xf] %vm1344_vm5, %v1331_v7 }
 0x1e8   :  { %1384 = vst.msk [vmem:[#allocation3 + $0x3c] sm:$0xf] %vm1378_vm6, %v1365_v41  ;;  %1881 = vrot.lane.b32.xlu1 %v5855_v1, %s4878_s19  ;;  %1960 = vrot.lane.b32.xlu2 %v5949_v59, %s4883_s30  ;;  %v6179_v41 = vld [vmem:[#allocation2 + $0x4] sm:$0x1] }
 0x1ea   :  { %v1433_v47 = vpop.permute.xlu1 %1432  ;;  %v6118_v0 = vpop.permute.xlu2 %1816 }
 0x1eb   :  { %1451 = vst.msk [vmem:[#allocation3 + $0x40] sm:$0xf] %vm1260_vm3, %v1433_v47 }
 0x1ec   :  { %1699 = vrot.lane.b32.xlu0 %v5823_v49, %s4878_s19 }
 0x1ee   :  { %v1466_v46 = vpop.permute.xlu0 %1465 }
 0x1ef   :  { %1484 = vst.msk [vmem:[#allocation3 + $0x40] sm:$0xf] %vm1344_vm5, %v1466_v46  ;;  %v4767_v43 = vld [vmem:[#allocation3 + $0x38] sm:$0xf0]  ;;  %v4792_v46 = vld [vmem:[%s7190_s4 + $0x40] sm:$0xff] }
 0x1f0   :  { %1530 = vst.msk [vmem:[#allocation3 + $0x40] sm:$0xf] %vm1378_vm6, %v1512_v29  ;;  %1958 = vrot.lane.b32.xlu1 %v5887_v53, %s4883_s30  ;;  %1779 = vrot.lane.b32.xlu2 %v5772_v11, %s4882_s0  ;;  %v4403_v59 = vor.u32 %v4767_v43, %v4402_v25  ;;  %v6137_v11 = vld [vmem:[#allocation2] sm:$0xf] }
 0x1f1   :  { %2823 = vst.msk [vmem:[#allocation3] sm:$0xf] %vm36_vm4, %v6137_v11  ;;  %v4552_v34 = vrot.slane %v6137_v11, 9 }
 0x1f2   :  { %2346 = vmatmul.bf16.gmra.mxu1 %v4403_v59  ;;  %v1510_v1 = vpop.permute.xlu1 %1509  ;;  %v1706_v28 = vpop.permute.xlu2 %1705 }
 0x1f3   :  { %1529 = vst.msk [vmem:[#allocation3 + $0x34] sm:$0xf] %vm1378_vm6, %v1510_v1 }
 0x1f4   :  { %1724 = vst.msk [vmem:[#allocation3 + $0x9c] sm:$0xf] %vm1260_vm3, %v1706_v28  ;;  %1781 = vrot.lane.b32.xlu0 %v5811_v58, %s4882_s0  ;;  %v1941_v58 = vshrl.u32 %v5909_v61, 16 }
 0x1f6   :  { %v1249_v49 = vpop.permute.xlu0 %1248 }
 0x1f7   :  { %1267 = vst.msk [vmem:[#allocation3 + $0x48] sm:$0xf] %vm1260_vm3, %v1249_v49 }
 0x1f8   :  { %1701 = vrot.lane.b32.xlu1 %v5866_v30, %s4878_s19  ;;  %1814 = vrot.lane.b32.xlu2 %v5831_v20, %s4883_s30  ;;  %v1944_v30 = vshll.u32 %v5909_v61, 16  ;;  %v1943_v20 = vrot.slane %v1941_v58, 4 }
 0x1fa   :  { %v1251_v53 = vpop.permute.xlu1 %1250  ;;  %v6142_v60 = vpop.permute.xlu2 %1820  ;;  %v1946_v26 = vrot.slane %v1944_v30, 5 }
 0x1fb   :  { %1268 = vst.msk [vmem:[#allocation3 + $0x54] sm:$0xf] %vm1260_vm3, %v1251_v53 }
 0x1fc   :  { %1883 = vrot.lane.b32.xlu0 %v5902_v56, %s4878_s19  ;;  %v1947_v27 = vor.u32 %v1946_v26, %v1943_v20 }
 0x1fe   :  { %v1435_v38 = vpop.permute.xlu0 %1434 }
 0x1ff   :  { %1452 = vst.msk [vmem:[#allocation3 + $0x4c] sm:$0xf] %vm1260_vm3, %v1435_v38 }
 0x200   :  { %1485 = vst.msk [vmem:[#allocation3 + $0x4c] sm:$0xf] %vm1344_vm5, %v1468_v16  ;;  %1812 = vrot.lane.b32.xlu1 %v5791_v21, %s4883_s30  ;;  %1916 = vrot.lane.b32.xlu2 %v5930_v10, %s4882_s0  ;;  %v1950_v21 = vshll.u32 %v5920_v50, 16 }
 0x202   :  { %v1437_v4 = vpop.permute.xlu1 %1436  ;;  %v1710_v56 = vpop.permute.xlu2 %1709  ;;  %v1952_v31 = vrot.slane %v1950_v21, 5  ;;  %v4760_v21 = vld [vmem:[#allocation3 + $0x4] sm:$0xf] }
 0x203   :  { %1453 = vst.msk [vmem:[#allocation3 + $0x58] sm:$0xf] %vm1260_vm3, %v1437_v4 }
 0x204   :  { %1486 = vst.msk [vmem:[#allocation3 + $0x58] sm:$0xf] %vm1344_vm5, %v5957_v35  ;;  %1918 = vrot.lane.b32.xlu0 %v5972_v33, %s4882_s0  ;;  %v4799_v35 = vld [vmem:[%s7190_s4 + $0x78] sm:$0xff]  ;;  %v1948_v33 = vrot.slane %v1947_v27, 4 }
 0x205   :  { %1532 = vst.msk [vmem:[#allocation3 + $0x58] sm:$0xf] %vm1378_vm6, %v5839_v22  ;;  %2377 = vmatpush.bf16.msrb.mxu2 %v4799_v35  ;;  %v4798_v22 = vld [vmem:[%s7190_s4 + $0x70] sm:$0xff] }
 0x206   :  { %1726 = vst.msk [vmem:[#allocation3 + $0xb4] sm:$0xf] %vm1260_vm3, %v1710_v56  ;;  %v1784_v10 = vpop.permute.xlu0 %1783  ;;  %v4380_v56 = vld [vmem:[#allocation3 + $0xc] sm:$0xf0] }
 0x207   :  { %v4383_v35 = vor.u32 %v4760_v21, %v4380_v56 }
 0x208   :  { %1885 = vrot.lane.b32.xlu1 %v5953_v45, %s4878_s19  ;;  %1920 = vrot.lane.b32.xlu2 %v5998_v63, %s4882_s0  ;;  %v1953_v45 = vsel %vm4978_vm2, %v1948_v33, %v1952_v31 }
 0x209   :  { %2378 = vmatpush.bf16.msrb.mxu2 %v4798_v22  ;;  %v2832_v22 = vshrl.u32 %v6137_v11, 16 }
 0x20a   :  { %v1514_v17 = vpop.permute.xlu1 %1513  ;;  %v1333_v50 = vpop.permute.xlu2 %1332 }
 0x20b   :  { %1531 = vst.msk [vmem:[#allocation3 + $0x4c] sm:$0xf] %vm1378_vm6, %v1514_v17 }
 0x20c   :  { %1351 = vst.msk [vmem:[#allocation3 + $0x48] sm:$0xf] %vm1344_vm5, %v1333_v50  ;;  %1887 = vrot.lane.b32.xlu0 %v5986_v54, %s4878_s19  ;;  %v2993_v54 = vrot.slane %v6179_v41, 5  ;;  %v2835_v50 = vshll.u32 %v6137_v11, 16 }
 0x20d   :  { %2379 = vmatpush.bf16.msrb.mxu2 %v4797_v51 }
 0x20e   :  { %v1819_v63 = vpop.permute.xlu0 %1818  ;;  %v2994_v6 = vsel %vm5407_vm12, %v4552_v34, %v2993_v54  ;;  %v2841_v54 = vshll.u32 %v6179_v41, 16 }
 0x210   :  { %1962 = vrot.lane.b32.xlu1 %v5990_v12, %s4883_s30  ;;  %1968 = vrot.lane.b32.xlu2 %v1953_v45, %s4883_s30  ;;  %v6198_v12 = vld [vmem:[#allocation2 + $0x98] sm:$0xf]  ;;  %v2834_v45 = vrot.slane %v2832_v22, 4 }
 0x211   :  { %2380 = vmatpush.bf16.msrb.mxu2 %v4796_v9 }
 0x212   :  { %v1704_v32 = vpop.permute.xlu1 %1703  ;;  %v1369_v57 = vpop.permute.xlu2 %1368 }
 0x213   :  { %1723 = vst.msk [vmem:[#allocation3 + $0x90] sm:$0xf] %vm1260_vm3, %v1704_v32  ;;  %v4763_v32 = vld [vmem:[#allocation3 + $0x1c] sm:$0xf] }
 0x214   :  { %1803 = vst.msk [vmem:[#allocation3 + $0x90] sm:$0xf] %vm1344_vm5, %v1784_v10  ;;  %1922 = vrot.lane.b32.xlu0 %v5909_v61, %s4882_s0 }
 0x215   :  { %1836 = vst.msk [vmem:[#allocation3 + $0x90] sm:$0xf] %vm1378_vm6, %v6118_v0  ;;  %2381 = vmatpush.bf16.msrb.mxu2 %v4795_v42 }
 0x216   :  { %v1788_v5 = vpop.permute.xlu0 %1787 }
 0x218   :  { %3622 = vrot.lane.b32.xlu1 %v6198_v12, %s4882_s0  ;;  %3023 = vrot.lane.b32.xlu2 %v2994_v6, %s4882_s0 }
 0x219   :  { %2382 = vmatpush.bf16.msrb.mxu2 %v4794_v36 }
 0x21a   :  { %v1786_v61 = vpop.permute.xlu1 %1785  ;;  %v1909_v16 = vpop.permute.xlu2 %1908 }
 0x21b   :  { %1804 = vst.msk [vmem:[#allocation3 + $0x9c] sm:$0xf] %vm1344_vm5, %v1786_v61 }
 0x21c   :  { %1837 = vst.msk [vmem:[#allocation3 + $0x9c] sm:$0xf] %vm1378_vm6, %v1819_v63  ;;  %v4450_v7 = vld [vmem:[#allocation3 + $0x90] sm:$0xf]  ;;  %v2837_v63 = vrot.slane %v2835_v50, 5 }
 0x21d   :  { %2383 = vmatpush.bf16.msrb.mxu2 %v4793_v14 }
 0x21e   :  { %v1823_v62 = vpop.permute.xlu0 %1822  ;;  %v2838_v34 = vor.u32 %v2837_v63, %v2834_v45 }
 0x220   :  { %1964 = vrot.lane.b32.xlu2 %v6009_v52, %s4883_s30  ;;  %1889 = vrot.lane.b32.xlu1 %v6016_v13, %s4878_s19  ;;  %v2839_v9 = vrot.slane %v2838_v34, 4 }
 0x221   :  { %2384 = vmatpush.bf16.msrb.mxu2 %v4792_v46 }
 0x222   :  { %v1708_v29 = vpop.permute.xlu1 %1707  ;;  %v1957_v47 = vpop.permute.xlu2 %1956 }
 0x223   :  { %1725 = vst.msk [vmem:[#allocation3 + $0xa8] sm:$0xf] %vm1260_vm3, %v1708_v29  ;;  %v4779_v0 = vld [vmem:[#allocation3 + $0x98] sm:$0xf0] }
 0x224   :  { %1805 = vst.msk [vmem:[#allocation3 + $0xa8] sm:$0xf] %vm1344_vm5, %v1788_v5  ;;  %v4451_v52 = vor.u32 %v4779_v0, %v4450_v7  ;;  %v4392_v5 = vld [vmem:[#allocation3 + $0x24] sm:$0xf0] }
 0x225   :  { %1838 = vst.msk [vmem:[#allocation3 + $0xa8] sm:$0xf] %vm1378_vm6, %v6142_v60  ;;  %v4395_v61 = vor.u32 %v4763_v32, %v4392_v5 }
 0x226   :  { %v1335_v13 = vpop.permute.xlu0 %1334  ;;  %2366 = vmatmul.bf16.vlgmr.msra.gmra.mxu2 %v4451_v52  ;;  %v4404_v52 = vld [vmem:[#allocation3 + $0x3c] sm:$0xf0] }
 0x227   :  { %1352 = vst.msk [vmem:[#allocation3 + $0x54] sm:$0xf] %vm1344_vm5, %v1335_v13 }
 0x228   :  { %1386 = vst.msk [vmem:[#allocation3 + $0x54] sm:$0xf] %vm1378_vm6, %v1369_v57  ;;  %1966 = vrot.lane.b32.xlu1 %v6031_v37, %s4883_s30  ;;  %v2843_v57 = vrot.slane %v2841_v54, 5 }
 0x22a   :  { %v1790_v25 = vpop.permute.xlu1 %1789  ;;  %v1776_v43 = vpop.permute.xlu2 %1775  ;;  %v2844_v42 = vsel %vm4978_vm2, %v2839_v9, %v2843_v57 }
 0x22b   :  { %1806 = vst.msk [vmem:[#allocation3 + $0xb4] sm:$0xf] %vm1344_vm5, %v1790_v25  ;;  %2943 = vrot.lane.b32.xlu0 %v2844_v42, %s4878_s19  ;;  %v2435_v9 = vpop.f32.mrf.mxu3  ;;  %v3255_v42 = vld [vmem:[#allocation2 + $0x50] sm:$0xf] }
 0x22c   :  { %1839 = vst.msk [vmem:[#allocation3 + $0xb4] sm:$0xf] %vm1378_vm6, %v1823_v62  ;;  %v4462_v49 = vld [vmem:[#allocation3 + $0xa8] sm:$0xf] }
 0x22e   :  { %v1876_v59 = vpop.permute.xlu0 %1875 }
 0x22f   :  { %1899 = vst.msk [vmem:[#allocation3 + $0x64] sm:$0xf] %vm1260_vm3, %v1876_v59  ;;  %v4770_v38 = vld [vmem:[#allocation3 + $0x50] sm:$0xf0] }
 0x230   :  { %1932 = vst.msk [vmem:[#allocation3 + $0x64] sm:$0xf] %vm1344_vm5, %v1909_v16 }
 0x232   :  { %v1367_v1 = vpop.permute.xlu1 %1366  ;;  %v1811_v28 = vpop.permute.xlu2 %1810 }
 0x233   :  { %1385 = vst.msk [vmem:[#allocation3 + $0x48] sm:$0xf] %vm1378_vm6, %v1367_v1  ;;  %v4782_v53 = vld [vmem:[#allocation3 + $0xb0] sm:$0xf0] }
 0x234   :  { %v4463_v60 = vor.u32 %v4782_v53, %v4462_v49 }
 0x236   :  { %v1911_v58 = vpop.permute.xlu0 %1910  ;;  %2371 = vmatmul.bf16.gmra.mxu2 %v4463_v60  ;;  %v4416_v60 = vld [vmem:[#allocation3 + $0x54] sm:$0xf0] }
 0x23a   :  { %v1878_v37 = vpop.permute.xlu1 %1877  ;;  %v4414_v30 = vld [vmem:[#allocation3 + $0x48] sm:$0xf]  ;;  %v1913_v20 = vpop.permute.xlu2 %1912 }
 0x23b   :  { %1900 = vst.msk [vmem:[#allocation3 + $0x70] sm:$0xf] %vm1260_vm3, %v1878_v37  ;;  %v4415_v26 = vor.u32 %v4770_v38, %v4414_v30 }
 0x23c   :  { %1933 = vst.msk [vmem:[#allocation3 + $0x70] sm:$0xf] %vm1344_vm5, %v1911_v58 }
 0x23d   :  { %1979 = vst.msk [vmem:[#allocation3 + $0x70] sm:$0xf] %vm1378_vm6, %v1957_v47  ;;  %2351 = vmatmul.bf16.gmra.mxu1 %v4415_v26  ;;  %v4766_v47 = vld [vmem:[#allocation3 + $0x34] sm:$0xf] }
 0x23e   :  { %v1696_v4 = vpop.permute.xlu0 %1695  ;;  %v4407_v13 = vor.u32 %v4766_v47, %v4404_v52 }
 0x23f   :  { %1719 = vst.msk [vmem:[#allocation3 + $0x60] sm:$0xf] %vm1260_vm3, %v1696_v4 }
 0x240   :  { %1799 = vst.msk [vmem:[#allocation3 + $0x60] sm:$0xf] %vm1344_vm5, %v1776_v43 }
 0x242   :  { %v1955_v27 = vpop.permute.xlu1 %1954  ;;  %v1961_v10 = vpop.permute.xlu2 %1960 }
 0x243   :  { %1978 = vst.msk [vmem:[#allocation3 + $0x64] sm:$0xf] %vm1378_vm6, %v1955_v27 }
 0x246   :  { %v1778_v33 = vpop.permute.xlu0 %1777  ;;  %2385 = vmatmul.bf16.vlgmr.msrb.gmra.mxu2 %v4383_v35 }
 0x24a   :  { %v1698_v31 = vpop.permute.xlu1 %1697  ;;  %v1780_v17 = vpop.permute.xlu2 %1779  ;;  %v4772_v27 = vld [vmem:[#allocation3 + $0x64] sm:$0xf] }
 0x24b   :  { %1720 = vst.msk [vmem:[#allocation3 + $0x6c] sm:$0xf] %vm1260_vm3, %v1698_v31 }
 0x24c   :  { %1800 = vst.msk [vmem:[#allocation3 + $0x6c] sm:$0xf] %vm1344_vm5, %v1778_v33 }
 0x24d   :  { %1833 = vst.msk [vmem:[#allocation3 + $0x6c] sm:$0xf] %vm1378_vm6, %v1811_v28  ;;  %v4769_v28 = vld [vmem:[#allocation3 + $0x4c] sm:$0xf] }
 0x24e   :  { %v1880_v51 = vpop.permute.xlu0 %1879  ;;  %v4419_v58 = vor.u32 %v4769_v28, %v4416_v60  ;;  %v2337_v60 = vpop.f32.mrf.mxu1 }
 0x24f   :  { %1901 = vst.msk [vmem:[#allocation3 + $0x7c] sm:$0xf] %vm1260_vm3, %v1880_v51 }
 0x250   :  { %1934 = vst.msk [vmem:[#allocation3 + $0x7c] sm:$0xf] %vm1344_vm5, %v1913_v20 }
 0x252   :  { %v1809_v6 = vpop.permute.xlu1 %1808  ;;  %v1815_v11 = vpop.permute.xlu2 %1814 }
 0x253   :  { %1832 = vst.msk [vmem:[#allocation3 + $0x60] sm:$0xf] %vm1378_vm6, %v1809_v6 }
 0x254   :  { %v4773_v62 = vld [vmem:[#allocation3 + $0x68] sm:$0xf0] }
 0x256   :  { %v1915_v36 = vpop.permute.xlu0 %1914  ;;  %2390 = vmatmul.bf16.gmra.mxu2 %v4395_v61  ;;  %v3284_v61 = vshrl.u32 %v3255_v42, 16 }
 0x25a   :  { %v1882_v16 = vpop.permute.xlu1 %1881  ;;  %v4426_v41 = vld [vmem:[#allocation3 + $0x60] sm:$0xf]  ;;  %v1917_v14 = vpop.permute.xlu2 %1916 }
 0x25b   :  { %1902 = vst.msk [vmem:[#allocation3 + $0x88] sm:$0xf] %vm1260_vm3, %v1882_v16  ;;  %v4427_v29 = vor.u32 %v4773_v62, %v4426_v41  ;;  %v2437_v16 = vpop.f32.mrf.mxu3  ;;  %v3256_v41 = vld [vmem:[#allocation2 + $0x54] sm:$0x1]  ;;  %v3286_v62 = vrot.slane %v3284_v61, 4 }
 0x25c   :  { %1935 = vst.msk [vmem:[#allocation3 + $0x88] sm:$0xf] %vm1344_vm5, %v1915_v36  ;;  %v3287_v36 = vshll.u32 %v3255_v42, 16 }
 0x25d   :  { %1981 = vst.msk [vmem:[#allocation3 + $0x88] sm:$0xf] %vm1378_vm6, %v1961_v10  ;;  %2356 = vmatmul.bf16.gmra.mxu1 %v4427_v29  ;;  %v4428_v10 = vld [vmem:[#allocation3 + $0x6c] sm:$0xf0]  ;;  %v4562_v29 = vrot.slane %v3255_v42, 9 }
 0x25e   :  { %v1700_v7 = vpop.permute.xlu0 %1699  ;;  %v4431_v35 = vor.u32 %v4772_v27, %v4428_v10  ;;  %3275 = vst.msk [vmem:[#allocation3 + $0x60] sm:$0xf] %vm36_vm4, %v3255_v42 }
 0x25f   :  { %1721 = vst.msk [vmem:[#allocation3 + $0x78] sm:$0xf] %vm1260_vm3, %v1700_v7  ;;  %v3445_v7 = vrot.slane %v3256_v41, 5 }
 0x260   :  { %1801 = vst.msk [vmem:[#allocation3 + $0x78] sm:$0xf] %vm1344_vm5, %v1780_v17 }
 0x261   :  { %v3446_v52 = vsel %vm5407_vm12, %v4562_v29, %v3445_v7 }
 0x262   :  { %v1959_v0 = vpop.permute.xlu1 %1958  ;;  %v1921_v46 = vpop.permute.xlu2 %1920  ;;  %3475 = vrot.lane.b32.xlu2 %v3446_v52, %s4882_s0 }
 0x263   :  { %1980 = vst.msk [vmem:[#allocation3 + $0x7c] sm:$0xf] %vm1378_vm6, %v1959_v0  ;;  %v2440_v27 = vpop.f32.mrf.mxu3 }
 0x264   :  { %v4440_v50 = vld [vmem:[#allocation3 + $0x84] sm:$0xf0] }
 0x266   :  { %v1782_v25 = vpop.permute.xlu0 %1781  ;;  %2395 = vmatmul.bf16.gmra.mxu2 %v4407_v13  ;;  %v4874_v13 = vld [vmem:[#allocation2 + $0x48] sm:$0xf] }
 0x26a   :  { %v1702_v43 = vpop.permute.xlu1 %1701  ;;  %v1969_v59 = vpop.permute.xlu2 %1968  ;;  %v4775_v31 = vld [vmem:[#allocation3 + $0x7c] sm:$0xf] }
 0x26b   :  { %1722 = vst.msk [vmem:[#allocation3 + $0x84] sm:$0xf] %vm1260_vm3, %v1702_v43  ;;  %v4443_v45 = vor.u32 %v4775_v31, %v4440_v50  ;;  %v3192_v43 = vshll.u32 %v4874_v13, 16  ;;  %v2442_v42 = vpop.f32.mrf.mxu3 }
 0x26c   :  { %1802 = vst.msk [vmem:[#allocation3 + $0x84] sm:$0xf] %vm1344_vm5, %v1782_v25  ;;  %v3189_v25 = vshrl.u32 %v4874_v13, 16 }
 0x26d   :  { %1835 = vst.msk [vmem:[#allocation3 + $0x84] sm:$0xf] %vm1378_vm6, %v1815_v11 }
 0x26e   :  { %v1884_v1 = vpop.permute.xlu0 %1883  ;;  %v3191_v28 = vrot.slane %v3189_v25, 4 }
 0x26f   :  { %1903 = vst.msk [vmem:[#allocation3 + $0x94] sm:$0xf] %vm1260_vm3, %v1884_v1 }
 0x270   :  { %1936 = vst.msk [vmem:[#allocation3 + $0x94] sm:$0xf] %vm1344_vm5, %v1917_v14  ;;  %v3289_v14 = vrot.slane %v3287_v36, 5  ;;  %v6315_v36 = vld [vmem:[%s7192_s6] ss:$0 sm:$0xff] }
 0x272   :  { %v1813_v49 = vpop.permute.xlu1 %1812  ;;  %v6266_v53 = vpop.permute.xlu2 %3023  ;;  %v3290_v0 = vor.u32 %v3289_v14, %v3286_v62 }
 0x273   :  { %1834 = vst.msk [vmem:[#allocation3 + $0x78] sm:$0xf] %vm1378_vm6, %v1813_v49  ;;  %v3194_v49 = vrot.slane %v3192_v43, 5 }
 0x274   :  { %v4776_v20 = vld [vmem:[#allocation3 + $0x80] sm:$0xf0] }
 0x276   :  { %v1919_v37 = vpop.permute.xlu0 %1918  ;;  %2400 = vmatmul.bf16.gmra.mxu2 %v4419_v58 }
 0x27a   :  { %v1886_v30 = vpop.permute.xlu1 %1885  ;;  %v4438_v38 = vld [vmem:[#allocation3 + $0x78] sm:$0xf]  ;;  %v1965_v4 = vpop.permute.xlu2 %1964 }
 0x27b   :  { %1904 = vst.msk [vmem:[#allocation3 + $0xa0] sm:$0xf] %vm1260_vm3, %v1886_v30  ;;  %v4439_v26 = vor.u32 %v4776_v20, %v4438_v38  ;;  %v3644_v30 = vshll.u32 %v6198_v12, 16  ;;  %v3195_v38 = vor.u32 %v3194_v49, %v3191_v28  ;;  %v4875_v20 = vld [vmem:[#allocation2 + $0x4c] sm:$0x1] }
 0x27c   :  { %1937 = vst.msk [vmem:[#allocation3 + $0xa0] sm:$0xf] %vm1344_vm5, %v1919_v37  ;;  %v3641_v37 = vshrl.u32 %v6198_v12, 16 }
 0x27d   :  { %1983 = vst.msk [vmem:[#allocation3 + $0xa0] sm:$0xf] %vm1378_vm6, %v1965_v4  ;;  %2361 = vmatmul.bf16.gmra.mxu1 %v4439_v26  ;;  %v3198_v26 = vshll.u32 %v4875_v20, 16  ;;  %v3196_v4 = vrot.slane %v3195_v38, 4  ;;  %v2619_v38 = vld [vmem:[#allocation2 + $0x8] sm:$0xf] }
 0x27e   :  { %v1888_v56 = vpop.permute.xlu0 %1887  ;;  %v3643_v10 = vrot.slane %v3641_v37, 4  ;;  %v2622_v20 = vld [vmem:[#allocation2 + $0xc] sm:$0x1] }
 0x27f   :  { %1905 = vst.msk [vmem:[#allocation3 + $0xac] sm:$0xf] %vm1260_vm3, %v1888_v56  ;;  %v3200_v56 = vrot.slane %v3198_v26, 5 }
 0x280   :  { %1938 = vst.msk [vmem:[#allocation3 + $0xac] sm:$0xf] %vm1344_vm5, %v1921_v46  ;;  %v3293_v46 = vshll.u32 %v3256_v41, 16 }
 0x281   :  { %v3201_v31 = vsel %vm4978_vm2, %v3196_v4, %v3200_v56 }
 0x282   :  { %v1963_v21 = vpop.permute.xlu1 %1962  ;;  %v3295_v1 = vrot.slane %v3293_v46, 5  ;;  %3216 = vrot.lane.b32.xlu2 %v3201_v31, %s4883_s30 }
 0x283   :  { %1982 = vst.msk [vmem:[#allocation3 + $0x94] sm:$0xf] %vm1378_vm6, %v1963_v21 }
 0x284   :  { %v4452_v34 = vld [vmem:[#allocation3 + $0x9c] sm:$0xf0] }
 0x286   :  { %2405 = vmatmul.bf16.gmra.mxu2 %v4431_v35  ;;  %v1923_v17 = vpop.permute.xlu0 %1922  ;;  %v3646_v35 = vrot.slane %v3644_v30, 5 }
 0x28a   :  { %v6274_v33 = vpop.permute.xlu1 %3622  ;;  %v4778_v51 = vld [vmem:[#allocation3 + $0x94] sm:$0xf] }
 0x28b   :  { %v4455_v54 = vor.u32 %v4778_v51, %v4452_v34 }
 0x292   :  { %v1890_v22 = vpop.permute.xlu1 %1889 }
 0x293   :  { %1906 = vst.msk [vmem:[#allocation3 + $0xb8] sm:$0xf] %vm1260_vm3, %v1890_v22  ;;  %v3647_v22 = vor.u32 %v3646_v35, %v3643_v10 }
 0x294   :  { %1939 = vst.msk [vmem:[#allocation3 + $0xb8] sm:$0xf] %vm1344_vm5, %v1923_v17  ;;  %v3274_v17 = vld [vmem:[#allocation2 + $0x9c] sm:$0x1] }
 0x295   :  { %1985 = vst.msk [vmem:[#allocation3 + $0xb8] sm:$0xf] %vm1378_vm6, %v1969_v59  ;;  %v3291_v59 = vrot.slane %v3290_v0, 4  ;;  %v3650_v50 = vshll.u32 %v3274_v17, 16  ;;  %v3648_v51 = vrot.slane %v3647_v22, 4  ;;  %v4571_v0 = vrot.slane %v6198_v12, 9 }
 0x296   :  { %2410 = vmatmul.bf16.gmra.mxu2 %v4443_v45  ;;  %v2339_v45 = vpop.f32.mrf.mxu1  ;;  %v3689_v43 = vrot.slane %v3274_v17, 5  ;;  %v4843_v22 = vld [vmem:[%s7193_s7 + $0x88] sm:$0xff] }
 0x297   :  { %v3296_v58 = vsel %vm4978_vm2, %v3291_v59, %v3295_v1  ;;  %v3652_v34 = vrot.slane %v3650_v50, 5  ;;  %4131 = vmatpush.bf16.msrb.mxu1 %v4843_v22 }
 0x298   :  { %3395 = vrot.lane.b32.xlu0 %v3296_v58, %s4878_s19  ;;  %v3690_v49 = vsel %vm5407_vm12, %v4571_v0, %v3689_v43 }
 0x299   :  { %3706 = vst.msk [vmem:[#allocation3 + $0xbc] sm:$0xf] %vm36_vm4, %v3690_v49 }
 0x29a   :  { %v1967_v63 = vpop.permute.xlu1 %1966 }
 0x29b   :  { %1984 = vst.msk [vmem:[#allocation3 + $0xac] sm:$0xf] %vm1378_vm6, %v1967_v63 }
 0x29c   :  { %v4464_v11 = vld [vmem:[#allocation3 + $0xb4] sm:$0xf0] }
 0x29d   :  { %v2944_v63 = vpop.permute.xlu0 %2943 }
 0x29e   :  { %2967 = vst.msk [vmem:[#allocation3] sm:$0xf] %vm1260_vm3, %v2944_v63  ;;  %v2342_v62 = vpop.f32.mrf.mxu1 }
 0x29f   :  { %3047 = vst.msk [vmem:[#allocation3] sm:$0xf] %vm1344_vm5, %v6266_v53 }
 0x2a0   :  { %3170 = vrot.lane.b32.xlu0 %v4874_v13, %s4882_s0  ;;  %v6320_v13 = vpop.f32.mrf.mxu3 }
 0x2a2   :  { %v4781_v6 = vld [vmem:[#allocation3 + $0xac] sm:$0xf] }
 0x2a3   :  { %v4467_v5 = vor.u32 %v4781_v6, %v4464_v11  ;;  %v6305_v11 = vld [vmem:[%s7191_s5] ss:$0 sm:$0xff] }
 0x2a6   :  { %2415 = vmatmul.bf16.gmra.mxu2 %v4455_v54 }
 0x2a8   :  { %v6332_v17 = vpop.f32.mrf.mxu3 }
 0x2a9   :  { %v6280_v32 = vpop.f32.mrf.mxu2 }
 0x2b1   :  { %v6282_v57 = vpop.f32.mrf.mxu2 }
 0x2b6   :  { %2420 = vmatmul.bf16.gmra.mxu2 %v4467_v5  ;;  %v3653_v5 = vsel %vm4978_vm2, %v3648_v51, %v3652_v34 }
 0x2b7   :  { %3668 = vrot.lane.b32.xlu2 %v3653_v5, %s4883_s30 }
 0x2b9   :  { %v6285_v47 = vpop.f32.mrf.mxu2 }
 0x2c1   :  { %v6295_v21 = vpop.f32.mrf.mxu2 }
 0x2c9   :  { %v2386_v54 = vpop.f32.mrf.mxu2 }
 0x2ca   :  { %v2387_v6 = vadd.f32 %v2386_v54, %v2337_v60  ;;  %v2344_v60 = vpop.f32.mrf.mxu1 }
 0x2cc   :  { %v2436_v61 = vadd.f32 %v2435_v9, %v2387_v6 }
 0x2ce   :  { %v2479_v41 = vmul.f32 %v6305_v11, %v2436_v61  ;;  %v2625_v61 = vld [vmem:[#allocation2 + $0x10] sm:$0xf] }
 0x2d0   :  { %v2499_v14 = vadd.f32 %v6315_v36, %v2479_v41  ;;  %v2628_v41 = vld [vmem:[#allocation2 + $0x14] sm:$0x1] }
 0x2d1   :  { %v2388_v29 = vpop.f32.mrf.mxu2 }
 0x2d2   :  { %v2515_v7 = vmax.f32 %v2499_v14, 0.0  ;;  %v2389_v53 = vadd.f32 %v2388_v29, %v2339_v45  ;;  %v2347_v51 = vpop.f32.mrf.mxu1 }
 0x2d4   :  { %v2531_v46 = vpack.c.bf16 %v2515_v7, %v2515_v7  ;;  %v2438_v52 = vadd.f32 %v2437_v16, %v2389_v53 }
 0x2d6   :  { %v2540_v9 = vshrl.u32 %v2531_v46, 16  ;;  %v2480_v25 = vmul.f32 %v6305_v11, %v2438_v52  ;;  %v2543_v1 = vshll.u32 %v2531_v46, 16 }
 0x2d8   :  { %v2542_v59 = vrot.slane %v2540_v9, 7  ;;  %v2500_v28 = vadd.f32 %v6315_v36, %v2480_v25 }
 0x2d9   :  { %v2391_v58 = vpop.f32.mrf.mxu2 }
 0x2da   :  { %v2545_v12 = vor.u32 %v2543_v1, %v2542_v59  ;;  %v2546_v37 = vrot.slane %v2542_v59, 4  ;;  %v2516_v16 = vmax.f32 %v2500_v28, 0.0  ;;  %v2392_v30 = vadd.f32 %v2391_v58, %v2342_v62  ;;  %v4842_v62 = vld [vmem:[%s7193_s7 + $0x80] sm:$0xff] }
 0x2db   :  { %4132 = vmatpush.bf16.msrb.mxu1 %v4842_v62 }
 0x2dc   :  { %v2620_v26 = vsel %vm5440_vm15, %v2545_v12, %v2619_v38  ;;  %v2623_v4 = vsel %vm5446_vm0, %v2546_v37, %v2622_v20  ;;  %v2532_v56 = vpack.c.bf16 %v2516_v16, %v2516_v16  ;;  %v2441_v10 = vadd.f32 %v2440_v27, %v2392_v30  ;;  %v6351_v37 = vpop.f32.mrf.mxu3 }
 0x2dd   :  { %2621 = vst [vmem:[#allocation2 + $0x8] sm:$0xf] %v2620_v26 }
 0x2de   :  { %2624 = vst [vmem:[#allocation2 + $0xc] sm:$0x1] %v2623_v4  ;;  %v2548_v35 = vshrl.u32 %v2532_v56, 16  ;;  %v2481_v31 = vmul.f32 %v6305_v11, %v2441_v10  ;;  %v2551_v45 = vshll.u32 %v2532_v56, 16  ;;  %v2349_v56 = vpop.f32.mrf.mxu1  ;;  %v2631_v10 = vld [vmem:[#allocation2 + $0x18] sm:$0xf] }
 0x2e0   :  { %v2550_v50 = vrot.slane %v2548_v35, 7  ;;  %v2501_v63 = vadd.f32 %v6315_v36, %v2481_v31  ;;  %v2634_v35 = vld [vmem:[#allocation2 + $0x1c] sm:$0x1] }
 0x2e1   :  { %v2393_v34 = vpop.f32.mrf.mxu2 }
 0x2e2   :  { %v2553_v54 = vor.u32 %v2551_v45, %v2550_v50  ;;  %v2554_v27 = vrot.slane %v2550_v50, 4  ;;  %v2517_v6 = vmax.f32 %v2501_v63, 0.0  ;;  %v2394_v5 = vadd.f32 %v2393_v34, %v2344_v60 }
 0x2e4   :  { %v2626_v14 = vsel %vm5440_vm15, %v2553_v54, %v2625_v61  ;;  %v2629_v29 = vsel %vm5446_vm0, %v2554_v27, %v2628_v41  ;;  %v2533_v7 = vpack.c.bf16 %v2517_v6, %v2517_v6  ;;  %v2443_v53 = vadd.f32 %v2442_v42, %v2394_v5  ;;  %v2805_v0 = vld [vmem:[#allocation2 + $0x8] sm:$0xf] }
 0x2e5   :  { %2627 = vst [vmem:[#allocation2 + $0x10] sm:$0xf] %v2626_v14  ;;  %3056 = vrot.lane.b32.xlu1 %v2805_v0, %s4883_s30  ;;  %v2806_v46 = vld [vmem:[#allocation2 + $0xc] sm:$0x1]  ;;  %v4553_v52 = vrot.slane %v2805_v0, 9  ;;  %v2846_v9 = vshrl.u32 %v2805_v0, 16 }
 0x2e6   :  { %2630 = vst [vmem:[#allocation2 + $0x14] sm:$0x1] %v2629_v29  ;;  %v2556_v25 = vshrl.u32 %v2533_v7, 16  ;;  %v2482_v43 = vmul.f32 %v6305_v11, %v2443_v53  ;;  %v2997_v59 = vrot.slane %v2806_v46, 5  ;;  %v2849_v28 = vshll.u32 %v2805_v0, 16 }
 0x2e7   :  { %2824 = vst.msk [vmem:[#allocation3 + $0xc] sm:$0xf] %vm36_vm4, %v2805_v0  ;;  %v2848_v1 = vrot.slane %v2846_v9, 4  ;;  %v2855_v49 = vshll.u32 %v2806_v46, 16  ;;  %v2559_v42 = vshll.u32 %v2533_v7, 16 }
 0x2e8   :  { %v2558_v60 = vrot.slane %v2556_v25, 7  ;;  %v2502_v58 = vadd.f32 %v6315_v36, %v2482_v43  ;;  %v2998_v12 = vsel %vm5407_vm12, %v4553_v52, %v2997_v59  ;;  %v2851_v30 = vrot.slane %v2849_v28, 5 }
 0x2e9   :  { %3025 = vrot.lane.b32.xlu0 %v2998_v12, %s4882_s0  ;;  %v2396_v16 = vpop.f32.mrf.mxu2  ;;  %v2857_v22 = vrot.slane %v2855_v49, 5  ;;  %v6371_v49 = vpop.f32.mrf.mxu3 }
 0x2ea   :  { %v2561_v38 = vor.u32 %v2559_v42, %v2558_v60  ;;  %v2562_v20 = vrot.slane %v2558_v60, 4  ;;  %v2518_v26 = vmax.f32 %v2502_v58, 0.0  ;;  %v2397_v4 = vadd.f32 %v2396_v16, %v2347_v51  ;;  %v2352_v60 = vpop.f32.mrf.mxu1  ;;  %v2637_v42 = vld [vmem:[#allocation2 + $0x20] sm:$0xf]  ;;  %v2640_v58 = vld [vmem:[#allocation2 + $0x24] sm:$0x1] }
 0x2eb   :  { %v2852_v31 = vor.u32 %v2851_v30, %v2848_v1 }
 0x2ec   :  { %v2632_v50 = vsel %vm5440_vm15, %v2561_v38, %v2631_v10  ;;  %v2635_v45 = vsel %vm5446_vm0, %v2562_v20, %v2634_v35  ;;  %v2534_v63 = vpack.c.bf16 %v2518_v26, %v2518_v26  ;;  %v2446_v34 = vadd.f32 %v6320_v13, %v2397_v4  ;;  %v2807_v54 = vld [vmem:[#allocation2 + $0x10] sm:$0xf] }
 0x2ed   :  { %2633 = vst [vmem:[#allocation2 + $0x18] sm:$0xf] %v2632_v50  ;;  %3058 = vrot.lane.b32.xlu2 %v2807_v54, %s4883_s30  ;;  %v2853_v27 = vrot.slane %v2852_v31, 4  ;;  %v2808_v51 = vld [vmem:[#allocation2 + $0x14] sm:$0x1]  ;;  %v4554_v6 = vrot.slane %v2807_v54, 9 }
 0x2ee   :  { %2636 = vst [vmem:[#allocation2 + $0x1c] sm:$0x1] %v2635_v45  ;;  %v2564_v5 = vshrl.u32 %v2534_v63, 16  ;;  %v2483_v61 = vmul.f32 %v6305_v11, %v2446_v34  ;;  %v3001_v41 = vrot.slane %v2808_v51, 5  ;;  %v2860_v14 = vshrl.u32 %v2807_v54, 16 }
 0x2ef   :  { %2825 = vst.msk [vmem:[#allocation3 + $0x18] sm:$0xf] %vm36_vm4, %v2807_v54  ;;  %v2858_v62 = vsel %vm4978_vm2, %v2853_v27, %v2857_v22  ;;  %v2863_v29 = vshll.u32 %v2807_v54, 16  ;;  %v2869_v13 = vshll.u32 %v2808_v51, 16  ;;  %v2567_v53 = vshll.u32 %v2534_v63, 16 }
 0x2f0   :  { %v2566_v7 = vrot.slane %v2564_v5, 7  ;;  %v2503_v0 = vadd.f32 %v6315_v36, %v2483_v61  ;;  %2945 = vrot.lane.b32.xlu1 %v2858_v62, %s4878_s19  ;;  %3110 = vst.msk [vmem:[#allocation3 + $0x4] sm:$0xf] %vm36_vm4, %v2858_v62  ;;  %v3002_v46 = vsel %vm5407_vm12, %v4554_v6, %v3001_v41  ;;  %v2862_v9 = vrot.slane %v2860_v14, 4 }
 0x2f1   :  { %3123 = vrot.lane.b32.xlu0 %v2998_v12, %s4878_s19  ;;  %v2398_v52 = vpop.f32.mrf.mxu2  ;;  %3247 = vst.msk [vmem:[#allocation3 + $0x8] sm:$0xf] %vm36_vm4, %v3002_v46  ;;  %v2865_v25 = vrot.slane %v2863_v29, 5  ;;  %v2871_v30 = vrot.slane %v2869_v13, 5 }
 0x2f2   :  { %v2569_v43 = vor.u32 %v2567_v53, %v2566_v7  ;;  %v2570_v59 = vrot.slane %v2566_v7, 4  ;;  %v2519_v1 = vmax.f32 %v2503_v0, 0.0  ;;  %v2399_v28 = vadd.f32 %v2398_v52, %v2349_v56  ;;  %v2643_v7 = vld [vmem:[#allocation2 + $0x28] sm:$0xf]  ;;  %v2646_v53 = vld [vmem:[#allocation2 + $0x2c] sm:$0x1] }
 0x2f3   :  { %v2866_v16 = vor.u32 %v2865_v25, %v2862_v9 }
 0x2f4   :  { %v2638_v38 = vsel %vm5440_vm15, %v2569_v43, %v2637_v42  ;;  %v2641_v12 = vsel %vm5446_vm0, %v2570_v59, %v2640_v58  ;;  %v2535_v20 = vpack.c.bf16 %v2519_v1, %v2519_v1  ;;  %v2448_v26 = vadd.f32 %v6332_v17, %v2399_v28  ;;  %v2809_v4 = vld [vmem:[#allocation2 + $0x18] sm:$0xf]  ;;  %v6403_v28 = vpop.f32.mrf.mxu3  ;;  %v2354_v42 = vpop.f32.mrf.mxu1 }
 0x2f5   :  { %2639 = vst [vmem:[#allocation2 + $0x20] sm:$0xf] %v2638_v38  ;;  %3156 = vrot.lane.b32.xlu2 %v2807_v54, %s4882_s0  ;;  %v2810_v56 = vld [vmem:[#allocation2 + $0x1c] sm:$0x1]  ;;  %v4555_v10 = vrot.slane %v2809_v4, 9  ;;  %v2867_v35 = vrot.slane %v2866_v16, 4 }
 0x2f6   :  { %2642 = vst [vmem:[#allocation2 + $0x24] sm:$0x1] %v2641_v12  ;;  %v2572_v31 = vshrl.u32 %v2535_v20, 16  ;;  %v2484_v22 = vmul.f32 %v6305_v11, %v2448_v26  ;;  %v3005_v50 = vrot.slane %v2810_v56, 5  ;;  %v2874_v63 = vshrl.u32 %v2809_v4, 16 }
 0x2f7   :  { %2826 = vst.msk [vmem:[#allocation3 + $0x24] sm:$0xf] %vm36_vm4, %v2809_v4  ;;  %v6383_v45 = vsel %vm4978_vm2, %v2867_v35, %v2871_v30  ;;  %v2877_v17 = vshll.u32 %v2809_v4, 16  ;;  %v2883_v34 = vshll.u32 %v2810_v56, 16  ;;  %v2575_v51 = vshll.u32 %v2535_v20, 16 }
 0x2f8   :  { %v2574_v27 = vrot.slane %v2572_v31, 7  ;;  %v2504_v54 = vadd.f32 %v6315_v36, %v2484_v22  ;;  %3125 = vrot.lane.b32.xlu1 %v3002_v46, %s4878_s19  ;;  %v6389_v6 = vsel %vm5407_vm12, %v4555_v10, %v3005_v50  ;;  %3111 = vst.msk [vmem:[#allocation3 + $0x10] sm:$0xf] %vm36_vm4, %v6383_v45  ;;  %v2876_v61 = vrot.slane %v2874_v63, 4  ;;  %v4582_v12 = vld [vmem:[#allocation3 + $0x8] sm:$0xf] }
 0x2f9   :  { %3248 = vst.msk [vmem:[#allocation3 + $0x14] sm:$0xf] %vm36_vm4, %v6389_v6  ;;  %3158 = vrot.lane.b32.xlu0 %v2809_v4, %s4882_s0  ;;  %v2401_v5 = vpop.f32.mrf.mxu2  ;;  %v2879_v41 = vrot.slane %v2877_v17, 5  ;;  %v2885_v52 = vrot.slane %v2883_v34, 5 }
 0x2fa   :  { %v2577_v62 = vor.u32 %v2575_v51, %v2574_v27  ;;  %v2578_v14 = vrot.slane %v2574_v27, 4  ;;  %v2520_v29 = vmax.f32 %v2504_v54, 0.0  ;;  %v2402_v13 = vadd.f32 %v2401_v5, %v2352_v60 }
 0x2fb   :  { %v2880_v0 = vor.u32 %v2879_v41, %v2876_v61  ;;  %v2649_v61 = vld [vmem:[#allocation2 + $0x30] sm:$0xf]  ;;  %v2652_v41 = vld [vmem:[#allocation2 + $0x34] sm:$0x1] }
 0x2fc   :  { %v2644_v9 = vsel %vm5440_vm15, %v2577_v62, %v2643_v7  ;;  %v2647_v25 = vsel %vm5446_vm0, %v2578_v14, %v2646_v53  ;;  %v2536_v43 = vpack.c.bf16 %v2520_v29, %v2520_v29  ;;  %v2451_v59 = vadd.f32 %v6351_v37, %v2402_v13  ;;  %v6401_v1 = vld [vmem:[#allocation2 + $0x20] sm:$0xf] }
 0x2fd   :  { %2645 = vst [vmem:[#allocation2 + $0x28] sm:$0xf] %v2644_v9  ;;  %3027 = vrot.lane.b32.xlu2 %v3002_v46, %s4882_s0  ;;  %v2812_v60 = vld [vmem:[#allocation2 + $0x24] sm:$0x1]  ;;  %v4556_v58 = vrot.slane %v6401_v1, 9  ;;  %v2881_v16 = vrot.slane %v2880_v0, 4 }
 0x2fe   :  { %2648 = vst [vmem:[#allocation2 + $0x2c] sm:$0x1] %v2647_v25  ;;  %v2580_v30 = vshrl.u32 %v2536_v43, 16  ;;  %v2485_v38 = vmul.f32 %v6305_v11, %v2451_v59  ;;  %v3009_v20 = vrot.slane %v2812_v60, 5  ;;  %v2888_v26 = vshrl.u32 %v6401_v1, 16 }
 0x2ff   :  { %2827 = vst.msk [vmem:[#allocation3 + $0x30] sm:$0xf] %vm36_vm4, %v6401_v1  ;;  %v6412_v37 = vsel %vm4978_vm2, %v2881_v16, %v2885_v52  ;;  %v2891_v46 = vshll.u32 %v6401_v1, 16  ;;  %v2897_v56 = vshll.u32 %v2812_v60, 16  ;;  %v2583_v35 = vshll.u32 %v2536_v43, 16  ;;  %v2357_v52 = vpop.f32.mrf.mxu1 }
 0x300   :  { %v2582_v10 = vrot.slane %v2580_v30, 7  ;;  %v2505_v31 = vadd.f32 %v6315_v36, %v2485_v38  ;;  %3060 = vrot.lane.b32.xlu1 %v2809_v4, %s4883_s30  ;;  %v4804_v22 = vld [vmem:[#allocation3 + $0x10] sm:$0xf0]  ;;  %v6420_v50 = vsel %vm5407_vm12, %v4556_v58, %v3009_v20  ;;  %3112 = vst.msk [vmem:[#allocation3 + $0x1c] sm:$0xf] %vm36_vm4, %v6412_v37  ;;  %v2890_v34 = vrot.slane %v2888_v26, 4  ;;  %v6442_v58 = vpop.f32.mrf.mxu3 }
 0x301   :  { %2947 = vrot.lane.b32.xlu0 %v6383_v45, %s4878_s19  ;;  %v2403_v63 = vpop.f32.mrf.mxu2  ;;  %v4583_v17 = vor.u32 %v4804_v22, %v4582_v12  ;;  %3249 = vst.msk [vmem:[#allocation3 + $0x20] sm:$0xf] %vm36_vm4, %v6420_v50  ;;  %v2893_v27 = vrot.slane %v2891_v46, 5  ;;  %v2899_v14 = vrot.slane %v2897_v56, 5 }
 0x302   :  { %v2585_v51 = vor.u32 %v2583_v35, %v2582_v10  ;;  %v2586_v4 = vrot.slane %v2582_v10, 4  ;;  %v2521_v54 = vmax.f32 %v2505_v31, 0.0  ;;  %v2404_v5 = vadd.f32 %v2403_v63, %v2354_v42 }
 0x303   :  { %4740 = vmatmul.msk.bf16.vlgmr.msrb.gmra.mxu1 %vm2303_vm1, %v4583_v17  ;;  %v2894_v62 = vor.u32 %v2893_v27, %v2890_v34  ;;  %v2655_v17 = vld [vmem:[#allocation2 + $0x38] sm:$0xf]  ;;  %v2658_v34 = vld [vmem:[#allocation2 + $0x3c] sm:$0x1] }
 0x304   :  { %v6429_v29 = vld [vmem:[#allocation2 + $0x28] sm:$0xf]  ;;  %v2650_v13 = vsel %vm5440_vm15, %v2585_v51, %v2649_v61  ;;  %v2653_v7 = vsel %vm5446_vm0, %v2586_v4, %v2652_v41  ;;  %v2537_v53 = vpack.c.bf16 %v2521_v54, %v2521_v54  ;;  %v2453_v0 = vadd.f32 %v6371_v49, %v2404_v5 }
 0x305   :  { %2828 = vst.msk [vmem:[#allocation3 + $0x3c] sm:$0xf] %vm36_vm4, %v6429_v29  ;;  %3062 = vrot.lane.b32.xlu2 %v6401_v1, %s4883_s30  ;;  %v2814_v9 = vld [vmem:[#allocation2 + $0x2c] sm:$0x1]  ;;  %v4557_v25 = vrot.slane %v6429_v29, 9  ;;  %v2895_v43 = vrot.slane %v2894_v62, 4 }
 0x306   :  { %2651 = vst [vmem:[#allocation2 + $0x30] sm:$0xf] %v2650_v13  ;;  %v2588_v59 = vshrl.u32 %v2537_v53, 16  ;;  %v2486_v42 = vmul.f32 %v6305_v11, %v2453_v0  ;;  %v3013_v60 = vrot.slane %v2814_v9, 5  ;;  %v2902_v16 = vshrl.u32 %v6429_v29, 16 }
 0x307   :  { %2654 = vst [vmem:[#allocation2 + $0x34] sm:$0x1] %v2653_v7  ;;  %v6446_v49 = vsel %vm4978_vm2, %v2895_v43, %v2899_v14  ;;  %v2905_v30 = vshll.u32 %v6429_v29, 16  ;;  %v2591_v12 = vshll.u32 %v2537_v53, 16  ;;  %v2911_v35 = vshll.u32 %v2814_v9, 16  ;;  %v2359_v0 = vpop.f32.mrf.mxu1 }
 0x308   :  { %v2590_v38 = vrot.slane %v2588_v59, 7  ;;  %v2506_v20 = vadd.f32 %v6315_v36, %v2486_v42  ;;  %3202 = vrot.lane.b32.xlu1 %v6383_v45, %s4883_s30  ;;  %v6455_v26 = vsel %vm5407_vm12, %v4557_v25, %v3013_v60  ;;  %3113 = vst.msk [vmem:[#allocation3 + $0x28] sm:$0xf] %vm36_vm4, %v6446_v49  ;;  %v2904_v56 = vrot.slane %v2902_v16, 4  ;;  %v4594_v7 = vld [vmem:[#allocation3 + $0x20] sm:$0xf]  ;;  %v6486_v60 = vpop.f32.mrf.mxu3 }
 0x309   :  { %3029 = vrot.lane.b32.xlu0 %v6389_v6, %s4882_s0  ;;  %v2406_v46 = vpop.f32.mrf.mxu2  ;;  %3250 = vst.msk [vmem:[#allocation3 + $0x2c] sm:$0xf] %vm36_vm4, %v6455_v26  ;;  %v2907_v10 = vrot.slane %v2905_v30, 5  ;;  %v2913_v62 = vrot.slane %v2911_v35, 5 }
 0x30a   :  { %v2593_v31 = vor.u32 %v2591_v12, %v2590_v38  ;;  %v2594_v22 = vrot.slane %v2590_v38, 4  ;;  %v2522_v45 = vmax.f32 %v2506_v20, 0.0  ;;  %v2407_v63 = vadd.f32 %v2406_v46, %v2357_v52 }
 0x30b   :  { %v2908_v27 = vor.u32 %v2907_v10, %v2904_v56 }
 0x30c   :  { %v2656_v51 = vsel %vm5440_vm15, %v2593_v31, %v2655_v17  ;;  %v2659_v4 = vsel %vm5446_vm0, %v2594_v22, %v2658_v34  ;;  %v2538_v54 = vpack.c.bf16 %v2522_v45, %v2522_v45  ;;  %v2456_v5 = vadd.f32 %v6403_v28, %v2407_v63  ;;  %v2661_v31 = vld [vmem:[#allocation2 + $0x40] sm:$0xf]  ;;  %v2664_v22 = vld [vmem:[#allocation2 + $0x44] sm:$0x1] }
 0x30d   :  { %v6468_v61 = vld [vmem:[#allocation2 + $0x30] sm:$0xf]  ;;  %2657 = vst [vmem:[#allocation2 + $0x38] sm:$0xf] %v2656_v51  ;;  %3160 = vrot.lane.b32.xlu2 %v6401_v1, %s4882_s0  ;;  %v2909_v41 = vrot.slane %v2908_v27, 4 }
 0x30e   :  { %2829 = vst.msk [vmem:[#allocation3 + $0x48] sm:$0xf] %vm36_vm4, %v6468_v61  ;;  %v2596_v14 = vshrl.u32 %v2538_v54, 16  ;;  %v2487_v13 = vmul.f32 %v6305_v11, %v2456_v5  ;;  %v2816_v53 = vld [vmem:[#allocation2 + $0x34] sm:$0x1]  ;;  %v2599_v52 = vshll.u32 %v2538_v54, 16 }
 0x30f   :  { %2660 = vst [vmem:[#allocation2 + $0x3c] sm:$0x1] %v2659_v4  ;;  %v4558_v28 = vrot.slane %v6468_v61, 9  ;;  %v3017_v9 = vrot.slane %v2816_v53, 5  ;;  %v6478_v25 = vsel %vm4978_vm2, %v2909_v41, %v2913_v62  ;;  %v2916_v42 = vshrl.u32 %v6468_v61, 16 }
 0x310   :  { %v2598_v1 = vrot.slane %v2596_v14, 7  ;;  %v2507_v43 = vadd.f32 %v6315_v36, %v2487_v13  ;;  %2949 = vrot.lane.b32.xlu1 %v6412_v37, %s4878_s19  ;;  %v4807_v59 = vld [vmem:[#allocation3 + $0x28] sm:$0xf0]  ;;  %3114 = vst.msk [vmem:[#allocation3 + $0x34] sm:$0xf] %vm36_vm4, %v6478_v25  ;;  %v2919_v12 = vshll.u32 %v6468_v61, 16 }
 0x311   :  { %3127 = vrot.lane.b32.xlu0 %v6389_v6, %s4878_s19  ;;  %v2408_v16 = vpop.f32.mrf.mxu2  ;;  %v4595_v30 = vor.u32 %v4807_v59, %v4594_v7  ;;  %v6492_v38 = vsel %vm5407_vm12, %v4558_v28, %v3017_v9  ;;  %v2925_v20 = vshll.u32 %v2816_v53, 16  ;;  %v2918_v6 = vrot.slane %v2916_v42, 4 }
 0x312   :  { %v2601_v46 = vor.u32 %v2599_v52, %v2598_v1  ;;  %v2602_v56 = vrot.slane %v2598_v1, 4  ;;  %v2523_v10 = vmax.f32 %v2507_v43, 0.0  ;;  %v2409_v35 = vadd.f32 %v2408_v16, %v2359_v0  ;;  %3251 = vst.msk [vmem:[#allocation3 + $0x38] sm:$0xf] %vm36_vm4, %v6492_v38 }
 0x313   :  { %4741 = vmatmul.msk.bf16.gmra.mxu1 %vm2303_vm1, %v4595_v30  ;;  %v2921_v45 = vrot.slane %v2919_v12, 5  ;;  %v2927_v7 = vrot.slane %v2925_v20, 5 }
 0x314   :  { %v6498_v63 = vld [vmem:[#allocation2 + $0x38] sm:$0xf]  ;;  %v2662_v17 = vsel %vm5440_vm15, %v2601_v46, %v2661_v31  ;;  %v2665_v34 = vsel %vm5446_vm0, %v2602_v56, %v2664_v22  ;;  %v2667_v27 = vpack.c.bf16 %v2523_v10, %v2523_v10  ;;  %v2458_v51 = vadd.f32 %v6442_v58, %v2409_v35  ;;  %v2362_v58 = vpop.f32.mrf.mxu1  ;;  %v2462_v35 = vpop.f32.mrf.mxu3  ;;  %v2758_v31 = vld [vmem:[#allocation2 + $0x5c] sm:$0x1] }
 0x315   :  { %2830 = vst.msk [vmem:[#allocation3 + $0x54] sm:$0xf] %vm36_vm4, %v6498_v63  ;;  %3204 = vrot.lane.b32.xlu2 %v6412_v37, %s4883_s30  ;;  %v4559_v4 = vrot.slane %v6498_v63, 9  ;;  %v2922_v54 = vor.u32 %v2921_v45, %v2918_v6  ;;  %v2930_v5 = vshrl.u32 %v6498_v63, 16  ;;  %v2933_v41 = vshll.u32 %v6498_v63, 16 }
 0x316   :  { %2663 = vst [vmem:[#allocation2 + $0x40] sm:$0xf] %v2662_v17  ;;  %v2676_v62 = vshrl.u32 %v2667_v27, 16  ;;  %v2488_v14 = vmul.f32 %v6305_v11, %v2458_v51  ;;  %v2818_v13 = vld [vmem:[#allocation2 + $0x3c] sm:$0x1]  ;;  %v2679_v9 = vshll.u32 %v2667_v27, 16 }
 0x317   :  { %2666 = vst [vmem:[#allocation2 + $0x44] sm:$0x1] %v2665_v34  ;;  %v3021_v53 = vrot.slane %v2818_v13, 5  ;;  %v2923_v0 = vrot.slane %v2922_v54, 4  ;;  %v2932_v52 = vrot.slane %v2930_v5, 4  ;;  %v2935_v28 = vrot.slane %v2933_v41, 5 }
 0x318   :  { %v2678_v37 = vrot.slane %v2676_v62, 7  ;;  %v2508_v1 = vadd.f32 %v6315_v36, %v2488_v14  ;;  %3129 = vrot.lane.b32.xlu1 %v6420_v50, %s4878_s19  ;;  %v2939_v43 = vshll.u32 %v2818_v13, 16  ;;  %v2755_v46 = vld [vmem:[#allocation2 + $0x58] sm:$0xf] }
 0x319   :  { %3162 = vrot.lane.b32.xlu0 %v6429_v29, %s4882_s0  ;;  %v2411_v59 = vpop.f32.mrf.mxu2  ;;  %v6520_v42 = vsel %vm5407_vm12, %v4559_v4, %v3021_v53  ;;  %v6524_v16 = vsel %vm4978_vm2, %v2923_v0, %v2927_v7  ;;  %v2936_v30 = vor.u32 %v2935_v28, %v2932_v52 }
 0x31a   :  { %v2681_v12 = vor.u32 %v2679_v9, %v2678_v37  ;;  %v2682_v20 = vrot.slane %v2678_v37, 4  ;;  %v2524_v56 = vmax.f32 %v2508_v1, 0.0  ;;  %v2412_v10 = vadd.f32 %v2411_v59, %v2362_v58  ;;  %3252 = vst.msk [vmem:[#allocation3 + $0x44] sm:$0xf] %vm36_vm4, %v6520_v42 }
 0x31b   :  { %3115 = vst.msk [vmem:[#allocation3 + $0x40] sm:$0xf] %vm36_vm4, %v6524_v16  ;;  %v2937_v22 = vrot.slane %v2936_v30, 4  ;;  %v2941_v6 = vrot.slane %v2939_v43, 5 }
 0x31c   :  { %v2756_v45 = vsel %vm5440_vm15, %v2681_v12, %v2755_v46  ;;  %v2759_v17 = vsel %vm5446_vm0, %v2682_v20, %v2758_v31  ;;  %v2668_v34 = vpack.c.bf16 %v2524_v56, %v2524_v56  ;;  %v2461_v27 = vadd.f32 %v6486_v60, %v2412_v10  ;;  %v2364_v53 = vpop.f32.mrf.mxu1  ;;  %v4606_v20 = vld [vmem:[#allocation3 + $0x38] sm:$0xf]  ;;  %v2764_v46 = vld [vmem:[#allocation2 + $0x64] sm:$0x1] }
 0x31d   :  { %2757 = vst [vmem:[#allocation2 + $0x58] sm:$0xf] %v2756_v45  ;;  %3031 = vrot.lane.b32.xlu2 %v6420_v50, %s4882_s0  ;;  %v6537_v51 = vld [vmem:[#allocation2 + $0x40] sm:$0xf]  ;;  %v6541_v4 = vsel %vm4978_vm2, %v2937_v22, %v2941_v6 }
 0x31e   :  { %2760 = vst [vmem:[#allocation2 + $0x5c] sm:$0x1] %v2759_v17  ;;  %v2684_v54 = vshrl.u32 %v2668_v34, 16  ;;  %v2489_v5 = vmul.f32 %v6305_v11, %v2461_v27  ;;  %v2820_v41 = vld [vmem:[#allocation2 + $0x44] sm:$0x1]  ;;  %v4560_v62 = vrot.slane %v6537_v51, 9 }
 0x31f   :  { %v3121_v14 = vrot.slane %v2820_v41, 5  ;;  %3116 = vst.msk [vmem:[#allocation3 + $0x4c] sm:$0xf] %vm36_vm4, %v6541_v4  ;;  %v3089_v60 = vshrl.u32 %v6537_v51, 16  ;;  %v3092_v50 = vshll.u32 %v6537_v51, 16  ;;  %v2687_v7 = vshll.u32 %v2668_v34, 16  ;;  %v2465_v34 = vpop.f32.mrf.mxu3 }
 0x320   :  { %v2686_v13 = vrot.slane %v2684_v54, 7  ;;  %v2509_v58 = vadd.f32 %v6315_v36, %v2489_v5  ;;  %3064 = vrot.lane.b32.xlu1 %v6429_v29, %s4883_s30  ;;  %v3098_v1 = vshll.u32 %v2820_v41, 16  ;;  %v2761_v29 = vld [vmem:[#allocation2 + $0x60] sm:$0xf] }
 0x321   :  { %2951 = vrot.lane.b32.xlu0 %v6446_v49, %s4878_s19  ;;  %v2413_v0 = vpop.f32.mrf.mxu2  ;;  %v4810_v52 = vld [vmem:[#allocation3 + $0x40] sm:$0xf0]  ;;  %v6556_v28 = vsel %vm5407_vm12, %v4560_v62, %v3121_v14  ;;  %v3091_v37 = vrot.slane %v3089_v60, 4  ;;  %v3094_v9 = vrot.slane %v3092_v50, 5 }
 0x322   :  { %v2689_v43 = vor.u32 %v2687_v7, %v2686_v13  ;;  %v2690_v59 = vrot.slane %v2686_v13, 4  ;;  %v2525_v30 = vmax.f32 %v2509_v58, 0.0  ;;  %v2414_v12 = vadd.f32 %v2413_v0, %v2364_v53  ;;  %3253 = vst.msk [vmem:[#allocation3 + $0x50] sm:$0xf] %vm36_vm4, %v6556_v28  ;;  %v3476_v0 = vpop.permute.xlu2 %3475 }
 0x323   :  { %v4607_v56 = vor.u32 %v4810_v52, %v4606_v20  ;;  %v3095_v10 = vor.u32 %v3094_v9, %v3091_v37  ;;  %v3100_v5 = vrot.slane %v3098_v1, 5 }
 0x324   :  { %v2762_v31 = vsel %vm5440_vm15, %v2689_v43, %v2761_v29  ;;  %v2765_v22 = vsel %vm5446_vm0, %v2690_v59, %v2764_v46  ;;  %v2669_v6 = vpack.c.bf16 %v2525_v30, %v2525_v30  ;;  %v2463_v45 = vadd.f32 %v2462_v35, %v2414_v12  ;;  %v6564_v17 = vld [vmem:[#allocation2 + $0x58] sm:$0xf]  ;;  %v2767_v30 = vld [vmem:[#allocation2 + $0x68] sm:$0xf]  ;;  %v2770_v12 = vld [vmem:[#allocation2 + $0x6c] sm:$0x1] }
 0x325   :  { %2763 = vst [vmem:[#allocation2 + $0x60] sm:$0xf] %v2762_v31  ;;  %4742 = vmatmul.msk.bf16.gmra.mxu1 %vm2303_vm1, %v4607_v56  ;;  %3066 = vrot.lane.b32.xlu2 %v6468_v61, %s4883_s30  ;;  %v6569_v27 = vld [vmem:[#allocation2 + $0x5c] sm:$0x1]  ;;  %v3096_v54 = vrot.slane %v3095_v10, 4  ;;  %v3298_v14 = vshrl.u32 %v6564_v17, 16 }
 0x326   :  { %2766 = vst [vmem:[#allocation2 + $0x64] sm:$0x1] %v2765_v22  ;;  %v2692_v41 = vshrl.u32 %v2669_v6, 16  ;;  %v2490_v62 = vmul.f32 %v6305_v11, %v2463_v45  ;;  %v3301_v60 = vshll.u32 %v6564_v17, 16  ;;  %v3307_v50 = vshll.u32 %v6569_v27, 16 }
 0x327   :  { %3276 = vst.msk [vmem:[#allocation3 + $0x6c] sm:$0xf] %vm36_vm4, %v6564_v17  ;;  %v6576_v35 = vsel %vm4978_vm2, %v3096_v54, %v3100_v5  ;;  %v2695_v7 = vshll.u32 %v2669_v6, 16  ;;  %v3300_v52 = vrot.slane %v3298_v14, 4 }
 0x328   :  { %v2694_v13 = vrot.slane %v2692_v41, 7  ;;  %v2510_v58 = vadd.f32 %v6315_v36, %v2490_v62  ;;  %3206 = vrot.lane.b32.xlu1 %v6446_v49, %s4883_s30  ;;  %3117 = vst.msk [vmem:[#allocation3 + $0x58] sm:$0xf] %vm36_vm4, %v6576_v35  ;;  %v3303_v37 = vrot.slane %v3301_v60, 5  ;;  %v3309_v29 = vrot.slane %v3307_v50, 5  ;;  %v2467_v41 = vpop.f32.mrf.mxu3 }
 0x329   :  { %3033 = vrot.lane.b32.xlu0 %v6455_v26, %s4882_s0  ;;  %v2416_v53 = vpop.f32.mrf.mxu2  ;;  %v4813_v62 = vld [vmem:[#allocation3 + $0x58] sm:$0xf0] }
 0x32a   :  { %v2697_v9 = vor.u32 %v2695_v7, %v2694_v13  ;;  %v2698_v1 = vrot.slane %v2694_v13, 4  ;;  %v2526_v43 = vmax.f32 %v2510_v58, 0.0  ;;  %v2417_v59 = vadd.f32 %v2416_v53, %v6280_v32  ;;  %v4618_v7 = vld [vmem:[#allocation3 + $0x50] sm:$0xf] }
 0x32b   :  { %v3304_v20 = vor.u32 %v3303_v37, %v3300_v52  ;;  %v3396_v52 = vpop.permute.xlu0 %3395 }
 0x32c   :  { %v6589_v49 = vld [vmem:[#allocation2 + $0x60] sm:$0xf]  ;;  %v2768_v46 = vsel %vm5440_vm15, %v2697_v9, %v2767_v30  ;;  %v2771_v56 = vsel %vm5446_vm0, %v2698_v1, %v2770_v12  ;;  %v2670_v10 = vpack.c.bf16 %v2526_v43, %v2526_v43  ;;  %v2466_v31 = vadd.f32 %v2465_v34, %v2417_v59  ;;  %3419 = vst.msk [vmem:[#allocation3 + $0x60] sm:$0xf] %vm1260_vm3, %v3396_v52 }
 0x32d   :  { %3277 = vst.msk [vmem:[#allocation3 + $0x78] sm:$0xf] %vm36_vm4, %v6589_v49  ;;  %3164 = vrot.lane.b32.xlu2 %v6468_v61, %s4882_s0  ;;  %v3260_v32 = vld [vmem:[#allocation2 + $0x64] sm:$0x1]  ;;  %v4564_v22 = vrot.slane %v6589_v49, 9  ;;  %v3305_v6 = vrot.slane %v3304_v20, 4 }
 0x32e   :  { %2769 = vst [vmem:[#allocation2 + $0x68] sm:$0xf] %v2768_v46  ;;  %v2700_v45 = vshrl.u32 %v2670_v10, 16  ;;  %v2491_v54 = vmul.f32 %v6305_v11, %v2466_v31  ;;  %v3453_v5 = vrot.slane %v3260_v32, 5  ;;  %v3312_v14 = vshrl.u32 %v6589_v49, 16  ;;  %v4833_v20 = vld [vmem:[%s7193_s7 + $0x38] sm:$0xff] }
 0x32f   :  { %2772 = vst [vmem:[#allocation2 + $0x6c] sm:$0x1] %v2771_v56  ;;  %v6603_v34 = vsel %vm4978_vm2, %v3305_v6, %v3309_v29  ;;  %v3315_v61 = vshll.u32 %v6589_v49, 16  ;;  %v2703_v50 = vshll.u32 %v2670_v10, 16  ;;  %v3321_v1 = vshll.u32 %v3260_v32, 16  ;;  %v6625_v56 = vpop.permute.xlu2 %3216  ;;  %4027 = vmatpush.bf16.msrb.mxu3 %v4833_v20 }
 0x330   :  { %v2702_v60 = vrot.slane %v2700_v45, 7  ;;  %v2511_v13 = vadd.f32 %v6315_v36, %v2491_v54  ;;  %2953 = vrot.lane.b32.xlu1 %v6478_v25, %s4878_s19  ;;  %v6612_v58 = vsel %vm5407_vm12, %v4564_v22, %v3453_v5  ;;  %3562 = vst.msk [vmem:[#allocation3 + $0x64] sm:$0xf] %vm36_vm4, %v6603_v34  ;;  %v3314_v37 = vrot.slane %v3312_v14, 4  ;;  %v2776_v29 = vld [vmem:[#allocation2 + $0x74] sm:$0x1] }
 0x331   :  { %3131 = vrot.lane.b32.xlu0 %v6455_v26, %s4878_s19  ;;  %v2418_v53 = vpop.f32.mrf.mxu2  ;;  %3699 = vst.msk [vmem:[#allocation3 + $0x68] sm:$0xf] %vm36_vm4, %v6612_v58  ;;  %v3317_v9 = vrot.slane %v3315_v61, 5  ;;  %v2773_v26 = vld [vmem:[#allocation2 + $0x70] sm:$0xf]  ;;  %v4619_v46 = vor.u32 %v4813_v62, %v4618_v7 }
 0x332   :  { %v2705_v43 = vor.u32 %v2703_v50, %v2702_v60  ;;  %v2706_v59 = vrot.slane %v2702_v60, 4  ;;  %v2527_v30 = vmax.f32 %v2511_v13, 0.0  ;;  %v2419_v12 = vadd.f32 %v2418_v53, %v6282_v57  ;;  %3499 = vst.msk [vmem:[#allocation3 + $0x60] sm:$0xf] %vm1344_vm5, %v3476_v0  ;;  %v4832_v61 = vld [vmem:[%s7193_s7 + $0x30] sm:$0xff]  ;;  %v2470_v53 = vpop.f32.mrf.mxu3 }
 0x333   :  { %v3318_v10 = vor.u32 %v3317_v9, %v3314_v37  ;;  %v3323_v0 = vrot.slane %v3321_v1, 5  ;;  %4028 = vmatpush.bf16.msrb.mxu3 %v4832_v61  ;;  %v2779_v20 = vld [vmem:[#allocation2 + $0x78] sm:$0xf] }
 0x334   :  { %v2774_v31 = vsel %vm5440_vm15, %v2705_v43, %v2773_v26  ;;  %v2777_v57 = vsel %vm5446_vm0, %v2706_v59, %v2776_v29  ;;  %v2671_v32 = vpack.c.bf16 %v2527_v30, %v2527_v30  ;;  %v2468_v22 = vadd.f32 %v2467_v41, %v2419_v12  ;;  %v4831_v12 = vld [vmem:[%s7193_s7 + $0x28] sm:$0xff]  ;;  %v2782_v26 = vld [vmem:[#allocation2 + $0x7c] sm:$0x1] }
 0x335   :  { %v6632_v6 = vld [vmem:[#allocation2 + $0x68] sm:$0xf]  ;;  %2775 = vst [vmem:[#allocation2 + $0x70] sm:$0xf] %v2774_v31  ;;  %4743 = vmatmul.msk.bf16.gmra.mxu1 %vm2303_vm1, %v4619_v46  ;;  %3208 = vrot.lane.b32.xlu2 %v6478_v25, %s4883_s30  ;;  %v3319_v45 = vrot.slane %v3318_v10, 4 }
 0x336   :  { %3278 = vst.msk [vmem:[#allocation3 + $0x84] sm:$0xf] %vm36_vm4, %v6632_v6  ;;  %v2708_v54 = vshrl.u32 %v2671_v32, 16  ;;  %v2492_v5 = vmul.f32 %v6305_v11, %v2468_v22  ;;  %v3262_v62 = vld [vmem:[#allocation2 + $0x6c] sm:$0x1]  ;;  %v4565_v41 = vrot.slane %v6632_v6, 9 }
 0x337   :  { %2778 = vst [vmem:[#allocation2 + $0x74] sm:$0x1] %v2777_v57  ;;  %v3457_v14 = vrot.slane %v3262_v62, 5  ;;  %v6646_v25 = vsel %vm4978_vm2, %v3319_v45, %v3323_v0  ;;  %v3326_v60 = vshrl.u32 %v6632_v6, 16  ;;  %v2711_v13 = vshll.u32 %v2671_v32, 16  ;;  %v6677_v32 = vpop.permute.xlu2 %3668  ;;  %4029 = vmatpush.bf16.msrb.mxu3 %v4831_v12  ;;  %v4830_v45 = vld [vmem:[%s7193_s7 + $0x20] sm:$0xff] }
 0x338   :  { %v2710_v50 = vrot.slane %v2708_v54, 7  ;;  %v2512_v7 = vadd.f32 %v6315_v36, %v2492_v5  ;;  %3133 = vrot.lane.b32.xlu1 %v6492_v38, %s4878_s19  ;;  %3563 = vst.msk [vmem:[#allocation3 + $0x70] sm:$0xf] %vm36_vm4, %v6646_v25  ;;  %v3329_v11 = vshll.u32 %v6632_v6, 16  ;;  %v3335_v36 = vshll.u32 %v3262_v62, 16 }
 0x339   :  { %3166 = vrot.lane.b32.xlu0 %v6498_v63, %s4882_s0  ;;  %v2421_v52 = vpop.f32.mrf.mxu2  ;;  %v6659_v37 = vsel %vm5407_vm12, %v4565_v41, %v3457_v14  ;;  %v3328_v9 = vrot.slane %v3326_v60, 4 }
 0x33a   :  { %v2713_v1 = vor.u32 %v2711_v13, %v2710_v50  ;;  %v2714_v43 = vrot.slane %v2710_v50, 4  ;;  %v2528_v59 = vmax.f32 %v2512_v7, 0.0  ;;  %v2422_v30 = vadd.f32 %v2421_v52, %v6285_v47  ;;  %3700 = vst.msk [vmem:[#allocation3 + $0x74] sm:$0xf] %vm36_vm4, %v6659_v37  ;;  %v4877_v52 = vld [vmem:[%s7192_s6] ss:$0 sm:$0xff] }
 0x33b   :  { %v3331_v29 = vrot.slane %v3329_v11, 5  ;;  %v3337_v61 = vrot.slane %v3335_v36, 5  ;;  %4030 = vmatpush.bf16.msrb.mxu3 %v4830_v45 }
 0x33c   :  { %v6667_v46 = vld [vmem:[#allocation2 + $0x70] sm:$0xf]  ;;  %v2780_v10 = vsel %vm5440_vm15, %v2713_v1, %v2779_v20  ;;  %v2783_v31 = vsel %vm5446_vm0, %v2714_v43, %v2782_v26  ;;  %v2672_v57 = vpack.c.bf16 %v2528_v59, %v2528_v59  ;;  %v2471_v47 = vadd.f32 %v2470_v53, %v2422_v30  ;;  %v2785_v43 = vld [vmem:[#allocation2 + $0x80] sm:$0xf]  ;;  %v4630_v59 = vld [vmem:[#allocation3 + $0x68] sm:$0xf] }
 0x33d   :  { %3279 = vst.msk [vmem:[#allocation3 + $0x90] sm:$0xf] %vm36_vm4, %v6667_v46  ;;  %3035 = vrot.lane.b32.xlu2 %v6492_v38, %s4882_s0  ;;  %v4566_v22 = vrot.slane %v6667_v46, 9  ;;  %v3332_v0 = vor.u32 %v3331_v29, %v3328_v9  ;;  %v3340_v54 = vshrl.u32 %v6667_v46, 16  ;;  %v3343_v5 = vshll.u32 %v6667_v46, 16 }
 0x33e   :  { %2781 = vst [vmem:[#allocation2 + $0x78] sm:$0xf] %v2780_v10  ;;  %v2716_v62 = vshrl.u32 %v2672_v57, 16  ;;  %v4876_v38 = vld [vmem:[%s7191_s5] ss:$0 sm:$0xff]  ;;  %v2719_v53 = vshll.u32 %v2672_v57, 16 }
 0x33f   :  { %v2493_v41 = vmul.f32 %v4876_v38, %v2471_v47  ;;  %v3264_v14 = vld [vmem:[#allocation2 + $0x74] sm:$0x1]  ;;  %2784 = vst [vmem:[#allocation2 + $0x7c] sm:$0x1] %v2783_v31  ;;  %v3333_v50 = vrot.slane %v3332_v0, 4  ;;  %v3342_v13 = vrot.slane %v3340_v54, 4  ;;  %v2472_v47 = vpop.f32.mrf.mxu3 }
 0x340   :  { %v3461_v60 = vrot.slane %v3264_v14, 5  ;;  %v3345_v7 = vrot.slane %v3343_v5, 5  ;;  %v2718_v11 = vrot.slane %v2716_v62, 7  ;;  %3068 = vrot.lane.b32.xlu1 %v6498_v63, %s4883_s30  ;;  %v3349_v1 = vshll.u32 %v3264_v14, 16  ;;  %v4829_v57 = vld [vmem:[%s7193_s7 + $0x18] sm:$0xff] }
 0x341   :  { %v2513_v9 = vadd.f32 %v4877_v52, %v2493_v41  ;;  %2955 = vrot.lane.b32.xlu0 %v6524_v16, %s4878_s19  ;;  %v2423_v36 = vpop.f32.mrf.mxu2  ;;  %v4816_v30 = vld [vmem:[#allocation3 + $0x70] sm:$0xf0]  ;;  %v6701_v20 = vsel %vm4978_vm2, %v3333_v50, %v3337_v61  ;;  %4031 = vmatpush.bf16.msrb.mxu3 %v4829_v57 }
 0x342   :  { %v6697_v12 = vsel %vm5407_vm12, %v4566_v22, %v3461_v60  ;;  %v3346_v26 = vor.u32 %v3345_v7, %v3342_v13  ;;  %v2721_v29 = vor.u32 %v2719_v53, %v2718_v11  ;;  %v2722_v63 = vrot.slane %v2718_v11, 4  ;;  %v2788_v22 = vld [vmem:[#allocation2 + $0x84] sm:$0x1]  ;;  %3564 = vst.msk [vmem:[#allocation3 + $0x7c] sm:$0xf] %vm36_vm4, %v6701_v20  ;;  %v4828_v7 = vld [vmem:[%s7193_s7 + $0x10] sm:$0xff] }
 0x343   :  { %v2529_v10 = vmax.f32 %v2513_v9, 0.0  ;;  %v2424_v31 = vadd.f32 %v2423_v36, %v6295_v21  ;;  %3701 = vst.msk [vmem:[#allocation3 + $0x80] sm:$0xf] %vm36_vm4, %v6697_v12  ;;  %v4631_v45 = vor.u32 %v4816_v30, %v4630_v59  ;;  %v3351_v54 = vrot.slane %v3349_v1, 5 }
 0x344   :  { %v3347_v0 = vrot.slane %v3346_v26, 4  ;;  %v2786_v5 = vsel %vm5440_vm15, %v2721_v29, %v2785_v43  ;;  %v2789_v21 = vsel %vm5446_vm0, %v2722_v63, %v2788_v22  ;;  %v4841_v43 = vld [vmem:[%s7193_s7 + $0x78] sm:$0xff]  ;;  %v2794_v22 = vld [vmem:[#allocation2 + $0x8c] sm:$0x1] }
 0x345   :  { %v2673_v62 = vpack.c.bf16 %v2529_v10, %v2529_v10  ;;  %v2473_v41 = vadd.f32 %v2472_v47, %v2424_v31  ;;  %v6715_v14 = vld [vmem:[#allocation2 + $0x78] sm:$0xf]  ;;  %2787 = vst [vmem:[#allocation2 + $0x80] sm:$0xf] %v2786_v5  ;;  %4744 = vmatmul.msk.bf16.gmra.mxu1 %vm2303_vm1, %v4631_v45  ;;  %3070 = vrot.lane.b32.xlu2 %v6537_v51, %s4883_s30  ;;  %v4827_v31 = vld [vmem:[%s7193_s7 + $0x8] sm:$0xff] }
 0x346   :  { %v6722_v61 = vsel %vm4978_vm2, %v3347_v0, %v3351_v54  ;;  %3280 = vst.msk [vmem:[#allocation3 + $0x9c] sm:$0xf] %vm36_vm4, %v6715_v14  ;;  %v3266_v13 = vld [vmem:[#allocation2 + $0x7c] sm:$0x1]  ;;  %v4567_v9 = vrot.slane %v6715_v14, 9  ;;  %v3357_v30 = vshll.u32 %v6715_v14, 16  ;;  %4076 = vmatpush.bf16.msrb.mxu0 %v4841_v43  ;;  %4032 = vmatpush.bf16.msrb.mxu3 %v4828_v7 }
 0x347   :  { %v2724_v60 = vshrl.u32 %v2673_v62, 16  ;;  %v2494_v50 = vmul.f32 %v4876_v38, %v2473_v41  ;;  %2790 = vst [vmem:[#allocation2 + $0x84] sm:$0x1] %v2789_v21  ;;  %v2727_v11 = vshll.u32 %v2673_v62, 16  ;;  %v6729_v53 = vpop.permute.xlu2 %3058  ;;  %v3465_v1 = vrot.slane %v3266_v13, 5  ;;  %4852 = vmatpush.bf16.msra.mxu2 %v4841_v43  ;;  %v4826_v41 = vld [vmem:[%s7193_s7] sm:$0xff] }
 0x348   :  { %3210 = vrot.lane.b32.xlu1 %v6524_v16, %s4883_s30  ;;  %3565 = vst.msk [vmem:[#allocation3 + $0x88] sm:$0xf] %vm36_vm4, %v6722_v61  ;;  %v3354_v38 = vshrl.u32 %v6715_v14, 16  ;;  %v3363_v16 = vshll.u32 %v3266_v13, 16  ;;  %v2791_v47 = vld [vmem:[#allocation2 + $0x88] sm:$0xf] }
 0x349   :  { %v2726_v36 = vrot.slane %v2724_v60, 7  ;;  %v2514_v59 = vadd.f32 %v4877_v52, %v2494_v50  ;;  %3037 = vrot.lane.b32.xlu0 %v6520_v42, %s4882_s0  ;;  %v6745_v26 = vsel %vm5407_vm12, %v4567_v9, %v3465_v1  ;;  %v4840_v52 = vld [vmem:[%s7193_s7 + $0x70] sm:$0xff]  ;;  %v3359_v45 = vrot.slane %v3357_v30, 5  ;;  %v4839_v60 = vld [vmem:[%s7193_s7 + $0x68] sm:$0xff] }
 0x34a   :  { %3702 = vst.msk [vmem:[#allocation3 + $0x8c] sm:$0xf] %vm36_vm4, %v6745_v26  ;;  %v3356_v57 = vrot.slane %v3354_v38, 4  ;;  %4077 = vmatpush.bf16.msrb.mxu0 %v4840_v52  ;;  %4033 = vmatpush.bf16.msrb.mxu3 %v4827_v31  ;;  %v3365_v9 = vrot.slane %v3363_v16, 5  ;;  %v6780_v16 = vpop.permute.xlu0 %3170 }
 0x34b   :  { %v2729_v29 = vor.u32 %v2727_v11, %v2726_v36  ;;  %v2730_v63 = vrot.slane %v2726_v36, 4  ;;  %v2530_v10 = vmax.f32 %v2514_v59, 0.0  ;;  %4853 = vmatpush.bf16.msra.mxu2 %v4840_v52 }
 0x34c   :  { %v6755_v0 = vld [vmem:[#allocation2 + $0x80] sm:$0xf]  ;;  %v3360_v50 = vor.u32 %v3359_v45, %v3356_v57 }
 0x34d   :  { %v2792_v54 = vsel %vm5440_vm15, %v2729_v29, %v2791_v47  ;;  %v2795_v5 = vsel %vm5446_vm0, %v2730_v63, %v2794_v22  ;;  %v2674_v21 = vpack.c.bf16 %v2530_v10, %v2530_v10  ;;  %3281 = vst.msk [vmem:[#allocation3 + $0xa8] sm:$0xf] %vm36_vm4, %v6755_v0  ;;  %3168 = vrot.lane.b32.xlu2 %v6537_v51, %s4882_s0  ;;  %v4568_v62 = vrot.slane %v6755_v0, 9  ;;  %v4642_v29 = vld [vmem:[#allocation3 + $0x80] sm:$0xf] }
 0x34e   :  { %v3368_v13 = vshrl.u32 %v6755_v0, 16  ;;  %2793 = vst [vmem:[#allocation2 + $0x88] sm:$0xf] %v2792_v54  ;;  %v3268_v11 = vld [vmem:[#allocation2 + $0x84] sm:$0x1]  ;;  %v3361_v43 = vrot.slane %v3360_v50, 4  ;;  %4078 = vmatpush.bf16.msrb.mxu0 %v4839_v60  ;;  %4034 = vmatpush.bf16.msrb.mxu3 %v4826_v41 }
 0x34f   :  { %v2732_v7 = vshrl.u32 %v2674_v21, 16  ;;  %2796 = vst [vmem:[#allocation2 + $0x8c] sm:$0x1] %v2795_v5  ;;  %v6773_v51 = vpop.permute.xlu2 %3156  ;;  %v3469_v1 = vrot.slane %v3268_v11, 5  ;;  %v3371_v59 = vshll.u32 %v6755_v0, 16  ;;  %v2735_v30 = vshll.u32 %v2674_v21, 16  ;;  %4854 = vmatpush.bf16.msra.mxu2 %v4839_v60 }
 0x350   :  { %v3370_v36 = vrot.slane %v3368_v13, 4  ;;  %2957 = vrot.lane.b32.xlu1 %v6541_v4, %s4878_s19  ;;  %v6788_v10 = vsel %vm4978_vm2, %v3361_v43, %v3365_v9  ;;  %v3377_v57 = vshll.u32 %v3268_v11, 16  ;;  %v2797_v54 = vld [vmem:[#allocation2 + $0x90] sm:$0xf]  ;;  %v2800_v5 = vld [vmem:[#allocation2 + $0x94] sm:$0x1] }
 0x351   :  { %v2734_v38 = vrot.slane %v2732_v7, 7  ;;  %3135 = vrot.lane.b32.xlu0 %v6520_v42, %s4878_s19  ;;  %v4819_v63 = vld [vmem:[#allocation3 + $0x88] sm:$0xf0]  ;;  %v6784_v52 = vsel %vm5407_vm12, %v4568_v62, %v3469_v1  ;;  %v3373_v31 = vrot.slane %v3371_v59, 5  ;;  %v4838_v42 = vld [vmem:[%s7193_s7 + $0x60] sm:$0xff]  ;;  %v4563_v13 = vrot.slane %v6564_v17, 9 }
 0x352   :  { %v4643_v45 = vor.u32 %v4819_v63, %v4642_v29  ;;  %3703 = vst.msk [vmem:[#allocation3 + $0x98] sm:$0xf] %vm36_vm4, %v6784_v52  ;;  %v3449_v41 = vrot.slane %v6569_v27, 5  ;;  %v3379_v11 = vrot.slane %v3377_v57, 5  ;;  %4079 = vmatpush.bf16.msrb.mxu0 %v4838_v42  ;;  %v4837_v27 = vld [vmem:[%s7193_s7 + $0x58] sm:$0xff] }
 0x353   :  { %v2737_v47 = vor.u32 %v2735_v30, %v2734_v38  ;;  %v2738_v22 = vrot.slane %v2734_v38, 4  ;;  %3566 = vst.msk [vmem:[#allocation3 + $0x94] sm:$0xf] %vm36_vm4, %v6788_v10  ;;  %v3374_v21 = vor.u32 %v3373_v31, %v3370_v36  ;;  %4855 = vmatpush.bf16.msra.mxu2 %v4838_v42 }
 0x354   :  { %v3450_v38 = vsel %vm5407_vm12, %v4563_v13, %v3449_v41 }
 0x355   :  { %v2798_v62 = vsel %vm5440_vm15, %v2737_v47, %v2797_v54  ;;  %v2801_v50 = vsel %vm5446_vm0, %v2738_v22, %v2800_v5  ;;  %v6803_v7 = vld [vmem:[#allocation2 + $0x88] sm:$0xf]  ;;  %4745 = vmatmul.msk.bf16.gmra.mxu1 %vm2303_vm1, %v4643_v45  ;;  %3212 = vrot.lane.b32.xlu2 %v6541_v4, %s4883_s30  ;;  %v3375_v60 = vrot.slane %v3374_v21, 4 }
 0x356   :  { %2799 = vst [vmem:[#allocation2 + $0x90] sm:$0xf] %v2798_v62  ;;  %v3270_v15 = vld [vmem:[#allocation2 + $0x8c] sm:$0x1]  ;;  %v4569_v19 = vrot.slane %v6803_v7, 9  ;;  %v3382_v36 = vshrl.u32 %v6803_v7, 16  ;;  %4080 = vmatpush.bf16.msrb.mxu0 %v4837_v27 }
 0x357   :  { %3282 = vst.msk [vmem:[#allocation3 + $0xb4] sm:$0xf] %vm36_vm4, %v6803_v7  ;;  %v6814_v9 = vpop.permute.xlu2 %3027  ;;  %v3057_v1 = vpop.permute.xlu1 %3056  ;;  %v3473_v43 = vrot.slane %v3270_v15, 5  ;;  %v6818_v4 = vsel %vm4978_vm2, %v3375_v60, %v3379_v11  ;;  %v3385_v59 = vshll.u32 %v6803_v7, 16  ;;  %v3391_v30 = vshll.u32 %v3270_v15, 16  ;;  %4856 = vmatpush.bf16.msra.mxu2 %v4837_v27 }
 0x358   :  { %2802 = vst [vmem:[#allocation2 + $0x94] sm:$0x1] %v2801_v50  ;;  %3137 = vrot.lane.b32.xlu1 %v6556_v28, %s4878_s19  ;;  %v3384_v63 = vrot.slane %v3382_v36, 4  ;;  %v4836_v28 = vld [vmem:[%s7193_s7 + $0x50] sm:$0xff]  ;;  %v4835_v50 = vld [vmem:[%s7193_s7 + $0x48] sm:$0xff] }
 0x359   :  { %3080 = vst.msk [vmem:[#allocation3] sm:$0xf] %vm1378_vm6, %v3057_v1  ;;  %3477 = vrot.lane.b32.xlu0 %v3450_v38, %s4882_s0  ;;  %v6830_v29 = vsel %vm5407_vm12, %v4569_v19, %v3473_v43  ;;  %v3387_v31 = vrot.slane %v3385_v59, 5  ;;  %v3393_v45 = vrot.slane %v3391_v30, 5  ;;  %v4654_v27 = vld [vmem:[#allocation3 + $0x98] sm:$0xf] }
 0x35a   :  { %3567 = vst.msk [vmem:[#allocation3 + $0xa0] sm:$0xf] %vm36_vm4, %v6818_v4  ;;  %4081 = vmatpush.bf16.msrb.mxu0 %v4836_v28 }
 0x35b   :  { %3704 = vst.msk [vmem:[#allocation3 + $0xa4] sm:$0xf] %vm36_vm4, %v6830_v29  ;;  %v3026_v57 = vpop.permute.xlu0 %3025  ;;  %v3388_v47 = vor.u32 %v3387_v31, %v3384_v63  ;;  %4857 = vmatpush.bf16.msra.mxu2 %v4836_v28 }
 0x35d   :  { %v6839_v22 = vld [vmem:[#allocation2 + $0x90] sm:$0xf]  ;;  %3510 = vrot.lane.b32.xlu2 %v6589_v49, %s4883_s30  ;;  %v3389_v54 = vrot.slane %v3388_v47, 4 }
 0x35e   :  { %v4570_v42 = vrot.slane %v6839_v22, 9  ;;  %v3541_v5 = vshrl.u32 %v6839_v22, 16  ;;  %v3544_v21 = vshll.u32 %v6839_v22, 16  ;;  %4082 = vmatpush.bf16.msrb.mxu0 %v4835_v50 }
 0x35f   :  { %v3272_v62 = vld [vmem:[#allocation2 + $0x94] sm:$0x1]  ;;  %v6849_v13 = vpop.permute.xlu2 %3062  ;;  %v6853_v60 = vsel %vm4978_vm2, %v3389_v54, %v3393_v45  ;;  %4858 = vmatpush.bf16.msra.mxu2 %v4835_v50  ;;  %v4825_v45 = vld [vmem:[#allocation3 + $0xb8] sm:$0xf0] }
 0x360   :  { %v3573_v41 = vrot.slane %v3272_v62, 5  ;;  %v3543_v11 = vrot.slane %v3541_v5, 4  ;;  %v3546_v15 = vrot.slane %v3544_v21, 5  ;;  %3508 = vrot.lane.b32.xlu1 %v6564_v17, %s4883_s30  ;;  %3568 = vst.msk [vmem:[#allocation3 + $0xac] sm:$0xf] %vm36_vm4, %v6853_v60  ;;  %v3550_v19 = vshll.u32 %v3272_v62, 16 }
 0x361   :  { %3575 = vrot.lane.b32.xlu0 %v3450_v38, %s4878_s19  ;;  %v4834_v17 = vld [vmem:[%s7193_s7 + $0x40] sm:$0xff] }
 0x362   :  { %v4822_v1 = vld [vmem:[#allocation3 + $0xa0] sm:$0xf0]  ;;  %v6862_v43 = vsel %vm5407_vm12, %v4570_v42, %v3573_v41  ;;  %v3547_v36 = vor.u32 %v3546_v15, %v3543_v11  ;;  %v2946_v59 = vpop.permute.xlu1 %2945  ;;  %v3552_v31 = vrot.slane %v3550_v19, 5  ;;  %4083 = vmatpush.bf16.msrb.mxu0 %v4834_v17 }
 0x363   :  { %v4655_v30 = vor.u32 %v4822_v1, %v4654_v27  ;;  %3705 = vst.msk [vmem:[#allocation3 + $0xb0] sm:$0xf] %vm36_vm4, %v6862_v43  ;;  %v3124_v38 = vpop.permute.xlu0 %3123  ;;  %4859 = vmatpush.bf16.msra.mxu2 %v4834_v17 }
 0x364   :  { %2968 = vst.msk [vmem:[#allocation3 + $0xc] sm:$0xf] %vm1260_vm3, %v2946_v59  ;;  %v3548_v63 = vrot.slane %v3547_v36, 4 }
 0x365   :  { %3048 = vst.msk [vmem:[#allocation3 + $0xc] sm:$0xf] %vm1344_vm5, %v3026_v57  ;;  %4746 = vmatmul.msk.bf16.gmra.mxu1 %vm2303_vm1, %v4655_v30  ;;  %3608 = vrot.lane.b32.xlu2 %v6589_v49, %s4882_s0 }
 0x366   :  { %3081 = vst.msk [vmem:[#allocation3 + $0xc] sm:$0xf] %vm1378_vm6, %v6729_v53  ;;  %v6878_v55 = vsel %vm4978_vm2, %v3548_v63, %v3552_v31  ;;  %v4574_v53 = vld [vmem:[#allocation3] sm:$0xf] }
 0x367   :  { %3147 = vst.msk [vmem:[#allocation3 + $0x4] sm:$0xf] %vm1260_vm3, %v3124_v38  ;;  %v3161_v28 = vpop.permute.xlu2 %3160 }
 0x368   :  { %3180 = vst.msk [vmem:[#allocation3 + $0x4] sm:$0xf] %vm1344_vm5, %v6773_v51  ;;  %3214 = vrot.lane.b32.xlu1 %v6576_v35, %s4883_s30 }
 0x369   :  { %3569 = vst.msk [vmem:[#allocation3 + $0xb8] sm:$0xf] %vm36_vm4, %v6878_v55  ;;  %3610 = vrot.lane.b32.xlu0 %v6632_v6, %s4882_s0 }
 0x36a   :  { %v3126_v23 = vpop.permute.xlu1 %3125  ;;  %v4666_v47 = vld [vmem:[#allocation3 + $0xb0] sm:$0xf] }
 0x36b   :  { %3148 = vst.msk [vmem:[#allocation3 + $0x10] sm:$0xf] %vm1260_vm3, %v3126_v23  ;;  %v3159_v49 = vpop.permute.xlu0 %3158  ;;  %v4667_v5 = vor.u32 %v4825_v45, %v4666_v47 }
 0x36c   :  { %3181 = vst.msk [vmem:[#allocation3 + $0x10] sm:$0xf] %vm1344_vm5, %v3159_v49 }
 0x36d   :  { %v4803_v57 = vld [vmem:[#allocation3 + $0x8] sm:$0xf0]  ;;  %3479 = vrot.lane.b32.xlu2 %v6612_v58, %s4882_s0 }
 0x36e   :  { %v4575_v51 = vor.u32 %v4803_v57, %v4574_v53 }
 0x36f   :  { %v3205_v35 = vpop.permute.xlu2 %3204 }
 0x370   :  { %4035 = vmatmul.bf16.vlgmr.msrb.gmra.mxu3 %v4575_v51  ;;  %3397 = vrot.lane.b32.xlu1 %v6603_v34, %s4878_s19  ;;  %3227 = vst.msk [vmem:[#allocation3 + $0x10] sm:$0xf] %vm1378_vm6, %v3205_v35 }
 0x371   :  { %3399 = vrot.lane.b32.xlu0 %v6646_v25, %s4878_s19 }
 0x372   :  { %v3061_v42 = vpop.permute.xlu1 %3060 }
 0x373   :  { %v2948_v54 = vpop.permute.xlu0 %2947 }
 0x374   :  { %2969 = vst.msk [vmem:[#allocation3 + $0x18] sm:$0xf] %vm1260_vm3, %v2948_v54 }
 0x375   :  { %3049 = vst.msk [vmem:[#allocation3 + $0x18] sm:$0xf] %vm1344_vm5, %v6814_v9  ;;  %4747 = vmatmul.msk.bf16.gmra.mxu1 %vm2303_vm1, %v4667_v5  ;;  %3514 = vrot.lane.b32.xlu2 %v6667_v46, %s4883_s30 }
 0x376   :  { %3082 = vst.msk [vmem:[#allocation3 + $0x18] sm:$0xf] %vm1378_vm6, %v3061_v42 }
 0x377   :  { %v3032_v34 = vpop.permute.xlu2 %3031 }
 0x378   :  { %3577 = vrot.lane.b32.xlu1 %v6612_v58, %s4878_s19  ;;  %v4576_v58 = vld [vmem:[#allocation3 + $0xc] sm:$0xf0] }
 0x379   :  { %3481 = vrot.lane.b32.xlu0 %v6659_v37, %s4882_s0 }
 0x37a   :  { %v3203_v21 = vpop.permute.xlu1 %3202 }
 0x37b   :  { %3226 = vst.msk [vmem:[#allocation3 + $0x4] sm:$0xf] %vm1378_vm6, %v3203_v21  ;;  %v3030_v62 = vpop.permute.xlu0 %3029 }
 0x37d   :  { %3612 = vrot.lane.b32.xlu2 %v6667_v46, %s4882_s0 }
 0x37f   :  { %v3067_v9 = vpop.permute.xlu2 %3066 }
 0x380   :  { %3512 = vrot.lane.b32.xlu1 %v6632_v6, %s4883_s30 }
 0x381   :  { %3579 = vrot.lane.b32.xlu0 %v6659_v37, %s4878_s19 }
 0x382   :  { %v2950_v50 = vpop.permute.xlu1 %2949  ;;  %v4802_v41 = vld [vmem:[#allocation3 + $0x4] sm:$0xf] }
 0x383   :  { %2970 = vst.msk [vmem:[#allocation3 + $0x24] sm:$0xf] %vm1260_vm3, %v2950_v50  ;;  %v3128_v11 = vpop.permute.xlu0 %3127  ;;  %v4579_v15 = vor.u32 %v4802_v41, %v4576_v58 }
 0x384   :  { %3050 = vst.msk [vmem:[#allocation3 + $0x24] sm:$0xf] %vm1344_vm5, %v3030_v62 }
 0x385   :  { %3083 = vst.msk [vmem:[#allocation3 + $0x24] sm:$0xf] %vm1378_vm6, %v6849_v13  ;;  %4084 = vmatmul.bf16.vlgmr.msrb.gmra.mxu0 %v4579_v15  ;;  %3656 = vrot.lane.b32.xlu2 %v6701_v20, %s4883_s30  ;;  %v4586_v13 = vld [vmem:[#allocation3 + $0x18] sm:$0xf] }
 0x386   :  { %3149 = vst.msk [vmem:[#allocation3 + $0x1c] sm:$0xf] %vm1260_vm3, %v3128_v11 }
 0x387   :  { %3182 = vst.msk [vmem:[#allocation3 + $0x1c] sm:$0xf] %vm1344_vm5, %v3161_v28  ;;  %v3165_v6 = vpop.permute.xlu2 %3164 }
 0x388   :  { %3654 = vrot.lane.b32.xlu1 %v6646_v25, %s4883_s30 }
 0x389   :  { %3614 = vrot.lane.b32.xlu0 %v6715_v14, %s4882_s0 }
 0x38a   :  { %v3130_v37 = vpop.permute.xlu1 %3129 }
 0x38b   :  { %3150 = vst.msk [vmem:[#allocation3 + $0x28] sm:$0xf] %vm1260_vm3, %v3130_v37  ;;  %v3163_v46 = vpop.permute.xlu0 %3162 }
 0x38c   :  { %3183 = vst.msk [vmem:[#allocation3 + $0x28] sm:$0xf] %vm1344_vm5, %v3163_v46  ;;  %v4806_v19 = vld [vmem:[#allocation3 + $0x20] sm:$0xf0] }
 0x38d   :  { %3483 = vrot.lane.b32.xlu2 %v6697_v12, %s4882_s0  ;;  %v4587_v27 = vor.u32 %v4806_v19, %v4586_v13 }
 0x38f   :  { %4040 = vmatmul.bf16.gmra.mxu3 %v4587_v27  ;;  %v3209_v1 = vpop.permute.xlu2 %3208 }
 0x390   :  { %3401 = vrot.lane.b32.xlu1 %v6701_v20, %s4878_s19  ;;  %3229 = vst.msk [vmem:[#allocation3 + $0x28] sm:$0xf] %vm1378_vm6, %v3209_v1 }
 0x391   :  { %3403 = vrot.lane.b32.xlu0 %v6722_v61, %s4878_s19 }
 0x392   :  { %v3065_v25 = vpop.permute.xlu1 %3064 }
 0x393   :  { %v2952_v36 = vpop.permute.xlu0 %2951 }
 0x394   :  { %2971 = vst.msk [vmem:[#allocation3 + $0x30] sm:$0xf] %vm1260_vm3, %v2952_v36 }
 0x395   :  { %3051 = vst.msk [vmem:[#allocation3 + $0x30] sm:$0xf] %vm1344_vm5, %v3032_v34  ;;  %3518 = vrot.lane.b32.xlu2 %v6755_v0, %s4883_s30 }
 0x396   :  { %3084 = vst.msk [vmem:[#allocation3 + $0x30] sm:$0xf] %vm1378_vm6, %v3065_v25 }
 0x397   :  { %v3036_v59 = vpop.permute.xlu2 %3035 }
 0x398   :  { %3581 = vrot.lane.b32.xlu1 %v6697_v12, %s4878_s19  ;;  %v4588_v12 = vld [vmem:[#allocation3 + $0x24] sm:$0xf0] }
 0x399   :  { %3485 = vrot.lane.b32.xlu0 %v6745_v26, %s4882_s0 }
 0x39a   :  { %v3207_v20 = vpop.permute.xlu1 %3206 }
 0x39b   :  { %3228 = vst.msk [vmem:[#allocation3 + $0x1c] sm:$0xf] %vm1378_vm6, %v3207_v20  ;;  %v3034_v30 = vpop.permute.xlu0 %3033 }
 0x39d   :  { %3616 = vrot.lane.b32.xlu2 %v6755_v0, %s4882_s0  ;;  %v4598_v23 = vld [vmem:[#allocation3 + $0x30] sm:$0xf] }
 0x39f   :  { %v3071_v17 = vpop.permute.xlu2 %3070 }
 0x3a0   :  { %3516 = vrot.lane.b32.xlu1 %v6715_v14, %s4883_s30 }
 0x3a1   :  { %3583 = vrot.lane.b32.xlu0 %v6745_v26, %s4878_s19 }
 0x3a2   :  { %v2954_v38 = vpop.permute.xlu1 %2953  ;;  %v4805_v63 = vld [vmem:[#allocation3 + $0x1c] sm:$0xf] }
 0x3a3   :  { %2972 = vst.msk [vmem:[#allocation3 + $0x3c] sm:$0xf] %vm1260_vm3, %v2954_v38  ;;  %v3132_v31 = vpop.permute.xlu0 %3131  ;;  %v4591_v28 = vor.u32 %v4805_v63, %v4588_v12  ;;  %v4134_v12 = vpop.f32.mrf.mxu1 }
 0x3a4   :  { %3052 = vst.msk [vmem:[#allocation3 + $0x3c] sm:$0xf] %vm1344_vm5, %v3034_v30 }
 0x3a5   :  { %3085 = vst.msk [vmem:[#allocation3 + $0x3c] sm:$0xf] %vm1378_vm6, %v3067_v9  ;;  %4089 = vmatmul.bf16.gmra.mxu0 %v4591_v28  ;;  %3660 = vrot.lane.b32.xlu2 %v6788_v10, %s4883_s30 }
 0x3a6   :  { %3151 = vst.msk [vmem:[#allocation3 + $0x34] sm:$0xf] %vm1260_vm3, %v3132_v31 }
 0x3a7   :  { %3184 = vst.msk [vmem:[#allocation3 + $0x34] sm:$0xf] %vm1344_vm5, %v3165_v6  ;;  %v3169_v14 = vpop.permute.xlu2 %3168 }
 0x3a8   :  { %3658 = vrot.lane.b32.xlu1 %v6722_v61, %s4883_s30 }
 0x3a9   :  { %3407 = vrot.lane.b32.xlu0 %v6818_v4, %s4878_s19 }
 0x3aa   :  { %v3134_v26 = vpop.permute.xlu1 %3133 }
 0x3ab   :  { %3152 = vst.msk [vmem:[#allocation3 + $0x40] sm:$0xf] %vm1260_vm3, %v3134_v26  ;;  %v3167_v0 = vpop.permute.xlu0 %3166 }
 0x3ac   :  { %3185 = vst.msk [vmem:[#allocation3 + $0x40] sm:$0xf] %vm1344_vm5, %v3167_v0  ;;  %v4809_v49 = vld [vmem:[#allocation3 + $0x38] sm:$0xf0] }
 0x3ad   :  { %v4599_v53 = vor.u32 %v4809_v49, %v4598_v23  ;;  %3520 = vrot.lane.b32.xlu2 %v6803_v7, %s4883_s30 }
 0x3af   :  { %4045 = vmatmul.bf16.gmra.mxu3 %v4599_v53  ;;  %v3213_v57 = vpop.permute.xlu2 %3212 }
 0x3b0   :  { %3405 = vrot.lane.b32.xlu1 %v6788_v10, %s4878_s19  ;;  %3231 = vst.msk [vmem:[#allocation3 + $0x40] sm:$0xf] %vm1378_vm6, %v3213_v57 }
 0x3b1   :  { %3620 = vrot.lane.b32.xlu0 %v6839_v22, %s4882_s0 }
 0x3b2   :  { %v3069_v61 = vpop.permute.xlu1 %3068 }
 0x3b3   :  { %v2956_v51 = vpop.permute.xlu0 %2955 }
 0x3b4   :  { %2973 = vst.msk [vmem:[#allocation3 + $0x48] sm:$0xf] %vm1260_vm3, %v2956_v51 }
 0x3b5   :  { %3053 = vst.msk [vmem:[#allocation3 + $0x48] sm:$0xf] %vm1344_vm5, %v3036_v59  ;;  %3587 = vrot.lane.b32.xlu2 %v6830_v29, %s4878_s19 }
 0x3b6   :  { %3086 = vst.msk [vmem:[#allocation3 + $0x48] sm:$0xf] %vm1378_vm6, %v3069_v61  ;;  %v7036_v61 = vld [vmem:[%s7195_s9] ss:$0 sm:$0xff] }
 0x3b7   :  { %v3511_v35 = vpop.permute.xlu2 %3510  ;;  %v4600_v5 = vld [vmem:[#allocation3 + $0x3c] sm:$0xf0] }
 0x3b8   :  { %3487 = vrot.lane.b32.xlu1 %v6784_v52, %s4882_s0 }
 0x3b9   :  { %3522 = vrot.lane.b32.xlu0 %v6839_v22, %s4883_s30 }
 0x3ba   :  { %v3211_v10 = vpop.permute.xlu1 %3210 }
 0x3bb   :  { %3230 = vst.msk [vmem:[#allocation3 + $0x34] sm:$0xf] %vm1378_vm6, %v3211_v10  ;;  %v3038_v47 = vpop.permute.xlu0 %3037 }
 0x3bd   :  { %3489 = vrot.lane.b32.xlu2 %v6830_v29, %s4882_s0  ;;  %v4610_v21 = vld [vmem:[#allocation3 + $0x48] sm:$0xf] }
 0x3bf   :  { %v3609_v45 = vpop.permute.xlu2 %3608 }
 0x3c0   :  { %3585 = vrot.lane.b32.xlu1 %v6784_v52, %s4878_s19 }
 0x3c1   :  { %3589 = vrot.lane.b32.xlu0 %v6862_v43, %s4878_s19 }
 0x3c2   :  { %v2958_v42 = vpop.permute.xlu1 %2957  ;;  %v4808_v54 = vld [vmem:[#allocation3 + $0x34] sm:$0xf] }
 0x3c3   :  { %2974 = vst.msk [vmem:[#allocation3 + $0x54] sm:$0xf] %vm1260_vm3, %v2958_v42  ;;  %v3136_v22 = vpop.permute.xlu0 %3135  ;;  %v4603_v34 = vor.u32 %v4808_v54, %v4600_v5 }
 0x3c4   :  { %3054 = vst.msk [vmem:[#allocation3 + $0x54] sm:$0xf] %vm1344_vm5, %v3038_v47 }
 0x3c5   :  { %3087 = vst.msk [vmem:[#allocation3 + $0x54] sm:$0xf] %vm1378_vm6, %v3071_v17  ;;  %4094 = vmatmul.bf16.gmra.mxu0 %v4603_v34  ;;  %3664 = vrot.lane.b32.xlu2 %v6853_v60, %s4883_s30  ;;  %v4136_v34 = vpop.f32.mrf.mxu1 }
 0x3c6   :  { %3153 = vst.msk [vmem:[#allocation3 + $0x4c] sm:$0xf] %vm1260_vm3, %v3136_v22 }
 0x3c7   :  { %3186 = vst.msk [vmem:[#allocation3 + $0x4c] sm:$0xf] %vm1344_vm5, %v3169_v14  ;;  %v3480_v52 = vpop.permute.xlu2 %3479  ;;  %v7030_v14 = vld [vmem:[%s7194_s8] ss:$0 sm:$0xff] }
 0x3c8   :  { %3409 = vrot.lane.b32.xlu1 %v6853_v60, %s4878_s19 }
 0x3c9   :  { %3618 = vrot.lane.b32.xlu0 %v6803_v7, %s4882_s0 }
 0x3ca   :  { %v3138_v29 = vpop.permute.xlu1 %3137 }
 0x3cb   :  { %3154 = vst.msk [vmem:[#allocation3 + $0x58] sm:$0xf] %vm1260_vm3, %v3138_v29  ;;  %v3478_v43 = vpop.permute.xlu0 %3477 }
 0x3cc   :  { %3187 = vst.msk [vmem:[#allocation3 + $0x58] sm:$0xf] %vm1344_vm5, %v6780_v16  ;;  %v4812_v62 = vld [vmem:[#allocation3 + $0x50] sm:$0xf0] }
 0x3cd   :  { %3233 = vst.msk [vmem:[#allocation3 + $0x58] sm:$0xf] %vm1378_vm6, %v6625_v56  ;;  %v4611_v9 = vor.u32 %v4812_v62, %v4610_v21 }
 0x3cf   :  { %4050 = vmatmul.bf16.gmra.mxu3 %v4611_v9  ;;  %v3515_v50 = vpop.permute.xlu2 %3514 }
 0x3d0   :  { %3666 = vrot.lane.b32.xlu1 %v6878_v55, %s4883_s30 }
 0x3d2   :  { %v3509_v60 = vpop.permute.xlu1 %3508 }
 0x3d3   :  { %3532 = vst.msk [vmem:[#allocation3 + $0x60] sm:$0xf] %vm1378_vm6, %v3509_v60  ;;  %v3576_v7 = vpop.permute.xlu0 %3575 }
 0x3d4   :  { %3599 = vst.msk [vmem:[#allocation3 + $0x64] sm:$0xf] %vm1260_vm3, %v3576_v7  ;;  %v4612_v55 = vld [vmem:[#allocation3 + $0x54] sm:$0xf0] }
 0x3d5   :  { %3632 = vst.msk [vmem:[#allocation3 + $0x64] sm:$0xf] %vm1344_vm5, %v3609_v45 }
 0x3d7   :  { %v3613_v16 = vpop.permute.xlu2 %3612 }
 0x3d8   :  { %3662 = vrot.lane.b32.xlu1 %v6818_v4, %s4883_s30 }
 0x3da   :  { %v3215_v41 = vpop.permute.xlu1 %3214  ;;  %v4622_v19 = vld [vmem:[#allocation3 + $0x60] sm:$0xf] }
 0x3db   :  { %3232 = vst.msk [vmem:[#allocation3 + $0x4c] sm:$0xf] %vm1378_vm6, %v3215_v41  ;;  %v3611_v56 = vpop.permute.xlu0 %3610 }
 0x3df   :  { %v3657_v58 = vpop.permute.xlu2 %3656 }
 0x3e2   :  { %v3398_v11 = vpop.permute.xlu1 %3397  ;;  %v4811_v15 = vld [vmem:[#allocation3 + $0x4c] sm:$0xf] }
 0x3e3   :  { %3420 = vst.msk [vmem:[#allocation3 + $0x6c] sm:$0xf] %vm1260_vm3, %v3398_v11  ;;  %v3400_v6 = vpop.permute.xlu0 %3399  ;;  %v4615_v37 = vor.u32 %v4811_v15, %v4612_v55  ;;  %v4139_v55 = vpop.f32.mrf.mxu1 }
 0x3e4   :  { %3500 = vst.msk [vmem:[#allocation3 + $0x6c] sm:$0xf] %vm1344_vm5, %v3478_v43 }
 0x3e5   :  { %3533 = vst.msk [vmem:[#allocation3 + $0x6c] sm:$0xf] %vm1378_vm6, %v3511_v35  ;;  %4099 = vmatmul.bf16.gmra.mxu0 %v4615_v37 }
 0x3e6   :  { %3421 = vst.msk [vmem:[#allocation3 + $0x78] sm:$0xf] %vm1260_vm3, %v3400_v6 }
 0x3e7   :  { %3501 = vst.msk [vmem:[#allocation3 + $0x78] sm:$0xf] %vm1344_vm5, %v3480_v52  ;;  %v3484_v4 = vpop.permute.xlu2 %3483 }
 0x3ea   :  { %v3578_v46 = vpop.permute.xlu1 %3577 }
 0x3eb   :  { %3600 = vst.msk [vmem:[#allocation3 + $0x70] sm:$0xf] %vm1260_vm3, %v3578_v46  ;;  %v3482_v13 = vpop.permute.xlu0 %3481 }
 0x3ec   :  { %3633 = vst.msk [vmem:[#allocation3 + $0x70] sm:$0xf] %vm1344_vm5, %v3611_v56  ;;  %v4815_v27 = vld [vmem:[#allocation3 + $0x68] sm:$0xf0] }
 0x3ed   :  { %3679 = vst.msk [vmem:[#allocation3 + $0x70] sm:$0xf] %vm1378_vm6, %v3657_v58  ;;  %v4623_v1 = vor.u32 %v4815_v27, %v4622_v19 }
 0x3ef   :  { %4055 = vmatmul.bf16.gmra.mxu3 %v4623_v1  ;;  %v7021_v25 = vpop.permute.xlu2 %3518 }
 0x3f2   :  { %v3513_v36 = vpop.permute.xlu1 %3512 }
 0x3f3   :  { %v3580_v59 = vpop.permute.xlu0 %3579  ;;  %3534 = vst.msk [vmem:[#allocation3 + $0x78] sm:$0xf] %vm1378_vm6, %v3513_v36  ;;  %v4036_v63 = vpop.f32.mrf.mxu3 }
 0x3f4   :  { %3601 = vst.msk [vmem:[#allocation3 + $0x7c] sm:$0xf] %vm1260_vm3, %v3580_v59  ;;  %v4624_v49 = vld [vmem:[#allocation3 + $0x6c] sm:$0xf0] }
 0x3f5   :  { %3634 = vst.msk [vmem:[#allocation3 + $0x7c] sm:$0xf] %vm1344_vm5, %v3613_v16 }
 0x3f7   :  { %v3617_v20 = vpop.permute.xlu2 %3616 }
 0x3fa   :  { %v3655_v30 = vpop.permute.xlu1 %3654  ;;  %v4634_v52 = vld [vmem:[#allocation3 + $0x78] sm:$0xf] }
 0x3fb   :  { %v3615_v17 = vpop.permute.xlu0 %3614  ;;  %3678 = vst.msk [vmem:[#allocation3 + $0x64] sm:$0xf] %vm1378_vm6, %v3655_v30  ;;  %v4038_v47 = vpop.f32.mrf.mxu3 }
 0x3ff   :  { %v3661_v38 = vpop.permute.xlu2 %3660 }
 0x402   :  { %v4085_v31 = vpop.f32.mrf.mxu0  ;;  %v3402_v26 = vpop.permute.xlu1 %3401  ;;  %v4814_v23 = vld [vmem:[#allocation3 + $0x64] sm:$0xf] }
 0x403   :  { %v4086_v28 = vadd.f32 %v4085_v31, %v4036_v63  ;;  %v3404_v0 = vpop.permute.xlu0 %3403  ;;  %3422 = vst.msk [vmem:[#allocation3 + $0x84] sm:$0xf] %vm1260_vm3, %v3402_v26  ;;  %v4627_v53 = vor.u32 %v4814_v23, %v4624_v49  ;;  %v4141_v31 = vpop.f32.mrf.mxu1 }
 0x404   :  { %3502 = vst.msk [vmem:[#allocation3 + $0x84] sm:$0xf] %vm1344_vm5, %v3482_v13 }
 0x405   :  { %v4135_v57 = vadd.f32 %v4134_v12, %v4086_v28  ;;  %3535 = vst.msk [vmem:[#allocation3 + $0x84] sm:$0xf] %vm1378_vm6, %v3515_v50  ;;  %4104 = vmatmul.bf16.gmra.mxu0 %v4627_v53 }
 0x406   :  { %3423 = vst.msk [vmem:[#allocation3 + $0x90] sm:$0xf] %vm1260_vm3, %v3404_v0 }
 0x407   :  { %v4178_v51 = vmul.f32 %v7030_v14, %v4135_v57  ;;  %v7042_v35 = vpop.permute.xlu2 %3520  ;;  %3503 = vst.msk [vmem:[#allocation3 + $0x90] sm:$0xf] %vm1344_vm5, %v3484_v4 }
 0x409   :  { %v4198_v10 = vadd.f32 %v7036_v61, %v4178_v51 }
 0x40a   :  { %v4087_v45 = vpop.f32.mrf.mxu0  ;;  %v3582_v5 = vpop.permute.xlu1 %3581 }
 0x40b   :  { %v4214_v42 = vadd.f32 %v4198_v10, %v5434_v3  ;;  %v4088_v54 = vadd.f32 %v4087_v45, %v4038_v47  ;;  %v3486_v22 = vpop.permute.xlu0 %3485  ;;  %3602 = vst.msk [vmem:[#allocation3 + $0x88] sm:$0xf] %vm1260_vm3, %v3582_v5 }
 0x40c   :  { %3635 = vst.msk [vmem:[#allocation3 + $0x88] sm:$0xf] %vm1344_vm5, %v3615_v17  ;;  %v4818_v21 = vld [vmem:[#allocation3 + $0x80] sm:$0xf0] }
 0x40d   :  { %v4230_v29 = vmax.f32 %v4214_v42, 0.0  ;;  %v4137_v43 = vadd.f32 %v4136_v34, %v4088_v54  ;;  %3681 = vst.msk [vmem:[#allocation3 + $0x88] sm:$0xf] %vm1378_vm6, %v3661_v38  ;;  %v4635_v62 = vor.u32 %v4818_v21, %v4634_v52 }
 0x40f   :  { %v4246_v9 = vpack.c.bf16 %v4230_v29, %v4230_v29  ;;  %v4179_v50 = vmul.f32 %v7030_v14, %v4137_v43  ;;  %v3588_v60 = vpop.permute.xlu2 %3587  ;;  %4060 = vmatmul.bf16.gmra.mxu3 %v4635_v62 }
 0x410   :  { %3605 = vst.msk [vmem:[#allocation3 + $0xac] sm:$0xf] %vm1260_vm3, %v3588_v60 }
 0x411   :  { %4262 = vst.msk [vmem:[%s7196_s10] sm:$0xf] %vm36_vm4, %v4246_v9  ;;  %v4199_v3 = vadd.f32 %v7036_v61, %v4179_v50 }
 0x412   :  { %v3517_v16 = vpop.permute.xlu1 %3516 }
 0x413   :  { %v4215_v7 = vadd.f32 %v4199_v3, %v5450_v24  ;;  %v3584_v41 = vpop.permute.xlu0 %3583  ;;  %3536 = vst.msk [vmem:[#allocation3 + $0x90] sm:$0xf] %vm1378_vm6, %v3517_v16  ;;  %v4041_v24 = vpop.f32.mrf.mxu3 }
 0x414   :  { %3603 = vst.msk [vmem:[#allocation3 + $0x94] sm:$0xf] %vm1260_vm3, %v3584_v41  ;;  %v4636_v19 = vld [vmem:[#allocation3 + $0x84] sm:$0xf0] }
 0x415   :  { %v4231_v56 = vmax.f32 %v4215_v7, 0.0  ;;  %3636 = vst.msk [vmem:[#allocation3 + $0x94] sm:$0xf] %vm1344_vm5, %v3617_v20 }
 0x417   :  { %v4247_v58 = vpack.c.bf16 %v4231_v56, %v4231_v56 }
 0x419   :  { %4263 = vst.msk [vmem:[%s7196_s10 + $0x4] sm:$0xf] %vm36_vm4, %v4247_v58 }
 0x41a   :  { %v3659_v11 = vpop.permute.xlu1 %3658  ;;  %v4646_v28 = vld [vmem:[#allocation3 + $0x90] sm:$0xf] }
 0x41b   :  { %v3408_v15 = vpop.permute.xlu0 %3407  ;;  %3680 = vst.msk [vmem:[#allocation3 + $0x7c] sm:$0xf] %vm1378_vm6, %v3659_v11  ;;  %v4043_v20 = vpop.f32.mrf.mxu3 }
 0x41c   :  { %3425 = vst.msk [vmem:[#allocation3 + $0xa8] sm:$0xf] %vm1260_vm3, %v3408_v15 }
 0x422   :  { %v4090_v6 = vpop.f32.mrf.mxu0  ;;  %v3406_v4 = vpop.permute.xlu1 %3405  ;;  %v4817_v13 = vld [vmem:[#allocation3 + $0x7c] sm:$0xf] }
 0x423   :  { %v4091_v37 = vadd.f32 %v4090_v6, %v4041_v24  ;;  %v3621_v46 = vpop.permute.xlu0 %3620  ;;  %3424 = vst.msk [vmem:[#allocation3 + $0x9c] sm:$0xf] %vm1260_vm3, %v3406_v4  ;;  %v4639_v27 = vor.u32 %v4817_v13, %v4636_v19 }
 0x424   :  { %3504 = vst.msk [vmem:[#allocation3 + $0x9c] sm:$0xf] %vm1344_vm5, %v3486_v22 }
 0x425   :  { %v4140_v1 = vadd.f32 %v4139_v55, %v4091_v37  ;;  %3537 = vst.msk [vmem:[#allocation3 + $0x9c] sm:$0xf] %vm1378_vm6, %v7021_v25  ;;  %4109 = vmatmul.bf16.gmra.mxu0 %v4639_v27 }
 0x426   :  { %3638 = vst.msk [vmem:[#allocation3 + $0xac] sm:$0xf] %vm1344_vm5, %v3621_v46 }
 0x427   :  { %v4180_v36 = vmul.f32 %v7030_v14, %v4140_v1 }
 0x429   :  { %v4200_v59 = vadd.f32 %v7036_v61, %v4180_v36 }
 0x42a   :  { %v4092_v30 = vpop.f32.mrf.mxu0  ;;  %v3488_v63 = vpop.permute.xlu1 %3487 }
 0x42b   :  { %v4216_v17 = vadd.f32 %v4200_v59, %v5466_v44  ;;  %v4093_v38 = vadd.f32 %v4092_v30, %v4043_v20  ;;  %v3523_v12 = vpop.permute.xlu0 %3522  ;;  %3505 = vst.msk [vmem:[#allocation3 + $0xa8] sm:$0xf] %vm1344_vm5, %v3488_v63 }
 0x42c   :  { %3538 = vst.msk [vmem:[#allocation3 + $0xa8] sm:$0xf] %vm1378_vm6, %v7042_v35  ;;  %v4821_v0 = vld [vmem:[#allocation3 + $0x98] sm:$0xf0]  ;;  %v3490_v35 = vpop.permute.xlu2 %3489 }
 0x42d   :  { %v4232_v26 = vmax.f32 %v4216_v17, 0.0  ;;  %v4142_v25 = vadd.f32 %v4141_v31, %v4093_v38  ;;  %v4647_v23 = vor.u32 %v4821_v0, %v4646_v28 }
 0x42f   :  { %v4248_v49 = vpack.c.bf16 %v4232_v26, %v4232_v26  ;;  %v4181_v53 = vmul.f32 %v7030_v14, %v4142_v25  ;;  %4065 = vmatmul.bf16.gmra.mxu3 %v4647_v23 }
 0x431   :  { %4264 = vst.msk [vmem:[%s7196_s10 + $0x8] sm:$0xf] %vm36_vm4, %v4248_v49  ;;  %v4201_v44 = vadd.f32 %v7036_v61, %v4181_v53 }
 0x432   :  { %v3586_v51 = vpop.permute.xlu1 %3585 }
 0x433   :  { %v4217_v57 = vadd.f32 %v4201_v44, %v5481_v40  ;;  %v3590_v10 = vpop.permute.xlu0 %3589  ;;  %3604 = vst.msk [vmem:[#allocation3 + $0xa0] sm:$0xf] %vm1260_vm3, %v3586_v51  ;;  %v4658_v29 = vld [vmem:[#allocation3 + $0xa8] sm:$0xf] }
 0x434   :  { %3606 = vst.msk [vmem:[#allocation3 + $0xb8] sm:$0xf] %vm1260_vm3, %v3590_v10  ;;  %v3665_v54 = vpop.permute.xlu2 %3664 }
 0x435   :  { %v4233_v47 = vmax.f32 %v4217_v57, 0.0  ;;  %3639 = vst.msk [vmem:[#allocation3 + $0xb8] sm:$0xf] %vm1344_vm5, %v6274_v33  ;;  %v4046_v33 = vpop.f32.mrf.mxu3 }
 0x436   :  { %3685 = vst.msk [vmem:[#allocation3 + $0xb8] sm:$0xf] %vm1378_vm6, %v6677_v32  ;;  %v4144_v32 = vpop.f32.mrf.mxu1 }
 0x437   :  { %v4249_v45 = vpack.c.bf16 %v4233_v47, %v4233_v47 }
 0x439   :  { %4265 = vst.msk [vmem:[%s7196_s10 + $0xc] sm:$0xf] %vm36_vm4, %v4249_v45 }
 0x43a   :  { %v3410_v40 = vpop.permute.xlu1 %3409 }
 0x43b   :  { %3426 = vst.msk [vmem:[#allocation3 + $0xb4] sm:$0xf] %vm1260_vm3, %v3410_v40  ;;  %v3619_v42 = vpop.permute.xlu0 %3618 }
 0x43c   :  { %3506 = vst.msk [vmem:[#allocation3 + $0xb4] sm:$0xf] %vm1344_vm5, %v3490_v35 }
 0x43d   :  { %3539 = vst.msk [vmem:[#allocation3 + $0xb4] sm:$0xf] %vm1378_vm6, %v3523_v12  ;;  %v4048_v50 = vpop.f32.mrf.mxu3  ;;  %v4660_v56 = vld [vmem:[#allocation3 + $0xb4] sm:$0xf0] }
 0x43e   :  { %3637 = vst.msk [vmem:[#allocation3 + $0xa0] sm:$0xf] %vm1344_vm5, %v3619_v42  ;;  %v4146_v58 = vpop.f32.mrf.mxu1 }
 0x43f   :  { %3683 = vst.msk [vmem:[#allocation3 + $0xa0] sm:$0xf] %vm1378_vm6, %v3665_v54 }
 0x442   :  { %v4095_v5 = vpop.f32.mrf.mxu0  ;;  %v3667_v34 = vpop.permute.xlu1 %3666 }
 0x443   :  { %v4096_v22 = vadd.f32 %v4095_v5, %v4046_v33  ;;  %3684 = vst.msk [vmem:[#allocation3 + $0xac] sm:$0xf] %vm1378_vm6, %v3667_v34 }
 0x444   :  { %v4824_v43 = vld [vmem:[#allocation3 + $0xb0] sm:$0xf0] }
 0x445   :  { %v4145_v52 = vadd.f32 %v4144_v32, %v4096_v22  ;;  %v4659_v21 = vor.u32 %v4824_v43, %v4658_v29  ;;  %v7219_v43 = vld [vmem:[#allocation4_spill] sm:$0xff] }
 0x446   :  { %v4648_v46 = vld [vmem:[#allocation3 + $0x9c] sm:$0xf0]  ;;  %v4149_v36 = vpop.f32.mrf.mxu1 }
 0x447   :  { %v4182_v62 = vmul.f32 %v7030_v14, %v4145_v52  ;;  %4070 = vmatmul.bf16.gmra.mxu3 %v4659_v21 }
 0x449   :  { %v4202_v9 = vadd.f32 %v7036_v61, %v4182_v62 }
 0x44a   :  { %v4097_v60 = vpop.f32.mrf.mxu0  ;;  %v3663_v16 = vpop.permute.xlu1 %3662  ;;  %v4823_v41 = vld [vmem:[#allocation3 + $0xac] sm:$0xf] }
 0x44b   :  { %v4218_v3 = vadd.f32 %v4202_v9, %v5501_v39  ;;  %v4098_v7 = vadd.f32 %v4097_v60, %v4048_v50  ;;  %3682 = vst.msk [vmem:[#allocation3 + $0x94] sm:$0xf] %vm1378_vm6, %v3663_v16  ;;  %v4663_v11 = vor.u32 %v4823_v41, %v4660_v56 }
 0x44d   :  { %v4234_v15 = vmax.f32 %v4218_v3, 0.0  ;;  %v4147_v24 = vadd.f32 %v4146_v58, %v4098_v7  ;;  %4119 = vmatmul.bf16.vlgmr.msra.gmra.mxu2 %v4663_v11  ;;  %v7220_v11 = vld [vmem:[#allocation5_spill] sm:$0xff] }
 0x44e   :  { %v4151_v28 = vpop.f32.mrf.mxu1 }
 0x44f   :  { %v4250_v55 = vpack.c.bf16 %v4234_v15, %v4234_v15  ;;  %v4183_v6 = vmul.f32 %v7030_v14, %v4147_v24 }
 0x451   :  { %4266 = vst.msk [vmem:[%s7196_s10 + $0x10] sm:$0xf] %vm36_vm4, %v4250_v55  ;;  %v4203_v39 = vadd.f32 %v7036_v61, %v4183_v6 }
 0x452   :  { %v4820_v4 = vld [vmem:[#allocation3 + $0x94] sm:$0xf]  ;;  %v4051_v1 = vpop.f32.mrf.mxu3 }
 0x453   :  { %v4219_v37 = vadd.f32 %v4203_v39, %v5534_v2  ;;  %v4651_v13 = vor.u32 %v4820_v4, %v4648_v46 }
 0x455   :  { %v4235_v19 = vmax.f32 %v4219_v37, 0.0  ;;  %4114 = vmatmul.bf16.gmra.mxu0 %v4651_v13  ;;  %v7221_v13 = vld [vmem:[#allocation6_spill] sm:$0xff] }
 0x456   :  { %v4154_v51 = vpop.f32.mrf.mxu1 }
 0x457   :  { %v4251_v27 = vpack.c.bf16 %v4235_v19, %v4235_v19 }
 0x459   :  { %4267 = vst.msk [vmem:[%s7196_s10 + $0x14] sm:$0xf] %vm36_vm4, %v4251_v27 }
 0x45a   :  { %v4053_v38 = vpop.f32.mrf.mxu3 }
 0x45e   :  { %v4156_v32 = vpop.f32.mrf.mxu1 }
 0x462   :  { %v4100_v59 = vpop.f32.mrf.mxu0 }
 0x463   :  { %v4101_v20 = vadd.f32 %v4100_v59, %v4051_v1 }
 0x465   :  { %v4150_v30 = vadd.f32 %v4149_v36, %v4101_v20 }
 0x466   :  { %v4159_v50 = vpop.f32.mrf.mxu1 }
 0x467   :  { %v4184_v17 = vmul.f32 %v7030_v14, %v4150_v30 }
 0x469   :  { %v4204_v2 = vadd.f32 %v7036_v61, %v4184_v17 }
 0x46a   :  { %v4102_v63 = vpop.f32.mrf.mxu0 }
 0x46b   :  { %v4220_v12 = vadd.f32 %v4204_v2, %v5566_v48  ;;  %v4103_v31 = vadd.f32 %v4102_v63, %v4053_v38 }
 0x46d   :  { %v4236_v26 = vmax.f32 %v4220_v12, 0.0  ;;  %v4152_v25 = vadd.f32 %v4151_v28, %v4103_v31 }
 0x46e   :  { %v4161_v55 = vpop.f32.mrf.mxu1 }
 0x46f   :  { %v4252_v0 = vpack.c.bf16 %v4236_v26, %v4236_v26  ;;  %v4185_v23 = vmul.f32 %v7030_v14, %v4152_v25 }
 0x471   :  { %4268 = vst.msk [vmem:[%s7196_s10 + $0x18] sm:$0xf] %vm36_vm4, %v4252_v0  ;;  %v4205_v49 = vadd.f32 %v7036_v61, %v4185_v23 }
 0x472   :  { %v4056_v48 = vpop.f32.mrf.mxu3 }
 0x473   :  { %v4221_v53 = vadd.f32 %v4205_v49, %v5602_v18 }
 0x475   :  { %v4237_v44 = vmax.f32 %v4221_v53, 0.0 }
 0x476   :  { %v4164_v36 = vpop.f32.mrf.mxu1 }
 0x477   :  { %v4253_v57 = vpack.c.bf16 %v4237_v44, %v4237_v44  ;;  %v7222_v44 = vld [vmem:[#allocation9_spill] sm:$0xff] }
 0x479   :  { %4269 = vst.msk [vmem:[%s7196_s10 + $0x1c] sm:$0xf] %vm36_vm4, %v4253_v57 }
 0x47a   :  { %v4058_v42 = vpop.f32.mrf.mxu3 }
 0x47e   :  { %v4166_v20 = vpop.f32.mrf.mxu1 }
 0x482   :  { %v4105_v10 = vpop.f32.mrf.mxu0 }
 0x483   :  { %v4106_v35 = vadd.f32 %v4105_v10, %v4056_v48 }
 0x485   :  { %v4155_v47 = vadd.f32 %v4154_v51, %v4106_v35 }
 0x486   :  { %v4169_v2 = vpop.f32.mrf.mxu1 }
 0x487   :  { %v4186_v45 = vmul.f32 %v7030_v14, %v4155_v47 }
 0x489   :  { %v4206_v40 = vadd.f32 %v7036_v61, %v4186_v45  ;;  %v7223_v45 = vld [vmem:[#allocation7_spill] sm:$0xff] }
 0x48a   :  { %v4107_v54 = vpop.f32.mrf.mxu0 }
 0x48b   :  { %v4222_v18 = vadd.f32 %v4206_v40, %v5631_v8  ;;  %v4108_v33 = vadd.f32 %v4107_v54, %v4058_v42 }
 0x48d   :  { %v4238_v5 = vmax.f32 %v4222_v18, 0.0  ;;  %v4157_v22 = vadd.f32 %v4156_v32, %v4108_v33 }
 0x48e   :  { %v4171_v10 = vpop.f32.mrf.mxu1 }
 0x48f   :  { %v4254_v34 = vpack.c.bf16 %v4238_v5, %v4238_v5  ;;  %v4187_v52 = vmul.f32 %v7030_v14, %v4157_v22 }
 0x491   :  { %4270 = vst.msk [vmem:[%s7196_s10 + $0x20] sm:$0xf] %vm36_vm4, %v4254_v34  ;;  %v4207_v29 = vadd.f32 %v7036_v61, %v4187_v52 }
 0x492   :  { %v4061_v8 = vpop.f32.mrf.mxu3 }
 0x493   :  { %v4223_v21 = vadd.f32 %v4207_v29, %v7219_v43  ;;  %v7224_v29 = vld [vmem:[#allocation10_spill] sm:$0xff] }
 0x495   :  { %v4239_v62 = vmax.f32 %v4223_v21, 0.0 }
 0x497   :  { %v4255_v9 = vpack.c.bf16 %v4239_v62, %v4239_v62 }
 0x499   :  { %4271 = vst.msk [vmem:[%s7196_s10 + $0x24] sm:$0xf] %vm36_vm4, %v4255_v9  ;;  %v7225_v9 = vld [vmem:[#allocation8_spill] sm:$0xff] }
 0x49a   :  { %v4063_v56 = vpop.f32.mrf.mxu3 }
 0x4a2   :  { %v4110_v60 = vpop.f32.mrf.mxu0 }
 0x4a3   :  { %v4111_v3 = vadd.f32 %v4110_v60, %v4061_v8 }
 0x4a5   :  { %v4160_v7 = vadd.f32 %v4159_v50, %v4111_v3 }
 0x4a7   :  { %v4188_v16 = vmul.f32 %v7030_v14, %v4160_v7 }
 0x4a9   :  { %v4208_v41 = vadd.f32 %v7036_v61, %v4188_v16 }
 0x4aa   :  { %v4112_v58 = vpop.f32.mrf.mxu0 }
 0x4ab   :  { %v4224_v15 = vadd.f32 %v4208_v41, %v7220_v11  ;;  %v4113_v24 = vadd.f32 %v4112_v58, %v4063_v56 }
 0x4ad   :  { %v4240_v6 = vmax.f32 %v4224_v15, 0.0  ;;  %v4162_v39 = vadd.f32 %v4161_v55, %v4113_v24 }
 0x4af   :  { %v4256_v37 = vpack.c.bf16 %v4240_v6, %v4240_v6  ;;  %v4189_v4 = vmul.f32 %v7030_v14, %v4162_v39 }
 0x4b1   :  { %4272 = vst.msk [vmem:[%s7196_s10 + $0x28] sm:$0xf] %vm36_vm4, %v4256_v37  ;;  %v4209_v46 = vadd.f32 %v7036_v61, %v4189_v4 }
 0x4b2   :  { %v4066_v59 = vpop.f32.mrf.mxu3 }
 0x4b3   :  { %v4225_v19 = vadd.f32 %v4209_v46, %v7221_v13 }
 0x4b5   :  { %v4241_v27 = vmax.f32 %v4225_v19, 0.0 }
 0x4b7   :  { %v4257_v1 = vpack.c.bf16 %v4241_v27, %v4241_v27 }
 0x4b9   :  { %4273 = vst.msk [vmem:[%s7196_s10 + $0x2c] sm:$0xf] %vm36_vm4, %v4257_v1 }
 0x4ba   :  { %v4068_v30 = vpop.f32.mrf.mxu3 }
 0x4ca   :  { %v4071_v17 = vpop.f32.mrf.mxu3 }
 0x4d0   :  { %v4120_v38 = vpop.f32.mrf.mxu2 }
 0x4d1   :  { %v4121_v63 = vadd.f32 %v4120_v38, %v4071_v17 }
 0x4d2   :  { %v4115_v12 = vpop.f32.mrf.mxu0  ;;  %v4073_v49 = vpop.f32.mrf.mxu3 }
 0x4d3   :  { %v4170_v31 = vadd.f32 %v4169_v2, %v4121_v63  ;;  %v4116_v28 = vadd.f32 %v4115_v12, %v4066_v59 }
 0x4d5   :  { %v4192_v26 = vmul.f32 %v7030_v14, %v4170_v31  ;;  %v4165_v25 = vadd.f32 %v4164_v36, %v4116_v28 }
 0x4d7   :  { %v4212_v0 = vadd.f32 %v7036_v61, %v4192_v26  ;;  %v4190_v23 = vmul.f32 %v7030_v14, %v4165_v25 }
 0x4d8   :  { %v4122_v53 = vpop.f32.mrf.mxu2 }
 0x4d9   :  { %v4228_v57 = vadd.f32 %v4212_v0, %v7222_v44  ;;  %v4210_v48 = vadd.f32 %v7036_v61, %v4190_v23  ;;  %v4123_v51 = vadd.f32 %v4122_v53, %v4073_v49 }
 0x4da   :  { %v4117_v35 = vpop.f32.mrf.mxu0 }
 0x4db   :  { %v4244_v47 = vmax.f32 %v4228_v57, 0.0  ;;  %v4226_v40 = vadd.f32 %v4210_v48, %v7223_v45  ;;  %v4172_v42 = vadd.f32 %v4171_v10, %v4123_v51  ;;  %v4118_v54 = vadd.f32 %v4117_v35, %v4068_v30 }
 0x4dd   :  { %v4260_v18 = vpack.c.bf16 %v4244_v47, %v4244_v47  ;;  %v4242_v33 = vmax.f32 %v4226_v40, 0.0  ;;  %v4193_v32 = vmul.f32 %v7030_v14, %v4172_v42  ;;  %v4167_v5 = vadd.f32 %v4166_v20, %v4118_v54 }
 0x4df   :  { %4276 = vst.msk [vmem:[%s7196_s10 + $0x38] sm:$0xf] %vm36_vm4, %v4260_v18  ;;  %v4258_v22 = vpack.c.bf16 %v4242_v33, %v4242_v33  ;;  %v4213_v34 = vadd.f32 %v7036_v61, %v4193_v32  ;;  %v4191_v52 = vmul.f32 %v7030_v14, %v4167_v5 }
 0x4e1   :  { %4274 = vst.msk [vmem:[%s7196_s10 + $0x30] sm:$0xf] %vm36_vm4, %v4258_v22  ;;  %v4229_v43 = vadd.f32 %v4213_v34, %v7224_v29  ;;  %v4211_v21 = vadd.f32 %v7036_v61, %v4191_v52 }
 0x4e3   :  { %v4245_v62 = vmax.f32 %v4229_v43, 0.0  ;;  %v4227_v8 = vadd.f32 %v4211_v21, %v7225_v9 }
 0x4e5   :  { %v4261_v50 = vpack.c.bf16 %v4245_v62, %v4245_v62  ;;  %v4243_v60 = vmax.f32 %v4227_v8, 0.0 }
 0x4e7   :  { %4277 = vst.msk [vmem:[%s7196_s10 + $0x3c] sm:$0xf] %vm36_vm4, %v4261_v50  ;;  %v4259_v14 = vpack.c.bf16 %v4243_v60, %v4243_v60 }
 0x4e9   :  { %4275 = vst.msk [vmem:[%s7196_s10 + $0x34] sm:$0xf] %vm36_vm4, %v4259_v14 }

// kernel: vqvae_encoder_forward.3
= control target key start
LH: loop header
LB: loop body
LE: loop exit
PB: predicated region body
PF: predicated region fallthrough
CT: control target
= control target key end

     0   :  { %vm88_vm0 = vcmask 1041408   ;;  %vm91_vm1 = vcmask 1043458   ;;  %vm110_vm2 = vsmask.f32 1280  ;;  %vm111_vm3 = vsmask.f32 3336  ;;  %s7200_s1 = inlined_call_operand.vmem [shape: bf16[512,64], index: 1, kind: input, shape index: {}]   ;;  %s7201_s0 = inlined_call_operand.vmem [shape: bf16[2,5,5,128], index: 0, kind: input, shape index: {}]   ;;  %s7202_s2 = inlined_call_operand.vmem [shape: f32[1,64], index: 2, kind: input, shape index: {}]   ;;  %s7203_s3 = inlined_call_operand.vmem [shape: f32[1,64], index: 3, kind: input, shape index: {}]   ;;  %s7204_s4 = inlined_call_operand.vmem [shape: bf16[576,64], index: 4, kind: input, shape index: {}]   ;;  %s7205_s5 = inlined_call_operand.vmem [shape: f32[1,64], index: 5, kind: input, shape index: {}]   ;;  %s7206_s6 = inlined_call_operand.vmem [shape: f32[1,64], index: 6, kind: input, shape index: {}]   ;;  %s7207_s7 = inlined_call_operand.vmem [shape: bf16[576,64], index: 7, kind: input, shape index: {}]   ;;  %s7208_s8 = inlined_call_operand.vmem [shape: f32[1,64], index: 8, kind: input, shape index: {}]   ;;  %s7209_s9 = inlined_call_operand.vmem [shape: f32[1,64], index: 9, kind: input, shape index: {}]   ;;  %s7210_s10 = inlined_call_operand.vmem [shape: bf16[576,128], index: 10, kind: input, shape index: {}]   ;;  %s7211_s11 = inlined_call_operand.vmem [shape: f32[1,128], index: 11, kind: input, shape index: {}]   ;;  %s7212_s12 = inlined_call_operand.vmem [shape: f32[1,128], index: 12, kind: input, shape index: {}]   ;;  %s7213_s13 = inlined_call_operand.vmem [shape: f32[32,128], index: 13, kind: output, shape index: {}]  }
   0x1   :  { %v5247_v0 = vld [vmem:[%s7200_s1 + $0xb8] sm:$0xff]  ;;  %v5246_v3 = vld [vmem:[%s7200_s1 + $0xb0] sm:$0xff]  ;;  %v5245_v8 = vld [vmem:[%s7200_s1 + $0xa8] sm:$0xff]  ;;  %vm113_vm4 = vsmask.f32 5392  ;;  %vm45_vm9 = vcmask 518144  }
   0x2   :  { %v5231_v1 = vld [vmem:[%s7200_s1 + $0x38] sm:$0xff]  ;;  %744 = vmatpush.bf16.msra.mxu2 %v5247_v0  ;;  %v5230_v4 = vld [vmem:[%s7200_s1 + $0x30] sm:$0xff]  ;;  %v5229_v9 = vld [vmem:[%s7200_s1 + $0x28] sm:$0xff]  ;;  %vm115_vm5 = vsmask.f32 7448  ;;  %vm1047_vm12 = vcmask 1040384  }
   0x3   :  { %v5239_v2 = vld [vmem:[%s7200_s1 + $0x78] sm:$0xff]  ;;  %706 = vmatpush.bf16.msra.mxu0 %v5231_v1  ;;  %v5238_v6 = vld [vmem:[%s7200_s1 + $0x70] sm:$0xff]  ;;  %v5237_v10 = vld [vmem:[%s7200_s1 + $0x68] sm:$0xff]  ;;  %vm846_vm10 = vsmask.f32 2306  ;;  %vm1048_vm13 = vcmask 1042434  }
   0x4   :  { %v5255_v5 = vld [vmem:[%s7200_s1 + $0xf8] sm:$0xff]  ;;  %725 = vmatpush.bf16.msra.mxu1 %v5239_v2  ;;  %v5254_v7 = vld [vmem:[%s7200_s1 + $0xf0] sm:$0xff]  ;;  %v5253_v11 = vld [vmem:[%s7200_s1 + $0xe8] sm:$0xff]  ;;  %vm1050_vm15 = vcmask 1044484  }
   0x5   :  { %763 = vmatpush.bf16.msra.mxu3 %v5255_v5  ;;  %v5244_v12 = vld [vmem:[%s7200_s1 + $0xa0] sm:$0xff]  ;;  %v5537_v16 = vld [vmem:[%s7201_s0 + $0x8] sm:$0x7]  ;;  %v5548_v19 = vld [vmem:[%s7201_s0 + $0xc] sm:$0x7] }
   0x6   :  { %745 = vmatpush.bf16.msra.mxu2 %v5246_v3  ;;  %v5228_v13 = vld [vmem:[%s7200_s1 + $0x20] sm:$0xff]  ;;  %v86_v22 = vrot.slane %v5537_v16, 2  ;;  %v87_v23 = vrot.slane %v5548_v19, 2  ;;  %70 = vst [vmem:[#allocation1 + $0x10] ss:$2 sm:$0xff] %v5537_v16  ;;  %v5243_v24 = vld [vmem:[%s7200_s1 + $0x98] sm:$0xff]  ;;  %vm5584_vm6 = vmor %vm110_vm2, %vm111_vm3 }
   0x7   :  { %707 = vmatpush.bf16.msra.mxu0 %v5230_v4  ;;  %v58_v14 = vld [vmem:[%s7201_s0] sm:$0x7]  ;;  %v5532_v15 = vld [vmem:[%s7201_s0 + $0x4] sm:$0x7]  ;;  %v5227_v25 = vld [vmem:[%s7200_s1 + $0x18] sm:$0xff]  ;;  %vm936_vm2 = vcmask 519168  }
   0x8   :  { %726 = vmatpush.bf16.msra.mxu1 %v5238_v6  ;;  %v5236_v17 = vld [vmem:[%s7200_s1 + $0x60] sm:$0xff]  ;;  %64 = vst [vmem:[#allocation1] ss:$2 sm:$0xff] %v58_v14  ;;  %v84_v20 = vrot.slane %v58_v14, 2  ;;  %v85_v21 = vrot.slane %v5532_v15, 2  ;;  %v5235_v29 = vld [vmem:[%s7200_s1 + $0x58] sm:$0xff]  ;;  %v101_v32 = vsel %vm88_vm0, %v5537_v16, %v86_v22  ;;  %v102_v33 = vsel %vm91_vm1, %v5537_v16, %v86_v22  ;;  %vm5608_vm7 = vmor %vm5584_vm6, %vm113_vm4 }
   0x9   :  { %764 = vmatpush.bf16.msra.mxu3 %v5254_v7  ;;  %v5252_v18 = vld [vmem:[%s7200_s1 + $0xe0] sm:$0xff]  ;;  %67 = vst [vmem:[#allocation1 + $0x1] ss:$2 sm:$0xff] %v5532_v15  ;;  %v5251_v34 = vld [vmem:[%s7200_s1 + $0xd8] sm:$0xff]  ;;  %v104_v36 = vrot.slane %v102_v33, 2  ;;  %v106_v37 = vsel %vm88_vm0, %v5548_v19, %v87_v23  ;;  %v107_v38 = vsel %vm91_vm1, %v5548_v19, %v87_v23  ;;  %v5242_v40 = vld [vmem:[%s7200_s1 + $0x90] sm:$0xff] }
   0xa   :  { %746 = vmatpush.bf16.msra.mxu2 %v5245_v8  ;;  %73 = vst [vmem:[#allocation1 + $0x11] ss:$2 sm:$0xff] %v5548_v19  ;;  %v90_v26 = vsel %vm88_vm0, %v58_v14, %v84_v20  ;;  %v92_v27 = vsel %vm91_vm1, %v58_v14, %v84_v20  ;;  %v96_v28 = vsel %vm88_vm0, %v5532_v15, %v85_v21  ;;  %v109_v41 = vrot.slane %v107_v38, 2  ;;  %v5226_v45 = vld [vmem:[%s7200_s1 + $0x10] sm:$0xff]  ;;  %v5241_v57 = vld [vmem:[%s7200_s1 + $0x88] sm:$0xff]  ;;  %vm5621_vm8 = vmor %vm5608_vm7, %vm115_vm5 }
   0xb   :  { %708 = vmatpush.bf16.msra.mxu0 %v5229_v9  ;;  %v94_v30 = vrot.slane %v92_v27, 2  ;;  %v97_v31 = vsel %vm91_vm1, %v5532_v15, %v85_v21  ;;  %v117_v42 = vshrl.u32 %v90_v26, 16  ;;  %v120_v43 = vshll.u32 %v90_v26, 16  ;;  %v5234_v46 = vld [vmem:[%s7200_s1 + $0x50] sm:$0xff]  ;;  %v5225_v3 = vld [vmem:[%s7200_s1 + $0x8] sm:$0xff]  ;;  %v5240_v22 = vld [vmem:[%s7200_s1 + $0x80] sm:$0xff] }
   0xc   :  { %727 = vmatpush.bf16.msra.mxu1 %v5237_v10  ;;  %v99_v35 = vrot.slane %v97_v31, 2  ;;  %v130_v47 = vshrl.u32 %v96_v28, 16  ;;  %v133_v48 = vshll.u32 %v96_v28, 16  ;;  %v143_v50 = vshrl.u32 %v101_v32, 16  ;;  %v5250_v51 = vld [vmem:[%s7200_s1 + $0xd0] sm:$0xff]  ;;  %v5233_v9 = vld [vmem:[%s7200_s1 + $0x48] sm:$0xff]  ;;  %vm5759_vm11 = vmand %vm45_vm9, %vm846_vm10 }
   0xd   :  { %765 = vmatpush.bf16.msra.mxu3 %v5253_v11  ;;  %v126_v44 = vshll.u32 %v94_v30, 16  ;;  %v5603_v52 = vld [vmem:[%s7201_s0 + $0x10] sm:$0x7]  ;;  %v119_v55 = vrot.slane %v117_v42, 6  ;;  %v122_v56 = vrot.slane %v120_v43, 7  ;;  %v146_v0 = vshll.u32 %v101_v32, 16  ;;  %vm1049_vm14 = vmor %vm1047_vm12, %vm1048_vm13 }
   0xe   :  { %747 = vmatpush.bf16.msra.mxu2 %v5244_v12  ;;  %v139_v49 = vshll.u32 %v99_v35, 16  ;;  %v132_v59 = vrot.slane %v130_v47, 6  ;;  %v135_v60 = vrot.slane %v133_v48, 7  ;;  %v145_v61 = vrot.slane %v143_v50, 6  ;;  %v5224_v23 = vld [vmem:[%s7200_s1] sm:$0xff]  ;;  %v5249_v27 = vld [vmem:[%s7200_s1 + $0xc8] sm:$0xff]  ;;  %vm1051_vm3 = vmor %vm1049_vm14, %vm1050_vm15 }
   0xf   :  { %709 = vmatpush.bf16.msra.mxu0 %v5228_v13  ;;  %v128_v58 = vrot.slane %v126_v44, 7  ;;  %v123_v63 = vor.u32 %v122_v56, %v119_v55  ;;  %v152_v1 = vshll.u32 %v104_v36, 16  ;;  %v156_v2 = vshrl.u32 %v106_v37, 16  ;;  %v5232_v28 = vld [vmem:[%s7200_s1 + $0x40] sm:$0xff] }
  0x10   :  { %728 = vmatpush.bf16.msra.mxu1 %v5236_v17  ;;  %v74_v53 = vld.sshfl [vmem:[#allocation1] sm:$0xff pattern:$0x75643120]  ;;  %v136_v5 = vor.u32 %v135_v60, %v132_v59  ;;  %v141_v6 = vrot.slane %v139_v49, 7  ;;  %v159_v7 = vshll.u32 %v106_v37, 16  ;;  %v165_v8 = vshll.u32 %v109_v41, 16 }
  0x11   :  { %766 = vmatpush.bf16.msra.mxu3 %v5252_v18  ;;  %78 = vst [vmem:[#allocation3] sm:$0xf] %v74_v53  ;;  %v75_v62 = vld.sshfl [vmem:[#allocation1 + $0x10] sm:$0xff pattern:$0x75643120]  ;;  %v124_v10 = vrot.slane %v123_v63, 2 }
  0x12   :  { %748 = vmatpush.bf16.msra.mxu2 %v5243_v24  ;;  %79 = vst [vmem:[#allocation3 + $0x14] sm:$0xf] %v75_v62  ;;  %v148_v11 = vrot.slane %v146_v0, 7  ;;  %v158_v12 = vrot.slane %v156_v2, 6  ;;  %v137_v13 = vrot.slane %v136_v5, 2  ;;  %v161_v14 = vrot.slane %v159_v7, 7 }
  0x13   :  { %710 = vmatpush.bf16.msra.mxu0 %v5227_v25  ;;  %v201_v17 = vrot.slane %v5603_v52, 2  ;;  %v129_v18 = vsel %vm5621_vm8, %v124_v10, %v128_v58  ;;  %v154_v21 = vrot.slane %v152_v1, 7  ;;  %v167_v26 = vrot.slane %v165_v8, 7  ;;  %v5248_v32 = vld [vmem:[%s7200_s1 + $0xc0] sm:$0xff] }
  0x14   :  { %729 = vmatpush.bf16.msra.mxu1 %v5235_v29  ;;  %v149_v20 = vor.u32 %v148_v11, %v145_v61  ;;  %v142_v24 = vsel %vm5621_vm8, %v137_v13, %v141_v6  ;;  %v162_v25 = vor.u32 %v161_v14, %v158_v12  ;;  %170 = vst [vmem:[#allocation1] ss:$2 sm:$0xff] %v129_v18  ;;  %vm1052_vm4 = vcmask 1046534  }
  0x15   :  { %767 = vmatpush.bf16.msra.mxu3 %v5251_v34  ;;  %173 = vst [vmem:[#allocation1 + $0x1] ss:$2 sm:$0xff] %v142_v24  ;;  %v203_v33 = vsel %vm88_vm0, %v5603_v52, %v201_v17  ;;  %vm5828_vm5 = vmor %vm1051_vm3, %vm1052_vm4  ;;  %vm1040_vm6 = vcmask 1043968   ;;  %vm1905_vm7 = vcmask 523264  }
  0x16   :  { %749 = vmatpush.bf16.msra.mxu2 %v5242_v40  ;;  %v150_v29 = vrot.slane %v149_v20, 2  ;;  %v163_v31 = vrot.slane %v162_v25, 2  ;;  %v207_v38 = vshrl.u32 %v203_v33, 16  ;;  %v210_v39 = vshll.u32 %v203_v33, 16 }
  0x17   :  { %711 = vmatpush.bf16.msra.mxu0 %v5226_v45  ;;  %v204_v40 = vsel %vm91_vm1, %v5603_v52, %v201_v17  ;;  %v5661_v45 = vld [vmem:[%s7201_s0 + $0x14] sm:$0x7] }
  0x18   :  { %730 = vmatpush.bf16.msra.mxu1 %v5234_v46  ;;  %v4464_v30 = vld [vmem:[#allocation3] sm:$0xf]  ;;  %v155_v34 = vsel %vm5621_vm8, %v150_v29, %v154_v21  ;;  %v168_v36 = vsel %vm5621_vm8, %v163_v31, %v167_v26  ;;  %v206_v42 = vrot.slane %v204_v40, 2  ;;  %v209_v43 = vrot.slane %v207_v38, 6 }
  0x19   :  { %768 = vmatpush.bf16.msra.mxu3 %v5250_v51  ;;  %v5218_v35 = vld [vmem:[#allocation3 + $0x10] sm:$0xf0]  ;;  %176 = vst [vmem:[#allocation1 + $0x10] ss:$2 sm:$0xff] %v155_v34  ;;  %v212_v44 = vrot.slane %v210_v39, 7  ;;  %v261_v48 = vrot.slane %v5661_v45, 2 }
  0x1a   :  { %750 = vmatpush.bf16.msra.mxu2 %v5241_v57  ;;  %v4465_v37 = vor.u32 %v5218_v35, %v4464_v30  ;;  %179 = vst [vmem:[#allocation1 + $0x11] ss:$2 sm:$0xff] %v168_v36  ;;  %v5666_v46 = vld [vmem:[%s7201_s0 + $0x18] sm:$0x7]  ;;  %v216_v49 = vshll.u32 %v206_v42, 16 }
  0x1b   :  { %712 = vmatpush.bf16.msra.mxu0 %v5225_v3  ;;  %v262_v50 = vrot.slane %v5666_v46, 2  ;;  %v5680_v51 = vld [vmem:[%s7201_s0 + $0x20] sm:$0x7]  ;;  %v266_v54 = vsel %vm88_vm0, %v5661_v45, %v261_v48 }
  0x1c   :  { %731 = vmatpush.bf16.msra.mxu1 %v5233_v9  ;;  %v180_v41 = vld.sshfl [vmem:[#allocation1] sm:$0xff pattern:$0x75643120]  ;;  %v264_v57 = vrot.slane %v5680_v51, 2  ;;  %v285_v61 = vshrl.u32 %v266_v54, 16  ;;  %v288_v62 = vshll.u32 %v266_v54, 16 }
  0x1d   :  { %769 = vmatpush.bf16.msra.mxu3 %v5249_v27  ;;  %186 = vst [vmem:[#allocation1] ss:$2 sm:$0xff] %v5532_v15  ;;  %v5671_v15 = vld [vmem:[%s7201_s0 + $0x1c] sm:$0x7]  ;;  %v271_v58 = vsel %vm88_vm0, %v5666_v46, %v262_v50  ;;  %v272_v59 = vsel %vm91_vm1, %v5666_v46, %v262_v50 }
  0x1e   :  { %751 = vmatpush.bf16.msra.mxu2 %v5240_v22  ;;  %188 = vst [vmem:[#allocation1 + $0x1] ss:$2 sm:$0xff] %v5537_v16  ;;  %v213_v16 = vor.u32 %v212_v44, %v209_v43  ;;  %v263_v53 = vrot.slane %v5671_v15, 2  ;;  %v298_v0 = vshrl.u32 %v271_v58, 16  ;;  %v301_v1 = vshll.u32 %v271_v58, 16 }
  0x1f   :  { %713 = vmatpush.bf16.msra.mxu0 %v5224_v23  ;;  %184 = vst [vmem:[#allocation3 + $0x4] sm:$0xf] %v180_v41  ;;  %v281_v6 = vsel %vm88_vm0, %v5680_v51, %v264_v57  ;;  %v274_v8 = vrot.slane %v272_v59, 2  ;;  %v282_v10 = vsel %vm91_vm1, %v5680_v51, %v264_v57  ;;  %v287_v13 = vrot.slane %v285_v61, 6 }
  0x20   :  { %732 = vmatpush.bf16.msra.mxu1 %v5232_v28  ;;  %v214_v56 = vrot.slane %v213_v16, 2  ;;  %v276_v60 = vsel %vm88_vm0, %v5671_v15, %v263_v53  ;;  %v277_v9 = vsel %vm91_vm1, %v5671_v15, %v263_v53  ;;  %v290_v14 = vrot.slane %v288_v62, 7 }
  0x21   :  { %770 = vmatpush.bf16.msra.mxu3 %v5248_v32  ;;  %v181_v47 = vld.sshfl [vmem:[#allocation1 + $0x10] sm:$0xff pattern:$0x75643120]  ;;  %v311_v11 = vshrl.u32 %v276_v60, 16  ;;  %v314_v17 = vshll.u32 %v276_v60, 16  ;;  %v300_v18 = vrot.slane %v298_v0, 6 }
  0x22   :  { %714 = vmatmul.bf16.vlgmr.msra.gmra.mxu0 %v4465_v37  ;;  %190 = vst [vmem:[#allocation1 + $0x10] ss:$2 sm:$0xff] %v5548_v19  ;;  %v218_v19 = vrot.slane %v216_v49, 7  ;;  %v303_v20 = vrot.slane %v301_v1, 7  ;;  %v324_v21 = vshrl.u32 %v281_v6, 16  ;;  %v327_v22 = vshll.u32 %v281_v6, 16 }
  0x23   :  { %193 = vst [vmem:[#allocation1 + $0x11] ss:$2 sm:$0xff] %v5603_v52  ;;  %v267_v52 = vsel %vm91_vm1, %v5661_v45, %v261_v48  ;;  %v279_v23 = vrot.slane %v277_v9, 2  ;;  %v313_v26 = vrot.slane %v311_v11, 6  ;;  %v291_v29 = vor.u32 %v290_v14, %v287_v13 }
  0x24   :  { %185 = vst [vmem:[#allocation3 + $0x18] sm:$0xf] %v181_v47  ;;  %v219_v3 = vsel %vm5621_vm8, %v214_v56, %v218_v19  ;;  %v269_v5 = vrot.slane %v267_v52, 2  ;;  %v316_v30 = vrot.slane %v314_v17, 7  ;;  %v304_v31 = vor.u32 %v303_v20, %v300_v18 }
  0x25   :  { %v194_v55 = vld.sshfl [vmem:[#allocation1] sm:$0xff pattern:$0x75643120]  ;;  %v307_v32 = vshll.u32 %v274_v8, 16  ;;  %v326_v33 = vrot.slane %v324_v21, 6  ;;  %v292_v38 = vrot.slane %v291_v29, 2 }
  0x26   :  { %198 = vst [vmem:[#allocation3 + $0x8] sm:$0xf] %v194_v55  ;;  %v5216_v63 = vld [vmem:[#allocation3 + $0x4] sm:$0xf]  ;;  %v294_v25 = vshll.u32 %v269_v5, 16  ;;  %v317_v40 = vor.u32 %v316_v30, %v313_v26  ;;  %v320_v41 = vshll.u32 %v279_v23, 16 }
  0x27   :  { %220 = vst [vmem:[#allocation1] ss:$2 sm:$0xff] %v142_v24  ;;  %v284_v24 = vrot.slane %v282_v10, 2  ;;  %v305_v42 = vrot.slane %v304_v31, 2  ;;  %v309_v43 = vrot.slane %v307_v32, 7 }
  0x28   :  { %222 = vst [vmem:[#allocation1 + $0x1] ss:$2 sm:$0xff] %v155_v34  ;;  %v329_v34 = vrot.slane %v327_v22, 7  ;;  %v296_v39 = vrot.slane %v294_v25, 7  ;;  %v318_v16 = vrot.slane %v317_v40, 2  ;;  %v322_v49 = vrot.slane %v320_v41, 7 }
  0x29   :  { %v333_v47 = vshll.u32 %v284_v24, 16  ;;  %v310_v50 = vsel %vm5621_vm8, %v305_v42, %v309_v43 }
  0x2a   :  { %v195_v2 = vld.sshfl [vmem:[#allocation1 + $0x10] sm:$0xff pattern:$0x75643120]  ;;  %v330_v44 = vor.u32 %v329_v34, %v326_v33  ;;  %v297_v48 = vsel %vm5621_vm8, %v292_v38, %v296_v39  ;;  %v323_v58 = vsel %vm5621_vm8, %v318_v16, %v322_v49  ;;  %v5744_v38 = vld [vmem:[%s7203_s3] ss:$0 sm:$0xff] }
  0x2b   :  { %199 = vst [vmem:[#allocation3 + $0x1c] sm:$0xf] %v195_v2  ;;  %v4466_v7 = vld [vmem:[#allocation3 + $0x14] sm:$0xf0]  ;;  %v335_v54 = vrot.slane %v333_v47, 7 }
  0x2c   :  { %224 = vst [vmem:[#allocation1 + $0x10] ss:$2 sm:$0xff] %v168_v36  ;;  %v4469_v12 = vor.u32 %v5216_v63, %v4466_v7  ;;  %v331_v53 = vrot.slane %v330_v44, 2 }
  0x2d   :  { %227 = vst [vmem:[#allocation1 + $0x11] ss:$2 sm:$0xff] %v219_v3  ;;  %v4472_v27 = vld [vmem:[#allocation3 + $0x8] sm:$0xf] }
  0x2e   :  { %733 = vmatmul.bf16.vlgmr.msra.gmra.mxu1 %v4469_v12  ;;  %v336_v59 = vsel %vm5621_vm8, %v331_v53, %v335_v54 }
  0x2f   :  { %v228_v28 = vld.sshfl [vmem:[#allocation1] sm:$0xff pattern:$0x75643120] }
  0x30   :  { %232 = vst [vmem:[#allocation3 + $0xc] sm:$0xf] %v228_v28  ;;  %v5412_v28 = vmov 0  }
  0x31   :  { %241 = vst [vmem:[#allocation1] ss:$2 sm:$0xff] %v5661_v45  ;;  %v4461_v45 = vld [vmem:[%s7201_s0 + $0x24] sm:$0x7] }
  0x32   :  { %v5219_v35 = vld [vmem:[#allocation3 + $0x18] sm:$0xf0]  ;;  %244 = vst [vmem:[#allocation1 + $0x1] ss:$2 sm:$0xff] %v5666_v46  ;;  %v369_v19 = vrot.slane %v4461_v45, 2 }
  0x33   :  { %v4473_v36 = vor.u32 %v5219_v35, %v4472_v27  ;;  %46 = vst.msk [vmem:[#allocation2] sm:$0x7] %vm45_vm9, %v5412_v28  ;;  %v5739_v35 = vld [vmem:[%s7202_s2] ss:$0 sm:$0xff]  ;;  %s5413_s2 = smov 64  }
  0x34   :  { %v229_v37 = vld.sshfl [vmem:[#allocation1 + $0x10] sm:$0xff pattern:$0x75643120]  ;;  %v371_v60 = vsel %vm88_vm0, %v4461_v45, %v369_v19  ;;  %v372_v0 = vsel %vm91_vm1, %v4461_v45, %v369_v19  ;;  %47 = vst.msk [vmem:[#allocation2 + $0x4] sm:$0x7] %vm45_vm9, %v5412_v28 }
  0x35   :  { %752 = vmatmul.bf16.vlgmr.msra.gmra.mxu2 %v4473_v36  ;;  %233 = vst [vmem:[#allocation3 + $0x20] sm:$0xf] %v229_v37  ;;  %v375_v62 = vshrl.u32 %v371_v60, 16  ;;  %v378_v63 = vshll.u32 %v371_v60, 16  ;;  %v374_v2 = vrot.slane %v372_v0, 2 }
  0x36   :  { %247 = vst [vmem:[#allocation1 + $0x10] ss:$2 sm:$0xff] %v5671_v15 }
  0x37   :  { %250 = vst [vmem:[#allocation1 + $0x11] ss:$2 sm:$0xff] %v5680_v51  ;;  %v5217_v55 = vld [vmem:[#allocation3 + $0xc] sm:$0xf]  ;;  %v377_v3 = vrot.slane %v375_v62, 6  ;;  %v380_v5 = vrot.slane %v378_v63, 7 }
  0x38   :  { %v384_v9 = vshll.u32 %v374_v2, 16  ;;  %48 = vst.msk [vmem:[#allocation2 + $0x8] sm:$0x7] %vm45_vm9, %v5412_v28 }
  0x39   :  { %v251_v56 = vld.sshfl [vmem:[#allocation1] sm:$0xff pattern:$0x75643120]  ;;  %v381_v8 = vor.u32 %v380_v5, %v377_v3  ;;  %51 = vst.msk [vmem:[#allocation2 + $0x14] sm:$0x7] %vm45_vm9, %v5412_v28 }
  0x3a   :  { %338 = vst [vmem:[#allocation1] ss:$2 sm:$0xff] %v297_v48  ;;  %v915_v29 = vld [vmem:[#allocation2] sm:$0x7] }
  0x3b   :  { %341 = vst [vmem:[#allocation1 + $0x1] ss:$2 sm:$0xff] %v310_v50  ;;  %v382_v13 = vrot.slane %v381_v8, 2  ;;  %v943_v48 = vrot.slane %v915_v29, 2 }
  0x3c   :  { %v4474_v57 = vld [vmem:[#allocation3 + $0x1c] sm:$0xf0]  ;;  %255 = vst [vmem:[#allocation3 + $0x28] sm:$0xf] %v251_v56 }
  0x3d   :  { %v4477_v52 = vor.u32 %v5217_v55, %v4474_v57  ;;  %52 = vst.msk [vmem:[#allocation2 + $0x18] sm:$0x7] %vm45_vm9, %v5412_v28  ;;  %v5754_v56 = vsel %vm88_vm0, %v915_v29, %v943_v48 }
  0x3e   :  { %v252_v61 = vld.sshfl [vmem:[#allocation1 + $0x10] sm:$0xff pattern:$0x75643120]  ;;  %57 = vst.msk [vmem:[#allocation2 + $0x2c] sm:$0x7] %vm45_vm9, %v5412_v28  ;;  %v967_v62 = vshrl.u32 %v5754_v56, 16 }
  0x3f   :  { %771 = vmatmul.bf16.vlgmr.msra.gmra.mxu3 %v4477_v52  ;;  %344 = vst [vmem:[#allocation1 + $0x10] ss:$2 sm:$0xff] %v323_v58  ;;  %v970_v63 = vshll.u32 %v5754_v56, 16  ;;  %v851_v5 = vld [vmem:[#allocation2 + $0x8] sm:$0x7] }
  0x40   :  { %347 = vst [vmem:[#allocation1 + $0x11] ss:$2 sm:$0xff] %v336_v59 }
  0x41   :  { %256 = vst [vmem:[#allocation3 + $0x3c] sm:$0xf] %v252_v61  ;;  %v848_v61 = vld [vmem:[#allocation2 + $0x4] sm:$0x7] }
  0x42   :  { %v348_v1 = vld.sshfl [vmem:[#allocation1] sm:$0xff pattern:$0x75643120]  ;;  %49 = vst.msk [vmem:[#allocation2 + $0xc] sm:$0x7] %vm45_vm9, %v5412_v28 }
  0x43   :  { %354 = vst [vmem:[#allocation1] ss:$2 sm:$0xff] %v5666_v46  ;;  %v4480_v6 = vld [vmem:[#allocation3 + $0x28] sm:$0xf]  ;;  %v386_v46 = vrot.slane %v384_v9, 7 }
  0x44   :  { %356 = vst [vmem:[#allocation1 + $0x1] ss:$2 sm:$0xff] %v5671_v15 }
  0x45   :  { %352 = vst [vmem:[#allocation3 + $0x2c] sm:$0xf] %v348_v1  ;;  %v387_v17 = vsel %vm5621_vm8, %v382_v13, %v386_v46 }
  0x46   :  { %50 = vst.msk [vmem:[#allocation2 + $0x10] sm:$0x7] %vm45_vm9, %v5412_v28 }
  0x47   :  { %v349_v7 = vld.sshfl [vmem:[#allocation1 + $0x10] sm:$0xff pattern:$0x75643120]  ;;  %53 = vst.msk [vmem:[#allocation2 + $0x1c] sm:$0x7] %vm45_vm9, %v5412_v28 }
  0x48   :  { %358 = vst [vmem:[#allocation1 + $0x10] ss:$2 sm:$0xff] %v5680_v51  ;;  %v5222_v10 = vld [vmem:[#allocation3 + $0x38] sm:$0xf0] }
  0x49   :  { %361 = vst [vmem:[#allocation1 + $0x11] ss:$2 sm:$0xff] %v4461_v45  ;;  %v4481_v11 = vor.u32 %v5222_v10, %v4480_v6  ;;  %v5768_v6 = vsel %vm91_vm1, %v915_v29, %v943_v48 }
  0x4a   :  { %353 = vst [vmem:[#allocation3 + $0x40] sm:$0xf] %v349_v7  ;;  %v951_v46 = vrot.slane %v5768_v6, 2 }
  0x4b   :  { %719 = vmatmul.bf16.gmra.mxu0 %v4481_v11  ;;  %v362_v12 = vld.sshfl [vmem:[#allocation1] sm:$0xff pattern:$0x75643120]  ;;  %54 = vst.msk [vmem:[#allocation2 + $0x20] sm:$0x7] %vm45_vm9, %v5412_v28  ;;  %v969_v11 = vrot.slane %v967_v62, 6 }
  0x4c   :  { %366 = vst [vmem:[#allocation3 + $0x30] sm:$0xf] %v362_v12  ;;  %v5220_v14 = vld [vmem:[#allocation3 + $0x2c] sm:$0xf]  ;;  %v972_v12 = vrot.slane %v970_v63, 7 }
  0x4d   :  { %388 = vst [vmem:[#allocation1] ss:$2 sm:$0xff] %v310_v50 }
  0x4e   :  { %390 = vst [vmem:[#allocation1 + $0x1] ss:$2 sm:$0xff] %v323_v58 }
  0x4f   :  { %55 = vst.msk [vmem:[#allocation2 + $0x24] sm:$0x7] %vm45_vm9, %v5412_v28 }
  0x50   :  { %v363_v15 = vld.sshfl [vmem:[#allocation1 + $0x10] sm:$0xff pattern:$0x75643120]  ;;  %56 = vst.msk [vmem:[#allocation2 + $0x28] sm:$0x7] %vm45_vm9, %v5412_v28 }
  0x51   :  { %367 = vst [vmem:[#allocation3 + $0x44] sm:$0xf] %v363_v15  ;;  %v4482_v51 = vld [vmem:[#allocation3 + $0x3c] sm:$0xf0] }
  0x52   :  { %392 = vst [vmem:[#allocation1 + $0x10] ss:$2 sm:$0xff] %v336_v59  ;;  %v4485_v18 = vor.u32 %v5220_v14, %v4482_v51 }
  0x53   :  { %395 = vst [vmem:[#allocation1 + $0x11] ss:$2 sm:$0xff] %v387_v17  ;;  %v4488_v20 = vld [vmem:[#allocation3 + $0x30] sm:$0xf] }
  0x54   :  { %738 = vmatmul.bf16.gmra.mxu1 %v4485_v18 }
  0x55   :  { %v396_v21 = vld.sshfl [vmem:[#allocation1] sm:$0xff pattern:$0x75643120] }
  0x56   :  { %400 = vst [vmem:[#allocation3 + $0x34] sm:$0xf] %v396_v21  ;;  %v854_v21 = vld [vmem:[#allocation2 + $0xc] sm:$0x7] }
  0x57   :  { %922 = vst [vmem:[#allocation1] ss:$2 sm:$0xff] %v915_v29 }
  0x58   :  { %v5223_v22 = vld [vmem:[#allocation3 + $0x40] sm:$0xf0] }
  0x59   :  { %v4489_v23 = vor.u32 %v5223_v22, %v4488_v20  ;;  %v973_v20 = vor.u32 %v972_v12, %v969_v11  ;;  %v976_v22 = vshll.u32 %v951_v46, 16  ;;  %v4622_v11 = vrot.slane %v5754_v56, 9 }
  0x5a   :  { %v397_v24 = vld.sshfl [vmem:[#allocation1 + $0x10] sm:$0xff pattern:$0x75643120]  ;;  %v1056_v12 = vrot.slane %v951_v46, 7 }
  0x5b   :  { %757 = vmatmul.bf16.gmra.mxu2 %v4489_v23  ;;  %401 = vst [vmem:[#allocation3 + $0x48] sm:$0xf] %v397_v24 }
  0x5c   :  { %v1057_v56 = vsel %vm5828_vm5, %v4622_v11, %v1056_v12 }
  0x5d   :  { %v5221_v25 = vld [vmem:[#allocation3 + $0x34] sm:$0xf] }
  0x62   :  { %v4490_v26 = vld [vmem:[#allocation3 + $0x44] sm:$0xf0] }
  0x63   :  { %v4493_v27 = vor.u32 %v5221_v25, %v4490_v26  ;;  %v857_v26 = vld [vmem:[#allocation2 + $0x10] sm:$0x7] }
  0x65   :  { %776 = vmatmul.bf16.gmra.mxu3 %v4493_v27 }
  0x9f   :  { %v715_v30 = vpop.f32.mrf.mxu0 }
  0xa7   :  { %v717_v39 = vpop.f32.mrf.mxu0 }
  0xab   :  { %v734_v31 = vpop.f32.mrf.mxu1 }
  0xac   :  { %v735_v32 = vadd.f32 %v734_v31, %v715_v30 }
  0xb3   :  { %v736_v40 = vpop.f32.mrf.mxu1 }
  0xb4   :  { %v737_v43 = vadd.f32 %v736_v40, %v717_v39 }
  0xb8   :  { %v753_v33 = vpop.f32.mrf.mxu2 }
  0xb9   :  { %v754_v34 = vadd.f32 %v753_v33, %v735_v32  ;;  %v974_v32 = vrot.slane %v973_v20, 2  ;;  %v978_v33 = vrot.slane %v976_v22, 7 }
  0xc0   :  { %v755_v42 = vpop.f32.mrf.mxu2 }
  0xc1   :  { %v756_v47 = vadd.f32 %v755_v42, %v737_v43 }
  0xc2   :  { %v772_v36 = vpop.f32.mrf.mxu3 }
  0xc3   :  { %v773_v37 = vadd.f32 %v772_v36, %v754_v34 }
  0xc5   :  { %v786_v41 = vmul.f32 %v5739_v35, %v773_v37 }
  0xc7   :  { %v794_v44 = vadd.f32 %v5744_v38, %v786_v41 }
  0xc9   :  { %v5748_v45 = vmax.f32 %v794_v44, 0.0 }
  0xca   :  { %v774_v16 = vpop.f32.mrf.mxu3 }
  0xcb   :  { %v804_v49 = vrot.slane %v5748_v45, 4  ;;  %v808_v50 = vpack.c.bf16 %v5748_v45, %v5748_v45  ;;  %v775_v53 = vadd.f32 %v774_v16, %v756_v47  ;;  %v979_v47 = vsel %vm5621_vm8, %v974_v32, %v978_v33 }
  0xcd   :  { %v809_v54 = vpack.c.bf16 %v804_v49, %v804_v49  ;;  %v813_v55 = vshrl.u32 %v808_v50, 16  ;;  %v787_v19 = vmul.f32 %v5739_v35, %v775_v53  ;;  %v816_v58 = vshll.u32 %v808_v50, 16 }
  0xcf   :  { %v815_v57 = vrot.slane %v813_v55, 7  ;;  %v820_v52 = vshrl.u32 %v809_v54, 16  ;;  %v795_v59 = vadd.f32 %v5744_v38, %v787_v19  ;;  %v823_v2 = vshll.u32 %v809_v54, 16 }
  0xd1   :  { %v818_v0 = vor.u32 %v816_v58, %v815_v57  ;;  %v822_v1 = vrot.slane %v820_v52, 7  ;;  %v5765_v3 = vmax.f32 %v795_v59, 0.0 }
  0xd3   :  { %v825_v7 = vor.u32 %v823_v2, %v822_v1  ;;  %v849_v8 = vsel %vm5759_vm11, %v818_v0, %v848_v61  ;;  %v805_v9 = vrot.slane %v5765_v3, 4  ;;  %v810_v10 = vpack.c.bf16 %v5765_v3, %v5765_v3 }
  0xd4   :  { %850 = vst [vmem:[#allocation2 + $0x4] sm:$0x7] %v849_v8 }
  0xd5   :  { %v852_v13 = vsel %vm5759_vm11, %v825_v7, %v851_v5  ;;  %v811_v14 = vpack.c.bf16 %v805_v9, %v805_v9  ;;  %v827_v15 = vshrl.u32 %v810_v10, 16  ;;  %v830_v51 = vshll.u32 %v810_v10, 16 }
  0xd6   :  { %853 = vst [vmem:[#allocation2 + $0x8] sm:$0x7] %v852_v13 }
  0xd7   :  { %v829_v17 = vrot.slane %v827_v15, 7  ;;  %v834_v18 = vshrl.u32 %v811_v14, 16  ;;  %v837_v25 = vshll.u32 %v811_v14, 16 }
  0xd9   :  { %v832_v23 = vor.u32 %v830_v51, %v829_v17  ;;  %v836_v24 = vrot.slane %v834_v18, 7  ;;  %v5387_v18 = vld [vmem:[%s7210_s10 + $0xe8] sm:$0xff] }
  0xdb   :  { %v5780_v27 = vld [vmem:[#allocation2 + $0x4] sm:$0x7]  ;;  %v839_v28 = vor.u32 %v837_v25, %v836_v24  ;;  %v855_v29 = vsel %vm5759_vm11, %v832_v23, %v854_v21 }
  0xdc   :  { %925 = vst [vmem:[#allocation1 + $0x1] ss:$2 sm:$0xff] %v5780_v27  ;;  %v944_v30 = vrot.slane %v5780_v27, 2 }
  0xdd   :  { %v5786_v31 = vld [vmem:[#allocation2 + $0x8] sm:$0x7]  ;;  %856 = vst [vmem:[#allocation2 + $0xc] sm:$0x7] %v855_v29  ;;  %v858_v34 = vsel %vm5759_vm11, %v839_v28, %v857_v26 }
  0xde   :  { %928 = vst [vmem:[#allocation1 + $0x10] ss:$2 sm:$0xff] %v5786_v31  ;;  %v945_v36 = vrot.slane %v5786_v31, 2  ;;  %v5794_v37 = vsel %vm88_vm0, %v5780_v27, %v944_v30  ;;  %v954_v39 = vsel %vm91_vm1, %v5780_v27, %v944_v30 }
  0xdf   :  { %v956_v40 = vrot.slane %v954_v39, 2  ;;  %v980_v41 = vshrl.u32 %v5794_v37, 16  ;;  %v983_v42 = vshll.u32 %v5794_v37, 16  ;;  %859 = vst [vmem:[#allocation2 + $0x10] sm:$0x7] %v858_v34  ;;  %v4623_v6 = vrot.slane %v5794_v37, 9 }
  0xe0   :  { %v5802_v43 = vsel %vm88_vm0, %v5786_v31, %v945_v36  ;;  %v959_v44 = vsel %vm91_vm1, %v5786_v31, %v945_v36 }
  0xe1   :  { %v982_v48 = vrot.slane %v980_v41, 6  ;;  %v985_v16 = vrot.slane %v983_v42, 7  ;;  %v989_v49 = vshll.u32 %v956_v40, 16  ;;  %v961_v50 = vrot.slane %v959_v44, 2 }
  0xe2   :  { %v993_v53 = vshrl.u32 %v5802_v43, 16  ;;  %v996_v54 = vshll.u32 %v5802_v43, 16  ;;  %v1060_v20 = vrot.slane %v956_v40, 7  ;;  %v4624_v33 = vrot.slane %v5802_v43, 9 }
  0xe3   :  { %v932_v55 = vld.sshfl [vmem:[#allocation1] sm:$0xff pattern:$0x75643120]  ;;  %v986_v19 = vor.u32 %v985_v16, %v982_v48  ;;  %v991_v61 = vrot.slane %v989_v49, 7  ;;  %v1002_v0 = vshll.u32 %v961_v50, 16  ;;  %v1064_v29 = vrot.slane %v961_v50, 7 }
  0xe4   :  { %v995_v57 = vrot.slane %v993_v53, 6  ;;  %v998_v58 = vrot.slane %v996_v54, 7  ;;  %1020 = vst [vmem:[#allocation1] ss:$2 sm:$0xff] %v979_v47  ;;  %v5810_v52 = vld [vmem:[#allocation2 + $0xc] sm:$0x7]  ;;  %v1061_v25 = vsel %vm5828_vm5, %v4623_v6, %v1060_v20 }
  0xe5   :  { %v987_v59 = vrot.slane %v986_v19, 2  ;;  %931 = vst [vmem:[#allocation1 + $0x11] ss:$2 sm:$0xff] %v5810_v52  ;;  %v946_v62 = vrot.slane %v5810_v52, 2  ;;  %v1004_v13 = vrot.slane %v1002_v0, 7  ;;  %v5853_v36 = vsel %vm5828_vm5, %v4624_v33, %v1064_v29  ;;  %v739_v19 = vpop.f32.mrf.mxu1  ;;  %v758_v0 = vpop.f32.mrf.mxu2 }
  0xe6   :  { %v999_v63 = vor.u32 %v998_v58, %v995_v57  ;;  %937 = vst.msk [vmem:[#allocation3] sm:$0xf] %vm936_vm2, %v932_v55  ;;  %v5845_v28 = vld [vmem:[#allocation2 + $0x10] sm:$0x7]  ;;  %v720_v57 = vpop.f32.mrf.mxu0 }
  0xe7   :  { %v992_v1 = vsel %vm5621_vm8, %v987_v59, %v991_v61  ;;  %v963_v2 = vsel %vm88_vm0, %v5810_v52, %v946_v62  ;;  %v964_v5 = vsel %vm91_vm1, %v5810_v52, %v946_v62  ;;  %v1108_v32 = vrot.slane %v5845_v28, 2  ;;  %v920_v62 = vld [vmem:[#allocation2 + $0x14] sm:$0x7] }
  0xe8   :  { %v1000_v7 = vrot.slane %v999_v63, 2  ;;  %1023 = vst [vmem:[#allocation1 + $0x1] ss:$2 sm:$0xff] %v992_v1  ;;  %v966_v8 = vrot.slane %v964_v5, 2  ;;  %v1006_v9 = vshrl.u32 %v963_v2, 16  ;;  %v1009_v10 = vshll.u32 %v963_v2, 16 }
  0xe9   :  { %v4625_v39 = vrot.slane %v963_v2, 9  ;;  %v1110_v40 = vsel %vm88_vm0, %v5845_v28, %v1108_v32  ;;  %v1111_v44 = vsel %vm91_vm1, %v5845_v28, %v1108_v32  ;;  %v740_v58 = vadd.f32 %v739_v19, %v720_v57  ;;  %v903_v19 = vld [vmem:[#allocation2 + $0x1c] sm:$0x7] }
  0xea   :  { %v1008_v14 = vrot.slane %v1006_v9, 6  ;;  %v1011_v15 = vrot.slane %v1009_v10, 7  ;;  %v1015_v17 = vshll.u32 %v966_v8, 16  ;;  %v5826_v51 = vsel %vm5621_vm8, %v1000_v7, %v1004_v13  ;;  %v777_v7 = vpop.f32.mrf.mxu3 }
  0xeb   :  { %v1068_v34 = vrot.slane %v966_v8, 7  ;;  %v1117_v42 = vshll.u32 %v1110_v40, 16  ;;  %v1113_v49 = vrot.slane %v1111_v44, 2  ;;  %v1181_v2 = vrot.slane %v920_v62, 2 }
  0xec   :  { %v933_v21 = vld.sshfl [vmem:[#allocation1 + $0x10] sm:$0xff pattern:$0x75643120]  ;;  %v1012_v22 = vor.u32 %v1011_v15, %v1008_v14  ;;  %v1017_v23 = vrot.slane %v1015_v17, 7  ;;  %v4626_v11 = vrot.slane %v1110_v40, 9 }
  0xed   :  { %1026 = vst [vmem:[#allocation1 + $0x10] ss:$2 sm:$0xff] %v5826_v51  ;;  %v5861_v41 = vsel %vm5828_vm5, %v4625_v39, %v1068_v34  ;;  %v1119_v48 = vrot.slane %v1117_v42, 7  ;;  %v1123_v53 = vshll.u32 %v1113_v49, 16  ;;  %v1144_v9 = vrot.slane %v1113_v49, 7  ;;  %v741_v20 = vpop.f32.mrf.mxu1 }
  0xee   :  { %v1013_v46 = vrot.slane %v1012_v22, 2  ;;  %938 = vst.msk [vmem:[#allocation3 + $0x14] sm:$0xf] %vm936_vm2, %v933_v21  ;;  %v5887_v10 = vsel %vm88_vm0, %v920_v62, %v1181_v2  ;;  %v722_v17 = vpop.f32.mrf.mxu0 }
  0xef   :  { %v1030_v24 = vld.sshfl [vmem:[#allocation1] sm:$0xff pattern:$0x75643120]  ;;  %v1125_v59 = vrot.slane %v1123_v53, 7  ;;  %v1187_v14 = vshrl.u32 %v5887_v10, 16  ;;  %v1190_v15 = vshll.u32 %v5887_v10, 16  ;;  %v742_v22 = vadd.f32 %v741_v20, %v722_v17 }
  0xf0   :  { %1071 = vst [vmem:[#allocation1] ss:$2 sm:$0xff] %v1057_v56  ;;  %v5841_v26 = vsel %vm5621_vm8, %v1013_v46, %v1017_v23  ;;  %1034 = vrot.lane.b32.xlu0 %v1030_v24, %s5413_s2  ;;  %v760_v24 = vpop.f32.mrf.mxu2  ;;  %v909_v17 = vld [vmem:[#allocation2 + $0x24] sm:$0x7] }
  0xf1   :  { %1074 = vst [vmem:[#allocation1 + $0x1] ss:$2 sm:$0xff] %v1061_v25  ;;  %v1189_v6 = vrot.slane %v1187_v14, 6  ;;  %v1192_v46 = vrot.slane %v1190_v15, 7  ;;  %v761_v32 = vadd.f32 %v760_v24, %v742_v22 }
  0xf2   :  { %1029 = vst [vmem:[#allocation1 + $0x11] ss:$2 sm:$0xff] %v5841_v26  ;;  %v779_v29 = vpop.f32.mrf.mxu3 }
  0xf3   :  { %v1193_v33 = vor.u32 %v1192_v46, %v1189_v6  ;;  %v912_v6 = vld [vmem:[#allocation2 + $0x28] sm:$0x7] }
  0xf8   :  { %v1081_v30 = vld.sshfl [vmem:[#allocation1] sm:$0xff pattern:$0x75643120] }
  0xf9   :  { %1087 = vst [vmem:[#allocation1] ss:$2 sm:$0xff] %v5780_v27  ;;  %v1032_v37 = vld.sshfl [vmem:[#allocation1 + $0x10] sm:$0xff pattern:$0x75643120]  ;;  %v1114_v27 = vshrl.u32 %v1110_v40, 16 }
  0xfa   :  { %1089 = vst [vmem:[#allocation1 + $0x1] ss:$2 sm:$0xff] %v5786_v31  ;;  %1036 = vrot.lane.b32.xlu0 %v1032_v37, %s5413_s2 }
  0xfb   :  { %1077 = vst [vmem:[#allocation1 + $0x10] ss:$2 sm:$0xff] %v5853_v36  ;;  %v1116_v47 = vrot.slane %v1114_v27, 6  ;;  %v780_v27 = vadd.f32 %v779_v29, %v761_v32 }
  0xfc   :  { %1080 = vst [vmem:[#allocation1 + $0x11] ss:$2 sm:$0xff] %v5861_v41 }
  0xfd   :  { %1085 = vst.msk [vmem:[#allocation3 + $0x4] sm:$0xf] %vm936_vm2, %v1081_v30  ;;  %v1120_v50 = vor.u32 %v1119_v48, %v1116_v47  ;;  %v789_v47 = vmul.f32 %v5739_v35, %v780_v27  ;;  %v1194_v48 = vrot.slane %v1193_v33, 2 }
  0xff   :  { %v1121_v55 = vrot.slane %v1120_v50, 2 }
 0x101   :  { %v5865_v43 = vld.sshfl [vmem:[#allocation1] sm:$0xff pattern:$0x75643120]  ;;  %v5878_v63 = vsel %vm5621_vm8, %v1121_v55, %v1125_v59  ;;  %v797_v55 = vadd.f32 %v5744_v38, %v789_v47 }
 0x102   :  { %1127 = vst [vmem:[#allocation1] ss:$2 sm:$0xff] %v992_v1  ;;  %v759_v1 = vadd.f32 %v758_v0, %v740_v58  ;;  %v906_v0 = vld [vmem:[#allocation2 + $0x20] sm:$0x7] }
 0x103   :  { %1129 = vst [vmem:[#allocation1 + $0x1] ss:$2 sm:$0xff] %v5826_v51  ;;  %v1082_v16 = vld.sshfl [vmem:[#allocation1 + $0x10] sm:$0xff pattern:$0x75643120]  ;;  %v5926_v58 = vmax.f32 %v797_v55, 0.0 }
 0x104   :  { %1091 = vst [vmem:[#allocation1 + $0x10] ss:$2 sm:$0xff] %v5810_v52  ;;  %v778_v8 = vadd.f32 %v777_v7, %v759_v1  ;;  %v4627_v7 = vrot.slane %v5887_v10, 9 }
 0x105   :  { %1094 = vst [vmem:[#allocation1 + $0x11] ss:$2 sm:$0xff] %v5845_v28 }
 0x106   :  { %1086 = vst.msk [vmem:[#allocation3 + $0x18] sm:$0xf] %vm936_vm2, %v1082_v16  ;;  %v788_v13 = vmul.f32 %v5739_v35, %v778_v8 }
 0x108   :  { %v796_v21 = vadd.f32 %v5744_v38, %v788_v13 }
 0x10a   :  { %v1135_v54 = vld.sshfl [vmem:[#allocation1] sm:$0xff pattern:$0x75643120]  ;;  %v5908_v30 = vmax.f32 %v796_v21, 0.0 }
 0x10b   :  { %1146 = vst [vmem:[#allocation1] ss:$2 sm:$0xff] %v1061_v25  ;;  %v5904_v25 = vld [vmem:[#allocation2 + $0x18] sm:$0x7] }
 0x10c   :  { %1148 = vst [vmem:[#allocation1 + $0x1] ss:$2 sm:$0xff] %v5853_v36  ;;  %v5874_v61 = vld.sshfl [vmem:[#allocation1 + $0x10] sm:$0xff pattern:$0x75643120]  ;;  %v1267_v37 = vrot.slane %v5904_v25, 2 }
 0x10d   :  { %1131 = vst [vmem:[#allocation1 + $0x10] ss:$2 sm:$0xff] %v5841_v26  ;;  %v862_v40 = vrot.slane %v5908_v30, 4 }
 0x10e   :  { %1134 = vst [vmem:[#allocation1 + $0x11] ss:$2 sm:$0xff] %v5878_v63  ;;  %v5920_v49 = vsel %vm88_vm0, %v5904_v25, %v1267_v37 }
 0x10f   :  { %1139 = vst.msk [vmem:[#allocation3 + $0x8] sm:$0xf] %vm936_vm2, %v1135_v54  ;;  %v1291_v38 = vshrl.u32 %v5920_v49, 16  ;;  %v1294_v8 = vshll.u32 %v5920_v49, 16 }
 0x111   :  { %v1293_v20 = vrot.slane %v1291_v38, 6  ;;  %v1296_v21 = vrot.slane %v1294_v8, 7 }
 0x113   :  { %v1154_v5 = vld.sshfl [vmem:[#allocation1] sm:$0xff pattern:$0x75643120]  ;;  %v1297_v29 = vor.u32 %v1296_v21, %v1293_v20 }
 0x114   :  { %1166 = vst [vmem:[#allocation1] ss:$2 sm:$0xff] %v5786_v31  ;;  %1158 = vrot.lane.b32.xlu2 %v1154_v5, %s5413_s2  ;;  %v5894_v31 = vsel %vm5828_vm5, %v4626_v11, %v1144_v9  ;;  %v868_v5 = vpack.c.bf16 %v5926_v58, %v5926_v58 }
 0x115   :  { %1168 = vst [vmem:[#allocation1 + $0x1] ss:$2 sm:$0xff] %v5810_v52  ;;  %v1136_v12 = vld.sshfl [vmem:[#allocation1 + $0x10] sm:$0xff pattern:$0x75643120]  ;;  %v5898_v52 = vsel %vm91_vm1, %v920_v62, %v1181_v2 }
 0x116   :  { %1150 = vst [vmem:[#allocation1 + $0x10] ss:$2 sm:$0xff] %v5861_v41  ;;  %v1186_v56 = vrot.slane %v5898_v52, 2  ;;  %v888_v13 = vshll.u32 %v868_v5, 16 }
 0x117   :  { %1153 = vst [vmem:[#allocation1 + $0x11] ss:$2 sm:$0xff] %v5894_v31 }
 0x118   :  { %1140 = vst.msk [vmem:[#allocation3 + $0x1c] sm:$0xf] %vm936_vm2, %v1136_v12  ;;  %v1196_v34 = vshll.u32 %v1186_v56, 16  ;;  %v885_v12 = vshrl.u32 %v868_v5, 16  ;;  %v1223_v14 = vrot.slane %v1186_v56, 7 }
 0x11a   :  { %v1198_v16 = vrot.slane %v1196_v34, 7  ;;  %v1224_v46 = vsel %vm5828_vm5, %v4627_v7, %v1223_v14 }
 0x11c   :  { %v1174_v23 = vld.sshfl [vmem:[#allocation1] sm:$0xff pattern:$0x75643120]  ;;  %v1199_v59 = vsel %vm5621_vm8, %v1194_v48, %v1198_v16 }
 0x11d   :  { %1200 = vst [vmem:[#allocation1] ss:$2 sm:$0xff] %v5826_v51  ;;  %v866_v51 = vpack.c.bf16 %v5908_v30, %v5908_v30 }
 0x11e   :  { %1202 = vst [vmem:[#allocation1 + $0x1] ss:$2 sm:$0xff] %v5841_v26  ;;  %v1156_v39 = vld.sshfl [vmem:[#allocation1 + $0x10] sm:$0xff pattern:$0x75643120]  ;;  %v867_v26 = vpack.c.bf16 %v862_v40, %v862_v40  ;;  %v1298_v40 = vrot.slane %v1297_v29, 2 }
 0x11f   :  { %1178 = vst.msk [vmem:[#allocation3 + $0xc] sm:$0xf] %vm936_vm2, %v1174_v23  ;;  %1160 = vrot.lane.b32.xlu2 %v1156_v39, %s5413_s2  ;;  %v871_v42 = vshrl.u32 %v866_v51, 16  ;;  %v874_v44 = vshll.u32 %v866_v51, 16 }
 0x120   :  { %1170 = vst [vmem:[#allocation1 + $0x10] ss:$2 sm:$0xff] %v5845_v28  ;;  %v878_v53 = vshrl.u32 %v867_v26, 16  ;;  %v881_v54 = vshll.u32 %v867_v26, 16 }
 0x121   :  { %1173 = vst [vmem:[#allocation1 + $0x11] ss:$2 sm:$0xff] %v920_v62  ;;  %v873_v50 = vrot.slane %v871_v42, 7  ;;  %v5932_v62 = vsel %vm91_vm1, %v5904_v25, %v1267_v37 }
 0x122   :  { %v880_v57 = vrot.slane %v878_v53, 7  ;;  %v1275_v15 = vrot.slane %v5932_v62, 2 }
 0x123   :  { %v876_v35 = vor.u32 %v874_v44, %v873_v50 }
 0x124   :  { %v883_v1 = vor.u32 %v881_v54, %v880_v57 }
 0x125   :  { %v1208_v28 = vld.sshfl [vmem:[#allocation1] sm:$0xff pattern:$0x75643120]  ;;  %v904_v2 = vsel %vm5759_vm11, %v876_v35, %v903_v19 }
 0x126   :  { %1225 = vst [vmem:[#allocation1] ss:$2 sm:$0xff] %v5853_v36  ;;  %1212 = vrot.lane.b32.xlu0 %v1208_v28, %s5413_s2  ;;  %v907_v9 = vsel %vm5759_vm11, %v883_v1, %v906_v0 }
 0x127   :  { %1227 = vst [vmem:[#allocation1 + $0x1] ss:$2 sm:$0xff] %v5861_v41  ;;  %v863_v41 = vrot.slane %v5926_v58, 4  ;;  %1099 = vrot.lane.b32.xlu2 %v5865_v43, %s5413_s2  ;;  %v887_v43 = vrot.slane %v885_v12, 7 }
 0x128   :  { %v1175_v36 = vld.sshfl [vmem:[#allocation1 + $0x10] sm:$0xff pattern:$0x75643120]  ;;  %905 = vst [vmem:[#allocation2 + $0x1c] sm:$0x7] %v904_v2 }
 0x129   :  { %1204 = vst [vmem:[#allocation1 + $0x10] ss:$2 sm:$0xff] %v5878_v63  ;;  %v869_v11 = vpack.c.bf16 %v863_v41, %v863_v41  ;;  %v890_v63 = vor.u32 %v888_v13, %v887_v43  ;;  %v4628_v43 = vrot.slane %v5920_v49, 9 }
 0x12a   :  { %1207 = vst [vmem:[#allocation1 + $0x11] ss:$2 sm:$0xff] %v1199_v59 }
 0x12b   :  { %908 = vst [vmem:[#allocation2 + $0x20] sm:$0x7] %v907_v9  ;;  %v892_v10 = vshrl.u32 %v869_v11, 16  ;;  %v895_v52 = vshll.u32 %v869_v11, 16  ;;  %v910_v24 = vsel %vm5759_vm11, %v890_v63, %v909_v17 }
 0x12c   :  { %1179 = vst.msk [vmem:[#allocation3 + $0x20] sm:$0xf] %vm936_vm2, %v1175_v36 }
 0x12d   :  { %v894_v56 = vrot.slane %v892_v10, 7  ;;  %911 = vst [vmem:[#allocation2 + $0x24] sm:$0x7] %v910_v24  ;;  %v1372_v10 = vrot.slane %v1275_v15, 7 }
 0x12e   :  { %v1233_v22 = vld.sshfl [vmem:[#allocation1] sm:$0xff pattern:$0x75643120]  ;;  %1101 = vrot.lane.b32.xlu0 %v5874_v61, %s5413_s2  ;;  %v1300_v61 = vshll.u32 %v1275_v15, 16 }
 0x12f   :  { %1247 = vst [vmem:[#allocation1] ss:$2 sm:$0xff] %v5904_v25  ;;  %v897_v23 = vor.u32 %v895_v52, %v894_v56  ;;  %v5962_v25 = vld [vmem:[#allocation2 + $0x1c] sm:$0x7]  ;;  %v1373_v24 = vsel %vm5828_vm5, %v4628_v43, %v1372_v10 }
 0x130   :  { %1237 = vst.msk [vmem:[#allocation3 + $0x10] sm:$0xf] %vm936_vm2, %v1233_v22  ;;  %v1268_v37 = vrot.slane %v5962_v25, 2  ;;  %v1302_v51 = vrot.slane %v1300_v61, 7 }
 0x131   :  { %v5959_v32 = vld.sshfl [vmem:[#allocation1 + $0x10] sm:$0xff pattern:$0x75643120]  ;;  %v913_v33 = vsel %vm5759_vm11, %v897_v23, %v912_v6  ;;  %1250 = vst [vmem:[#allocation1 + $0x1] ss:$2 sm:$0xff] %v5962_v25 }
 0x132   :  { %1229 = vst [vmem:[#allocation1 + $0x10] ss:$2 sm:$0xff] %v5894_v31  ;;  %v5966_v34 = vld [vmem:[#allocation2 + $0x20] sm:$0x7]  ;;  %v1277_v27 = vsel %vm88_vm0, %v5962_v25, %v1268_v37  ;;  %v1278_v31 = vsel %vm91_vm1, %v5962_v25, %v1268_v37  ;;  %v1303_v54 = vsel %vm5621_vm8, %v1298_v40, %v1302_v51 }
 0x133   :  { %1232 = vst [vmem:[#allocation1 + $0x11] ss:$2 sm:$0xff] %v1224_v46  ;;  %v1269_v39 = vrot.slane %v5966_v34, 2  ;;  %v1280_v26 = vrot.slane %v1278_v31, 2  ;;  %v1304_v44 = vshrl.u32 %v1277_v27, 16  ;;  %v1307_v48 = vshll.u32 %v1277_v27, 16 }
 0x134   :  { %914 = vst [vmem:[#allocation2 + $0x28] sm:$0x7] %v913_v33  ;;  %v5985_v57 = vld [vmem:[#allocation2 + $0x24] sm:$0x7]  ;;  %v4629_v56 = vrot.slane %v1277_v27, 9 }
 0x135   :  { %v5977_v42 = vsel %vm88_vm0, %v5966_v34, %v1269_v39  ;;  %v1283_v47 = vsel %vm91_vm1, %v5966_v34, %v1269_v39  ;;  %v1306_v50 = vrot.slane %v1304_v44, 6  ;;  %v1313_v53 = vshll.u32 %v1280_v26, 16 }
 0x136   :  { %v1317_v16 = vshrl.u32 %v5977_v42, 16  ;;  %v1320_v28 = vshll.u32 %v5977_v42, 16  ;;  %v1309_v55 = vrot.slane %v1307_v48, 7  ;;  %v1285_v38 = vrot.slane %v1283_v47, 2 }
 0x137   :  { %v1315_v1 = vrot.slane %v1313_v53, 7  ;;  %v1270_v5 = vrot.slane %v5985_v57, 2  ;;  %v1376_v6 = vrot.slane %v1280_v26, 7  ;;  %v4630_v37 = vrot.slane %v5977_v42, 9 }
 0x138   :  { %v1319_v19 = vrot.slane %v1317_v16, 6  ;;  %v1322_v35 = vrot.slane %v1320_v28, 7  ;;  %v1257_v0 = vld.sshfl [vmem:[#allocation1] sm:$0xff pattern:$0x75643120]  ;;  %v1310_v36 = vor.u32 %v1309_v55, %v1306_v50  ;;  %v1326_v41 = vshll.u32 %v1285_v38, 16 }
 0x139   :  { %1344 = vst [vmem:[#allocation1] ss:$2 sm:$0xff] %v1303_v54  ;;  %v1287_v8 = vsel %vm88_vm0, %v5985_v57, %v1270_v5  ;;  %v1288_v9 = vsel %vm91_vm1, %v5985_v57, %v1270_v5  ;;  %v1377_v15 = vsel %vm5828_vm5, %v4629_v56, %v1376_v6  ;;  %v1380_v39 = vrot.slane %v1285_v38, 7  ;;  %v5272_v50 = vld [vmem:[%s7204_s4 + $0x30] sm:$0xff]  ;;  %v5289_v38 = vld [vmem:[%s7204_s4 + $0xb8] sm:$0xff] }
 0x13a   :  { %v1234_v59 = vld.sshfl [vmem:[#allocation1 + $0x10] sm:$0xff pattern:$0x75643120]  ;;  %v1323_v2 = vor.u32 %v1322_v35, %v1319_v19  ;;  %v1311_v7 = vrot.slane %v1310_v36, 2  ;;  %v1290_v12 = vrot.slane %v1288_v9, 2  ;;  %v1330_v13 = vshrl.u32 %v1287_v8, 16  ;;  %1950 = vmatpush.bf16.msrb.mxu2 %v5289_v38 }
 0x13b   :  { %1253 = vst [vmem:[#allocation1 + $0x10] ss:$2 sm:$0xff] %v5966_v34  ;;  %v1328_v17 = vrot.slane %v1326_v41, 7  ;;  %v1333_v20 = vshll.u32 %v1287_v8, 16  ;;  %v6017_v33 = vld [vmem:[#allocation2 + $0x28] sm:$0x7]  ;;  %v6024_v44 = vsel %vm5828_vm5, %v4630_v37, %v1380_v39 }
 0x13c   :  { %1256 = vst [vmem:[#allocation1 + $0x11] ss:$2 sm:$0xff] %v5985_v57  ;;  %v1316_v11 = vsel %vm5621_vm8, %v1311_v7, %v1315_v1  ;;  %v1324_v14 = vrot.slane %v1323_v2, 2  ;;  %v1332_v52 = vrot.slane %v1330_v13, 6  ;;  %v1339_v21 = vshll.u32 %v1290_v12, 16  ;;  %v5288_v1 = vld [vmem:[%s7204_s4 + $0xb0] sm:$0xff] }
 0x13d   :  { %1238 = vst.msk [vmem:[#allocation3 + $0x24] sm:$0xf] %vm936_vm2, %v1234_v59  ;;  %v1335_v22 = vrot.slane %v1333_v20, 7  ;;  %v1424_v40 = vrot.slane %v6017_v33, 2  ;;  %v4631_v51 = vrot.slane %v1287_v8, 9  ;;  %v1384_v27 = vrot.slane %v1290_v12, 7 }
 0x13e   :  { %1261 = vst.msk [vmem:[#allocation3 + $0x28] sm:$0xf] %vm936_vm2, %v1257_v0  ;;  %v6003_v63 = vsel %vm5621_vm8, %v1324_v14, %v1328_v17  ;;  %v1341_v29 = vrot.slane %v1339_v21, 7  ;;  %v5271_v59 = vld [vmem:[%s7204_s4 + $0x28] sm:$0xff]  ;;  %1951 = vmatpush.bf16.msrb.mxu2 %v5288_v1  ;;  %v1245_v8 = vld [vmem:[#allocation2 + $0x2c] sm:$0x7] }
 0x13f   :  { %1347 = vst [vmem:[#allocation1 + $0x1] ss:$2 sm:$0xff] %v1316_v11  ;;  %v1336_v23 = vor.u32 %v1335_v22, %v1332_v52  ;;  %v6029_v47 = vsel %vm88_vm0, %v6017_v33, %v1424_v40  ;;  %v6034_v42 = vsel %vm5828_vm5, %v4631_v51, %v1384_v27  ;;  %v1427_v28 = vsel %vm91_vm1, %v6017_v33, %v1424_v40  ;;  %v5269_v9 = vld [vmem:[%s7204_s4 + $0x18] sm:$0xff]  ;;  %v5268_v17 = vld [vmem:[%s7204_s4 + $0x10] sm:$0xff]  ;;  %v5286_v20 = vld [vmem:[%s7204_s4 + $0xa0] sm:$0xff] }
 0x140   :  { %v1430_v48 = vshrl.u32 %v6029_v47, 16  ;;  %v1433_v16 = vshll.u32 %v6029_v47, 16  ;;  %v1429_v19 = vrot.slane %v1427_v28, 2  ;;  %v1497_v14 = vrot.slane %v1245_v8, 2  ;;  %v5267_v22 = vld [vmem:[%s7204_s4 + $0x8] sm:$0xff]  ;;  %v5285_v56 = vld [vmem:[%s7204_s4 + $0x98] sm:$0xff] }
 0x141   :  { %v1337_v49 = vrot.slane %v1336_v23, 2  ;;  %v4632_v43 = vrot.slane %v6029_v47, 9  ;;  %v5283_v40 = vld [vmem:[%s7204_s4 + $0x88] sm:$0xff]  ;;  %v5281_v51 = vld [vmem:[%s7204_s4 + $0x78] sm:$0xff] }
 0x142   :  { %v1432_v54 = vrot.slane %v1430_v48, 6  ;;  %v1435_v55 = vrot.slane %v1433_v16, 7  ;;  %v1439_v36 = vshll.u32 %v1429_v19, 16  ;;  %v1460_v10 = vrot.slane %v1429_v19, 7  ;;  %1931 = vmatpush.bf16.msrb.mxu1 %v5281_v51  ;;  %v5282_v48 = vld [vmem:[%s7204_s4 + $0x80] sm:$0xff]  ;;  %v5279_v16 = vld [vmem:[%s7204_s4 + $0x68] sm:$0xff] }
 0x143   :  { %v1258_v46 = vld.sshfl [vmem:[#allocation1 + $0x10] sm:$0xff pattern:$0x75643120]  ;;  %v6014_v61 = vsel %vm5621_vm8, %v1337_v49, %v1341_v29  ;;  %v6094_v52 = vsel %vm88_vm0, %v1245_v8, %v1497_v14  ;;  %v5277_v38 = vld [vmem:[%s7204_s4 + $0x58] sm:$0xff] }
 0x144   :  { %1350 = vst [vmem:[#allocation1 + $0x10] ss:$2 sm:$0xff] %v6003_v63  ;;  %v1436_v0 = vor.u32 %v1435_v55, %v1432_v54  ;;  %v1441_v41 = vrot.slane %v1439_v36, 7  ;;  %v1503_v23 = vshrl.u32 %v6094_v52, 16  ;;  %v6112_v29 = vsel %vm5828_vm5, %v4632_v43, %v1460_v10  ;;  %v5294_v43 = vld [vmem:[%s7204_s4 + $0xe0] sm:$0xff] }
 0x145   :  { %1262 = vst.msk [vmem:[#allocation3 + $0x3c] sm:$0xf] %vm936_vm2, %v1258_v46  ;;  %v6106_v46 = vsel %vm91_vm1, %v1245_v8, %v1497_v14 }
 0x146   :  { %v1354_v62 = vld.sshfl [vmem:[#allocation1] sm:$0xff pattern:$0x75643120]  ;;  %1353 = vst [vmem:[#allocation1 + $0x11] ss:$2 sm:$0xff] %v6014_v61  ;;  %v1437_v2 = vrot.slane %v1436_v0, 2 }
 0x147   :  { %1387 = vst [vmem:[#allocation1] ss:$2 sm:$0xff] %v1373_v24  ;;  %1358 = vrot.lane.b32.xlu1 %v1354_v62, %s5413_s2  ;;  %v1506_v24 = vshll.u32 %v6094_v52, 16  ;;  %v5284_v62 = vld [vmem:[%s7204_s4 + $0x90] sm:$0xff]  ;;  %v1505_v37 = vrot.slane %v1503_v23, 6  ;;  %v5291_v23 = vld [vmem:[%s7204_s4 + $0xc8] sm:$0xff] }
 0x148   :  { %1390 = vst [vmem:[#allocation1 + $0x1] ss:$2 sm:$0xff] %v1377_v15  ;;  %v6081_v13 = vsel %vm5621_vm8, %v1437_v2, %v1441_v41  ;;  %v5276_v2 = vld [vmem:[%s7204_s4 + $0x50] sm:$0xff] }
 0x149   :  { %v1508_v39 = vrot.slane %v1506_v24, 7  ;;  %v5299_v24 = vld [vmem:[%s7204_s4 + $0x108] sm:$0xff] }
 0x14b   :  { %v1509_v47 = vor.u32 %v1508_v39, %v1505_v37 }
 0x14d   :  { %v1356_v26 = vld.sshfl [vmem:[#allocation1 + $0x10] sm:$0xff pattern:$0x75643120] }
 0x14e   :  { %1393 = vst [vmem:[#allocation1 + $0x10] ss:$2 sm:$0xff] %v6024_v44 }
 0x14f   :  { %v1397_v31 = vld.sshfl [vmem:[#allocation1] sm:$0xff pattern:$0x75643120]  ;;  %1360 = vrot.lane.b32.xlu1 %v1356_v26, %s5413_s2  ;;  %1396 = vst [vmem:[#allocation1 + $0x11] ss:$2 sm:$0xff] %v6034_v42 }
 0x150   :  { %1403 = vst [vmem:[#allocation1] ss:$2 sm:$0xff] %v5962_v25  ;;  %v5273_v25 = vld [vmem:[%s7204_s4 + $0x38] sm:$0xff] }
 0x151   :  { %1405 = vst [vmem:[#allocation1 + $0x1] ss:$2 sm:$0xff] %v5966_v34  ;;  %1912 = vmatpush.bf16.msrb.mxu0 %v5273_v25 }
 0x152   :  { %1401 = vst.msk [vmem:[#allocation3 + $0x2c] sm:$0xf] %vm936_vm2, %v1397_v31  ;;  %v5280_v31 = vld [vmem:[%s7204_s4 + $0x70] sm:$0xff] }
 0x153   :  { %1932 = vmatpush.bf16.msrb.mxu1 %v5280_v31 }
 0x155   :  { %1913 = vmatpush.bf16.msrb.mxu0 %v5272_v50 }
 0x156   :  { %v1398_v35 = vld.sshfl [vmem:[#allocation1 + $0x10] sm:$0xff pattern:$0x75643120] }
 0x157   :  { %1214 = vrot.lane.b32.xlu1 %v5959_v32, %s5413_s2  ;;  %1407 = vst [vmem:[#allocation1 + $0x10] ss:$2 sm:$0xff] %v5985_v57  ;;  %v5270_v32 = vld [vmem:[%s7204_s4 + $0x20] sm:$0xff]  ;;  %1933 = vmatpush.bf16.msrb.mxu1 %v5279_v16 }
 0x158   :  { %v6049_v53 = vld.sshfl [vmem:[#allocation1] sm:$0xff pattern:$0x75643120]  ;;  %1410 = vst [vmem:[#allocation1 + $0x11] ss:$2 sm:$0xff] %v6017_v33 }
 0x159   :  { %1443 = vst [vmem:[#allocation1] ss:$2 sm:$0xff] %v1316_v11  ;;  %1914 = vmatpush.bf16.msrb.mxu0 %v5271_v59  ;;  %v5287_v11 = vld [vmem:[%s7204_s4 + $0xa8] sm:$0xff] }
 0x15a   :  { %1445 = vst [vmem:[#allocation1 + $0x1] ss:$2 sm:$0xff] %v6003_v63  ;;  %1952 = vmatpush.bf16.msrb.mxu2 %v5287_v11  ;;  %v5274_v11 = vld [vmem:[%s7204_s4 + $0x40] sm:$0xff] }
 0x15b   :  { %1402 = vst.msk [vmem:[#allocation3 + $0x40] sm:$0xf] %vm936_vm2, %v1398_v35 }
 0x15d   :  { %1915 = vmatpush.bf16.msrb.mxu0 %v5270_v32  ;;  %v4633_v32 = vrot.slane %v6094_v52, 9  ;;  %v5293_v52 = vld [vmem:[%s7204_s4 + $0xd8] sm:$0xff] }
 0x15e   :  { %1953 = vmatpush.bf16.msrb.mxu2 %v5286_v20  ;;  %v5301_v20 = vld [vmem:[%s7204_s4 + $0x118] sm:$0xff] }
 0x15f   :  { %v6077_v12 = vld.sshfl [vmem:[#allocation1 + $0x10] sm:$0xff pattern:$0x75643120] }
 0x160   :  { %1447 = vst [vmem:[#allocation1 + $0x10] ss:$2 sm:$0xff] %v6014_v61 }
 0x161   :  { %v1451_v7 = vld.sshfl [vmem:[#allocation1] sm:$0xff pattern:$0x75643120]  ;;  %1916 = vmatpush.bf16.msrb.mxu0 %v5269_v9  ;;  %1450 = vst [vmem:[#allocation1 + $0x11] ss:$2 sm:$0xff] %v6081_v13  ;;  %v5297_v9 = vld [vmem:[%s7204_s4 + $0xf8] sm:$0xff] }
 0x162   :  { %v1035_v5 = vpop.permute.xlu0 %1034  ;;  %1462 = vst [vmem:[#allocation1] ss:$2 sm:$0xff] %v1377_v15  ;;  %1954 = vmatpush.bf16.msrb.mxu2 %v5285_v56  ;;  %v1502_v15 = vrot.slane %v6106_v46, 2  ;;  %1969 = vmatpush.bf16.msrb.mxu3 %v5297_v9 }
 0x163   :  { %1041 = vst.msk [vmem:[#allocation3] sm:$0xf] %vm1040_vm6, %v1035_v5 }
 0x164   :  { %1464 = vst [vmem:[#allocation1 + $0x1] ss:$2 sm:$0xff] %v6024_v44  ;;  %v1512_v26 = vshll.u32 %v1502_v15, 16  ;;  %v1539_v1 = vrot.slane %v1502_v15, 7 }
 0x165   :  { %1455 = vst.msk [vmem:[#allocation3 + $0x30] sm:$0xf] %vm936_vm2, %v1451_v7  ;;  %1917 = vmatpush.bf16.msrb.mxu0 %v5268_v17  ;;  %v5295_v17 = vld [vmem:[%s7204_s4 + $0xe8] sm:$0xff] }
 0x166   :  { %1955 = vmatpush.bf16.msrb.mxu2 %v5284_v62  ;;  %v1514_v50 = vrot.slane %v1512_v26, 7  ;;  %v1540_v5 = vsel %vm5828_vm5, %v4633_v32, %v1539_v1 }
 0x168   :  { %v1452_v6 = vld.sshfl [vmem:[#allocation1 + $0x10] sm:$0xff pattern:$0x75643120] }
 0x169   :  { %1918 = vmatpush.bf16.msrb.mxu0 %v5267_v22  ;;  %1466 = vst [vmem:[#allocation1 + $0x10] ss:$2 sm:$0xff] %v6034_v42 }
 0x16a   :  { %1469 = vst [vmem:[#allocation1 + $0x11] ss:$2 sm:$0xff] %v6112_v29  ;;  %1956 = vmatpush.bf16.msrb.mxu2 %v5283_v40 }
 0x16b   :  { %v1470_v21 = vld.sshfl [vmem:[#allocation1] sm:$0xff pattern:$0x75643120]  ;;  %1456 = vst.msk [vmem:[#allocation3 + $0x44] sm:$0xf] %vm936_vm2, %v1452_v6  ;;  %v5292_v6 = vld [vmem:[%s7204_s4 + $0xd0] sm:$0xff] }
 0x16c   :  { %1482 = vst [vmem:[#allocation1] ss:$2 sm:$0xff] %v5966_v34  ;;  %1474 = vrot.lane.b32.xlu1 %v1470_v21, %s5413_s2  ;;  %v1037_v49 = vpop.permute.xlu0 %1036  ;;  %v5300_v21 = vld [vmem:[%s7204_s4 + $0x110] sm:$0xff] }
 0x16d   :  { %1484 = vst [vmem:[#allocation1 + $0x1] ss:$2 sm:$0xff] %v5985_v57  ;;  %v5266_v57 = vld [vmem:[%s7204_s4] sm:$0xff] }
 0x16e   :  { %v1159_v34 = vpop.permute.xlu2 %1158  ;;  %1919 = vmatpush.bf16.msrb.mxu0 %v5266_v57  ;;  %1042 = vst.msk [vmem:[#allocation3 + $0x14] sm:$0xf] %vm1040_vm6, %v1037_v49  ;;  %1957 = vmatpush.bf16.msrb.mxu2 %v5282_v48  ;;  %v5298_v49 = vld [vmem:[%s7204_s4 + $0x100] sm:$0xff] }
 0x16f   :  { %1164 = vst.msk [vmem:[#allocation3 + $0x8] sm:$0xf] %vm1040_vm6, %v1159_v34 }
 0x171   :  { %v1472_v25 = vld.sshfl [vmem:[#allocation1 + $0x10] sm:$0xff pattern:$0x75643120] }
 0x172   :  { %1486 = vst [vmem:[#allocation1 + $0x10] ss:$2 sm:$0xff] %v6017_v33  ;;  %1476 = vrot.lane.b32.xlu2 %v1472_v25, %s5413_s2  ;;  %v5278_v33 = vld [vmem:[%s7204_s4 + $0x60] sm:$0xff]  ;;  %1992 = vmatpush.bf16.msra.mxu0 %v5301_v20  ;;  %v4652_v25 = vld [vmem:[#allocation3 + $0x10] sm:$0xf] }
 0x173   :  { %1489 = vst [vmem:[#allocation1 + $0x11] ss:$2 sm:$0xff] %v1245_v8  ;;  %1934 = vmatpush.bf16.msrb.mxu1 %v5278_v33  ;;  %v5275_v8 = vld [vmem:[%s7204_s4 + $0x48] sm:$0xff] }
 0x174   :  { %v1490_v27 = vld.sshfl [vmem:[#allocation1] sm:$0xff pattern:$0x75643120] }
 0x175   :  { %1516 = vst [vmem:[#allocation1] ss:$2 sm:$0xff] %v6003_v63  ;;  %v4636_v63 = vld [vmem:[#allocation3] sm:$0xf]  ;;  %v5258_v28 = vld [vmem:[#allocation3 + $0x10] sm:$0xf0] }
 0x176   :  { %1518 = vst [vmem:[#allocation1 + $0x1] ss:$2 sm:$0xff] %v6014_v61  ;;  %v1510_v61 = vrot.slane %v1509_v47, 2  ;;  %v4637_v55 = vor.u32 %v5258_v28, %v4636_v63  ;;  %v4644_v0 = vld [vmem:[#allocation3 + $0x8] sm:$0xf]  ;;  %1993 = vmatpush.bf16.msra.mxu0 %v5300_v21 }
 0x177   :  { %1494 = vst.msk [vmem:[#allocation3 + $0x34] sm:$0xf] %vm936_vm2, %v1490_v27  ;;  %1935 = vmatpush.bf16.msrb.mxu1 %v5277_v38  ;;  %v5260_v47 = vld [vmem:[#allocation3 + $0x20] sm:$0xf0] }
 0x178   :  { %1920 = vmatmul.bf16.vlgmr.msrb.gmra.mxu0 %v4637_v55  ;;  %v1515_v35 = vsel %vm5621_vm8, %v1510_v61, %v1514_v50  ;;  %v4653_v48 = vor.u32 %v5260_v47, %v4652_v25 }
 0x179   :  { %v1161_v54 = vpop.permute.xlu2 %1160 }
 0x17a   :  { %1165 = vst.msk [vmem:[#allocation3 + $0x1c] sm:$0xf] %vm1040_vm6, %v1161_v54  ;;  %v1491_v59 = vld.sshfl [vmem:[#allocation1 + $0x10] sm:$0xff pattern:$0x75643120]  ;;  %1415 = vrot.lane.b32.xlu2 %v6049_v53, %s5413_s2  ;;  %1994 = vmatpush.bf16.msra.mxu0 %v5299_v24 }
 0x17b   :  { %1520 = vst [vmem:[#allocation1 + $0x10] ss:$2 sm:$0xff] %v6081_v13  ;;  %v6164_v53 = vld [vmem:[#allocation2] sm:$0x7]  ;;  %1936 = vmatpush.bf16.msrb.mxu1 %v5276_v2 }
 0x17c   :  { %1523 = vst [vmem:[#allocation1 + $0x11] ss:$2 sm:$0xff] %v1515_v35 }
 0x17d   :  { %v1524_v19 = vld.sshfl [vmem:[#allocation1] sm:$0xff pattern:$0x75643120]  ;;  %1495 = vst.msk [vmem:[#allocation3 + $0x48] sm:$0xf] %vm936_vm2, %v1491_v59 }
 0x17e   :  { %1541 = vst [vmem:[#allocation1] ss:$2 sm:$0xff] %v6024_v44  ;;  %1528 = vrot.lane.b32.xlu0 %v1524_v19, %s5413_s2  ;;  %1995 = vmatpush.bf16.msra.mxu0 %v5298_v49 }
 0x17f   :  { %1543 = vst [vmem:[#allocation1 + $0x1] ss:$2 sm:$0xff] %v6034_v42  ;;  %1937 = vmatpush.bf16.msrb.mxu1 %v5275_v8 }
 0x181   :  { %v5259_v44 = vld [vmem:[#allocation3 + $0x18] sm:$0xf0]  ;;  %v1100_v36 = vpop.permute.xlu2 %1099 }
 0x182   :  { %1105 = vst.msk [vmem:[#allocation3 + $0x4] sm:$0xf] %vm1040_vm6, %v1100_v36  ;;  %v4645_v42 = vor.u32 %v5259_v44, %v4644_v0 }
 0x183   :  { %v1526_v7 = vld.sshfl [vmem:[#allocation1 + $0x10] sm:$0xff pattern:$0x75643120]  ;;  %1938 = vmatpush.bf16.msrb.mxu1 %v5274_v11 }
 0x184   :  { %1958 = vmatmul.bf16.vlgmr.msrb.gmra.mxu2 %v4645_v42  ;;  %1545 = vst [vmem:[#allocation1 + $0x10] ss:$2 sm:$0xff] %v6112_v29  ;;  %1530 = vrot.lane.b32.xlu1 %v1526_v7, %s5413_s2  ;;  %v5290_v29 = vld [vmem:[%s7204_s4 + $0xc0] sm:$0xff] }
 0x185   :  { %1548 = vst [vmem:[#allocation1 + $0x11] ss:$2 sm:$0xff] %v1540_v5 }
 0x186   :  { %v1549_v41 = vld.sshfl [vmem:[#allocation1] sm:$0xff pattern:$0x75643120]  ;;  %1417 = vrot.lane.b32.xlu0 %v6077_v12, %s5413_s2  ;;  %v5296_v12 = vld [vmem:[%s7204_s4 + $0xf0] sm:$0xff] }
 0x187   :  { %2142 = vst [vmem:[#allocation1] ss:$2 sm:$0xff] %v6164_v53  ;;  %1970 = vmatpush.bf16.msrb.mxu3 %v5296_v12 }
 0x188   :  { %1553 = vst.msk [vmem:[#allocation3 + $0x38] sm:$0xf] %vm936_vm2, %v1549_v41 }
 0x189   :  { %v5256_v22 = vld [vmem:[#allocation3 + $0x4] sm:$0xf] }
 0x18b   :  { %1971 = vmatpush.bf16.msrb.mxu3 %v5295_v17 }
 0x18c   :  { %v1550_v13 = vld.sshfl [vmem:[#allocation1 + $0x10] sm:$0xff pattern:$0x75643120] }
 0x18d   :  { %1554 = vst.msk [vmem:[#allocation3 + $0x4c] sm:$0xf] %vm936_vm2, %v1550_v13 }
 0x18f   :  { %1972 = vmatpush.bf16.msrb.mxu3 %v5294_v43  ;;  %v4672_v54 = vld [vmem:[#allocation3 + $0x38] sm:$0xf] }
 0x193   :  { %1973 = vmatpush.bf16.msrb.mxu3 %v5293_v52 }
 0x194   :  { %v5265_v50 = vld [vmem:[#allocation3 + $0x48] sm:$0xf0] }
 0x195   :  { %v4673_v55 = vor.u32 %v5265_v50, %v4672_v54 }
 0x197   :  { %1974 = vmatpush.bf16.msrb.mxu3 %v5292_v6 }
 0x198   :  { %v1213_v14 = vpop.permute.xlu0 %1212 }
 0x199   :  { %1218 = vst.msk [vmem:[#allocation3 + $0xc] sm:$0xf] %vm1040_vm6, %v1213_v14  ;;  %v6240_v14 = vld [vmem:[%s7205_s5] ss:$0 sm:$0xff] }
 0x19b   :  { %1975 = vmatpush.bf16.msrb.mxu3 %v5291_v23 }
 0x19f   :  { %1976 = vmatpush.bf16.msrb.mxu3 %v5290_v29 }
 0x1a0   :  { %v1102_v10 = vpop.permute.xlu0 %1101  ;;  %v5257_v51 = vld [vmem:[#allocation3 + $0xc] sm:$0xf] }
 0x1a1   :  { %1106 = vst.msk [vmem:[#allocation3 + $0x18] sm:$0xf] %vm1040_vm6, %v1102_v10  ;;  %v6245_v10 = vld [vmem:[%s7206_s6] ss:$0 sm:$0xff] }
 0x1a8   :  { %v4638_v56 = vld [vmem:[#allocation3 + $0x14] sm:$0xf0] }
 0x1a9   :  { %v4641_v46 = vor.u32 %v5256_v22, %v4638_v56 }
 0x1ab   :  { %1939 = vmatmul.bf16.vlgmr.msrb.gmra.mxu1 %v4641_v46  ;;  %v2162_v46 = vrot.slane %v6164_v53, 2 }
 0x1b9   :  { %v1359_v34 = vpop.permute.xlu1 %1358 }
 0x1ba   :  { %1364 = vst.msk [vmem:[#allocation3 + $0x28] sm:$0xf] %vm1040_vm6, %v1359_v34 }
 0x1c1   :  { %v1361_v57 = vpop.permute.xlu1 %1360  ;;  %v4656_v15 = vld [vmem:[#allocation3 + $0x28] sm:$0xf] }
 0x1c2   :  { %1365 = vst.msk [vmem:[#allocation3 + $0x3c] sm:$0xf] %vm1040_vm6, %v1361_v57 }
 0x1c9   :  { %v1215_v62 = vpop.permute.xlu1 %1214  ;;  %v5263_v37 = vld [vmem:[#allocation3 + $0x38] sm:$0xf0] }
 0x1ca   :  { %1219 = vst.msk [vmem:[#allocation3 + $0x20] sm:$0xf] %vm1040_vm6, %v1215_v62  ;;  %v4657_v39 = vor.u32 %v5263_v37, %v4656_v15  ;;  %v6252_v62 = vsel %vm88_vm0, %v6164_v53, %v2162_v46 }
 0x1cb   :  { %v2186_v47 = vshrl.u32 %v6252_v62, 16  ;;  %v2189_v25 = vshll.u32 %v6252_v62, 16 }
 0x1cc   :  { %1925 = vmatmul.bf16.gmra.mxu0 %v4657_v39  ;;  %v1477_v40 = vpop.permute.xlu2 %1476 }
 0x1cd   :  { %1481 = vst.msk [vmem:[#allocation3 + $0x44] sm:$0xf] %vm1040_vm6, %v1477_v40 }
 0x1d1   :  { %v4646_v27 = vld [vmem:[#allocation3 + $0x1c] sm:$0xf0] }
 0x1d2   :  { %v4649_v31 = vor.u32 %v5257_v51, %v4646_v27 }
 0x1d4   :  { %1977 = vmatmul.bf16.vlgmr.msrb.gmra.mxu3 %v4649_v31  ;;  %v1416_v26 = vpop.permute.xlu2 %1415  ;;  %v5264_v28 = vld [vmem:[#allocation3 + $0x40] sm:$0xf0] }
 0x1d5   :  { %1421 = vst.msk [vmem:[#allocation3 + $0x2c] sm:$0xf] %vm1040_vm6, %v1416_v26  ;;  %v6258_v26 = vsel %vm91_vm1, %v6164_v53, %v2162_v46  ;;  %v2072_v53 = vld [vmem:[#allocation2 + $0x8] sm:$0x7] }
 0x1dc   :  { %4818 = vmatmul.msk.bf16.vlgmr.msra.gmra.mxu0 %vm1905_vm7, %v4653_v48  ;;  %v5261_v59 = vld [vmem:[#allocation3 + $0x2c] sm:$0xf] }
 0x1de   :  { %v1475_v16 = vpop.permute.xlu1 %1474 }
 0x1df   :  { %1480 = vst.msk [vmem:[#allocation3 + $0x30] sm:$0xf] %vm1040_vm6, %v1475_v16 }
 0x1e6   :  { %v4664_v63 = vld [vmem:[#allocation3 + $0x30] sm:$0xf] }
 0x1e7   :  { %v4665_v61 = vor.u32 %v5264_v28, %v4664_v63 }
 0x1e9   :  { %1963 = vmatmul.bf16.gmra.mxu2 %v4665_v61  ;;  %v2069_v61 = vld [vmem:[#allocation2 + $0x4] sm:$0x7] }
 0x1ec   :  { %4819 = vmatmul.msk.bf16.gmra.mxu0 %vm1905_vm7, %v4673_v55 }
 0x1f0   :  { %v1529_v33 = vpop.permute.xlu0 %1528 }
 0x1f1   :  { %1534 = vst.msk [vmem:[#allocation3 + $0x34] sm:$0xf] %vm1040_vm6, %v1529_v33 }
 0x1f5   :  { %v1921_v1 = vpop.f32.mrf.mxu0 }
 0x1f6   :  { %v1531_v35 = vpop.permute.xlu1 %1530 }
 0x1f7   :  { %1535 = vst.msk [vmem:[#allocation3 + $0x48] sm:$0xf] %vm1040_vm6, %v1531_v35  ;;  %v2188_v35 = vrot.slane %v2186_v47, 6 }
 0x1f8   :  { %v1418_v19 = vpop.permute.xlu0 %1417  ;;  %v5262_v44 = vld [vmem:[#allocation3 + $0x34] sm:$0xf] }
 0x1f9   :  { %1422 = vst.msk [vmem:[#allocation3 + $0x40] sm:$0xf] %vm1040_vm6, %v1418_v19  ;;  %v2170_v19 = vrot.slane %v6258_v26, 2 }
 0x1fd   :  { %v1923_v42 = vpop.f32.mrf.mxu0 }
 0x1fe   :  { %v4666_v36 = vld [vmem:[#allocation3 + $0x44] sm:$0xf0] }
 0x1ff   :  { %v4669_v32 = vor.u32 %v5262_v44, %v4666_v36 }
 0x200   :  { %v4658_v38 = vld [vmem:[#allocation3 + $0x3c] sm:$0xf0] }
 0x201   :  { %v4661_v0 = vor.u32 %v5261_v59, %v4658_v38  ;;  %1982 = vmatmul.bf16.gmra.mxu3 %v4669_v32  ;;  %v2191_v59 = vrot.slane %v2189_v25, 7 }
 0x203   :  { %1944 = vmatmul.bf16.gmra.mxu1 %v4661_v0 }
 0x207   :  { %v1959_v8 = vpop.f32.mrf.mxu2 }
 0x20f   :  { %v1961_v21 = vpop.f32.mrf.mxu2 }
 0x228   :  { %v1940_v41 = vpop.f32.mrf.mxu1 }
 0x229   :  { %v1941_v7 = vadd.f32 %v1940_v41, %v1921_v1  ;;  %v2192_v41 = vor.u32 %v2191_v59, %v2188_v35 }
 0x22b   :  { %v1960_v9 = vadd.f32 %v1959_v8, %v1941_v7 }
 0x230   :  { %v1942_v11 = vpop.f32.mrf.mxu1 }
 0x231   :  { %v1943_v20 = vadd.f32 %v1942_v11, %v1923_v42  ;;  %v2195_v42 = vshll.u32 %v2170_v19, 16  ;;  %v2075_v11 = vld [vmem:[#allocation2 + $0xc] sm:$0x7] }
 0x233   :  { %v1962_v56 = vadd.f32 %v1961_v21, %v1943_v20  ;;  %v2197_v21 = vrot.slane %v2195_v42, 7 }
 0x249   :  { %v6233_v2 = vpop.f32.mrf.mxu0 }
 0x251   :  { %v6235_v5 = vpop.f32.mrf.mxu0 }
 0x257   :  { %v1978_v12 = vpop.f32.mrf.mxu3 }
 0x258   :  { %v1979_v13 = vadd.f32 %v1978_v12, %v1960_v9 }
 0x259   :  { %v1997_v17 = vpop.f32.mrf.mxu0 }
 0x25a   :  { %v1998_v43 = vadd.f32 %v1997_v17, %v1979_v13 }
 0x25c   :  { %v2011_v52 = vmul.f32 %v6240_v14, %v1998_v43  ;;  %v2078_v43 = vld [vmem:[#allocation2 + $0x10] sm:$0x7] }
 0x25e   :  { %v2019_v22 = vadd.f32 %v6245_v10, %v2011_v52  ;;  %v2193_v52 = vrot.slane %v2192_v41, 2 }
 0x25f   :  { %v1980_v6 = vpop.f32.mrf.mxu3 }
 0x260   :  { %v2023_v23 = vmax.f32 %v2019_v22, 0.0  ;;  %v1981_v24 = vadd.f32 %v1980_v6, %v1962_v56 }
 0x261   :  { %v1999_v29 = vpop.f32.mrf.mxu0 }
 0x262   :  { %v2029_v34 = vrot.slane %v2023_v23, 4  ;;  %v2033_v49 = vpack.c.bf16 %v2023_v23, %v2023_v23  ;;  %v2000_v57 = vadd.f32 %v1999_v29, %v1981_v24 }
 0x264   :  { %v2034_v15 = vpack.c.bf16 %v2029_v34, %v2029_v34  ;;  %v2038_v37 = vshrl.u32 %v2033_v49, 16  ;;  %v2012_v39 = vmul.f32 %v6240_v14, %v2000_v57  ;;  %v2041_v51 = vshll.u32 %v2033_v49, 16 }
 0x266   :  { %v2040_v40 = vrot.slane %v2038_v37, 7  ;;  %v2045_v27 = vshrl.u32 %v2034_v15, 16  ;;  %v2020_v31 = vadd.f32 %v6245_v10, %v2012_v39  ;;  %v2048_v63 = vshll.u32 %v2034_v15, 16 }
 0x267   :  { %v2198_v15 = vsel %vm5621_vm8, %v2193_v52, %v2197_v21 }
 0x268   :  { %v2043_v48 = vor.u32 %v2041_v51, %v2040_v40  ;;  %v2047_v16 = vrot.slane %v2045_v27, 7  ;;  %v2024_v28 = vmax.f32 %v2020_v31, 0.0 }
 0x269   :  { %v2002_v21 = vpop.f32.mrf.mxu0 }
 0x26a   :  { %v2050_v50 = vor.u32 %v2048_v63, %v2047_v16  ;;  %v2070_v54 = vsel %vm5759_vm11, %v2043_v48, %v2069_v61  ;;  %v2030_v55 = vrot.slane %v2024_v28, 4  ;;  %v2035_v33 = vpack.c.bf16 %v2024_v28, %v2024_v28 }
 0x26b   :  { %2071 = vst [vmem:[#allocation2 + $0x4] sm:$0x7] %v2070_v54 }
 0x26c   :  { %v2073_v38 = vsel %vm5759_vm11, %v2050_v50, %v2072_v53  ;;  %v2036_v0 = vpack.c.bf16 %v2030_v55, %v2030_v55  ;;  %v2052_v44 = vshrl.u32 %v2035_v33, 16  ;;  %v2055_v32 = vshll.u32 %v2035_v33, 16 }
 0x26d   :  { %2074 = vst [vmem:[#allocation2 + $0x8] sm:$0x7] %v2073_v38 }
 0x26e   :  { %v2054_v36 = vrot.slane %v2052_v44, 7  ;;  %v2059_v1 = vshrl.u32 %v2036_v0, 16  ;;  %v2062_v9 = vshll.u32 %v2036_v0, 16 }
 0x270   :  { %v2057_v7 = vor.u32 %v2055_v32, %v2054_v36  ;;  %v2061_v8 = vrot.slane %v2059_v1, 7  ;;  %v4820_v36 = vrot.slane %v6252_v62, 9  ;;  %v2267_v32 = vrot.slane %v2170_v19, 7 }
 0x272   :  { %v6269_v12 = vld [vmem:[#allocation2 + $0x4] sm:$0x7]  ;;  %v2064_v13 = vor.u32 %v2062_v9, %v2061_v8  ;;  %v2076_v17 = vsel %vm5759_vm11, %v2057_v7, %v2075_v11  ;;  %v1964_v11 = vpop.f32.mrf.mxu2 }
 0x273   :  { %2145 = vst [vmem:[#allocation1 + $0x1] ss:$2 sm:$0xff] %v6269_v12  ;;  %v2163_v20 = vrot.slane %v6269_v12, 2 }
 0x274   :  { %v6275_v22 = vld [vmem:[#allocation2 + $0x8] sm:$0x7]  ;;  %2077 = vst [vmem:[#allocation2 + $0xc] sm:$0x7] %v2076_v17  ;;  %v2079_v56 = vsel %vm5759_vm11, %v2064_v13, %v2078_v43 }
 0x275   :  { %2148 = vst [vmem:[#allocation1 + $0x10] ss:$2 sm:$0xff] %v6275_v22  ;;  %v2164_v6 = vrot.slane %v6275_v22, 2  ;;  %v2172_v46 = vsel %vm88_vm0, %v6269_v12, %v2163_v20  ;;  %v2173_v23 = vsel %vm91_vm1, %v6269_v12, %v2163_v20  ;;  %v2268_v20 = vsel %vm5828_vm5, %v4820_v36, %v2267_v32 }
 0x276   :  { %v2175_v24 = vrot.slane %v2173_v23, 2  ;;  %v2199_v29 = vshrl.u32 %v2172_v46, 16  ;;  %v2202_v34 = vshll.u32 %v2172_v46, 16  ;;  %2080 = vst [vmem:[#allocation2 + $0x10] sm:$0x7] %v2079_v56  ;;  %v4821_v26 = vrot.slane %v2172_v46, 9 }
 0x277   :  { %v6287_v49 = vsel %vm88_vm0, %v6275_v22, %v2164_v6  ;;  %v6291_v57 = vsel %vm91_vm1, %v6275_v22, %v2164_v6 }
 0x278   :  { %v2201_v37 = vrot.slane %v2199_v29, 6  ;;  %v2204_v39 = vrot.slane %v2202_v34, 7  ;;  %v2208_v40 = vshll.u32 %v2175_v24, 16  ;;  %v2212_v51 = vshrl.u32 %v6287_v49, 16 }
 0x279   :  { %v2215_v27 = vshll.u32 %v6287_v49, 16  ;;  %v2180_v47 = vrot.slane %v6291_v57, 2  ;;  %v2271_v13 = vrot.slane %v2175_v24, 7 }
 0x27a   :  { %v2152_v31 = vld.sshfl [vmem:[#allocation1] sm:$0xff pattern:$0x75643120]  ;;  %v2205_v25 = vor.u32 %v2204_v39, %v2201_v37  ;;  %v2214_v48 = vrot.slane %v2212_v51, 6  ;;  %v2210_v61 = vrot.slane %v2208_v40, 7  ;;  %v1966_v39 = vpop.f32.mrf.mxu2 }
 0x27b   :  { %v2217_v16 = vrot.slane %v2215_v27, 7  ;;  %2239 = vst [vmem:[#allocation1] ss:$2 sm:$0xff] %v2198_v15  ;;  %v6298_v63 = vld [vmem:[#allocation2 + $0xc] sm:$0x7]  ;;  %v2221_v35 = vshll.u32 %v2180_v47, 16  ;;  %v6330_v24 = vsel %vm5828_vm5, %v4821_v26, %v2271_v13 }
 0x27c   :  { %v2206_v28 = vrot.slane %v2205_v25, 2  ;;  %2156 = vst.msk [vmem:[#allocation3] sm:$0xf] %vm936_vm2, %v2152_v31  ;;  %v2165_v50 = vrot.slane %v6298_v63, 2  ;;  %v2275_v31 = vrot.slane %v2180_v47, 7 }
 0x27d   :  { %v2218_v54 = vor.u32 %v2217_v16, %v2214_v48  ;;  %2151 = vst [vmem:[#allocation1 + $0x11] ss:$2 sm:$0xff] %v6298_v63  ;;  %v2223_v9 = vrot.slane %v2221_v35, 7  ;;  %v6340_v15 = vld [vmem:[#allocation2 + $0x10] sm:$0x7]  ;;  %v4822_v48 = vrot.slane %v6287_v49, 9 }
 0x27e   :  { %v6305_v33 = vsel %vm5621_vm8, %v2206_v28, %v2210_v61  ;;  %v6309_v53 = vsel %vm88_vm0, %v6298_v63, %v2165_v50  ;;  %v2183_v59 = vsel %vm91_vm1, %v6298_v63, %v2165_v50  ;;  %v2319_v40 = vrot.slane %v6340_v15, 2 }
 0x27f   :  { %2242 = vst [vmem:[#allocation1 + $0x1] ss:$2 sm:$0xff] %v6305_v33  ;;  %v2185_v38 = vrot.slane %v2183_v59, 2  ;;  %v2225_v0 = vshrl.u32 %v6309_v53, 16  ;;  %v2228_v44 = vshll.u32 %v6309_v53, 16  ;;  %v2219_v1 = vrot.slane %v2218_v54, 2 }
 0x280   :  { %v1945_v55 = vpop.f32.mrf.mxu1  ;;  %v4823_v54 = vrot.slane %v6309_v53, 9  ;;  %v6351_v35 = vsel %vm88_vm0, %v6340_v15, %v2319_v40  ;;  %v6356_v49 = vsel %vm5828_vm5, %v4822_v48, %v2275_v31 }
 0x281   :  { %v2227_v42 = vrot.slane %v2225_v0, 6  ;;  %v2230_v41 = vrot.slane %v2228_v44, 7  ;;  %v2234_v7 = vshll.u32 %v2185_v38, 16  ;;  %v1946_v8 = vadd.f32 %v1945_v55, %v6233_v2  ;;  %v2004_v55 = vpop.f32.mrf.mxu0 }
 0x282   :  { %v6324_v43 = vsel %vm5621_vm8, %v2219_v1, %v2223_v9  ;;  %v2279_v28 = vrot.slane %v2185_v38, 7  ;;  %v2325_v36 = vshrl.u32 %v6351_v35, 16  ;;  %v2328_v32 = vshll.u32 %v6351_v35, 16 }
 0x283   :  { %v2231_v17 = vor.u32 %v2230_v41, %v2227_v42  ;;  %v2236_v52 = vrot.slane %v2234_v7, 7  ;;  %v1965_v56 = vadd.f32 %v1964_v11, %v1946_v8  ;;  %v2322_v8 = vsel %vm91_vm1, %v6340_v15, %v2319_v40 }
 0x284   :  { %v2153_v62 = vld.sshfl [vmem:[#allocation1 + $0x10] sm:$0xff pattern:$0x75643120]  ;;  %v1983_v6 = vpop.f32.mrf.mxu3  ;;  %v2330_v26 = vrot.slane %v2328_v32, 7 }
 0x285   :  { %v2232_v19 = vrot.slane %v2231_v17, 2  ;;  %2245 = vst [vmem:[#allocation1 + $0x10] ss:$2 sm:$0xff] %v6324_v43  ;;  %v1984_v46 = vadd.f32 %v1983_v6, %v1965_v56  ;;  %v2123_v17 = vld [vmem:[#allocation2 + $0x1c] sm:$0x7] }
 0x286   :  { %v2249_v2 = vld.sshfl [vmem:[#allocation1] sm:$0xff pattern:$0x75643120]  ;;  %2157 = vst.msk [vmem:[#allocation3 + $0x14] sm:$0xf] %vm936_vm2, %v2153_v62  ;;  %v2327_v62 = vrot.slane %v2325_v36, 6 }
 0x287   :  { %2282 = vst [vmem:[#allocation1] ss:$2 sm:$0xff] %v2268_v20  ;;  %v6334_v29 = vsel %vm5621_vm8, %v2232_v19, %v2236_v52  ;;  %2253 = vrot.lane.b32.xlu1 %v2249_v2, %s5413_s2  ;;  %v2003_v34 = vadd.f32 %v2002_v21, %v1984_v46  ;;  %v2126_v2 = vld [vmem:[#allocation2 + $0x20] sm:$0x7] }
 0x288   :  { %v1947_v23 = vpop.f32.mrf.mxu1  ;;  %2285 = vst [vmem:[#allocation1 + $0x1] ss:$2 sm:$0xff] %v6330_v24 }
 0x289   :  { %2248 = vst [vmem:[#allocation1 + $0x11] ss:$2 sm:$0xff] %v6334_v29  ;;  %v1948_v57 = vadd.f32 %v1947_v23, %v6235_v5  ;;  %v2013_v37 = vmul.f32 %v6240_v14, %v2003_v34  ;;  %v2331_v34 = vor.u32 %v2330_v26, %v2327_v62 }
 0x28b   :  { %v2021_v51 = vadd.f32 %v6245_v10, %v2013_v37  ;;  %v1967_v27 = vadd.f32 %v1966_v39, %v1948_v57  ;;  %v2332_v48 = vrot.slane %v2331_v34, 2 }
 0x28c   :  { %v1985_v25 = vpop.f32.mrf.mxu3 }
 0x28d   :  { %v2025_v61 = vmax.f32 %v2021_v51, 0.0  ;;  %v1986_v50 = vadd.f32 %v1985_v25, %v1967_v27 }
 0x28f   :  { %v2292_v16 = vld.sshfl [vmem:[#allocation1] sm:$0xff pattern:$0x75643120]  ;;  %v2083_v47 = vrot.slane %v2025_v61, 4  ;;  %v2087_v59 = vpack.c.bf16 %v2025_v61, %v2025_v61  ;;  %v2005_v0 = vadd.f32 %v2004_v55, %v1986_v50  ;;  %v2129_v61 = vld [vmem:[#allocation2 + $0x24] sm:$0x7] }
 0x290   :  { %2298 = vst [vmem:[#allocation1] ss:$2 sm:$0xff] %v6269_v12  ;;  %v2251_v5 = vld.sshfl [vmem:[#allocation1 + $0x10] sm:$0xff pattern:$0x75643120]  ;;  %v6361_v12 = vsel %vm5828_vm5, %v4823_v54, %v2279_v28 }
 0x291   :  { %2300 = vst [vmem:[#allocation1 + $0x1] ss:$2 sm:$0xff] %v6275_v22  ;;  %2255 = vrot.lane.b32.xlu2 %v2251_v5, %s5413_s2  ;;  %v2088_v53 = vpack.c.bf16 %v2083_v47, %v2083_v47  ;;  %v2092_v38 = vshrl.u32 %v2087_v59, 16  ;;  %v2014_v44 = vmul.f32 %v6240_v14, %v2005_v0  ;;  %v2095_v42 = vshll.u32 %v2087_v59, 16  ;;  %v2140_v28 = vld [vmem:[#allocation2 + $0x14] sm:$0x7] }
 0x292   :  { %2296 = vst.msk [vmem:[#allocation3 + $0x4] sm:$0xf] %vm936_vm2, %v2292_v16  ;;  %v2132_v5 = vld [vmem:[#allocation2 + $0x28] sm:$0x7]  ;;  %v2392_v59 = vrot.slane %v2140_v28, 2 }
 0x293   :  { %2288 = vst [vmem:[#allocation1 + $0x10] ss:$2 sm:$0xff] %v6356_v49  ;;  %v2094_v1 = vrot.slane %v2092_v38, 7  ;;  %v2099_v41 = vshrl.u32 %v2088_v53, 16  ;;  %v2022_v7 = vadd.f32 %v6245_v10, %v2014_v44  ;;  %v2102_v13 = vshll.u32 %v2088_v53, 16 }
 0x294   :  { %2291 = vst [vmem:[#allocation1 + $0x11] ss:$2 sm:$0xff] %v6361_v12  ;;  %v2324_v10 = vrot.slane %v2322_v8, 2  ;;  %v6396_v38 = vsel %vm88_vm0, %v2140_v28, %v2392_v59  ;;  %v4824_v44 = vrot.slane %v6351_v35, 9  ;;  %v2395_v32 = vsel %vm91_vm1, %v2140_v28, %v2392_v59  ;;  %v2450_v8 = vld [vmem:[#allocation2 + $0x18] sm:$0x7] }
 0x295   :  { %v2097_v9 = vor.u32 %v2095_v42, %v2094_v1  ;;  %v2101_v11 = vrot.slane %v2099_v41, 7  ;;  %v2026_v20 = vmax.f32 %v2022_v7, 0.0  ;;  %v2398_v1 = vshrl.u32 %v6396_v38, 16 }
 0x296   :  { %v2334_v40 = vshll.u32 %v2324_v10, 16  ;;  %v2355_v53 = vrot.slane %v2324_v10, 7  ;;  %v2401_v42 = vshll.u32 %v6396_v38, 16 }
 0x297   :  { %v2104_v19 = vor.u32 %v2102_v13, %v2101_v11  ;;  %v2124_v52 = vsel %vm5759_vm11, %v2097_v9, %v2123_v17  ;;  %v2084_v21 = vrot.slane %v2026_v20, 4  ;;  %v2089_v56 = vpack.c.bf16 %v2026_v20, %v2026_v20 }
 0x298   :  { %v2306_v14 = vld.sshfl [vmem:[#allocation1] sm:$0xff pattern:$0x75643120]  ;;  %2125 = vst [vmem:[#allocation2 + $0x1c] sm:$0x7] %v2124_v52  ;;  %v2336_v50 = vrot.slane %v2334_v40, 7  ;;  %v2356_v41 = vsel %vm5828_vm5, %v4824_v44, %v2355_v53 }
 0x299   :  { %2338 = vst [vmem:[#allocation1] ss:$2 sm:$0xff] %v6305_v33  ;;  %2310 = vrot.lane.b32.xlu2 %v2306_v14, %s5413_s2  ;;  %v2090_v23 = vpack.c.bf16 %v2084_v21, %v2084_v21  ;;  %v2106_v46 = vshrl.u32 %v2089_v56, 16  ;;  %v2127_v33 = vsel %vm5759_vm11, %v2104_v19, %v2126_v2  ;;  %v2109_v39 = vshll.u32 %v2089_v56, 16 }
 0x29a   :  { %2340 = vst [vmem:[#allocation1 + $0x1] ss:$2 sm:$0xff] %v6324_v43  ;;  %v2337_v47 = vsel %vm5621_vm8, %v2332_v48, %v2336_v50  ;;  %v2400_v7 = vrot.slane %v2398_v1, 6  ;;  %v2403_v35 = vrot.slane %v2401_v42, 7  ;;  %v2477_v17 = vrot.slane %v2450_v8, 2 }
 0x29b   :  { %v2293_v6 = vld.sshfl [vmem:[#allocation1 + $0x10] sm:$0xff pattern:$0x75643120]  ;;  %v2108_v57 = vrot.slane %v2106_v46, 7  ;;  %v2113_v37 = vshrl.u32 %v2090_v23, 16  ;;  %v2116_v27 = vshll.u32 %v2090_v23, 16 }
 0x29c   :  { %2302 = vst [vmem:[#allocation1 + $0x10] ss:$2 sm:$0xff] %v6298_v63  ;;  %v2404_v13 = vor.u32 %v2403_v35, %v2400_v7  ;;  %v2483_v19 = vsel %vm91_vm1, %v2450_v8, %v2477_v17 }
 0x29d   :  { %2305 = vst [vmem:[#allocation1 + $0x11] ss:$2 sm:$0xff] %v6340_v15  ;;  %v2115_v51 = vrot.slane %v2113_v37, 7  ;;  %v2111_v31 = vor.u32 %v2109_v39, %v2108_v57  ;;  %v2485_v2 = vrot.slane %v2483_v19, 2  ;;  %v4825_v57 = vrot.slane %v6396_v38, 9 }
 0x29e   :  { %2297 = vst.msk [vmem:[#allocation3 + $0x18] sm:$0xf] %vm936_vm2, %v2293_v6  ;;  %v2405_v62 = vrot.slane %v2404_v13, 2 }
 0x29f   :  { %2128 = vst [vmem:[#allocation2 + $0x20] sm:$0x7] %v2127_v33  ;;  %v2118_v16 = vor.u32 %v2116_v27, %v2115_v51  ;;  %v2130_v55 = vsel %vm5759_vm11, %v2111_v31, %v2129_v61  ;;  %v6410_v11 = vld [vmem:[#allocation2 + $0x1c] sm:$0x7]  ;;  %v2510_v31 = vshll.u32 %v2485_v2, 16 }
 0x2a0   :  { %2131 = vst [vmem:[#allocation2 + $0x24] sm:$0x7] %v2130_v55  ;;  %v2478_v14 = vrot.slane %v6410_v11, 2 }
 0x2a1   :  { %v2346_v25 = vld.sshfl [vmem:[#allocation1] sm:$0xff pattern:$0x75643120] }
 0x2a2   :  { %2357 = vst [vmem:[#allocation1] ss:$2 sm:$0xff] %v6330_v24  ;;  %v2133_v24 = vsel %vm5759_vm11, %v2118_v16, %v2132_v5 }
 0x2a3   :  { %2359 = vst [vmem:[#allocation1 + $0x1] ss:$2 sm:$0xff] %v6356_v49 }
 0x2a4   :  { %2350 = vst.msk [vmem:[#allocation3 + $0x8] sm:$0xf] %vm936_vm2, %v2346_v25  ;;  %v6384_v54 = vld.sshfl [vmem:[#allocation1 + $0x10] sm:$0xff pattern:$0x75643120] }
 0x2a5   :  { %2342 = vst [vmem:[#allocation1 + $0x10] ss:$2 sm:$0xff] %v6334_v29 }
 0x2a6   :  { %2345 = vst [vmem:[#allocation1 + $0x11] ss:$2 sm:$0xff] %v2337_v47 }
 0x2a7   :  { %2134 = vst [vmem:[#allocation2 + $0x28] sm:$0x7] %v2133_v24  ;;  %v6437_v34 = vld [vmem:[#allocation2 + $0x24] sm:$0x7] }
 0x2a8   :  { %v2480_v48 = vrot.slane %v6437_v34, 2 }
 0x2aa   :  { %v6393_v0 = vld.sshfl [vmem:[#allocation1] sm:$0xff pattern:$0x75643120]  ;;  %v6456_v24 = vsel %vm88_vm0, %v6437_v34, %v2480_v48 }
 0x2ab   :  { %2377 = vst [vmem:[#allocation1] ss:$2 sm:$0xff] %v6275_v22  ;;  %v2397_v22 = vrot.slane %v2395_v32, 2  ;;  %v2543_v1 = vshll.u32 %v6456_v24, 16 }
 0x2ac   :  { %2379 = vst [vmem:[#allocation1 + $0x1] ss:$2 sm:$0xff] %v6298_v63 }
 0x2ad   :  { %v2347_v36 = vld.sshfl [vmem:[#allocation1 + $0x10] sm:$0xff pattern:$0x75643120]  ;;  %v2407_v9 = vshll.u32 %v2397_v22, 16  ;;  %v2434_v37 = vrot.slane %v2397_v22, 7 }
 0x2ae   :  { %2361 = vst [vmem:[#allocation1 + $0x10] ss:$2 sm:$0xff] %v6361_v12 }
 0x2af   :  { %2364 = vst [vmem:[#allocation1 + $0x11] ss:$2 sm:$0xff] %v2356_v41  ;;  %v2409_v26 = vrot.slane %v2407_v9, 7 }
 0x2b0   :  { %2351 = vst.msk [vmem:[#allocation3 + $0x1c] sm:$0xf] %vm936_vm2, %v2347_v36  ;;  %v2540_v36 = vshrl.u32 %v6456_v24, 16 }
 0x2b1   :  { %v2410_v56 = vsel %vm5621_vm8, %v2405_v62, %v2409_v26 }
 0x2b2   :  { %v2542_v9 = vrot.slane %v2540_v36, 6 }
 0x2b3   :  { %v2385_v63 = vld.sshfl [vmem:[#allocation1] sm:$0xff pattern:$0x75643120] }
 0x2b4   :  { %2411 = vst [vmem:[#allocation1] ss:$2 sm:$0xff] %v6324_v43  ;;  %v6417_v43 = vsel %vm88_vm0, %v2450_v8, %v2477_v17  ;;  %v2545_v17 = vrot.slane %v2543_v1, 7 }
 0x2b5   :  { %2413 = vst [vmem:[#allocation1 + $0x1] ss:$2 sm:$0xff] %v6334_v29  ;;  %v2501_v52 = vshrl.u32 %v6417_v43, 16  ;;  %v2504_v21 = vshll.u32 %v6417_v43, 16 }
 0x2b6   :  { %v2367_v20 = vld.sshfl [vmem:[#allocation1 + $0x10] sm:$0xff pattern:$0x75643120]  ;;  %2389 = vst.msk [vmem:[#allocation3 + $0xc] sm:$0xf] %vm936_vm2, %v2385_v63  ;;  %v2498_v63 = vsel %vm91_vm1, %v6437_v34, %v2480_v48 }
 0x2b7   :  { %2381 = vst [vmem:[#allocation1 + $0x10] ss:$2 sm:$0xff] %v6340_v15  ;;  %2371 = vrot.lane.b32.xlu2 %v2367_v20, %s5413_s2  ;;  %v6427_v15 = vsel %vm88_vm0, %v6410_v11, %v2478_v14  ;;  %v2503_v46 = vrot.slane %v2501_v52, 6  ;;  %v2506_v33 = vrot.slane %v2504_v21, 7  ;;  %v4826_v20 = vrot.slane %v6417_v43, 9 }
 0x2b8   :  { %2384 = vst [vmem:[#allocation1 + $0x11] ss:$2 sm:$0xff] %v2140_v28  ;;  %v2514_v6 = vshrl.u32 %v6427_v15, 16  ;;  %v2517_v23 = vshll.u32 %v6427_v15, 16  ;;  %v2435_v28 = vsel %vm5828_vm5, %v4825_v57, %v2434_v37  ;;  %v2500_v26 = vrot.slane %v2498_v63, 2 }
 0x2b9   :  { %v2507_v27 = vor.u32 %v2506_v33, %v2503_v46  ;;  %v2546_v21 = vor.u32 %v2545_v17, %v2542_v9  ;;  %v4827_v43 = vrot.slane %v6427_v15, 9 }
 0x2ba   :  { %v2516_v40 = vrot.slane %v2514_v6, 6  ;;  %v2519_v51 = vrot.slane %v2517_v23, 7  ;;  %v5319_v6 = vld [vmem:[%s7207_s7 + $0x38] sm:$0xff] }
 0x2bb   :  { %v2508_v55 = vrot.slane %v2507_v27, 2  ;;  %v2547_v57 = vrot.slane %v2546_v21, 2  ;;  %3121 = vmatpush.bf16.msra.mxu1 %v5319_v6  ;;  %v6502_v27 = vld [vmem:[#allocation2 + $0x28] sm:$0x7] }
 0x2bc   :  { %v6419_v29 = vld.sshfl [vmem:[#allocation1] sm:$0xff pattern:$0x75643120]  ;;  %v2520_v5 = vor.u32 %v2519_v51, %v2516_v40 }
 0x2bd   :  { %2436 = vst [vmem:[#allocation1] ss:$2 sm:$0xff] %v6356_v49  ;;  %v6434_v49 = vld [vmem:[#allocation2 + $0x20] sm:$0x7] }
 0x2be   :  { %2438 = vst [vmem:[#allocation1 + $0x1] ss:$2 sm:$0xff] %v6361_v12  ;;  %v2488_v12 = vsel %vm91_vm1, %v6410_v11, %v2478_v14  ;;  %v2479_v39 = vrot.slane %v6434_v49, 2  ;;  %v2521_v38 = vrot.slane %v2520_v5, 2  ;;  %v2582_v14 = vrot.slane %v2485_v2, 7 }
 0x2bf   :  { %v2386_v10 = vld.sshfl [vmem:[#allocation1 + $0x10] sm:$0xff pattern:$0x75643120]  ;;  %v2490_v16 = vrot.slane %v2488_v12, 2  ;;  %v2549_v2 = vshll.u32 %v2500_v26, 16 }
 0x2c0   :  { %2415 = vst [vmem:[#allocation1 + $0x10] ss:$2 sm:$0xff] %v2337_v47  ;;  %v6452_v50 = vsel %vm88_vm0, %v6434_v49, %v2479_v39  ;;  %v2512_v47 = vrot.slane %v2510_v31, 7  ;;  %v2493_v22 = vsel %vm91_vm1, %v6434_v49, %v2479_v39  ;;  %v5318_v12 = vld [vmem:[%s7207_s7 + $0x30] sm:$0xff]  ;;  %v5317_v31 = vld [vmem:[%s7207_s7 + $0x28] sm:$0xff] }
 0x2c1   :  { %2418 = vst [vmem:[#allocation1 + $0x11] ss:$2 sm:$0xff] %v2410_v56  ;;  %v2523_v59 = vshll.u32 %v2490_v16, 16  ;;  %v2527_v53 = vshrl.u32 %v6452_v50, 16  ;;  %v2530_v44 = vshll.u32 %v6452_v50, 16  ;;  %v2495_v62 = vrot.slane %v2493_v22, 2  ;;  %3122 = vmatpush.bf16.msra.mxu1 %v5318_v12 }
 0x2c2   :  { %2390 = vst.msk [vmem:[#allocation3 + $0x20] sm:$0xf] %vm936_vm2, %v2386_v10  ;;  %v2513_v32 = vsel %vm5621_vm8, %v2508_v55, %v2512_v47  ;;  %v2586_v52 = vrot.slane %v2490_v16, 7  ;;  %v2583_v56 = vsel %vm5828_vm5, %v4826_v20, %v2582_v14  ;;  %v2551_v15 = vrot.slane %v2549_v2, 7  ;;  %v5316_v55 = vld [vmem:[%s7207_s7 + $0x20] sm:$0xff] }
 0x2c3   :  { %v2525_v42 = vrot.slane %v2523_v59, 7  ;;  %v2529_v7 = vrot.slane %v2527_v53, 6  ;;  %v2536_v10 = vshll.u32 %v2495_v62, 16  ;;  %v2634_v16 = vrot.slane %v6502_v27, 2  ;;  %v2455_v14 = vld [vmem:[#allocation2 + $0x2c] sm:$0x7] }
 0x2c4   :  { %v6486_v33 = vsel %vm5828_vm5, %v4827_v43, %v2586_v52  ;;  %v6499_v51 = vsel %vm5621_vm8, %v2547_v57, %v2551_v15  ;;  %v4828_v5 = vrot.slane %v6452_v50, 9  ;;  %v4829_v47 = vrot.slane %v6456_v24, 9  ;;  %v5315_v50 = vld [vmem:[%s7207_s7 + $0x18] sm:$0xff] }
 0x2c5   :  { %v2444_v25 = vld.sshfl [vmem:[#allocation1] sm:$0xff pattern:$0x75643120]  ;;  %v6468_v35 = vsel %vm5621_vm8, %v2521_v38, %v2525_v42  ;;  %v2538_v37 = vrot.slane %v2536_v10, 7  ;;  %3123 = vmatpush.bf16.msra.mxu1 %v5317_v31  ;;  %v2637_v36 = vsel %vm91_vm1, %v6502_v27, %v2634_v16 }
 0x2c6   :  { %2448 = vst.msk [vmem:[#allocation3 + $0x10] sm:$0xf] %vm936_vm2, %v2444_v25  ;;  %v2590_v25 = vrot.slane %v2495_v62, 7  ;;  %v2639_v22 = vrot.slane %v2637_v36, 2  ;;  %v5324_v36 = vld [vmem:[%s7207_s7 + $0x60] sm:$0xff] }
 0x2c7   :  { %2457 = vst [vmem:[#allocation1] ss:$2 sm:$0xff] %v2450_v8  ;;  %v2532_v8 = vrot.slane %v2530_v44, 7 }
 0x2c8   :  { %v6447_v61 = vld.sshfl [vmem:[#allocation1 + $0x10] sm:$0xff pattern:$0x75643120]  ;;  %2460 = vst [vmem:[#allocation1 + $0x1] ss:$2 sm:$0xff] %v6410_v11  ;;  %v6522_v59 = vsel %vm5828_vm5, %v4828_v5, %v2590_v25  ;;  %v2670_v21 = vrot.slane %v2639_v22, 7 }
 0x2c9   :  { %2440 = vst [vmem:[#allocation1 + $0x10] ss:$2 sm:$0xff] %v2356_v41  ;;  %v2533_v19 = vor.u32 %v2532_v8, %v2529_v7  ;;  %3124 = vmatpush.bf16.msra.mxu1 %v5316_v55  ;;  %v5313_v7 = vld [vmem:[%s7207_s7 + $0x8] sm:$0xff]  ;;  %v2649_v8 = vshll.u32 %v2639_v22, 16  ;;  %v5332_v22 = vld [vmem:[%s7207_s7 + $0xa0] sm:$0xff] }
 0x2ca   :  { %2443 = vst [vmem:[#allocation1 + $0x11] ss:$2 sm:$0xff] %v2435_v28  ;;  %v2594_v28 = vrot.slane %v2500_v26, 7 }
 0x2cb   :  { %v2534_v23 = vrot.slane %v2533_v19, 2  ;;  %v2651_v17 = vrot.slane %v2649_v8, 7  ;;  %v2707_v19 = vrot.slane %v2455_v14, 2  ;;  %v5341_v8 = vld [vmem:[%s7207_s7 + $0xe8] sm:$0xff] }
 0x2cc   :  { %v6533_v53 = vsel %vm5828_vm5, %v4829_v47, %v2594_v28 }
 0x2cd   :  { %v6495_v39 = vsel %vm5621_vm8, %v2534_v23, %v2538_v37  ;;  %3125 = vmatpush.bf16.msra.mxu1 %v5315_v50 }
 0x2cf   :  { %v2467_v41 = vld.sshfl [vmem:[#allocation1] sm:$0xff pattern:$0x75643120] }
 0x2d0   :  { %2554 = vst [vmem:[#allocation1] ss:$2 sm:$0xff] %v2513_v32 }
 0x2d1   :  { %v2445_v13 = vld.sshfl [vmem:[#allocation1 + $0x10] sm:$0xff pattern:$0x75643120]  ;;  %2557 = vst [vmem:[#allocation1 + $0x1] ss:$2 sm:$0xff] %v6468_v35 }
 0x2d2   :  { %2449 = vst.msk [vmem:[#allocation3 + $0x24] sm:$0xf] %vm936_vm2, %v2445_v13 }
 0x2d3   :  { %2463 = vst [vmem:[#allocation1 + $0x10] ss:$2 sm:$0xff] %v6434_v49 }
 0x2d4   :  { %2471 = vst.msk [vmem:[#allocation3 + $0x28] sm:$0xf] %vm936_vm2, %v2467_v41  ;;  %v5314_v41 = vld [vmem:[%s7207_s7 + $0x10] sm:$0xff] }
 0x2d5   :  { %2466 = vst [vmem:[#allocation1 + $0x11] ss:$2 sm:$0xff] %v6437_v34  ;;  %3126 = vmatpush.bf16.msra.mxu1 %v5314_v41  ;;  %v5347_v41 = vld [vmem:[%s7207_s7 + $0x118] sm:$0xff] }
 0x2d8   :  { %v2564_v46 = vld.sshfl [vmem:[#allocation1] sm:$0xff pattern:$0x75643120] }
 0x2d9   :  { %2597 = vst [vmem:[#allocation1] ss:$2 sm:$0xff] %v2583_v56  ;;  %2568 = vrot.lane.b32.xlu0 %v2564_v46, %s5413_s2  ;;  %3127 = vmatpush.bf16.msra.mxu1 %v5313_v7  ;;  %v5322_v7 = vld [vmem:[%s7207_s7 + $0x50] sm:$0xff] }
 0x2da   :  { %2600 = vst [vmem:[#allocation1 + $0x1] ss:$2 sm:$0xff] %v6486_v33 }
 0x2dc   :  { %v2468_v40 = vld.sshfl [vmem:[#allocation1 + $0x10] sm:$0xff pattern:$0x75643120] }
 0x2dd   :  { %2560 = vst [vmem:[#allocation1 + $0x10] ss:$2 sm:$0xff] %v6495_v39 }
 0x2de   :  { %2563 = vst [vmem:[#allocation1 + $0x11] ss:$2 sm:$0xff] %v6499_v51 }
 0x2df   :  { %2472 = vst.msk [vmem:[#allocation3 + $0x3c] sm:$0xf] %vm936_vm2, %v2468_v40  ;;  %v5326_v40 = vld [vmem:[%s7207_s7 + $0x70] sm:$0xff] }
 0x2e1   :  { %v2607_v48 = vld.sshfl [vmem:[#allocation1] sm:$0xff pattern:$0x75643120]  ;;  %2312 = vrot.lane.b32.xlu0 %v6384_v54, %s5413_s2 }
 0x2e2   :  { %2613 = vst [vmem:[#allocation1] ss:$2 sm:$0xff] %v6410_v11  ;;  %v6526_v11 = vsel %vm88_vm0, %v6502_v27, %v2634_v16 }
 0x2e3   :  { %2615 = vst [vmem:[#allocation1 + $0x1] ss:$2 sm:$0xff] %v6434_v49  ;;  %v2640_v24 = vshrl.u32 %v6526_v11, 16  ;;  %v2643_v38 = vshll.u32 %v6526_v11, 16  ;;  %v4830_v10 = vrot.slane %v6526_v11, 9 }
 0x2e4   :  { %2611 = vst.msk [vmem:[#allocation3 + $0x2c] sm:$0xf] %vm936_vm2, %v2607_v48 }
 0x2e5   :  { %v2566_v54 = vld.sshfl [vmem:[#allocation1 + $0x10] sm:$0xff pattern:$0x75643120]  ;;  %v2642_v1 = vrot.slane %v2640_v24, 6  ;;  %v2645_v42 = vrot.slane %v2643_v38, 7  ;;  %v2671_v46 = vsel %vm5828_vm5, %v4830_v10, %v2670_v21  ;;  %v5335_v24 = vld [vmem:[%s7207_s7 + $0xb8] sm:$0xff] }
 0x2e6   :  { %2603 = vst [vmem:[#allocation1 + $0x10] ss:$2 sm:$0xff] %v6522_v59  ;;  %2570 = vrot.lane.b32.xlu1 %v2566_v54, %s5413_s2  ;;  %v6601_v54 = vld [vmem:[#allocation2] sm:$0x7]  ;;  %3159 = vmatpush.bf16.msra.mxu3 %v5335_v24  ;;  %v5336_v10 = vld [vmem:[%s7207_s7 + $0xc0] sm:$0xff] }
 0x2e7   :  { %2606 = vst [vmem:[#allocation1 + $0x11] ss:$2 sm:$0xff] %v6533_v53  ;;  %v5325_v38 = vld [vmem:[%s7207_s7 + $0x68] sm:$0xff] }
 0x2e9   :  { %2423 = vrot.lane.b32.xlu0 %v6419_v29, %s5413_s2 }
 0x2ea   :  { %v2621_v44 = vld.sshfl [vmem:[#allocation1] sm:$0xff pattern:$0x75643120] }
 0x2eb   :  { %2653 = vst [vmem:[#allocation1] ss:$2 sm:$0xff] %v6468_v35  ;;  %2625 = vrot.lane.b32.xlu2 %v2621_v44, %s5413_s2  ;;  %v2256_v32 = vpop.permute.xlu2 %2255  ;;  %v2646_v35 = vor.u32 %v2645_v42, %v2642_v1  ;;  %v5334_v44 = vld [vmem:[%s7207_s7 + $0xb0] sm:$0xff]  ;;  %v5343_v1 = vld [vmem:[%s7207_s7 + $0xf8] sm:$0xff] }
 0x2ec   :  { %2655 = vst [vmem:[#allocation1 + $0x1] ss:$2 sm:$0xff] %v6495_v39  ;;  %3160 = vmatpush.bf16.msra.mxu3 %v5334_v44  ;;  %v5323_v42 = vld [vmem:[%s7207_s7 + $0x58] sm:$0xff]  ;;  %3178 = vmatpush.bf16.msrb.mxu0 %v5343_v1 }
 0x2ed   :  { %2260 = vst.msk [vmem:[#allocation3 + $0x14] sm:$0xf] %vm1040_vm6, %v2256_v32  ;;  %v2647_v9 = vrot.slane %v2646_v35, 2  ;;  %v5333_v32 = vld [vmem:[%s7207_s7 + $0xa8] sm:$0xff]  ;;  %v5331_v35 = vld [vmem:[%s7207_s7 + $0x98] sm:$0xff] }
 0x2ee   :  { %v2608_v29 = vld.sshfl [vmem:[#allocation1 + $0x10] sm:$0xff pattern:$0x75643120]  ;;  %2369 = vrot.lane.b32.xlu1 %v6393_v0, %s5413_s2  ;;  %v5312_v0 = vld [vmem:[%s7207_s7] sm:$0xff] }
 0x2ef   :  { %2617 = vst [vmem:[#allocation1 + $0x10] ss:$2 sm:$0xff] %v6437_v34  ;;  %3128 = vmatpush.bf16.msra.mxu1 %v5312_v0  ;;  %v2652_v62 = vsel %vm5621_vm8, %v2647_v9, %v2651_v17  ;;  %v5346_v9 = vld [vmem:[%s7207_s7 + $0x110] sm:$0xff]  ;;  %v5340_v0 = vld [vmem:[%s7207_s7 + $0xe0] sm:$0xff] }
 0x2f0   :  { %2620 = vst [vmem:[#allocation1 + $0x11] ss:$2 sm:$0xff] %v6502_v27  ;;  %3161 = vmatpush.bf16.msra.mxu3 %v5333_v32  ;;  %v5320_v17 = vld [vmem:[%s7207_s7 + $0x40] sm:$0xff] }
 0x2f1   :  { %2612 = vst.msk [vmem:[#allocation3 + $0x40] sm:$0xf] %vm936_vm2, %v2608_v29  ;;  %v5342_v29 = vld [vmem:[%s7207_s7 + $0xf0] sm:$0xff] }
 0x2f2   :  { %3179 = vmatpush.bf16.msrb.mxu0 %v5342_v29 }
 0x2f3   :  { %v2661_v63 = vld.sshfl [vmem:[#allocation1] sm:$0xff pattern:$0x75643120]  ;;  %v2311_v13 = vpop.permute.xlu2 %2310  ;;  %3201 = vmatpush.bf16.msrb.mxu1 %v5347_v41 }
 0x2f4   :  { %2665 = vst.msk [vmem:[#allocation3 + $0x30] sm:$0xf] %vm936_vm2, %v2661_v63  ;;  %v5304_v2 = vld [vmem:[#allocation3 + $0x10] sm:$0xf0]  ;;  %3162 = vmatpush.bf16.msra.mxu3 %v5332_v22 }
 0x2f5   :  { %2672 = vst [vmem:[#allocation1] ss:$2 sm:$0xff] %v6486_v33  ;;  %v5321_v63 = vld [vmem:[%s7207_s7 + $0x48] sm:$0xff] }
 0x2f6   :  { %2674 = vst [vmem:[#allocation1 + $0x1] ss:$2 sm:$0xff] %v6522_v59  ;;  %2425 = vrot.lane.b32.xlu1 %v6447_v61, %s5413_s2  ;;  %v2709_v61 = vsel %vm88_vm0, %v2455_v14, %v2707_v19  ;;  %3180 = vmatpush.bf16.msrb.mxu0 %v5341_v8 }
 0x2f7   :  { %v2623_v20 = vld.sshfl [vmem:[#allocation1 + $0x10] sm:$0xff pattern:$0x75643120]  ;;  %2316 = vst.msk [vmem:[#allocation3 + $0x4] sm:$0xf] %vm1040_vm6, %v2311_v13  ;;  %v2713_v6 = vshrl.u32 %v2709_v61, 16  ;;  %3202 = vmatpush.bf16.msrb.mxu1 %v5346_v9 }
 0x2f8   :  { %2657 = vst [vmem:[#allocation1 + $0x10] ss:$2 sm:$0xff] %v6499_v51  ;;  %2627 = vrot.lane.b32.xlu0 %v2623_v20, %s5413_s2  ;;  %v2716_v23 = vshll.u32 %v2709_v61, 16  ;;  %3163 = vmatpush.bf16.msra.mxu3 %v5331_v35  ;;  %v5330_v13 = vld [vmem:[%s7207_s7 + $0x90] sm:$0xff] }
 0x2f9   :  { %2660 = vst [vmem:[#allocation1 + $0x11] ss:$2 sm:$0xff] %v2652_v62  ;;  %v2254_v26 = vpop.permute.xlu1 %2253  ;;  %v2715_v37 = vrot.slane %v2713_v6, 6 }
 0x2fa   :  { %2259 = vst.msk [vmem:[#allocation3] sm:$0xf] %vm1040_vm6, %v2254_v26  ;;  %v2718_v15 = vrot.slane %v2716_v23, 7  ;;  %3181 = vmatpush.bf16.msrb.mxu0 %v5340_v0  ;;  %v5345_v26 = vld [vmem:[%s7207_s7 + $0x108] sm:$0xff] }
 0x2fb   :  { %3203 = vmatpush.bf16.msrb.mxu1 %v5345_v26 }
 0x2fc   :  { %v2719_v31 = vor.u32 %v2718_v15, %v2715_v37  ;;  %3164 = vmatpush.bf16.msra.mxu3 %v5330_v13 }
 0x2fd   :  { %v2680_v52 = vld.sshfl [vmem:[#allocation1] sm:$0xff pattern:$0x75643120] }
 0x2fe   :  { %2684 = vrot.lane.b32.xlu1 %v2680_v52, %s5413_s2  ;;  %2692 = vst [vmem:[#allocation1] ss:$2 sm:$0xff] %v6434_v49  ;;  %v2710_v49 = vsel %vm91_vm1, %v2455_v14, %v2707_v19  ;;  %v2720_v16 = vrot.slane %v2719_v31, 2  ;;  %v5328_v19 = vld [vmem:[%s7207_s7 + $0x80] sm:$0xff]  ;;  %v5338_v52 = vld [vmem:[%s7207_s7 + $0xd0] sm:$0xff] }
 0x2ff   :  { %2694 = vst [vmem:[#allocation1 + $0x1] ss:$2 sm:$0xff] %v6437_v34  ;;  %v5327_v34 = vld [vmem:[%s7207_s7 + $0x78] sm:$0xff]  ;;  %v2712_v57 = vrot.slane %v2710_v49, 2 }
 0x300   :  { %v2662_v56 = vld.sshfl [vmem:[#allocation1 + $0x10] sm:$0xff pattern:$0x75643120]  ;;  %3140 = vmatpush.bf16.msra.mxu2 %v5327_v34  ;;  %v5302_v23 = vld [vmem:[#allocation3 + $0x4] sm:$0xf] }
 0x301   :  { %2666 = vst.msk [vmem:[#allocation3 + $0x44] sm:$0xf] %vm936_vm2, %v2662_v56  ;;  %v4834_v43 = vld [vmem:[#allocation3] sm:$0xf]  ;;  %v2722_v25 = vshll.u32 %v2712_v57, 16  ;;  %v2749_v47 = vrot.slane %v2712_v57, 7 }
 0x302   :  { %2676 = vst [vmem:[#allocation1 + $0x10] ss:$2 sm:$0xff] %v6533_v53  ;;  %v4835_v33 = vor.u32 %v5304_v2, %v4834_v43  ;;  %v5337_v56 = vld [vmem:[%s7207_s7 + $0xc8] sm:$0xff] }
 0x303   :  { %2679 = vst [vmem:[#allocation1 + $0x11] ss:$2 sm:$0xff] %v2671_v46 }
 0x304   :  { %3129 = vmatmul.bf16.vlgmr.msra.gmra.mxu1 %v4835_v33  ;;  %3141 = vmatpush.bf16.msra.mxu2 %v5326_v40 }
 0x306   :  { %v2700_v12 = vld.sshfl [vmem:[#allocation1] sm:$0xff pattern:$0x75643120] }
 0x307   :  { %2726 = vst [vmem:[#allocation1] ss:$2 sm:$0xff] %v6495_v39  ;;  %v2724_v39 = vrot.slane %v2722_v25, 7 }
 0x308   :  { %2728 = vst [vmem:[#allocation1 + $0x1] ss:$2 sm:$0xff] %v6499_v51  ;;  %3142 = vmatpush.bf16.msra.mxu2 %v5325_v38 }
 0x309   :  { %2704 = vst.msk [vmem:[#allocation3 + $0x34] sm:$0xf] %vm936_vm2, %v2700_v12  ;;  %v2725_v5 = vsel %vm5621_vm8, %v2720_v16, %v2724_v39  ;;  %v5306_v16 = vld [vmem:[#allocation3 + $0x20] sm:$0xf0] }
 0x30a   :  { %v2682_v48 = vld.sshfl [vmem:[#allocation1 + $0x10] sm:$0xff pattern:$0x75643120] }
 0x30b   :  { %2686 = vrot.lane.b32.xlu2 %v2682_v48, %s5413_s2  ;;  %2696 = vst [vmem:[#allocation1 + $0x10] ss:$2 sm:$0xff] %v6502_v27  ;;  %v4831_v27 = vrot.slane %v2709_v61, 9  ;;  %v5344_v61 = vld [vmem:[%s7207_s7 + $0x100] sm:$0xff] }
 0x30c   :  { %2699 = vst [vmem:[#allocation1 + $0x11] ss:$2 sm:$0xff] %v2455_v14  ;;  %3143 = vmatpush.bf16.msra.mxu2 %v5324_v36  ;;  %v5329_v14 = vld [vmem:[%s7207_s7 + $0x88] sm:$0xff]  ;;  %3204 = vmatpush.bf16.msrb.mxu1 %v5344_v61 }
 0x30d   :  { %3165 = vmatpush.bf16.msra.mxu3 %v5329_v14 }
 0x30f   :  { %v2734_v28 = vld.sshfl [vmem:[#allocation1] sm:$0xff pattern:$0x75643120] }
 0x310   :  { %2738 = vrot.lane.b32.xlu0 %v2734_v28, %s5413_s2  ;;  %2751 = vst [vmem:[#allocation1] ss:$2 sm:$0xff] %v6522_v59  ;;  %v2750_v59 = vsel %vm5828_vm5, %v4831_v27, %v2749_v47  ;;  %3144 = vmatpush.bf16.msra.mxu2 %v5323_v42 }
 0x311   :  { %2753 = vst [vmem:[#allocation1 + $0x1] ss:$2 sm:$0xff] %v6533_v53  ;;  %v2372_v51 = vpop.permute.xlu2 %2371  ;;  %3166 = vmatpush.bf16.msra.mxu3 %v5328_v19 }
 0x312   :  { %2376 = vst.msk [vmem:[#allocation3 + $0x1c] sm:$0xf] %vm1040_vm6, %v2372_v51 }
 0x313   :  { %v2701_v55 = vld.sshfl [vmem:[#allocation1 + $0x10] sm:$0xff pattern:$0x75643120] }
 0x314   :  { %2730 = vst [vmem:[#allocation1 + $0x10] ss:$2 sm:$0xff] %v2652_v62  ;;  %3145 = vmatpush.bf16.msra.mxu2 %v5322_v7  ;;  %v5339_v62 = vld [vmem:[%s7207_s7 + $0xd8] sm:$0xff] }
 0x315   :  { %2733 = vst [vmem:[#allocation1 + $0x11] ss:$2 sm:$0xff] %v2725_v5  ;;  %3182 = vmatpush.bf16.msrb.mxu0 %v5339_v62  ;;  %v4850_v5 = vld [vmem:[#allocation3 + $0x10] sm:$0xf]  ;;  %v6708_v62 = vld [vmem:[%s7208_s8] ss:$0 sm:$0xff] }
 0x316   :  { %2705 = vst.msk [vmem:[#allocation3 + $0x48] sm:$0xf] %vm936_vm2, %v2701_v55  ;;  %v4851_v47 = vor.u32 %v5306_v16, %v4850_v5 }
 0x318   :  { %v2759_v11 = vld.sshfl [vmem:[#allocation1] sm:$0xff pattern:$0x75643120]  ;;  %3146 = vmatpush.bf16.msra.mxu2 %v5321_v63 }
 0x319   :  { %2763 = vst.msk [vmem:[#allocation3 + $0x38] sm:$0xf] %vm936_vm2, %v2759_v11  ;;  %3183 = vmatpush.bf16.msrb.mxu0 %v5338_v52  ;;  %v5305_v31 = vld [vmem:[#allocation3 + $0x18] sm:$0xf0]  ;;  %v6713_v52 = vld [vmem:[%s7209_s9] ss:$0 sm:$0xff] }
 0x31a   :  { %3355 = vst [vmem:[#allocation1] ss:$2 sm:$0xff] %v6601_v54 }
 0x31c   :  { %v2736_v50 = vld.sshfl [vmem:[#allocation1 + $0x10] sm:$0xff pattern:$0x75643120]  ;;  %3147 = vmatpush.bf16.msra.mxu2 %v5320_v17 }
 0x31d   :  { %2740 = vrot.lane.b32.xlu1 %v2736_v50, %s5413_s2  ;;  %2755 = vst [vmem:[#allocation1 + $0x10] ss:$2 sm:$0xff] %v2671_v46  ;;  %3184 = vmatpush.bf16.msrb.mxu0 %v5337_v56 }
 0x31e   :  { %2758 = vst [vmem:[#allocation1 + $0x11] ss:$2 sm:$0xff] %v2750_v59 }
 0x320   :  { %v4870_v44 = vld [vmem:[#allocation3 + $0x38] sm:$0xf] }
 0x321   :  { %3185 = vmatpush.bf16.msrb.mxu0 %v5336_v10 }
 0x325   :  { %v2760_v53 = vld.sshfl [vmem:[#allocation1 + $0x10] sm:$0xff pattern:$0x75643120] }
 0x326   :  { %2764 = vst.msk [vmem:[#allocation3 + $0x4c] sm:$0xf] %vm936_vm2, %v2760_v53 }
 0x32d   :  { %v5311_v38 = vld [vmem:[#allocation3 + $0x48] sm:$0xf0] }
 0x32e   :  { %v4871_v36 = vor.u32 %v5311_v38, %v4870_v44 }
 0x345   :  { %v2626_v20 = vpop.permute.xlu2 %2625 }
 0x346   :  { %2631 = vst.msk [vmem:[#allocation3 + $0x2c] sm:$0xf] %vm1040_vm6, %v2626_v20 }
 0x34b   :  { %v2569_v21 = vpop.permute.xlu0 %2568 }
 0x34c   :  { %2574 = vst.msk [vmem:[#allocation3 + $0x28] sm:$0xf] %vm1040_vm6, %v2569_v21 }
 0x34d   :  { %v5307_v55 = vld [vmem:[#allocation3 + $0x2c] sm:$0xf] }
 0x353   :  { %v2313_v43 = vpop.permute.xlu0 %2312  ;;  %v4854_v34 = vld [vmem:[#allocation3 + $0x28] sm:$0xf] }
 0x354   :  { %2317 = vst.msk [vmem:[#allocation3 + $0x18] sm:$0xf] %vm1040_vm6, %v2313_v43 }
 0x358   :  { %v2571_v2 = vpop.permute.xlu1 %2570 }
 0x359   :  { %2575 = vst.msk [vmem:[#allocation3 + $0x3c] sm:$0xf] %vm1040_vm6, %v2571_v2 }
 0x35b   :  { %v2424_v6 = vpop.permute.xlu0 %2423  ;;  %v4836_v46 = vld [vmem:[#allocation3 + $0x14] sm:$0xf0] }
 0x35c   :  { %2429 = vst.msk [vmem:[#allocation3 + $0xc] sm:$0xf] %vm1040_vm6, %v2424_v6  ;;  %v4839_v33 = vor.u32 %v5302_v23, %v4836_v46 }
 0x35e   :  { %3148 = vmatmul.bf16.vlgmr.msra.gmra.mxu2 %v4839_v33 }
 0x360   :  { %v2370_v49 = vpop.permute.xlu1 %2369  ;;  %v5309_v57 = vld [vmem:[#allocation3 + $0x38] sm:$0xf0] }
 0x361   :  { %2375 = vst.msk [vmem:[#allocation3 + $0x8] sm:$0xf] %vm1040_vm6, %v2370_v49  ;;  %v4855_v37 = vor.u32 %v5309_v57, %v4854_v34  ;;  %v3375_v34 = vrot.slane %v6601_v54, 2 }
 0x363   :  { %3134 = vmatmul.bf16.gmra.mxu1 %v4855_v37  ;;  %v5303_v28 = vld [vmem:[#allocation3 + $0xc] sm:$0xf] }
 0x365   :  { %v2687_v15 = vpop.permute.xlu2 %2686 }
 0x366   :  { %2691 = vst.msk [vmem:[#allocation3 + $0x44] sm:$0xf] %vm1040_vm6, %v2687_v15 }
 0x368   :  { %v2426_v12 = vpop.permute.xlu1 %2425  ;;  %v4842_v40 = vld [vmem:[#allocation3 + $0x8] sm:$0xf] }
 0x369   :  { %2430 = vst.msk [vmem:[#allocation3 + $0x20] sm:$0xf] %vm1040_vm6, %v2426_v12  ;;  %v4843_v25 = vor.u32 %v5305_v31, %v4842_v40 }
 0x36a   :  { %v2628_v48 = vpop.permute.xlu0 %2627 }
 0x36b   :  { %2632 = vst.msk [vmem:[#allocation3 + $0x40] sm:$0xf] %vm1040_vm6, %v2628_v48  ;;  %3167 = vmatmul.bf16.vlgmr.msra.gmra.mxu3 %v4843_v25  ;;  %v6723_v25 = vsel %vm88_vm0, %v6601_v54, %v3375_v34 }
 0x36d   :  { %v5310_v53 = vld [vmem:[#allocation3 + $0x40] sm:$0xf0] }
 0x370   :  { %v2685_v39 = vpop.permute.xlu1 %2684  ;;  %v4844_v51 = vld [vmem:[#allocation3 + $0x1c] sm:$0xf0] }
 0x371   :  { %2690 = vst.msk [vmem:[#allocation3 + $0x30] sm:$0xf] %vm1040_vm6, %v2685_v39  ;;  %v4847_v27 = vor.u32 %v5303_v28, %v4844_v51 }
 0x372   :  { %v4856_v11 = vld [vmem:[#allocation3 + $0x3c] sm:$0xf0] }
 0x373   :  { %v4859_v59 = vor.u32 %v5307_v55, %v4856_v11  ;;  %3186 = vmatmul.bf16.vlgmr.msrb.gmra.mxu0 %v4847_v27  ;;  %5016 = vmatmul.msk.bf16.vlgmr.msrb.gmra.mxu1 %vm1905_vm7, %v4851_v47  ;;  %v6728_v27 = vsel %vm91_vm1, %v6601_v54, %v3375_v34  ;;  %v3399_v47 = vshrl.u32 %v6723_v25, 16  ;;  %v3402_v11 = vshll.u32 %v6723_v25, 16 }
 0x374   :  { %v3383_v44 = vrot.slane %v6728_v27, 2 }
 0x375   :  { %3153 = vmatmul.bf16.gmra.mxu2 %v4859_v59  ;;  %v3282_v59 = vld [vmem:[#allocation2 + $0x4] sm:$0x7] }
 0x378   :  { %v4862_v50 = vld [vmem:[#allocation3 + $0x30] sm:$0xf] }
 0x379   :  { %v4863_v24 = vor.u32 %v5310_v53, %v4862_v50 }
 0x37b   :  { %3172 = vmatmul.bf16.gmra.mxu3 %v4863_v24 }
 0x381   :  { %v3130_v22 = vpop.f32.mrf.mxu1 }
 0x382   :  { %v2739_v32 = vpop.permute.xlu0 %2738 }
 0x383   :  { %2744 = vst.msk [vmem:[#allocation3 + $0x34] sm:$0xf] %vm1040_vm6, %v2739_v32  ;;  %5017 = vmatmul.msk.bf16.gmra.mxu1 %vm1905_vm7, %v4871_v36 }
 0x389   :  { %v3132_v7 = vpop.f32.mrf.mxu1 }
 0x38a   :  { %v5308_v42 = vld [vmem:[#allocation3 + $0x34] sm:$0xf] }
 0x38f   :  { %v2741_v1 = vpop.permute.xlu1 %2740 }
 0x390   :  { %2745 = vst.msk [vmem:[#allocation3 + $0x48] sm:$0xf] %vm1040_vm6, %v2741_v1  ;;  %v3401_v1 = vrot.slane %v3399_v47, 6 }
 0x397   :  { %v4864_v41 = vld [vmem:[#allocation3 + $0x44] sm:$0xf0] }
 0x398   :  { %v4867_v29 = vor.u32 %v5308_v42, %v4864_v41  ;;  %v3404_v42 = vrot.slane %v3402_v11, 7 }
 0x39a   :  { %3191 = vmatmul.bf16.gmra.mxu0 %v4867_v29 }
 0x3e0   :  { %v6701_v35 = vpop.f32.mrf.mxu1 }
 0x3e1   :  { %v3149_v8 = vpop.f32.mrf.mxu2 }
 0x3e2   :  { %v3150_v9 = vadd.f32 %v3149_v8, %v3130_v22 }
 0x3e8   :  { %v6703_v63 = vpop.f32.mrf.mxu1 }
 0x3e9   :  { %v3151_v26 = vpop.f32.mrf.mxu2 }
 0x3ea   :  { %v3152_v21 = vadd.f32 %v3151_v26, %v3132_v7  ;;  %v3408_v7 = vshll.u32 %v3383_v44, 16 }
 0x3ee   :  { %v3168_v13 = vpop.f32.mrf.mxu3 }
 0x3ef   :  { %v3169_v0 = vadd.f32 %v3168_v13, %v3150_v9 }
 0x3f0   :  { %v3187_v17 = vpop.f32.mrf.mxu0  ;;  %v3206_v20 = vpop.f32.mrf.mxu1 }
 0x3f1   :  { %v3188_v14 = vadd.f32 %v3187_v17, %v3169_v0  ;;  %v3405_v0 = vor.u32 %v3404_v42, %v3401_v1  ;;  %v3288_v17 = vld [vmem:[#allocation2 + $0xc] sm:$0x7] }
 0x3f3   :  { %v3207_v19 = vadd.f32 %v3206_v20, %v3188_v14 }
 0x3f5   :  { %v3220_v61 = vmul.f32 %v6708_v62, %v3207_v19 }
 0x3f6   :  { %v3170_v56 = vpop.f32.mrf.mxu3 }
 0x3f7   :  { %v3228_v10 = vadd.f32 %v6713_v52, %v3220_v61  ;;  %v3171_v43 = vadd.f32 %v3170_v56, %v3152_v21  ;;  %v3291_v21 = vld [vmem:[#allocation2 + $0x10] sm:$0x7]  ;;  %v3410_v61 = vrot.slane %v3408_v7, 7 }
 0x3f8   :  { %v3189_v2 = vpop.f32.mrf.mxu0  ;;  %v3208_v46 = vpop.f32.mrf.mxu1 }
 0x3f9   :  { %v3232_v6 = vadd.f32 %v3228_v10, %v5748_v45  ;;  %v3190_v23 = vadd.f32 %v3189_v2, %v3171_v43  ;;  %v3154_v10 = vpop.f32.mrf.mxu2  ;;  %v3406_v2 = vrot.slane %v3405_v0, 2 }
 0x3fb   :  { %v3236_v33 = vmax.f32 %v3232_v6, 0.0  ;;  %v3209_v49 = vadd.f32 %v3208_v46, %v3190_v23 }
 0x3fd   :  { %v3242_v57 = vrot.slane %v3236_v33, 4  ;;  %v3246_v37 = vpack.c.bf16 %v3236_v33, %v3236_v33  ;;  %v3221_v15 = vmul.f32 %v6708_v62, %v3209_v49 }
 0x3ff   :  { %v3247_v12 = vpack.c.bf16 %v3242_v57, %v3242_v57  ;;  %v3251_v40 = vshrl.u32 %v3246_v37, 16  ;;  %v3229_v31 = vadd.f32 %v6713_v52, %v3221_v15  ;;  %v3254_v45 = vshll.u32 %v3246_v37, 16  ;;  %v3173_v57 = vpop.f32.mrf.mxu3 }
 0x401   :  { %v3253_v48 = vrot.slane %v3251_v40, 7  ;;  %v3258_v16 = vshrl.u32 %v3247_v12, 16  ;;  %v3233_v39 = vadd.f32 %v3229_v31, %v5765_v3  ;;  %v3261_v5 = vshll.u32 %v3247_v12, 16  ;;  %v3285_v3 = vld [vmem:[#allocation2 + $0x8] sm:$0x7] }
 0x403   :  { %v3256_v28 = vor.u32 %v3254_v45, %v3253_v48  ;;  %v3260_v51 = vrot.slane %v3258_v16, 7  ;;  %v3237_v55 = vmax.f32 %v3233_v39, 0.0  ;;  %v3411_v48 = vsel %vm5621_vm8, %v3406_v2, %v3410_v61 }
 0x404   :  { %v3155_v39 = vadd.f32 %v3154_v10, %v6701_v35 }
 0x405   :  { %v3263_v50 = vor.u32 %v3261_v5, %v3260_v51  ;;  %v3283_v53 = vsel %vm5759_vm11, %v3256_v28, %v3282_v59  ;;  %v3243_v24 = vrot.slane %v3237_v55, 4  ;;  %v3248_v38 = vpack.c.bf16 %v3237_v55, %v3237_v55 }
 0x406   :  { %3284 = vst [vmem:[#allocation2 + $0x4] sm:$0x7] %v3283_v53  ;;  %v3174_v59 = vadd.f32 %v3173_v57, %v3155_v39 }
 0x407   :  { %v3286_v36 = vsel %vm5759_vm11, %v3263_v50, %v3285_v3  ;;  %v3249_v54 = vpack.c.bf16 %v3243_v24, %v3243_v24  ;;  %v3265_v32 = vshrl.u32 %v3248_v38, 16  ;;  %v3268_v29 = vshll.u32 %v3248_v38, 16  ;;  %v3211_v38 = vpop.f32.mrf.mxu1 }
 0x408   :  { %3287 = vst [vmem:[#allocation2 + $0x8] sm:$0x7] %v3286_v36 }
 0x409   :  { %v3267_v41 = vrot.slane %v3265_v32, 7  ;;  %v3272_v22 = vshrl.u32 %v3249_v54, 16  ;;  %v3275_v13 = vshll.u32 %v3249_v54, 16 }
 0x40b   :  { %v3270_v8 = vor.u32 %v3268_v29, %v3267_v41  ;;  %v3274_v9 = vrot.slane %v3272_v22, 7  ;;  %v3156_v41 = vpop.f32.mrf.mxu2 }
 0x40d   :  { %v6739_v20 = vld [vmem:[#allocation2 + $0x4] sm:$0x7]  ;;  %v3277_v14 = vor.u32 %v3275_v13, %v3274_v9  ;;  %v3289_v26 = vsel %vm5759_vm11, %v3270_v8, %v3288_v17  ;;  %v3175_v9 = vpop.f32.mrf.mxu3 }
 0x40e   :  { %3358 = vst [vmem:[#allocation1 + $0x1] ss:$2 sm:$0xff] %v6739_v20  ;;  %v3376_v19 = vrot.slane %v6739_v20, 2 }
 0x40f   :  { %v6745_v56 = vld [vmem:[#allocation2 + $0x8] sm:$0x7]  ;;  %3290 = vst [vmem:[#allocation2 + $0xc] sm:$0x7] %v3289_v26  ;;  %v3292_v43 = vsel %vm5759_vm11, %v3277_v14, %v3291_v21  ;;  %v3157_v26 = vadd.f32 %v3156_v41, %v6703_v63  ;;  %v3480_v21 = vrot.slane %v3383_v44, 7  ;;  %v3213_v44 = vpop.f32.mrf.mxu1 }
 0x410   :  { %3361 = vst [vmem:[#allocation1 + $0x10] ss:$2 sm:$0xff] %v6745_v56  ;;  %v3377_v6 = vrot.slane %v6745_v56, 2  ;;  %v6753_v23 = vsel %vm88_vm0, %v6739_v20, %v3376_v19  ;;  %v3386_v46 = vsel %vm91_vm1, %v6739_v20, %v3376_v19  ;;  %v5018_v19 = vrot.slane %v6723_v25, 9 }
 0x411   :  { %v3388_v33 = vrot.slane %v3386_v46, 2  ;;  %v3412_v49 = vshrl.u32 %v6753_v23, 16  ;;  %v3415_v34 = vshll.u32 %v6753_v23, 16  ;;  %3293 = vst [vmem:[#allocation2 + $0x10] sm:$0x7] %v3292_v43  ;;  %v3176_v43 = vadd.f32 %v3175_v9, %v3157_v26 }
 0x412   :  { %v6761_v37 = vsel %vm88_vm0, %v6745_v56, %v3377_v6  ;;  %v6765_v15 = vsel %vm91_vm1, %v6745_v56, %v3377_v6  ;;  %v3481_v27 = vsel %vm5828_vm5, %v5018_v19, %v3480_v21 }
 0x413   :  { %v3414_v12 = vrot.slane %v3412_v49, 6  ;;  %v3417_v40 = vrot.slane %v3415_v34, 7  ;;  %v3421_v31 = vshll.u32 %v3388_v33, 16  ;;  %v3425_v45 = vshrl.u32 %v6761_v37, 16 }
 0x414   :  { %v3428_v16 = vshll.u32 %v6761_v37, 16  ;;  %v3393_v51 = vrot.slane %v6765_v15, 2  ;;  %v3484_v46 = vrot.slane %v3388_v33, 7 }
 0x415   :  { %v3365_v28 = vld.sshfl [vmem:[#allocation1] sm:$0xff pattern:$0x75643120]  ;;  %v3418_v5 = vor.u32 %v3417_v40, %v3414_v12  ;;  %v3427_v55 = vrot.slane %v3425_v45, 6  ;;  %v3423_v53 = vrot.slane %v3421_v31, 7  ;;  %v5019_v31 = vrot.slane %v6753_v23, 9 }
 0x416   :  { %v3430_v47 = vrot.slane %v3428_v16, 7  ;;  %3369 = vst.msk [vmem:[#allocation3] sm:$0xf] %vm936_vm2, %v3365_v28  ;;  %v6774_v11 = vld [vmem:[#allocation2 + $0xc] sm:$0x7]  ;;  %v3434_v32 = vshll.u32 %v3393_v51, 16 }
 0x417   :  { %v3419_v50 = vrot.slane %v3418_v5, 2  ;;  %3452 = vst [vmem:[#allocation1] ss:$2 sm:$0xff] %v3411_v48  ;;  %v3378_v24 = vrot.slane %v6774_v11, 2  ;;  %v3192_v3 = vpop.f32.mrf.mxu0  ;;  %v6817_v16 = vsel %vm5828_vm5, %v5019_v31, %v3484_v46 }
 0x418   :  { %v3431_v36 = vor.u32 %v3430_v47, %v3427_v55  ;;  %3364 = vst [vmem:[#allocation1 + $0x11] ss:$2 sm:$0xff] %v6774_v11  ;;  %v3193_v35 = vadd.f32 %v3192_v3, %v3174_v59  ;;  %v3436_v61 = vrot.slane %v3434_v32, 7  ;;  %v6821_v23 = vld [vmem:[#allocation2 + $0x10] sm:$0x7]  ;;  %v3488_v47 = vrot.slane %v3393_v51, 7 }
 0x419   :  { %v6780_v54 = vsel %vm5621_vm8, %v3419_v50, %v3423_v53  ;;  %v6786_v1 = vsel %vm88_vm0, %v6774_v11, %v3378_v24  ;;  %v3396_v42 = vsel %vm91_vm1, %v6774_v11, %v3378_v24  ;;  %v3532_v3 = vrot.slane %v6821_v23, 2 }
 0x41a   :  { %3455 = vst [vmem:[#allocation1 + $0x1] ss:$2 sm:$0xff] %v6780_v54  ;;  %v3398_v29 = vrot.slane %v3396_v42, 2  ;;  %v3438_v22 = vshrl.u32 %v6786_v1, 16  ;;  %v3441_v7 = vshll.u32 %v6786_v1, 16  ;;  %v3432_v8 = vrot.slane %v3431_v36, 2 }
 0x41b   :  { %v3212_v13 = vadd.f32 %v3211_v38, %v3193_v35  ;;  %v5020_v38 = vrot.slane %v6761_v37, 9 }
 0x41c   :  { %v3440_v0 = vrot.slane %v3438_v22, 6  ;;  %v3443_v17 = vrot.slane %v3441_v7, 7  ;;  %v3447_v14 = vshll.u32 %v3398_v29, 16  ;;  %v6800_v6 = vsel %vm5621_vm8, %v3432_v8, %v3436_v61 }
 0x41d   :  { %v3222_v2 = vmul.f32 %v6708_v62, %v3212_v13  ;;  %v3492_v59 = vrot.slane %v3398_v29, 7  ;;  %v3336_v29 = vld [vmem:[#allocation2 + $0x1c] sm:$0x7]  ;;  %v6842_v7 = vsel %vm88_vm0, %v6821_v23, %v3532_v3 }
 0x41e   :  { %v3444_v10 = vor.u32 %v3443_v17, %v3440_v0  ;;  %v3449_v12 = vrot.slane %v3447_v14, 7  ;;  %v3339_v14 = vld [vmem:[#allocation2 + $0x20] sm:$0x7] }
 0x41f   :  { %v3366_v49 = vld.sshfl [vmem:[#allocation1 + $0x10] sm:$0xff pattern:$0x75643120]  ;;  %v3194_v34 = vpop.f32.mrf.mxu0  ;;  %v3230_v63 = vadd.f32 %v6713_v52, %v3222_v2 }
 0x420   :  { %v3445_v57 = vrot.slane %v3444_v10, 2  ;;  %3370 = vst.msk [vmem:[#allocation3 + $0x14] sm:$0xf] %vm936_vm2, %v3366_v49  ;;  %v3195_v25 = vadd.f32 %v3194_v34, %v3176_v43  ;;  %v3538_v10 = vshrl.u32 %v6842_v7, 16  ;;  %v3541_v43 = vshll.u32 %v6842_v7, 16 }
 0x421   :  { %3458 = vst [vmem:[#allocation1 + $0x10] ss:$2 sm:$0xff] %v6800_v6  ;;  %v3462_v40 = vld.sshfl [vmem:[#allocation1] sm:$0xff pattern:$0x75643120]  ;;  %v3234_v48 = vadd.f32 %v3230_v63, %v5908_v30  ;;  %v3535_v63 = vsel %vm91_vm1, %v6821_v23, %v3532_v3 }
 0x422   :  { %v6810_v33 = vsel %vm5621_vm8, %v3445_v57, %v3449_v12  ;;  %v3214_v45 = vadd.f32 %v3213_v44, %v3195_v25  ;;  %3466 = vrot.lane.b32.xlu2 %v3462_v40, %s5413_s2  ;;  %3495 = vst [vmem:[#allocation1] ss:$2 sm:$0xff] %v3481_v27  ;;  %v3345_v25 = vld [vmem:[#allocation2 + $0x28] sm:$0x7]  ;;  %v3540_v27 = vrot.slane %v3538_v10, 6  ;;  %v3543_v44 = vrot.slane %v3541_v43, 7 }
 0x423   :  { %3461 = vst [vmem:[#allocation1 + $0x11] ss:$2 sm:$0xff] %v6810_v33  ;;  %v3238_v39 = vmax.f32 %v3234_v48, 0.0  ;;  %v3537_v48 = vrot.slane %v3535_v63, 2 }
 0x424   :  { %v3223_v28 = vmul.f32 %v6708_v62, %v3214_v45  ;;  %3498 = vst [vmem:[#allocation1 + $0x1] ss:$2 sm:$0xff] %v6817_v16  ;;  %v5021_v62 = vrot.slane %v6786_v1, 9  ;;  %v3544_v45 = vor.u32 %v3543_v44, %v3540_v27 }
 0x425   :  { %v3296_v5 = vrot.slane %v3238_v39, 4  ;;  %v3300_v55 = vpack.c.bf16 %v3238_v39, %v3238_v39  ;;  %v3547_v39 = vshll.u32 %v3537_v48, 16 }
 0x426   :  { %v3231_v30 = vadd.f32 %v6713_v52, %v3223_v28  ;;  %v6832_v52 = vsel %vm5828_vm5, %v5020_v38, %v3488_v47  ;;  %v6836_v15 = vsel %vm5828_vm5, %v5021_v62, %v3492_v59  ;;  %v3545_v28 = vrot.slane %v3544_v45, 2 }
 0x427   :  { %v3301_v50 = vpack.c.bf16 %v3296_v5, %v3296_v5  ;;  %v3305_v53 = vshrl.u32 %v3300_v55, 16  ;;  %v3308_v35 = vshll.u32 %v3300_v55, 16  ;;  %v3549_v60 = vrot.slane %v3547_v39, 7 }
 0x428   :  { %v3235_v24 = vadd.f32 %v3231_v30, %v5926_v58  ;;  %v3568_v59 = vrot.slane %v3537_v48, 7 }
 0x429   :  { %v3307_v36 = vrot.slane %v3305_v53, 7  ;;  %v3312_v32 = vshrl.u32 %v3301_v50, 16  ;;  %v3315_v51 = vshll.u32 %v3301_v50, 16  ;;  %v3550_v30 = vsel %vm5621_vm8, %v3545_v28, %v3549_v60 }
 0x42a   :  { %v3239_v42 = vmax.f32 %v3235_v24, 0.0  ;;  %v3464_v58 = vld.sshfl [vmem:[#allocation1 + $0x10] sm:$0xff pattern:$0x75643120]  ;;  %v5022_v53 = vrot.slane %v6842_v7, 9 }
 0x42b   :  { %v3310_v41 = vor.u32 %v3308_v35, %v3307_v36  ;;  %v3314_v37 = vrot.slane %v3312_v32, 7  ;;  %3468 = vrot.lane.b32.xlu0 %v3464_v58, %s5413_s2  ;;  %3501 = vst [vmem:[#allocation1 + $0x10] ss:$2 sm:$0xff] %v6832_v52  ;;  %v3505_v8 = vld.sshfl [vmem:[#allocation1] sm:$0xff pattern:$0x75643120] }
 0x42c   :  { %v3297_v1 = vrot.slane %v3239_v42, 4  ;;  %v3302_v22 = vpack.c.bf16 %v3239_v42, %v3239_v42  ;;  %3504 = vst [vmem:[#allocation1 + $0x11] ss:$2 sm:$0xff] %v6836_v15  ;;  %v6881_v38 = vsel %vm5828_vm5, %v5022_v53, %v3568_v59 }
 0x42d   :  { %v3317_v9 = vor.u32 %v3315_v51, %v3314_v37  ;;  %v3337_v13 = vsel %vm5759_vm11, %v3310_v41, %v3336_v29  ;;  %3511 = vst [vmem:[#allocation1] ss:$2 sm:$0xff] %v6739_v20  ;;  %v3342_v20 = vld [vmem:[#allocation2 + $0x24] sm:$0x7]  ;;  %v3663_v51 = vld [vmem:[#allocation2 + $0x18] sm:$0x7] }
 0x42e   :  { %v3303_v0 = vpack.c.bf16 %v3297_v1, %v3297_v1  ;;  %v3319_v17 = vshrl.u32 %v3302_v22, 16  ;;  %3338 = vst [vmem:[#allocation2 + $0x1c] sm:$0x7] %v3337_v13  ;;  %v3322_v21 = vshll.u32 %v3302_v22, 16  ;;  %v3690_v41 = vrot.slane %v3663_v51, 2 }
 0x42f   :  { %v3340_v26 = vsel %vm5759_vm11, %v3317_v9, %v3339_v14  ;;  %3513 = vst [vmem:[#allocation1 + $0x1] ss:$2 sm:$0xff] %v6745_v56 }
 0x430   :  { %v3321_v19 = vrot.slane %v3319_v17, 7  ;;  %v3326_v61 = vshrl.u32 %v3303_v0, 16  ;;  %3341 = vst [vmem:[#allocation2 + $0x20] sm:$0x7] %v3340_v26  ;;  %v3329_v49 = vshll.u32 %v3303_v0, 16  ;;  %v6897_v22 = vsel %vm88_vm0, %v3663_v51, %v3690_v41 }
 0x431   :  { %3509 = vst.msk [vmem:[#allocation3 + $0x4] sm:$0xf] %vm936_vm2, %v3505_v8  ;;  %v3696_v8 = vsel %vm91_vm1, %v3663_v51, %v3690_v41  ;;  %v3714_v9 = vshrl.u32 %v6897_v22, 16 }
 0x432   :  { %v3324_v2 = vor.u32 %v3322_v21, %v3321_v19  ;;  %v3328_v46 = vrot.slane %v3326_v61, 7  ;;  %v3698_v17 = vrot.slane %v3696_v8, 2 }
 0x433   :  { %v3506_v12 = vld.sshfl [vmem:[#allocation1 + $0x10] sm:$0xff pattern:$0x75643120]  ;;  %v3716_v21 = vrot.slane %v3714_v9, 6 }
 0x434   :  { %v3331_v34 = vor.u32 %v3329_v49, %v3328_v46  ;;  %v3343_v57 = vsel %vm5759_vm11, %v3324_v2, %v3342_v20  ;;  %3515 = vst [vmem:[#allocation1 + $0x10] ss:$2 sm:$0xff] %v6774_v11 }
 0x435   :  { %3344 = vst [vmem:[#allocation2 + $0x24] sm:$0x7] %v3343_v57  ;;  %v6890_v37 = vld [vmem:[#allocation2 + $0x1c] sm:$0x7] }
 0x436   :  { %v3346_v40 = vsel %vm5759_vm11, %v3331_v34, %v3345_v25  ;;  %v3519_v31 = vld.sshfl [vmem:[#allocation1] sm:$0xff pattern:$0x75643120]  ;;  %3518 = vst [vmem:[#allocation1 + $0x11] ss:$2 sm:$0xff] %v6821_v23  ;;  %v3691_v1 = vrot.slane %v6890_v37, 2 }
 0x437   :  { %3347 = vst [vmem:[#allocation2 + $0x28] sm:$0x7] %v3346_v40  ;;  %3523 = vrot.lane.b32.xlu1 %v3519_v31, %s5413_s2  ;;  %v6914_v10 = vld [vmem:[#allocation2 + $0x20] sm:$0x7] }
 0x438   :  { %3551 = vst [vmem:[#allocation1] ss:$2 sm:$0xff] %v6780_v54  ;;  %v3353_v54 = vld [vmem:[#allocation2 + $0x14] sm:$0x7]  ;;  %v6904_v13 = vsel %vm88_vm0, %v6890_v37, %v3691_v1  ;;  %v3701_v46 = vsel %vm91_vm1, %v6890_v37, %v3691_v1  ;;  %v3692_v49 = vrot.slane %v6914_v10, 2 }
 0x439   :  { %3553 = vst [vmem:[#allocation1 + $0x1] ss:$2 sm:$0xff] %v6800_v6  ;;  %v3605_v47 = vrot.slane %v3353_v54, 2  ;;  %v3727_v14 = vshrl.u32 %v6904_v13, 16  ;;  %v3730_v26 = vshll.u32 %v6904_v13, 16  ;;  %v3703_v63 = vrot.slane %v3701_v46, 2 }
 0x43a   :  { %3510 = vst.msk [vmem:[#allocation3 + $0x18] sm:$0xf] %vm936_vm2, %v3506_v12  ;;  %v6927_v40 = vsel %vm88_vm0, %v6914_v10, %v3692_v49  ;;  %v3706_v59 = vsel %vm91_vm1, %v6914_v10, %v3692_v49  ;;  %v5025_v9 = vrot.slane %v6904_v13, 9 }
 0x43b   :  { %v3608_v36 = vsel %vm91_vm1, %v3353_v54, %v3605_v47  ;;  %v3729_v20 = vrot.slane %v3727_v14, 6  ;;  %v3732_v34 = vrot.slane %v3730_v26, 7  ;;  %v3736_v28 = vshll.u32 %v3703_v63, 16 }
 0x43c   :  { %v3610_v35 = vrot.slane %v3608_v36, 2  ;;  %v6916_v43 = vld [vmem:[#allocation2 + $0x24] sm:$0x7]  ;;  %v3740_v60 = vshrl.u32 %v6927_v40, 16 }
 0x43d   :  { %v3521_v55 = vld.sshfl [vmem:[#allocation1 + $0x10] sm:$0xff pattern:$0x75643120]  ;;  %v3693_v12 = vrot.slane %v6916_v43, 2  ;;  %v3733_v31 = vor.u32 %v3732_v34, %v3729_v20  ;;  %v5026_v34 = vrot.slane %v6927_v40, 9 }
 0x43e   :  { %3525 = vrot.lane.b32.xlu2 %v3521_v55, %s5413_s2  ;;  %3555 = vst [vmem:[#allocation1 + $0x10] ss:$2 sm:$0xff] %v6810_v33  ;;  %v3620_v29 = vshll.u32 %v3610_v35, 16  ;;  %v3647_v2 = vrot.slane %v3610_v35, 7  ;;  %v3742_v53 = vrot.slane %v3740_v60, 6 }
 0x43f   :  { %3558 = vst [vmem:[#allocation1 + $0x11] ss:$2 sm:$0xff] %v3550_v30  ;;  %v6932_v45 = vsel %vm88_vm0, %v6916_v43, %v3693_v12  ;;  %v3734_v55 = vrot.slane %v3733_v31, 2 }
 0x440   :  { %v3559_v5 = vld.sshfl [vmem:[#allocation1] sm:$0xff pattern:$0x75643120]  ;;  %v3622_v7 = vrot.slane %v3620_v29, 7 }
 0x441   :  { %3570 = vst [vmem:[#allocation1] ss:$2 sm:$0xff] %v6817_v16  ;;  %v3607_v16 = vsel %vm88_vm0, %v3353_v54, %v3605_v47 }
 0x442   :  { %3572 = vst [vmem:[#allocation1 + $0x1] ss:$2 sm:$0xff] %v6832_v52  ;;  %v3611_v62 = vshrl.u32 %v3607_v16, 16  ;;  %v3614_v3 = vshll.u32 %v3607_v16, 16 }
 0x443   :  { %3563 = vst.msk [vmem:[#allocation3 + $0x8] sm:$0xf] %vm936_vm2, %v3559_v5  ;;  %v3743_v5 = vshll.u32 %v6927_v40, 16  ;;  %v5373_v40 = vld [vmem:[%s7210_s10 + $0x78] sm:$0xff] }
 0x444   :  { %v3613_v32 = vrot.slane %v3611_v62, 6  ;;  %v3616_v42 = vrot.slane %v3614_v3, 7  ;;  %4353 = vmatpush.bf16.msrb.mxu3 %v5373_v40 }
 0x446   :  { %v3560_v50 = vld.sshfl [vmem:[#allocation1 + $0x10] sm:$0xff pattern:$0x75643120] }
 0x447   :  { %3574 = vst [vmem:[#allocation1 + $0x10] ss:$2 sm:$0xff] %v6836_v15 }
 0x448   :  { %3577 = vst [vmem:[#allocation1 + $0x11] ss:$2 sm:$0xff] %v6881_v38 }
 0x449   :  { %v6874_v24 = vld.sshfl [vmem:[#allocation1] sm:$0xff pattern:$0x75643120]  ;;  %3564 = vst.msk [vmem:[#allocation3 + $0x1c] sm:$0xf] %vm936_vm2, %v3560_v50  ;;  %v3738_v50 = vrot.slane %v3736_v28, 7 }
 0x44a   :  { %3590 = vst [vmem:[#allocation1] ss:$2 sm:$0xff] %v6745_v56 }
 0x44b   :  { %3592 = vst [vmem:[#allocation1 + $0x1] ss:$2 sm:$0xff] %v6774_v11  ;;  %v3617_v11 = vor.u32 %v3616_v42, %v3613_v32  ;;  %v6950_v3 = vsel %vm5621_vm8, %v3734_v55, %v3738_v50  ;;  %v5024_v32 = vrot.slane %v6897_v22, 9  ;;  %v3795_v42 = vrot.slane %v3698_v17, 7 }
 0x44f   :  { %v6888_v56 = vld.sshfl [vmem:[#allocation1 + $0x10] sm:$0xff pattern:$0x75643120] }
 0x450   :  { %3594 = vst [vmem:[#allocation1 + $0x10] ss:$2 sm:$0xff] %v6821_v23 }
 0x451   :  { %3597 = vst [vmem:[#allocation1 + $0x11] ss:$2 sm:$0xff] %v3353_v54  ;;  %v3756_v54 = vshll.u32 %v6932_v45, 16 }
 0x452   :  { %v3598_v58 = vld.sshfl [vmem:[#allocation1] sm:$0xff pattern:$0x75643120] }
 0x453   :  { %3624 = vst [vmem:[#allocation1] ss:$2 sm:$0xff] %v6800_v6  ;;  %v3618_v6 = vrot.slane %v3617_v11, 2  ;;  %v3758_v35 = vrot.slane %v3756_v54, 7  ;;  %v5362_v54 = vld [vmem:[%s7210_s10 + $0x20] sm:$0xff] }
 0x454   :  { %3626 = vst [vmem:[#allocation1 + $0x1] ss:$2 sm:$0xff] %v6810_v33  ;;  %v3717_v33 = vshll.u32 %v6897_v22, 16  ;;  %v3796_v22 = vsel %vm5828_vm5, %v5024_v32, %v3795_v42  ;;  %v5359_v32 = vld [vmem:[%s7210_s10 + $0x8] sm:$0xff]  ;;  %v3668_v42 = vld [vmem:[#allocation2 + $0x2c] sm:$0x7] }
 0x455   :  { %3602 = vst.msk [vmem:[#allocation3 + $0xc] sm:$0xf] %vm936_vm2, %v3598_v58  ;;  %v3623_v23 = vsel %vm5621_vm8, %v3618_v6, %v3622_v7  ;;  %v3799_v6 = vrot.slane %v3703_v63, 7 }
 0x456   :  { %v3719_v61 = vrot.slane %v3717_v33, 7 }
 0x457   :  { %v6963_v14 = vsel %vm5828_vm5, %v5025_v9, %v3799_v6  ;;  %v5368_v6 = vld [vmem:[%s7210_s10 + $0x50] sm:$0xff] }
 0x458   :  { %v3599_v19 = vld.sshfl [vmem:[#allocation1 + $0x10] sm:$0xff pattern:$0x75643120]  ;;  %v3720_v57 = vor.u32 %v3719_v61, %v3716_v21 }
 0x459   :  { %3628 = vst [vmem:[#allocation1 + $0x10] ss:$2 sm:$0xff] %v3550_v30  ;;  %v3753_v30 = vshrl.u32 %v6932_v45, 16 }
 0x45a   :  { %3631 = vst [vmem:[#allocation1 + $0x11] ss:$2 sm:$0xff] %v3623_v23  ;;  %v3721_v48 = vrot.slane %v3720_v57, 2  ;;  %v5027_v57 = vrot.slane %v6932_v45, 9 }
 0x45b   :  { %v6906_v0 = vld.sshfl [vmem:[#allocation1] sm:$0xff pattern:$0x75643120]  ;;  %3603 = vst.msk [vmem:[#allocation3 + $0x20] sm:$0xf] %vm936_vm2, %v3599_v19  ;;  %v3755_v36 = vrot.slane %v3753_v30, 6 }
 0x45c   :  { %3649 = vst [vmem:[#allocation1] ss:$2 sm:$0xff] %v6832_v52  ;;  %v5023_v52 = vrot.slane %v3607_v16, 9  ;;  %v3745_v16 = vrot.slane %v3743_v5, 7 }
 0x45d   :  { %3651 = vst [vmem:[#allocation1 + $0x1] ss:$2 sm:$0xff] %v6836_v15  ;;  %v3723_v15 = vshll.u32 %v3698_v17, 16  ;;  %v3759_v29 = vor.u32 %v3758_v35, %v3755_v36  ;;  %v5370_v36 = vld [vmem:[%s7210_s10 + $0x60] sm:$0xff] }
 0x45e   :  { %v3648_v27 = vsel %vm5828_vm5, %v5023_v52, %v3647_v2  ;;  %v3746_v11 = vor.u32 %v3745_v16, %v3742_v53  ;;  %v6977_v52 = vld [vmem:[#allocation2 + $0x28] sm:$0x7]  ;;  %v5365_v2 = vld [vmem:[%s7210_s10 + $0x38] sm:$0xff]  ;;  %v5371_v53 = vld [vmem:[%s7210_s10 + $0x68] sm:$0xff] }
 0x45f   :  { %v3725_v44 = vrot.slane %v3723_v15, 7  ;;  %v3760_v33 = vrot.slane %v3759_v29, 2  ;;  %v3847_v49 = vrot.slane %v6977_v52, 2  ;;  %4334 = vmatpush.bf16.msrb.mxu2 %v5365_v2 }
 0x460   :  { %v3747_v8 = vrot.slane %v3746_v11, 2 }
 0x461   :  { %v6935_v39 = vld.sshfl [vmem:[#allocation1 + $0x10] sm:$0xff pattern:$0x75643120]  ;;  %v3726_v47 = vsel %vm5621_vm8, %v3721_v48, %v3725_v44  ;;  %v7003_v44 = vsel %vm88_vm0, %v6977_v52, %v3847_v49  ;;  %v3850_v45 = vsel %vm91_vm1, %v6977_v52, %v3847_v49 }
 0x462   :  { %3653 = vst [vmem:[#allocation1 + $0x10] ss:$2 sm:$0xff] %v6881_v38  ;;  %v3711_v38 = vsel %vm91_vm1, %v6916_v43, %v3693_v12  ;;  %v5364_v12 = vld [vmem:[%s7210_s10 + $0x30] sm:$0xff]  ;;  %v3853_v31 = vshrl.u32 %v7003_v44, 16  ;;  %v3856_v48 = vshll.u32 %v7003_v44, 16  ;;  %v3852_v30 = vrot.slane %v3850_v45, 2 }
 0x463   :  { %3656 = vst [vmem:[#allocation1 + $0x11] ss:$2 sm:$0xff] %v3648_v27  ;;  %v3713_v58 = vrot.slane %v3711_v38, 2  ;;  %4335 = vmatpush.bf16.msrb.mxu2 %v5364_v12  ;;  %v5389_v45 = vld [vmem:[%s7210_s10 + $0xf8] sm:$0xff] }
 0x464   :  { %v3657_v25 = vld.sshfl [vmem:[#allocation1] sm:$0xff pattern:$0x75643120]  ;;  %v3855_v60 = vrot.slane %v3853_v31, 6  ;;  %v3858_v5 = vrot.slane %v3856_v48, 7  ;;  %v3862_v50 = vshll.u32 %v3852_v30, 16  ;;  %4391 = vmatpush.bf16.msra.mxu1 %v5389_v45 }
 0x465   :  { %3670 = vst [vmem:[#allocation1] ss:$2 sm:$0xff] %v3663_v51  ;;  %v3708_v51 = vrot.slane %v3706_v59, 2  ;;  %v3762_v7 = vshll.u32 %v3713_v58, 16  ;;  %v3807_v15 = vrot.slane %v3713_v58, 7  ;;  %v3920_v58 = vrot.slane %v3668_v42, 2 }
 0x466   :  { %3673 = vst [vmem:[#allocation1 + $0x1] ss:$2 sm:$0xff] %v6890_v37  ;;  %v3859_v59 = vor.u32 %v3858_v5, %v3855_v60  ;;  %v3883_v11 = vrot.slane %v3852_v30, 7  ;;  %v5393_v60 = vld [vmem:[%s7210_s10 + $0x118] sm:$0xff]  ;;  %v5386_v5 = vld [vmem:[%s7210_s10 + $0xe0] sm:$0xff]  ;;  %v5392_v30 = vld [vmem:[%s7210_s10 + $0x110] sm:$0xff] }
 0x467   :  { %3661 = vst.msk [vmem:[#allocation3 + $0x10] sm:$0xf] %vm936_vm2, %v3657_v25  ;;  %v3749_v1 = vshll.u32 %v3708_v51, 16  ;;  %v3764_v26 = vrot.slane %v3762_v7, 7  ;;  %v3803_v46 = vrot.slane %v3708_v51, 7  ;;  %v6999_v27 = vsel %vm5828_vm5, %v5027_v57, %v3807_v15  ;;  %v5369_v51 = vld [vmem:[%s7210_s10 + $0x58] sm:$0xff] }
 0x468   :  { %v3860_v16 = vrot.slane %v3859_v59, 2  ;;  %v5383_v59 = vld [vmem:[%s7210_s10 + $0xc8] sm:$0xff] }
 0x469   :  { %v3751_v17 = vrot.slane %v3749_v1, 7  ;;  %v6973_v13 = vsel %vm5621_vm8, %v3760_v33, %v3764_v26  ;;  %v6994_v63 = vsel %vm5828_vm5, %v5026_v34, %v3803_v46  ;;  %v5358_v1 = vld [vmem:[%s7210_s10] sm:$0xff]  ;;  %v3923_v33 = vsel %vm91_vm1, %v3668_v42, %v3920_v58 }
 0x46a   :  { %v3658_v41 = vld.sshfl [vmem:[#allocation1 + $0x10] sm:$0xff pattern:$0x75643120] }
 0x46b   :  { %3676 = vst [vmem:[#allocation1 + $0x10] ss:$2 sm:$0xff] %v6914_v10  ;;  %v6969_v19 = vsel %vm5621_vm8, %v3747_v8, %v3751_v17  ;;  %v5367_v8 = vld [vmem:[%s7210_s10 + $0x48] sm:$0xff]  ;;  %v5366_v17 = vld [vmem:[%s7210_s10 + $0x40] sm:$0xff] }
 0x46c   :  { %3679 = vst [vmem:[#allocation1 + $0x11] ss:$2 sm:$0xff] %v6916_v43 }
 0x46d   :  { %v3680_v62 = vld.sshfl [vmem:[#allocation1] sm:$0xff pattern:$0x75643120]  ;;  %3662 = vst.msk [vmem:[#allocation3 + $0x24] sm:$0xf] %vm936_vm2, %v3658_v41 }
 0x46e   :  { %3767 = vst [vmem:[#allocation1] ss:$2 sm:$0xff] %v3726_v47  ;;  %v5372_v47 = vld [vmem:[%s7210_s10 + $0x70] sm:$0xff] }
 0x46f   :  { %3770 = vst [vmem:[#allocation1 + $0x1] ss:$2 sm:$0xff] %v6950_v3  ;;  %4354 = vmatpush.bf16.msrb.mxu3 %v5372_v47  ;;  %v5381_v47 = vld [vmem:[%s7210_s10 + $0xb8] sm:$0xff] }
 0x470   :  { %3684 = vst.msk [vmem:[#allocation3 + $0x28] sm:$0xf] %vm936_vm2, %v3680_v62  ;;  %v3864_v62 = vrot.slane %v3862_v50, 7  ;;  %v5391_v50 = vld [vmem:[%s7210_s10 + $0x108] sm:$0xff]  ;;  %4372 = vmatpush.bf16.msra.mxu0 %v5381_v47 }
 0x473   :  { %v3681_v21 = vld.sshfl [vmem:[#allocation1 + $0x10] sm:$0xff pattern:$0x75643120]  ;;  %4355 = vmatpush.bf16.msrb.mxu3 %v5371_v53  ;;  %v5382_v53 = vld [vmem:[%s7210_s10 + $0xc0] sm:$0xff] }
 0x474   :  { %3773 = vst [vmem:[#allocation1 + $0x10] ss:$2 sm:$0xff] %v6969_v19 }
 0x475   :  { %3776 = vst [vmem:[#allocation1 + $0x11] ss:$2 sm:$0xff] %v6973_v13 }
 0x476   :  { %v3777_v23 = vld.sshfl [vmem:[#allocation1] sm:$0xff pattern:$0x75643120]  ;;  %3685 = vst.msk [vmem:[#allocation3 + $0x3c] sm:$0xf] %vm936_vm2, %v3681_v21 }
 0x477   :  { %3810 = vst [vmem:[#allocation1] ss:$2 sm:$0xff] %v3796_v22  ;;  %3781 = vrot.lane.b32.xlu0 %v3777_v23, %s5413_s2  ;;  %4356 = vmatpush.bf16.msrb.mxu3 %v5370_v36  ;;  %v3922_v22 = vsel %vm88_vm0, %v3668_v42, %v3920_v58  ;;  %v5378_v36 = vld [vmem:[%s7210_s10 + $0xa0] sm:$0xff] }
 0x478   :  { %3813 = vst [vmem:[#allocation1 + $0x1] ss:$2 sm:$0xff] %v6963_v14  ;;  %v3926_v23 = vshrl.u32 %v3922_v22, 16  ;;  %v5029_v40 = vrot.slane %v3922_v22, 9 }
 0x47a   :  { %v3928_v26 = vrot.slane %v3926_v23, 6 }
 0x47b   :  { %4357 = vmatpush.bf16.msrb.mxu3 %v5369_v51  ;;  %v5376_v51 = vld [vmem:[%s7210_s10 + $0x90] sm:$0xff] }
 0x47c   :  { %v3467_v61 = vpop.permute.xlu2 %3466  ;;  %v3779_v25 = vld.sshfl [vmem:[#allocation1 + $0x10] sm:$0xff pattern:$0x75643120] }
 0x47d   :  { %3472 = vst.msk [vmem:[#allocation3] sm:$0xf] %vm1040_vm6, %v3467_v61  ;;  %3783 = vrot.lane.b32.xlu1 %v3779_v25, %s5413_s2 }
 0x47e   :  { %3816 = vst [vmem:[#allocation1 + $0x10] ss:$2 sm:$0xff] %v6994_v63 }
 0x47f   :  { %v3820_v20 = vld.sshfl [vmem:[#allocation1] sm:$0xff pattern:$0x75643120]  ;;  %3819 = vst [vmem:[#allocation1 + $0x11] ss:$2 sm:$0xff] %v6999_v27  ;;  %4358 = vmatpush.bf16.msrb.mxu3 %v5368_v6 }
 0x480   :  { %3824 = vst.msk [vmem:[#allocation3 + $0x2c] sm:$0xf] %vm936_vm2, %v3820_v20  ;;  %v5374_v6 = vld [vmem:[%s7210_s10 + $0x80] sm:$0xff] }
 0x481   :  { %3826 = vst [vmem:[#allocation1] ss:$2 sm:$0xff] %v6890_v37  ;;  %v5363_v37 = vld [vmem:[%s7210_s10 + $0x28] sm:$0xff] }
 0x482   :  { %3828 = vst [vmem:[#allocation1 + $0x1] ss:$2 sm:$0xff] %v6914_v10  ;;  %4336 = vmatpush.bf16.msrb.mxu2 %v5363_v37 }
 0x483   :  { %4359 = vmatpush.bf16.msrb.mxu3 %v5367_v8  ;;  %v5352_v8 = vld [vmem:[#allocation3 + $0x20] sm:$0xf0] }
 0x484   :  { %v5032_v20 = vld [vmem:[#allocation3] sm:$0xf] }
 0x485   :  { %3636 = vrot.lane.b32.xlu1 %v6906_v0, %s5413_s2  ;;  %v5361_v0 = vld [vmem:[%s7210_s10 + $0x18] sm:$0xff] }
 0x486   :  { %v3821_v55 = vld.sshfl [vmem:[#allocation1 + $0x10] sm:$0xff pattern:$0x75643120]  ;;  %4337 = vmatpush.bf16.msrb.mxu2 %v5362_v54 }
 0x487   :  { %3825 = vst.msk [vmem:[#allocation3 + $0x40] sm:$0xf] %vm936_vm2, %v3821_v55  ;;  %4360 = vmatpush.bf16.msrb.mxu3 %v5366_v17  ;;  %v5385_v55 = vld [vmem:[%s7210_s10 + $0xd8] sm:$0xff]  ;;  %v5384_v54 = vld [vmem:[%s7210_s10 + $0xd0] sm:$0xff] }
 0x488   :  { %3830 = vst [vmem:[#allocation1 + $0x10] ss:$2 sm:$0xff] %v6916_v43 }
 0x489   :  { %v3834_v28 = vld.sshfl [vmem:[#allocation1] sm:$0xff pattern:$0x75643120]  ;;  %3833 = vst [vmem:[#allocation1 + $0x11] ss:$2 sm:$0xff] %v6977_v52 }
 0x48a   :  { %3866 = vst [vmem:[#allocation1] ss:$2 sm:$0xff] %v6950_v3  ;;  %3838 = vrot.lane.b32.xlu2 %v3834_v28, %s5413_s2  ;;  %4338 = vmatpush.bf16.msrb.mxu2 %v5361_v0  ;;  %v5360_v3 = vld [vmem:[%s7210_s10 + $0x10] sm:$0xff] }
 0x48b   :  { %3868 = vst [vmem:[#allocation1 + $0x1] ss:$2 sm:$0xff] %v6969_v19  ;;  %v5388_v28 = vld [vmem:[%s7210_s10 + $0xf0] sm:$0xff]  ;;  %5394 = vmatpush.bf16.msra.mxu3 %v5381_v47  ;;  %v5410_v47 = vld [vmem:[%s7211_s11] ss:$0 sm:$0xff] }
 0x48c   :  { %4392 = vmatpush.bf16.msra.mxu1 %v5388_v28  ;;  %v5380_v0 = vld [vmem:[%s7210_s10 + $0xb0] sm:$0xff] }
 0x48d   :  { %4373 = vmatpush.bf16.msra.mxu0 %v5380_v0 }
 0x48e   :  { %4339 = vmatpush.bf16.msrb.mxu2 %v5360_v3  ;;  %v5390_v3 = vld [vmem:[%s7210_s10 + $0x100] sm:$0xff] }
 0x48f   :  { %5395 = vmatpush.bf16.msra.mxu3 %v5380_v0 }
 0x490   :  { %v3836_v35 = vld.sshfl [vmem:[#allocation1 + $0x10] sm:$0xff pattern:$0x75643120]  ;;  %4393 = vmatpush.bf16.msra.mxu1 %v5387_v18 }
 0x491   :  { %3840 = vrot.lane.b32.xlu0 %v3836_v35, %s5413_s2  ;;  %3870 = vst [vmem:[#allocation1 + $0x10] ss:$2 sm:$0xff] %v6973_v13 }
 0x492   :  { %v3874_v38 = vld.sshfl [vmem:[#allocation1] sm:$0xff pattern:$0x75643120]  ;;  %3638 = vrot.lane.b32.xlu2 %v6935_v39, %s5413_s2  ;;  %v7051_v39 = vsel %vm5621_vm8, %v3860_v16, %v3864_v62  ;;  %4340 = vmatpush.bf16.msrb.mxu2 %v5359_v32  ;;  %v5379_v62 = vld [vmem:[%s7210_s10 + $0xa8] sm:$0xff] }
 0x493   :  { %3878 = vst.msk [vmem:[#allocation3 + $0x30] sm:$0xf] %vm936_vm2, %v3874_v38  ;;  %5396 = vmatpush.bf16.msra.mxu3 %v5379_v62  ;;  %4374 = vmatpush.bf16.msra.mxu0 %v5379_v62 }
 0x494   :  { %3885 = vst [vmem:[#allocation1] ss:$2 sm:$0xff] %v6963_v14  ;;  %v3925_v14 = vrot.slane %v3923_v33, 2  ;;  %4394 = vmatpush.bf16.msra.mxu1 %v5386_v5 }
 0x495   :  { %3887 = vst [vmem:[#allocation1 + $0x1] ss:$2 sm:$0xff] %v6994_v63 }
 0x496   :  { %3873 = vst [vmem:[#allocation1 + $0x11] ss:$2 sm:$0xff] %v7051_v39  ;;  %4341 = vmatpush.bf16.msrb.mxu2 %v5358_v1  ;;  %v3935_v2 = vshll.u32 %v3925_v14, 16  ;;  %v3962_v31 = vrot.slane %v3925_v14, 7 }
 0x497   :  { %5397 = vmatpush.bf16.msra.mxu3 %v5378_v36  ;;  %4375 = vmatpush.bf16.msra.mxu0 %v5378_v36 }
 0x498   :  { %v3526_v41 = vpop.permute.xlu2 %3525  ;;  %v3963_v4 = vsel %vm5828_vm5, %v5029_v40, %v3962_v31  ;;  %4395 = vmatpush.bf16.msra.mxu1 %v5385_v55 }
 0x499   :  { %3530 = vst.msk [vmem:[#allocation3 + $0x18] sm:$0xf] %vm1040_vm6, %v3526_v41 }
 0x49a   :  { %3582 = vrot.lane.b32.xlu2 %v6874_v24, %s5413_s2  ;;  %v5028_v24 = vrot.slane %v7003_v44, 9  ;;  %4414 = vmatpush.bf16.msra.mxu2 %v5393_v60 }
 0x49c   :  { %v3893_v29 = vld.sshfl [vmem:[#allocation1] sm:$0xff pattern:$0x75643120]  ;;  %v3884_v9 = vsel %vm5828_vm5, %v5028_v24, %v3883_v11  ;;  %4396 = vmatpush.bf16.msra.mxu1 %v5384_v54 }
 0x49d   :  { %3905 = vst [vmem:[#allocation1] ss:$2 sm:$0xff] %v6914_v10  ;;  %v3875_v7 = vld.sshfl [vmem:[#allocation1 + $0x10] sm:$0xff pattern:$0x75643120]  ;;  %3897 = vrot.lane.b32.xlu0 %v3893_v29, %s5413_s2  ;;  %v3469_v10 = vpop.permute.xlu0 %3468  ;;  %v5375_v29 = vld [vmem:[%s7210_s10 + $0x88] sm:$0xff] }
 0x49e   :  { %3907 = vst [vmem:[#allocation1 + $0x1] ss:$2 sm:$0xff] %v6916_v43  ;;  %v3929_v43 = vshll.u32 %v3922_v22, 16  ;;  %4415 = vmatpush.bf16.msra.mxu2 %v5392_v30 }
 0x49f   :  { %3879 = vst.msk [vmem:[#allocation3 + $0x44] sm:$0xf] %vm936_vm2, %v3875_v7 }
 0x4a0   :  { %3889 = vst [vmem:[#allocation1 + $0x10] ss:$2 sm:$0xff] %v6999_v27  ;;  %v3931_v21 = vrot.slane %v3929_v43, 7  ;;  %v5034_v44 = vld [vmem:[#allocation3 + $0x14] sm:$0xf0]  ;;  %4397 = vmatpush.bf16.msra.mxu1 %v5383_v59 }
 0x4a1   :  { %3892 = vst [vmem:[#allocation1 + $0x11] ss:$2 sm:$0xff] %v3884_v9 }
 0x4a2   :  { %3473 = vst.msk [vmem:[#allocation3 + $0x14] sm:$0xf] %vm1040_vm6, %v3469_v10  ;;  %v3932_v49 = vor.u32 %v3931_v21, %v3928_v26  ;;  %4416 = vmatpush.bf16.msra.mxu2 %v5391_v50  ;;  %v5411_v50 = vld [vmem:[%s7212_s12] ss:$0 sm:$0xff] }
 0x4a4   :  { %4398 = vmatpush.bf16.msra.mxu1 %v5382_v53 }
 0x4a5   :  { %v3913_v61 = vld.sshfl [vmem:[#allocation1] sm:$0xff pattern:$0x75643120]  ;;  %3584 = vrot.lane.b32.xlu0 %v6888_v56, %s5413_s2  ;;  %v3933_v56 = vrot.slane %v3932_v49, 2 }
 0x4a6   :  { %3917 = vst.msk [vmem:[#allocation3 + $0x34] sm:$0xf] %vm936_vm2, %v3913_v61  ;;  %4417 = vmatpush.bf16.msra.mxu2 %v5390_v3 }
 0x4a7   :  { %3939 = vst [vmem:[#allocation1] ss:$2 sm:$0xff] %v6969_v19  ;;  %v3937_v19 = vrot.slane %v3935_v2, 7 }
 0x4a8   :  { %3941 = vst [vmem:[#allocation1 + $0x1] ss:$2 sm:$0xff] %v6973_v13  ;;  %v3895_v46 = vld.sshfl [vmem:[#allocation1 + $0x10] sm:$0xff pattern:$0x75643120] }
 0x4a9   :  { %v3524_v15 = vpop.permute.xlu1 %3523  ;;  %3899 = vrot.lane.b32.xlu1 %v3895_v46, %s5413_s2  ;;  %3909 = vst [vmem:[#allocation1 + $0x10] ss:$2 sm:$0xff] %v6977_v52  ;;  %v5350_v34 = vld [vmem:[#allocation3 + $0x10] sm:$0xf0]  ;;  %v3938_v13 = vsel %vm5621_vm8, %v3933_v56, %v3937_v19 }
 0x4aa   :  { %3912 = vst [vmem:[#allocation1 + $0x11] ss:$2 sm:$0xff] %v3668_v42  ;;  %v5033_v57 = vor.u32 %v5350_v34, %v5032_v20  ;;  %v5377_v42 = vld [vmem:[%s7210_s10 + $0x98] sm:$0xff] }
 0x4ab   :  { %3529 = vst.msk [vmem:[#allocation3 + $0x4] sm:$0xf] %vm1040_vm6, %v3524_v15  ;;  %5398 = vmatpush.bf16.msra.mxu3 %v5377_v42  ;;  %4376 = vmatpush.bf16.msra.mxu0 %v5377_v42 }
 0x4ac   :  { %4342 = vmatmul.bf16.vlgmr.msrb.gmra.mxu2 %v5033_v57 }
 0x4af   :  { %v3947_v12 = vld.sshfl [vmem:[#allocation1] sm:$0xff pattern:$0x75643120]  ;;  %5399 = vmatpush.bf16.msra.mxu3 %v5376_v51  ;;  %4377 = vmatpush.bf16.msra.mxu0 %v5376_v51 }
 0x4b0   :  { %3964 = vst [vmem:[#allocation1] ss:$2 sm:$0xff] %v6994_v63 }
 0x4b1   :  { %v3914_v25 = vld.sshfl [vmem:[#allocation1 + $0x10] sm:$0xff pattern:$0x75643120]  ;;  %3951 = vrot.lane.b32.xlu1 %v3947_v12, %s5413_s2  ;;  %3966 = vst [vmem:[#allocation1 + $0x1] ss:$2 sm:$0xff] %v6999_v27 }
 0x4b2   :  { %3918 = vst.msk [vmem:[#allocation3 + $0x48] sm:$0xf] %vm936_vm2, %v3914_v25  ;;  %v5348_v52 = vld [vmem:[#allocation3 + $0x4] sm:$0xf] }
 0x4b3   :  { %3943 = vst [vmem:[#allocation1 + $0x10] ss:$2 sm:$0xff] %v7051_v39  ;;  %v5037_v37 = vor.u32 %v5348_v52, %v5034_v44  ;;  %5400 = vmatpush.bf16.msra.mxu3 %v5375_v29  ;;  %4378 = vmatpush.bf16.msra.mxu0 %v5375_v29 }
 0x4b4   :  { %3946 = vst [vmem:[#allocation1 + $0x11] ss:$2 sm:$0xff] %v3938_v13 }
 0x4b5   :  { %4361 = vmatmul.bf16.vlgmr.msrb.gmra.mxu3 %v5037_v37 }
 0x4b7   :  { %5401 = vmatpush.bf16.msra.mxu3 %v5374_v6  ;;  %4379 = vmatpush.bf16.msra.mxu0 %v5374_v6 }
 0x4b8   :  { %v3972_v63 = vld.sshfl [vmem:[#allocation1] sm:$0xff pattern:$0x75643120] }
 0x4b9   :  { %3976 = vst.msk [vmem:[#allocation3 + $0x38] sm:$0xf] %vm936_vm2, %v3972_v63 }
 0x4bb   :  { %v3949_v48 = vld.sshfl [vmem:[#allocation1 + $0x10] sm:$0xff pattern:$0x75643120] }
 0x4bc   :  { %3953 = vrot.lane.b32.xlu2 %v3949_v48, %s5413_s2  ;;  %3968 = vst [vmem:[#allocation1 + $0x10] ss:$2 sm:$0xff] %v3884_v9  ;;  %v5048_v9 = vld [vmem:[#allocation3 + $0x10] sm:$0xf] }
 0x4bd   :  { %3971 = vst [vmem:[#allocation1 + $0x11] ss:$2 sm:$0xff] %v3963_v4  ;;  %v5049_v33 = vor.u32 %v5352_v8, %v5048_v9 }
 0x4c0   :  { %v5068_v46 = vld [vmem:[#allocation3 + $0x38] sm:$0xf] }
 0x4c4   :  { %v3973_v27 = vld.sshfl [vmem:[#allocation1 + $0x10] sm:$0xff pattern:$0x75643120] }
 0x4c5   :  { %3977 = vst.msk [vmem:[#allocation3 + $0x4c] sm:$0xf] %vm936_vm2, %v3973_v27 }
 0x4cc   :  { %v5357_v2 = vld [vmem:[#allocation3 + $0x48] sm:$0xf0] }
 0x4cd   :  { %v5069_v15 = vor.u32 %v5357_v2, %v5068_v46 }
 0x4e4   :  { %v3839_v16 = vpop.permute.xlu2 %3838 }
 0x4e5   :  { %3844 = vst.msk [vmem:[#allocation3 + $0x2c] sm:$0xf] %vm1040_vm6, %v3839_v16 }
 0x4e9   :  { %v3782_v38 = vpop.permute.xlu0 %3781 }
 0x4ea   :  { %3787 = vst.msk [vmem:[#allocation3 + $0x28] sm:$0xf] %vm1040_vm6, %v3782_v38 }
 0x4ec   :  { %v3639_v35 = vpop.permute.xlu2 %3638  ;;  %v5353_v43 = vld [vmem:[#allocation3 + $0x2c] sm:$0xf] }
 0x4ed   :  { %3643 = vst.msk [vmem:[#allocation3 + $0x20] sm:$0xf] %vm1040_vm6, %v3639_v35 }
 0x4ef   :  { %v3784_v32 = vpop.permute.xlu1 %3783 }
 0x4f0   :  { %3788 = vst.msk [vmem:[#allocation3 + $0x3c] sm:$0xf] %vm1040_vm6, %v3784_v32 }
 0x4f1   :  { %v5052_v41 = vld [vmem:[#allocation3 + $0x28] sm:$0xf] }
 0x4f4   :  { %v3583_v39 = vpop.permute.xlu2 %3582  ;;  %v5042_v24 = vld [vmem:[#allocation3 + $0x1c] sm:$0xf0] }
 0x4f5   :  { %3588 = vst.msk [vmem:[#allocation3 + $0x8] sm:$0xf] %vm1040_vm6, %v3583_v39 }
 0x4f7   :  { %v3637_v58 = vpop.permute.xlu1 %3636  ;;  %v5355_v11 = vld [vmem:[#allocation3 + $0x38] sm:$0xf0] }
 0x4f8   :  { %3642 = vst.msk [vmem:[#allocation3 + $0xc] sm:$0xf] %vm1040_vm6, %v3637_v58  ;;  %v5053_v1 = vor.u32 %v5355_v11, %v5052_v41 }
 0x4fa   :  { %4347 = vmatmul.bf16.gmra.mxu2 %v5053_v1 }
 0x4fc   :  { %v5040_v49 = vld [vmem:[#allocation3 + $0x8] sm:$0xf] }
 0x4ff   :  { %v5349_v22 = vld [vmem:[#allocation3 + $0xc] sm:$0xf] }
 0x500   :  { %v5045_v7 = vor.u32 %v5349_v22, %v5042_v24 }
 0x502   :  { %4399 = vmatmul.bf16.vlgmr.msra.gmra.mxu1 %v5045_v7 }
 0x503   :  { %v3841_v10 = vpop.permute.xlu0 %3840 }
 0x504   :  { %3845 = vst.msk [vmem:[#allocation3 + $0x40] sm:$0xf] %vm1040_vm6, %v3841_v10 }
 0x50a   :  { %5214 = vmatmul.msk.bf16.vlgmr.msra.gmra.mxu2 %vm1905_vm7, %v5049_v33 }
 0x50b   :  { %v5054_v17 = vld [vmem:[#allocation3 + $0x3c] sm:$0xf0] }
 0x50c   :  { %v5057_v14 = vor.u32 %v5353_v43, %v5054_v17 }
 0x50e   :  { %4366 = vmatmul.bf16.gmra.mxu3 %v5057_v14 }
 0x50f   :  { %v3898_v23 = vpop.permute.xlu0 %3897 }
 0x510   :  { %3903 = vst.msk [vmem:[#allocation3 + $0x30] sm:$0xf] %vm1040_vm6, %v3898_v23 }
 0x516   :  { %v3954_v26 = vpop.permute.xlu2 %3953 }
 0x517   :  { %3958 = vst.msk [vmem:[#allocation3 + $0x48] sm:$0xf] %vm1040_vm6, %v3954_v26  ;;  %v3585_v21 = vpop.permute.xlu0 %3584  ;;  %v5060_v56 = vld [vmem:[#allocation3 + $0x30] sm:$0xf] }
 0x518   :  { %3589 = vst.msk [vmem:[#allocation3 + $0x1c] sm:$0xf] %vm1040_vm6, %v3585_v21 }
 0x51a   :  { %5215 = vmatmul.msk.bf16.gmra.mxu2 %vm1905_vm7, %v5069_v15 }
 0x51b   :  { %v3900_v61 = vpop.permute.xlu1 %3899 }
 0x51c   :  { %3904 = vst.msk [vmem:[#allocation3 + $0x44] sm:$0xf] %vm1040_vm6, %v3900_v61 }
 0x51e   :  { %v5062_v25 = vld [vmem:[#allocation3 + $0x44] sm:$0xf0] }
 0x51f   :  { %v5351_v20 = vld [vmem:[#allocation3 + $0x18] sm:$0xf0] }
 0x520   :  { %v5041_v34 = vor.u32 %v5351_v20, %v5040_v49 }
 0x522   :  { %4380 = vmatmul.bf16.vlgmr.msra.gmra.mxu0 %v5041_v34 }
 0x523   :  { %v3952_v57 = vpop.permute.xlu1 %3951  ;;  %v5356_v19 = vld [vmem:[#allocation3 + $0x40] sm:$0xf0] }
 0x524   :  { %3957 = vst.msk [vmem:[#allocation3 + $0x34] sm:$0xf] %vm1040_vm6, %v3952_v57  ;;  %v5061_v12 = vor.u32 %v5356_v19, %v5060_v56 }
 0x526   :  { %4385 = vmatmul.bf16.vlgmr.msra.gmra.mxu3 %v5061_v12 }
 0x52b   :  { %v5354_v13 = vld [vmem:[#allocation3 + $0x34] sm:$0xf] }
 0x52c   :  { %v5065_v52 = vor.u32 %v5354_v13, %v5062_v25 }
 0x52e   :  { %4404 = vmatmul.bf16.gmra.mxu1 %v5065_v52 }
 0x52f   :  { %v4343_v44 = vpop.f32.mrf.mxu2 }
 0x537   :  { %v4345_v37 = vpop.f32.mrf.mxu2 }
 0x538   :  { %v4362_v31 = vpop.f32.mrf.mxu3 }
 0x539   :  { %v4363_v28 = vadd.f32 %v4362_v31, %v4343_v44 }
 0x540   :  { %v4364_v4 = vpop.f32.mrf.mxu3 }
 0x541   :  { %v4365_v0 = vadd.f32 %v4364_v4, %v4345_v37 }
 0x57d   :  { %v4348_v40 = vpop.f32.mrf.mxu2 }
 0x57f   :  { %v4400_v45 = vpop.f32.mrf.mxu1 }
 0x585   :  { %v4350_v63 = vpop.f32.mrf.mxu2 }
 0x587   :  { %v4402_v30 = vpop.f32.mrf.mxu1 }
 0x58d   :  { %v4419_v27 = vpop.f32.mrf.mxu2 }
 0x591   :  { %v4367_v48 = vpop.f32.mrf.mxu3 }
 0x592   :  { %v4368_v16 = vadd.f32 %v4367_v48, %v4348_v40 }
 0x595   :  { %v4421_v5 = vpop.f32.mrf.mxu2 }
 0x599   :  { %v4369_v18 = vpop.f32.mrf.mxu3 }
 0x59a   :  { %v4370_v1 = vadd.f32 %v4369_v18, %v4350_v63 }
 0x59d   :  { %v4424_v32 = vpop.f32.mrf.mxu2 }
 0x59f   :  { %v4381_v60 = vpop.f32.mrf.mxu0 }
 0x5a0   :  { %v4382_v55 = vadd.f32 %v4381_v60, %v4363_v28 }
 0x5a2   :  { %v4401_v54 = vadd.f32 %v4400_v45, %v4382_v55 }
 0x5a4   :  { %v4420_v59 = vadd.f32 %v4419_v27, %v4401_v54 }
 0x5a5   :  { %v4426_v43 = vpop.f32.mrf.mxu2 }
 0x5a6   :  { %v4433_v53 = vmul.f32 %v5410_v47, %v4420_v59 }
 0x5a7   :  { %v4383_v38 = vpop.f32.mrf.mxu0 }
 0x5a8   :  { %v4441_v62 = vadd.f32 %v5411_v50, %v4433_v53  ;;  %v4384_v36 = vadd.f32 %v4383_v38, %v4365_v0 }
 0x5a9   :  { %v4386_v3 = vpop.f32.mrf.mxu3 }
 0x5aa   :  { %v4387_v35 = vadd.f32 %v4386_v3, %v4368_v16  ;;  %v4445_v39 = vmax.f32 %v4441_v62, 0.0  ;;  %v4403_v42 = vadd.f32 %v4402_v30, %v4384_v36 }
 0x5ab   :  { %v4405_v51 = vpop.f32.mrf.mxu1 }
 0x5ac   :  { %v4406_v58 = vadd.f32 %v4405_v51, %v4387_v35  ;;  %4449 = vst [vmem:[%s7213_s13] sm:$0xff] %v4445_v39  ;;  %v4422_v41 = vadd.f32 %v4421_v5, %v4403_v42 }
 0x5ae   :  { %v4425_v11 = vadd.f32 %v4424_v32, %v4406_v58  ;;  %v4434_v29 = vmul.f32 %v5410_v47, %v4422_v41 }
 0x5b0   :  { %v4435_v6 = vmul.f32 %v5410_v47, %v4425_v11  ;;  %v4442_v22 = vadd.f32 %v5411_v50, %v4434_v29 }
 0x5b1   :  { %v4388_v24 = vpop.f32.mrf.mxu3 }
 0x5b2   :  { %v4443_v7 = vadd.f32 %v5411_v50, %v4435_v6  ;;  %v4389_v10 = vadd.f32 %v4388_v24, %v4370_v1  ;;  %v4446_v8 = vmax.f32 %v4442_v22, 0.0 }
 0x5b3   :  { %v4407_v9 = vpop.f32.mrf.mxu1 }
 0x5b4   :  { %v4447_v33 = vmax.f32 %v4443_v7, 0.0  ;;  %v4408_v23 = vadd.f32 %v4407_v9, %v4389_v10  ;;  %4450 = vst [vmem:[%s7213_s13 + $0x8] sm:$0xff] %v4446_v8 }
 0x5b6   :  { %4451 = vst [vmem:[%s7213_s13 + $0x10] sm:$0xff] %v4447_v33  ;;  %v4427_v17 = vadd.f32 %v4426_v43, %v4408_v23 }
 0x5b8   :  { %v4436_v14 = vmul.f32 %v5410_v47, %v4427_v17 }
 0x5ba   :  { %v4444_v26 = vadd.f32 %v5411_v50, %v4436_v14 }
 0x5bc   :  { %v4448_v21 = vmax.f32 %v4444_v26, 0.0 }
 0x5be   :  { %4452 = vst [vmem:[%s7213_s13 + $0x18] sm:$0xff] %v4448_v21 }

</bundles_post_ra>
